<compile_context>
chip_gen: v6e
topology: v6e:2x2x1
jax: 0.10.0
libtpu: 0.0.40
codegen_flags: <defaults>
</compile_context>

<pallas_src>
import math
import functools

import jax
import jax.numpy as jnp
from jax.experimental import pallas as pl
from jax.experimental.pallas import tpu as pltpu

# ----------------------------------------------------------------------------
# Scaled-down "base" config (real base: 7 convs of 512ch, D=768, 12 layers,
# 12 heads, ffn 3072, pos-conv k=128 g=16).
# ----------------------------------------------------------------------------
CONV_LAYERS = [(32, 10, 5), (32, 3, 2), (32, 2, 2)]   # (dim, kernel, stride)
CONV_DIM = CONV_LAYERS[-1][0]
ENC_DIM = 64
ENC_HEADS = 4
ENC_FFN = 128
ENC_LAYERS = 2
POS_CONV_K = 4
POS_CONV_GROUPS = 2
LN_EPS = 1e-5

# float32 at toy scale; at real model scale switch weights/activations to
# bfloat16 (keep preferred_element_type=f32) for 2x MXU throughput and half
# the VMEM footprint (v7x only has 64 MiB).  TODO(synk): bf16 + flash-style T
# tiling + lax.fori_loop over heads for real-scale VMEM budgets.
MATMUL_DTYPE = jnp.float32

_GELU_C = math.sqrt(2.0 / math.pi)


# ----------------------------------------------------------------------------
# In-kernel math helpers
# ----------------------------------------------------------------------------
def _gelu(x):
    # tanh-approximate GELU: jnp.tanh lowers to the EUP (free slot vs VALU);
    # deviates from torch's exact-erf GELU by <~1e-3 absolute.
    return 0.5 * x * (1.0 + jnp.tanh(_GELU_C * (x + 0.044715 * x * x * x)))


def _mm(a, b):
    """2-D matmul on the MXU, f32 accumulation."""
    return jnp.dot(a.astype(MATMUL_DTYPE), b.astype(MATMUL_DTYPE),
                   preferred_element_type=jnp.float32)


def _mm_tb(a, b):
    """a @ b.T (contract last dims), f32 accumulation."""
    return jax.lax.dot_general(a.astype(MATMUL_DTYPE), b.astype(MATMUL_DTYPE),
                               (((1,), (1,)), ((), ())),
                               preferred_element_type=jnp.float32)


def _layer_norm(x, g, b, eps=LN_EPS):
    mu = jnp.mean(x, axis=-1, keepdims=True)
    var = jnp.mean(jnp.square(x - mu), axis=-1, keepdims=True)
    return (x - mu) * jax.lax.rsqrt(var + eps) * g + b


# ----------------------------------------------------------------------------
# Kernel 1: whole feature extractor + feature LayerNorm + post_extract_proj
# (one batch sample per grid step; all intermediates stay in VMEM)
# ----------------------------------------------------------------------------
def _feature_kernel(c_ref, w0_ref, gng_ref, gnb_ref, w1_ref, w2_ref,
                    lng_ref, lnb_ref, pw_ref, pb_ref, o_ref,
                    h0_scr, h1_scr, *, to0, to1, to2, taps0, k1, s1, k2, s2):
    # conv0: input comes as non-overlapping (T//s0, s0) chunks; a window is
    # taps0 consecutive chunks lane-concatenated -> (to0, k0) patch matrix.
    chunks = c_ref[0].astype(jnp.float32)                    # (to0+taps0-1, s0)
    p0 = jnp.concatenate([chunks[i:i + to0, :] for i in range(taps0)], axis=1)
    h0 = _mm(p0, w0_ref[...])                                # (to0, C), bias=False
    # GroupNorm(C, C) == per-channel normalization over time (per sample)
    mu = jnp.mean(h0, axis=0, keepdims=True)
    var = jnp.mean(jnp.square(h0 - mu), axis=0, keepdims=True)
    h0 = (h0 - mu) * jax.lax.rsqrt(var + LN_EPS) * gng_ref[...] + gnb_ref[...]
    h0_scr[...] = _gelu(h0)

    # conv1 (k1, stride s1): strided in-VMEM reads replace the XLA im2col glue.
    acc1 = jnp.zeros((to1, h0_scr.shape[1]), jnp.float32)
    for j in range(k1):                                       # static taps
        acc1 = acc1 + _mm(h0_scr[pl.ds(j, to1, stride=s1), :], w1_ref[j])
    h1_scr[...] = _gelu(acc1)

    # conv2 (k2, stride s2)
    acc2 = jnp.zeros((to2, h1_scr.shape[1]), jnp.float32)
    for j in range(k2):
        acc2 = acc2 + _mm(h1_scr[pl.ds(j, to2, stride=s2), :], w2_ref[j])
    h2 = _gelu(acc2)

    # feature-extractor LayerNorm + post_extract_proj epilogue
    h2 = _layer_norm(h2, lng_ref[...], lnb_ref[...])
    o_ref[0] = (_mm(h2, pw_ref[...]) + pb_ref[...]).astype(o_ref.dtype)


def feature_extractor(fe, wav):
    """wav: (B, T) -> (B, T', ENC_DIM) in a single fused pallas_call."""
    B, T = wav.shape
    (c0, k0, s0), (c1, k1, s1), (c2, k2, s2) = CONV_LAYERS
    to0 = (T - k0) // s0 + 1
    to1 = (to0 - k1) // s1 + 1
    to2 = (to1 - k2) // s2 + 1
    assert k0 % s0 == 0, "conv0 in-kernel im2col assumes k0 % s0 == 0"
    taps0 = k0 // s0
    nch = to0 + taps0 - 1
    # Pure reshape of the raw waveform (no patch inflation, no extra HBM bytes).
    chunks = wav[:, :nch * s0].reshape(B, nch, s0)

    kernel = functools.partial(_feature_kernel, to0=to0, to1=to1, to2=to2,
                               taps0=taps0, k1=k1, s1=s1, k2=k2, s2=s2)
    return pl.pallas_call(
        kernel,
        grid=(B,),
        out_shape=jax.ShapeDtypeStruct((B, to2, ENC_DIM), wav.dtype),
        in_specs=[
            pl.BlockSpec((1, nch, s0), lambda b: (b, 0, 0)),
            pl.BlockSpec((k0, c0), lambda b: (0, 0)),
            pl.BlockSpec((1, c0), lambda b: (0, 0)),
            pl.BlockSpec((1, c0), lambda b: (0, 0)),
            pl.BlockSpec((k1, c0, c1), lambda b: (0, 0, 0)),
            pl.BlockSpec((k2, c1, c2), lambda b: (0, 0, 0)),
            pl.BlockSpec((1, c2), lambda b: (0, 0)),
            pl.BlockSpec((1, c2), lambda b: (0, 0)),
            pl.BlockSpec((c2, ENC_DIM), lambda b: (0, 0)),
            pl.BlockSpec((1, ENC_DIM), lambda b: (0, 0)),
        ],
        out_specs=pl.BlockSpec((1, to2, ENC_DIM), lambda b: (b, 0, 0)),
        scratch_shapes=[pltpu.VMEM((to0, c0), jnp.float32),
                        pltpu.VMEM((to1, c1), jnp.float32)],
        compiler_params=pltpu.CompilerParams(dimension_semantics=("parallel",)),
    )(chunks, fe["w0"], fe["gn_g"], fe["gn_b"], fe["w1"], fe["w2"],
      fe["ln_g"], fe["ln_b"], fe["proj_w"], fe["proj_b"])


# ----------------------------------------------------------------------------
# Kernel 2: positional conv + residual + LayerNorm + ALL transformer layers
# (one batch sample per grid step; x stays resident in VMEM across layers)
# ----------------------------------------------------------------------------
def _encoder_kernel(xp_ref, pw_ref, pb_ref, elng_ref, elnb_ref,
                    wqkv_ref, bqkv_ref, wo_ref, bo_ref,
                    ln1g_ref, ln1b_ref, fc1w_ref, fc1b_ref,
                    fc2w_ref, fc2b_ref, ln2g_ref, ln2b_ref,
                    o_ref, *, k, groups, pad, t_out, heads, n_layers):
    xp = xp_ref[0].astype(jnp.float32)                       # (Tp, D), padded
    D = xp.shape[1]
    cpg = D // groups
    dh = D // heads

    # Grouped positional conv: k taps x g groups of lane-block matmuls
    # (no block-diagonal zero padding -> no wasted MXU flops, grouped weights
    #  stay small at real scale).  SamePad trim handled by computing only
    #  t_out outputs.
    pw = pw_ref[...]                                         # (k, g, cpg, cpg)
    cols = []
    for gi in range(groups):                                 # static groups
        accg = jnp.zeros((t_out, cpg), jnp.float32)
        for j in range(k):                                   # static taps
            accg = accg + _mm(xp[j:j + t_out, gi * cpg:(gi + 1) * cpg], pw[j, gi])
        cols.append(accg)
    pos = _gelu(jnp.concatenate(cols, axis=1) + pb_ref[...])
    x = xp[pad:pad + t_out, :] + pos                         # x + pos_conv(x)
    x = _layer_norm(x, elng_ref[...], elnb_ref[...])         # encoder LayerNorm

    # Post-LN transformer layers, weights stacked on leading L axis.
    for l in range(n_layers):                                # static unrolled layers
        qkv = _mm(x, wqkv_ref[l]) + bqkv_ref[l]              # (T, 3D); q-scale folded
        heads_out = []
        for h in range(heads):                               # static unrolled heads
            qh = qkv[:, h * dh:(h + 1) * dh]
            kh = qkv[:, D + h * dh:D + (h + 1) * dh]
            vh = qkv[:, 2 * D + h * dh:2 * D + (h + 1) * dh]
            s = _mm_tb(qh, kh)                               # (T, T)
            s = s - jnp.max(s, axis=-1, keepdims=True)
            p = jnp.exp(s)
            p = p * pl.reciprocal(jnp.sum(p, axis=-1, keepdims=True), approx=True)
            heads_out.append(_mm(p, vh))                     # (T, dh)
        # single out-projection matmul on the lane-concatenated heads
        attn = _mm(jnp.concatenate(heads_out, axis=1), wo_ref[l]) + bo_ref[l]
        x1 = _layer_norm(x + attn, ln1g_ref[l], ln1b_ref[l])
        f = _gelu(_mm(x1, fc1w_ref[l]) + fc1b_ref[l])
        f = _mm(f, fc2w_ref[l]) + fc2b_ref[l]
        x = _layer_norm(x1 + f, ln2g_ref[l], ln2b_ref[l])

    o_ref[0] = x.astype(o_ref.dtype)


def encoder(enc, x):
    """x: (B, T, D) -> (B, T, D); pos-conv + both transformer layers fused.
    Grid over batch is marked 'parallel' so v7x's 2 TensorCores split it; on
    single-TC v5e/v6e it is a cheap 2-step loop (only 2 pallas steps total)."""
    B, T, D = x.shape
    k = POS_CONV_K
    pad = k // 2
    g = POS_CONV_GROUPS
    cpg = D // g
    L = enc["wqkv"].shape[0]
    F = enc["fc1_w"].shape[2]
    xpad = jnp.pad(x, ((0, 0), (pad, pad), (0, 0)))
    Tp = T + 2 * pad

    kernel = functools.partial(_encoder_kernel, k=k, groups=g, pad=pad,
                               t_out=T, heads=ENC_HEADS, n_layers=L)
    return pl.pallas_call(
        kernel,
        grid=(B,),
        out_shape=jax.ShapeDtypeStruct((B, T, D), x.dtype),
        in_specs=[
            pl.BlockSpec((1, Tp, D), lambda b: (b, 0, 0)),
            pl.BlockSpec((k, g, cpg, cpg), lambda b: (0, 0, 0, 0)),
            pl.BlockSpec((1, D), lambda b: (0, 0)),
            pl.BlockSpec((1, D), lambda b: (0, 0)),
            pl.BlockSpec((1, D), lambda b: (0, 0)),
            pl.BlockSpec((L, D, 3 * D), lambda b: (0, 0, 0)),
            pl.BlockSpec((L, 1, 3 * D), lambda b: (0, 0, 0)),
            pl.BlockSpec((L, D, D), lambda b: (0, 0, 0)),
            pl.BlockSpec((L, 1, D), lambda b: (0, 0, 0)),
            pl.BlockSpec((L, 1, D), lambda b: (0, 0, 0)),
            pl.BlockSpec((L, 1, D), lambda b: (0, 0, 0)),
            pl.BlockSpec((L, D, F), lambda b: (0, 0, 0)),
            pl.BlockSpec((L, 1, F), lambda b: (0, 0, 0)),
            pl.BlockSpec((L, F, D), lambda b: (0, 0, 0)),
            pl.BlockSpec((L, 1, D), lambda b: (0, 0, 0)),
            pl.BlockSpec((L, 1, D), lambda b: (0, 0, 0)),
            pl.BlockSpec((L, 1, D), lambda b: (0, 0, 0)),
        ],
        out_specs=pl.BlockSpec((1, T, D), lambda b: (b, 0, 0)),
        compiler_params=pltpu.CompilerParams(dimension_semantics=("parallel",)),
    )(xpad, enc["pos_w"], enc["pos_b"], enc["ln_g"], enc["ln_b"],
      enc["wqkv"], enc["bqkv"], enc["wo"], enc["bo"],
      enc["ln1_g"], enc["ln1_b"], enc["fc1_w"], enc["fc1_b"],
      enc["fc2_w"], enc["fc2_b"], enc["ln2_g"], enc["ln2_b"])


# ----------------------------------------------------------------------------
# One-time parameter repackaging (outside the jitted hot path)
# ----------------------------------------------------------------------------
def prepare_params(p):
    C = CONV_DIM
    k0 = CONV_LAYERS[0][1]
    fe = dict(
        w0=p["conv_w"][0].reshape(C, k0).T,                  # (k0, C), cin=1
        w1=jnp.transpose(p["conv_w"][1], (2, 1, 0)),         # (k1, Cin, Cout)
        w2=jnp.transpose(p["conv_w"][2], (2, 1, 0)),         # (k2, Cin, Cout)
        gn_g=p["gn_g"].reshape(1, C), gn_b=p["gn_b"].reshape(1, C),
        ln_g=p["fe_ln_g"].reshape(1, C), ln_b=p["fe_ln_b"].reshape(1, C),
        proj_w=p["proj_w"], proj_b=p["proj_b"].reshape(1, ENC_DIM))

    D = ENC_DIM
    g = POS_CONV_GROUPS
    cpg = D // g
    k = POS_CONV_K
    # grouped pos-conv weights (weight_norm folded into its effective weight):
    # (D, cpg, k) -> (k, g, cpg_in, cpg_out)   [no dense block-diagonal form]
    pos_w = p["pos_w"].reshape(g, cpg, cpg, k).transpose(3, 0, 2, 1)

    scale = (D // ENC_HEADS) ** -0.5                         # fairseq q-scale
    wqkv = jnp.stack([jnp.concatenate([lp["wq"] * scale, lp["wk"], lp["wv"]], axis=1)
                      for lp in p["layers"]])                # (L, D, 3D)
    bqkv = jnp.stack([jnp.concatenate([lp["bq"] * scale, lp["bk"], lp["bv"]]
                                      ).reshape(1, 3 * D)
                      for lp in p["layers"]])                # (L, 1, 3D)
    stack = lambda name: jnp.stack([lp[name] for lp in p["layers"]])
    stackr = lambda name: jnp.stack([lp[name].reshape(1, -1) for lp in p["layers"]])
    enc = dict(pos_w=pos_w, pos_b=p["pos_b"].reshape(1, D),
               ln_g=p["enc_ln_g"].reshape(1, D), ln_b=p["enc_ln_b"].reshape(1, D),
               wqkv=wqkv, bqkv=bqkv,
               wo=stack("wo"), bo=stackr("bo"),
               ln1_g=stackr("ln1_g"), ln1_b=stackr("ln1_b"),
               fc1_w=stack("fc1_w"), fc1_b=stackr("fc1_b"),
               fc2_w=stack("fc2_w"), fc2_b=stackr("fc2_b"),
               ln2_g=stackr("ln2_g"), ln2_b=stackr("ln2_b"))
    return dict(fe=fe, enc=enc)


# ----------------------------------------------------------------------------
# Forward
# ----------------------------------------------------------------------------
def wav2vec2_forward(pp, x):
    """x: (B, 1, T) waveform -> contextual features (B, T', ENC_DIM)
    (== self.model(x.squeeze(1), features_only=True)['x'])."""
    x = jnp.squeeze(x, axis=1)                               # x.squeeze(1)
    feats = feature_extractor(pp["fe"], x)                   # (B, T', ENC_DIM)
    # TODO(synk): fairseq's forward(mask=True) applies stochastic SpecAugment
    # masking and dropout in training mode; deterministic eval semantics here.
    return encoder(pp["enc"], feats)


def _out_len(t):
    for (_, k, s) in CONV_LAYERS:
        t = (t - k) // s + 1
    return t


# ----------------------------------------------------------------------------
# Deterministic synthetic parameters (shapes follow the architecture)
# ----------------------------------------------------------------------------
def init_params(key):
    keys = iter(jax.random.split(key, 256))

    def nrm(shape, scale):
        return scale * jax.random.normal(next(keys), shape, jnp.float32)

    p = {}
    convs = []
    in_c = 1
    for (c, k, s) in CONV_LAYERS:
        convs.append(nrm((c, in_c, k), 1.0 / math.sqrt(in_c * k)))
        in_c = c
    p["conv_w"] = convs
    p["gn_g"] = jnp.ones((CONV_DIM,), jnp.float32)
    p["gn_b"] = jnp.zeros((CONV_DIM,), jnp.float32)
    p["fe_ln_g"] = jnp.ones((CONV_DIM,), jnp.float32)
    p["fe_ln_b"] = jnp.zeros((CONV_DIM,), jnp.float32)
    p["proj_w"] = nrm((CONV_DIM, ENC_DIM), 1.0 / math.sqrt(CONV_DIM))
    p["proj_b"] = nrm((ENC_DIM,), 0.02)
    p["pos_w"] = nrm((ENC_DIM, ENC_DIM // POS_CONV_GROUPS, POS_CONV_K),
                     1.0 / math.sqrt(POS_CONV_K * ENC_DIM // POS_CONV_GROUPS))
    p["pos_b"] = nrm((ENC_DIM,), 0.02)
    p["enc_ln_g"] = jnp.ones((ENC_DIM,), jnp.float32)
    p["enc_ln_b"] = jnp.zeros((ENC_DIM,), jnp.float32)

    layers = []
    sd = 1.0 / math.sqrt(ENC_DIM)
    sf = 1.0 / math.sqrt(ENC_FFN)
    for _ in range(ENC_LAYERS):
        layers.append({
            "wq": nrm((ENC_DIM, ENC_DIM), sd), "bq": nrm((ENC_DIM,), 0.02),
            "wk": nrm((ENC_DIM, ENC_DIM), sd), "bk": nrm((ENC_DIM,), 0.02),
            "wv": nrm((ENC_DIM, ENC_DIM), sd), "bv": nrm((ENC_DIM,), 0.02),
            "wo": nrm((ENC_DIM, ENC_DIM), sd), "bo": nrm((ENC_DIM,), 0.02),
            "ln1_g": jnp.ones((ENC_DIM,), jnp.float32),
            "ln1_b": jnp.zeros((ENC_DIM,), jnp.float32),
            "fc1_w": nrm((ENC_DIM, ENC_FFN), sd), "fc1_b": nrm((ENC_FFN,), 0.02),
            "fc2_w": nrm((ENC_FFN, ENC_DIM), sf), "fc2_b": nrm((ENC_DIM,), 0.02),
            "ln2_g": jnp.ones((ENC_DIM,), jnp.float32),
            "ln2_b": jnp.zeros((ENC_DIM,), jnp.float32),
        })
    p["layers"] = layers
    return p


if __name__ == "__main__":
    key = jax.random.PRNGKey(0)
    pkey, xkey = jax.random.split(key)
    params = init_params(pkey)
    pp = prepare_params(params)        # one-time weight repackaging (not in hot path)

    B, T = 2, 400
    x = jax.random.normal(xkey, (B, 1, T), jnp.float32)   # (B, 1, T) raw waveform

    fwd = jax.jit(wav2vec2_forward)
    out = jax.block_until_ready(fwd(pp, x))

    expected_t = _out_len(T)
    assert out.shape == (B, expected_t, ENC_DIM), out.shape
    assert bool(jnp.all(jnp.isfinite(out)))
    print("KERNEL_OK")
</pallas_src>

<mosaic_0001>
module attributes {stable_mosaic.version = 11 : i64} {
  func.func @_feature_kernel(%arg0: i32, %arg1: memref<1x80x5xf32, #tpu.memory_space<vmem>>, %arg2: memref<10x32xf32, #tpu.memory_space<vmem>>, %arg3: memref<1x32xf32, #tpu.memory_space<vmem>>, %arg4: memref<1x32xf32, #tpu.memory_space<vmem>>, %arg5: memref<3x32x32xf32, #tpu.memory_space<vmem>>, %arg6: memref<2x32x32xf32, #tpu.memory_space<vmem>>, %arg7: memref<1x32xf32, #tpu.memory_space<vmem>>, %arg8: memref<1x32xf32, #tpu.memory_space<vmem>>, %arg9: memref<32x64xf32, #tpu.memory_space<vmem>>, %arg10: memref<1x64xf32, #tpu.memory_space<vmem>>, %arg11: memref<1x19x64xf32, #tpu.memory_space<vmem>>, %arg12: memref<79x32xf32, #tpu.memory_space<vmem>>, %arg13: memref<39x32xf32, #tpu.memory_space<vmem>>) attributes {dimension_semantics = [#tpu.dimension_semantics<parallel>], iteration_bounds = array<i64: 2>, scalar_prefetch = 0 : i64, scratch_operands = 2 : i64, tpu.core_type = #tpu.core_type<tc>, window_params = [{transform_indices = @transform_0, window_bounds = array<i64: 1, 80, 5>}, {pipeline_mode = #tpu.pipeline_mode<synchronous>, transform_indices = @transform_1, window_bounds = array<i64: 10, 32>}, {pipeline_mode = #tpu.pipeline_mode<synchronous>, transform_indices = @transform_2, window_bounds = array<i64: 1, 32>}, {pipeline_mode = #tpu.pipeline_mode<synchronous>, transform_indices = @transform_3, window_bounds = array<i64: 1, 32>}, {pipeline_mode = #tpu.pipeline_mode<synchronous>, transform_indices = @transform_4, window_bounds = array<i64: 3, 32, 32>}, {pipeline_mode = #tpu.pipeline_mode<synchronous>, transform_indices = @transform_5, window_bounds = array<i64: 2, 32, 32>}, {pipeline_mode = #tpu.pipeline_mode<synchronous>, transform_indices = @transform_6, window_bounds = array<i64: 1, 32>}, {pipeline_mode = #tpu.pipeline_mode<synchronous>, transform_indices = @transform_7, window_bounds = array<i64: 1, 32>}, {pipeline_mode = #tpu.pipeline_mode<synchronous>, transform_indices = @transform_8, window_bounds = array<i64: 32, 64>}, {pipeline_mode = #tpu.pipeline_mode<synchronous>, transform_indices = @transform_9, window_bounds = array<i64: 1, 64>}, {transform_indices = @transform_10, window_bounds = array<i64: 1, 19, 64>}]} {
    %c0 = arith.constant 0 : index
    %c0_0 = arith.constant 0 : index
    %c0_1 = arith.constant 0 : index
    %0 = vector.load %arg1[%c0, %c0_0, %c0_1] : memref<1x80x5xf32, #tpu.memory_space<vmem>>, vector<1x80x5xf32>
    %1 = vector.shape_cast %0 : vector<1x80x5xf32> to vector<80x5xf32>
    %2 = vector.extract_strided_slice %1 {offsets = [0, 0], sizes = [79, 5], strides = [1, 1]} : vector<80x5xf32> to vector<79x5xf32>
    %3 = vector.extract_strided_slice %1 {offsets = [1, 0], sizes = [79, 5], strides = [1, 1]} : vector<80x5xf32> to vector<79x5xf32>
    %4 = tpu.concatenate %2, %3 in 1 : vector<79x5xf32>, vector<79x5xf32> -> vector<79x10xf32>
    %c0_2 = arith.constant 0 : index
    %c0_3 = arith.constant 0 : index
    %5 = vector.load %arg2[%c0_2, %c0_3] : memref<10x32xf32, #tpu.memory_space<vmem>>, vector<10x32xf32>
    %cst = arith.constant dense<0.000000e+00> : vector<79x32xf32>
    %6 = tpu.matmul %4, %5, %cst {dimension_numbers = #tpu.dot_dimension_numbers<[1], [0], [0], [1], [0, 0, 1, 1], [], []>} : vector<79x10xf32>, vector<10x32xf32>, vector<79x32xf32> -> vector<79x32xf32>
    %cst_4 = arith.constant dense<0.000000e+00> : vector<32xf32>
    %7 = vector.multi_reduction <add>, %6, %cst_4 [0] : vector<79x32xf32> to vector<32xf32>
    %8 = vector.shape_cast %7 : vector<32xf32> to vector<1x32xf32>
    %cst_5 = arith.constant 7.900000e+01 : f32
    %9 = vector.broadcast %cst_5 : f32 to vector<1x32xf32>
    %10 = arith.divf %8, %9 : vector<1x32xf32>
    %11 = vector.broadcast %10 : vector<1x32xf32> to vector<79x32xf32>
    %12 = arith.subf %6, %11 : vector<79x32xf32>
    %13 = arith.mulf %12, %12 : vector<79x32xf32>
    %cst_6 = arith.constant dense<0.000000e+00> : vector<32xf32>
    %14 = vector.multi_reduction <add>, %13, %cst_6 [0] : vector<79x32xf32> to vector<32xf32>
    %15 = vector.shape_cast %14 : vector<32xf32> to vector<1x32xf32>
    %cst_7 = arith.constant 7.900000e+01 : f32
    %16 = vector.broadcast %cst_7 : f32 to vector<1x32xf32>
    %17 = arith.divf %15, %16 : vector<1x32xf32>
    %18 = vector.broadcast %10 : vector<1x32xf32> to vector<79x32xf32>
    %19 = arith.subf %6, %18 : vector<79x32xf32>
    %cst_8 = arith.constant 9.99999974E-6 : f32
    %20 = vector.broadcast %cst_8 : f32 to vector<1x32xf32>
    %21 = arith.addf %17, %20 : vector<1x32xf32>
    %22 = math.rsqrt %21 : vector<1x32xf32>
    %23 = vector.broadcast %22 : vector<1x32xf32> to vector<79x32xf32>
    %24 = arith.mulf %19, %23 : vector<79x32xf32>
    %c0_9 = arith.constant 0 : index
    %c0_10 = arith.constant 0 : index
    %25 = vector.load %arg3[%c0_9, %c0_10] : memref<1x32xf32, #tpu.memory_space<vmem>>, vector<1x32xf32>
    %26 = vector.broadcast %25 : vector<1x32xf32> to vector<79x32xf32>
    %27 = arith.mulf %24, %26 : vector<79x32xf32>
    %c0_11 = arith.constant 0 : index
    %c0_12 = arith.constant 0 : index
    %28 = vector.load %arg4[%c0_11, %c0_12] : memref<1x32xf32, #tpu.memory_space<vmem>>, vector<1x32xf32>
    %29 = vector.broadcast %28 : vector<1x32xf32> to vector<79x32xf32>
    %30 = arith.addf %27, %29 : vector<79x32xf32>
    %cst_13 = arith.constant 5.000000e-01 : f32
    %31 = vector.broadcast %cst_13 : f32 to vector<79x32xf32>
    %32 = arith.mulf %31, %30 : vector<79x32xf32>
    %cst_14 = arith.constant 4.471500e-02 : f32
    %33 = vector.broadcast %cst_14 : f32 to vector<79x32xf32>
    %34 = arith.mulf %33, %30 : vector<79x32xf32>
    %35 = arith.mulf %34, %30 : vector<79x32xf32>
    %36 = arith.mulf %35, %30 : vector<79x32xf32>
    %37 = arith.addf %30, %36 : vector<79x32xf32>
    %cst_15 = arith.constant 0.797884583 : f32
    %38 = vector.broadcast %cst_15 : f32 to vector<79x32xf32>
    %39 = arith.mulf %38, %37 : vector<79x32xf32>
    %40 = math.tanh %39 : vector<79x32xf32>
    %cst_16 = arith.constant 1.000000e+00 : f32
    %41 = vector.broadcast %cst_16 : f32 to vector<79x32xf32>
    %42 = arith.addf %41, %40 : vector<79x32xf32>
    %43 = arith.mulf %32, %42 : vector<79x32xf32>
    %c0_17 = arith.constant 0 : index
    %c0_18 = arith.constant 0 : index
    %44 = vector.load %arg12[%c0_17, %c0_18] : memref<79x32xf32, #tpu.memory_space<vmem>>, vector<79x32xf32>
    tpu.vector_store %arg12[%c0_17, %c0_18], %43 {strides = array<i32>} : memref<79x32xf32, #tpu.memory_space<vmem>>, vector<79x32xf32>,
    %cst_19 = arith.constant 0.000000e+00 : f32
    %45 = vector.broadcast %cst_19 : f32 to vector<39x32xf32>
    %c0_20 = arith.constant 0 : index
    %c0_21 = arith.constant 0 : index
    %46 = tpu.strided_load %arg12[%c0_20, %c0_21] {strides = array<i32: 2, 1>} : memref<79x32xf32, #tpu.memory_space<vmem>>, vector<39x32xf32>
    %c0_22 = arith.constant 0 : index
    %c0_23 = arith.constant 0 : index
    %c0_24 = arith.constant 0 : index
    %47 = vector.load %arg5[%c0_22, %c0_23, %c0_24] : memref<3x32x32xf32, #tpu.memory_space<vmem>>, vector<1x32x32xf32>
    %48 = vector.shape_cast %47 : vector<1x32x32xf32> to vector<32x32xf32>
    %cst_25 = arith.constant dense<0.000000e+00> : vector<39x32xf32>
    %49 = tpu.matmul %46, %48, %cst_25 {dimension_numbers = #tpu.dot_dimension_numbers<[1], [0], [0], [1], [0, 0, 1, 1], [], []>} : vector<39x32xf32>, vector<32x32xf32>, vector<39x32xf32> -> vector<39x32xf32>
    %50 = arith.addf %45, %49 : vector<39x32xf32>
    %c1 = arith.constant 1 : index
    %c0_26 = arith.constant 0 : index
    %51 = tpu.strided_load %arg12[%c1, %c0_26] {strides = array<i32: 2, 1>} : memref<79x32xf32, #tpu.memory_space<vmem>>, vector<39x32xf32>
    %c1_27 = arith.constant 1 : index
    %c0_28 = arith.constant 0 : index
    %c0_29 = arith.constant 0 : index
    %52 = vector.load %arg5[%c1_27, %c0_28, %c0_29] : memref<3x32x32xf32, #tpu.memory_space<vmem>>, vector<1x32x32xf32>
    %53 = vector.shape_cast %52 : vector<1x32x32xf32> to vector<32x32xf32>
    %cst_30 = arith.constant dense<0.000000e+00> : vector<39x32xf32>
    %54 = tpu.matmul %51, %53, %cst_30 {dimension_numbers = #tpu.dot_dimension_numbers<[1], [0], [0], [1], [0, 0, 1, 1], [], []>} : vector<39x32xf32>, vector<32x32xf32>, vector<39x32xf32> -> vector<39x32xf32>
    %55 = arith.addf %50, %54 : vector<39x32xf32>
    %c2 = arith.constant 2 : index
    %c0_31 = arith.constant 0 : index
    %56 = tpu.strided_load %arg12[%c2, %c0_31] {strides = array<i32: 2, 1>} : memref<79x32xf32, #tpu.memory_space<vmem>>, vector<39x32xf32>
    %c2_32 = arith.constant 2 : index
    %c0_33 = arith.constant 0 : index
    %c0_34 = arith.constant 0 : index
    %57 = vector.load %arg5[%c2_32, %c0_33, %c0_34] : memref<3x32x32xf32, #tpu.memory_space<vmem>>, vector<1x32x32xf32>
    %58 = vector.shape_cast %57 : vector<1x32x32xf32> to vector<32x32xf32>
    %cst_35 = arith.constant dense<0.000000e+00> : vector<39x32xf32>
    %59 = tpu.matmul %56, %58, %cst_35 {dimension_numbers = #tpu.dot_dimension_numbers<[1], [0], [0], [1], [0, 0, 1, 1], [], []>} : vector<39x32xf32>, vector<32x32xf32>, vector<39x32xf32> -> vector<39x32xf32>
    %60 = arith.addf %55, %59 : vector<39x32xf32>
    %cst_36 = arith.constant 5.000000e-01 : f32
    %61 = vector.broadcast %cst_36 : f32 to vector<39x32xf32>
    %62 = arith.mulf %61, %60 : vector<39x32xf32>
    %cst_37 = arith.constant 4.471500e-02 : f32
    %63 = vector.broadcast %cst_37 : f32 to vector<39x32xf32>
    %64 = arith.mulf %63, %60 : vector<39x32xf32>
    %65 = arith.mulf %64, %60 : vector<39x32xf32>
    %66 = arith.mulf %65, %60 : vector<39x32xf32>
    %67 = arith.addf %60, %66 : vector<39x32xf32>
    %cst_38 = arith.constant 0.797884583 : f32
    %68 = vector.broadcast %cst_38 : f32 to vector<39x32xf32>
    %69 = arith.mulf %68, %67 : vector<39x32xf32>
    %70 = math.tanh %69 : vector<39x32xf32>
    %cst_39 = arith.constant 1.000000e+00 : f32
    %71 = vector.broadcast %cst_39 : f32 to vector<39x32xf32>
    %72 = arith.addf %71, %70 : vector<39x32xf32>
    %73 = arith.mulf %62, %72 : vector<39x32xf32>
    %c0_40 = arith.constant 0 : index
    %c0_41 = arith.constant 0 : index
    %74 = vector.load %arg13[%c0_40, %c0_41] : memref<39x32xf32, #tpu.memory_space<vmem>>, vector<39x32xf32>
    tpu.vector_store %arg13[%c0_40, %c0_41], %73 {strides = array<i32>} : memref<39x32xf32, #tpu.memory_space<vmem>>, vector<39x32xf32>,
    %cst_42 = arith.constant 0.000000e+00 : f32
    %75 = vector.broadcast %cst_42 : f32 to vector<19x32xf32>
    %c0_43 = arith.constant 0 : index
    %c0_44 = arith.constant 0 : index
    %76 = tpu.strided_load %arg13[%c0_43, %c0_44] {strides = array<i32: 2, 1>} : memref<39x32xf32, #tpu.memory_space<vmem>>, vector<19x32xf32>
    %c0_45 = arith.constant 0 : index
    %c0_46 = arith.constant 0 : index
    %c0_47 = arith.constant 0 : index
    %77 = vector.load %arg6[%c0_45, %c0_46, %c0_47] : memref<2x32x32xf32, #tpu.memory_space<vmem>>, vector<1x32x32xf32>
    %78 = vector.shape_cast %77 : vector<1x32x32xf32> to vector<32x32xf32>
    %cst_48 = arith.constant dense<0.000000e+00> : vector<19x32xf32>
    %79 = tpu.matmul %76, %78, %cst_48 {dimension_numbers = #tpu.dot_dimension_numbers<[1], [0], [0], [1], [0, 0, 1, 1], [], []>} : vector<19x32xf32>, vector<32x32xf32>, vector<19x32xf32> -> vector<19x32xf32>
    %80 = arith.addf %75, %79 : vector<19x32xf32>
    %c1_49 = arith.constant 1 : index
    %c0_50 = arith.constant 0 : index
    %81 = tpu.strided_load %arg13[%c1_49, %c0_50] {strides = array<i32: 2, 1>} : memref<39x32xf32, #tpu.memory_space<vmem>>, vector<19x32xf32>
    %c1_51 = arith.constant 1 : index
    %c0_52 = arith.constant 0 : index
    %c0_53 = arith.constant 0 : index
    %82 = vector.load %arg6[%c1_51, %c0_52, %c0_53] : memref<2x32x32xf32, #tpu.memory_space<vmem>>, vector<1x32x32xf32>
    %83 = vector.shape_cast %82 : vector<1x32x32xf32> to vector<32x32xf32>
    %cst_54 = arith.constant dense<0.000000e+00> : vector<19x32xf32>
    %84 = tpu.matmul %81, %83, %cst_54 {dimension_numbers = #tpu.dot_dimension_numbers<[1], [0], [0], [1], [0, 0, 1, 1], [], []>} : vector<19x32xf32>, vector<32x32xf32>, vector<19x32xf32> -> vector<19x32xf32>
    %85 = arith.addf %80, %84 : vector<19x32xf32>
    %cst_55 = arith.constant 5.000000e-01 : f32
    %86 = vector.broadcast %cst_55 : f32 to vector<19x32xf32>
    %87 = arith.mulf %86, %85 : vector<19x32xf32>
    %cst_56 = arith.constant 4.471500e-02 : f32
    %88 = vector.broadcast %cst_56 : f32 to vector<19x32xf32>
    %89 = arith.mulf %88, %85 : vector<19x32xf32>
    %90 = arith.mulf %89, %85 : vector<19x32xf32>
    %91 = arith.mulf %90, %85 : vector<19x32xf32>
    %92 = arith.addf %85, %91 : vector<19x32xf32>
    %cst_57 = arith.constant 0.797884583 : f32
    %93 = vector.broadcast %cst_57 : f32 to vector<19x32xf32>
    %94 = arith.mulf %93, %92 : vector<19x32xf32>
    %95 = math.tanh %94 : vector<19x32xf32>
    %cst_58 = arith.constant 1.000000e+00 : f32
    %96 = vector.broadcast %cst_58 : f32 to vector<19x32xf32>
    %97 = arith.addf %96, %95 : vector<19x32xf32>
    %98 = arith.mulf %87, %97 : vector<19x32xf32>
    %c0_59 = arith.constant 0 : index
    %c0_60 = arith.constant 0 : index
    %99 = vector.load %arg7[%c0_59, %c0_60] : memref<1x32xf32, #tpu.memory_space<vmem>>, vector<1x32xf32>
    %c0_61 = arith.constant 0 : index
    %c0_62 = arith.constant 0 : index
    %100 = vector.load %arg8[%c0_61, %c0_62] : memref<1x32xf32, #tpu.memory_space<vmem>>, vector<1x32xf32>
    %cst_63 = arith.constant dense<0.000000e+00> : vector<19xf32>
    %101 = vector.multi_reduction <add>, %98, %cst_63 [1] : vector<19x32xf32> to vector<19xf32>
    %102 = vector.shape_cast %101 : vector<19xf32> to vector<19x1xf32>
    %cst_64 = arith.constant 3.200000e+01 : f32
    %103 = vector.broadcast %cst_64 : f32 to vector<19x1xf32>
    %104 = arith.divf %102, %103 : vector<19x1xf32>
    %105 = vector.broadcast %104 : vector<19x1xf32> to vector<19x32xf32>
    %106 = arith.subf %98, %105 : vector<19x32xf32>
    %107 = arith.mulf %106, %106 : vector<19x32xf32>
    %cst_65 = arith.constant dense<0.000000e+00> : vector<19xf32>
    %108 = vector.multi_reduction <add>, %107, %cst_65 [1] : vector<19x32xf32> to vector<19xf32>
    %109 = vector.shape_cast %108 : vector<19xf32> to vector<19x1xf32>
    %cst_66 = arith.constant 3.200000e+01 : f32
    %110 = vector.broadcast %cst_66 : f32 to vector<19x1xf32>
    %111 = arith.divf %109, %110 : vector<19x1xf32>
    %112 = vector.broadcast %104 : vector<19x1xf32> to vector<19x32xf32>
    %113 = arith.subf %98, %112 : vector<19x32xf32>
    %cst_67 = arith.constant 9.99999974E-6 : f32
    %114 = vector.broadcast %cst_67 : f32 to vector<19x1xf32>
    %115 = arith.addf %111, %114 : vector<19x1xf32>
    %116 = math.rsqrt %115 : vector<19x1xf32>
    %117 = vector.broadcast %116 : vector<19x1xf32> to vector<19x32xf32>
    %118 = arith.mulf %113, %117 : vector<19x32xf32>
    %119 = vector.broadcast %99 : vector<1x32xf32> to vector<19x32xf32>
    %120 = arith.mulf %118, %119 : vector<19x32xf32>
    %121 = vector.broadcast %100 : vector<1x32xf32> to vector<19x32xf32>
    %122 = arith.addf %120, %121 : vector<19x32xf32>
    %c0_68 = arith.constant 0 : index
    %c0_69 = arith.constant 0 : index
    %123 = vector.load %arg9[%c0_68, %c0_69] : memref<32x64xf32, #tpu.memory_space<vmem>>, vector<32x64xf32>
    %cst_70 = arith.constant dense<0.000000e+00> : vector<19x64xf32>
    %124 = tpu.matmul %122, %123, %cst_70 {dimension_numbers = #tpu.dot_dimension_numbers<[1], [0], [0], [1], [0, 0, 1, 1], [], []>} : vector<19x32xf32>, vector<32x64xf32>, vector<19x64xf32> -> vector<19x64xf32>
    %c0_71 = arith.constant 0 : index
    %c0_72 = arith.constant 0 : index
    %125 = vector.load %arg10[%c0_71, %c0_72] : memref<1x64xf32, #tpu.memory_space<vmem>>, vector<1x64xf32>
    %126 = vector.broadcast %125 : vector<1x64xf32> to vector<19x64xf32>
    %127 = arith.addf %124, %126 : vector<19x64xf32>
    %c0_73 = arith.constant 0 : index
    %c0_74 = arith.constant 0 : index
    %c0_75 = arith.constant 0 : index
    %128 = vector.load %arg11[%c0_73, %c0_74, %c0_75] : memref<1x19x64xf32, #tpu.memory_space<vmem>>, vector<1x19x64xf32>
    %129 = vector.shape_cast %128 : vector<1x19x64xf32> to vector<19x64xf32>
    %130 = vector.shape_cast %127 : vector<19x64xf32> to vector<1x19x64xf32>
    tpu.vector_store %arg11[%c0_73, %c0_74, %c0_75], %130 {strides = array<i32>} : memref<1x19x64xf32, #tpu.memory_space<vmem>>, vector<1x19x64xf32>,
    return
  }
  func.func @transform_0(%arg0: i32) -> (i32, i32, i32) {
    %c0_i32 = arith.constant 0 : i32
    %c0_i32_0 = arith.constant 0 : i32
    %c0_i32_1 = arith.constant 0 : i32
    return %arg0, %c0_i32, %c0_i32_0 : i32, i32, i32
  }
  func.func @transform_1(%arg0: i32) -> (i32, i32) {
    %c0_i32 = arith.constant 0 : i32
    %c0_i32_0 = arith.constant 0 : i32
    %c0_i32_1 = arith.constant 0 : i32
    return %c0_i32, %c0_i32_0 : i32, i32
  }
  func.func @transform_2(%arg0: i32) -> (i32, i32) {
    %c0_i32 = arith.constant 0 : i32
    %c0_i32_0 = arith.constant 0 : i32
    %c0_i32_1 = arith.constant 0 : i32
    return %c0_i32, %c0_i32_0 : i32, i32
  }
  func.func @transform_3(%arg0: i32) -> (i32, i32) {
    %c0_i32 = arith.constant 0 : i32
    %c0_i32_0 = arith.constant 0 : i32
    %c0_i32_1 = arith.constant 0 : i32
    return %c0_i32, %c0_i32_0 : i32, i32
  }
  func.func @transform_4(%arg0: i32) -> (i32, i32, i32) {
    %c0_i32 = arith.constant 0 : i32
    %c0_i32_0 = arith.constant 0 : i32
    %c0_i32_1 = arith.constant 0 : i32
    %c0_i32_2 = arith.constant 0 : i32
    return %c0_i32, %c0_i32_0, %c0_i32_1 : i32, i32, i32
  }
  func.func @transform_5(%arg0: i32) -> (i32, i32, i32) {
    %c0_i32 = arith.constant 0 : i32
    %c0_i32_0 = arith.constant 0 : i32
    %c0_i32_1 = arith.constant 0 : i32
    %c0_i32_2 = arith.constant 0 : i32
    return %c0_i32, %c0_i32_0, %c0_i32_1 : i32, i32, i32
  }
  func.func @transform_6(%arg0: i32) -> (i32, i32) {
    %c0_i32 = arith.constant 0 : i32
    %c0_i32_0 = arith.constant 0 : i32
    %c0_i32_1 = arith.constant 0 : i32
    return %c0_i32, %c0_i32_0 : i32, i32
  }
  func.func @transform_7(%arg0: i32) -> (i32, i32) {
    %c0_i32 = arith.constant 0 : i32
    %c0_i32_0 = arith.constant 0 : i32
    %c0_i32_1 = arith.constant 0 : i32
    return %c0_i32, %c0_i32_0 : i32, i32
  }
  func.func @transform_8(%arg0: i32) -> (i32, i32) {
    %c0_i32 = arith.constant 0 : i32
    %c0_i32_0 = arith.constant 0 : i32
    %c0_i32_1 = arith.constant 0 : i32
    return %c0_i32, %c0_i32_0 : i32, i32
  }
  func.func @transform_9(%arg0: i32) -> (i32, i32) {
    %c0_i32 = arith.constant 0 : i32
    %c0_i32_0 = arith.constant 0 : i32
    %c0_i32_1 = arith.constant 0 : i32
    return %c0_i32, %c0_i32_0 : i32, i32
  }
  func.func @transform_10(%arg0: i32) -> (i32, i32, i32) {
    %c0_i32 = arith.constant 0 : i32
    %c0_i32_0 = arith.constant 0 : i32
    %c0_i32_1 = arith.constant 0 : i32
    return %arg0, %c0_i32, %c0_i32_0 : i32, i32, i32
  }
}

module attributes {stable_mosaic.version = 11 : i64} {
  func.func @_encoder_kernel(%arg0: i32, %arg1: memref<1x23x64xf32, #tpu.memory_space<vmem>>, %arg2: memref<4x2x32x32xf32, #tpu.memory_space<vmem>>, %arg3: memref<1x64xf32, #tpu.memory_space<vmem>>, %arg4: memref<1x64xf32, #tpu.memory_space<vmem>>, %arg5: memref<1x64xf32, #tpu.memory_space<vmem>>, %arg6: memref<2x64x192xf32, #tpu.memory_space<vmem>>, %arg7: memref<2x1x192xf32, #tpu.memory_space<vmem>>, %arg8: memref<2x64x64xf32, #tpu.memory_space<vmem>>, %arg9: memref<2x1x64xf32, #tpu.memory_space<vmem>>, %arg10: memref<2x1x64xf32, #tpu.memory_space<vmem>>, %arg11: memref<2x1x64xf32, #tpu.memory_space<vmem>>, %arg12: memref<2x64x128xf32, #tpu.memory_space<vmem>>, %arg13: memref<2x1x128xf32, #tpu.memory_space<vmem>>, %arg14: memref<2x128x64xf32, #tpu.memory_space<vmem>>, %arg15: memref<2x1x64xf32, #tpu.memory_space<vmem>>, %arg16: memref<2x1x64xf32, #tpu.memory_space<vmem>>, %arg17: memref<2x1x64xf32, #tpu.memory_space<vmem>>, %arg18: memref<1x19x64xf32, #tpu.memory_space<vmem>>) attributes {dimension_semantics = [#tpu.dimension_semantics<parallel>], iteration_bounds = array<i64: 2>, scalar_prefetch = 0 : i64, scratch_operands = 0 : i64, tpu.core_type = #tpu.core_type<tc>, window_params = [{transform_indices = @transform_0, window_bounds = array<i64: 1, 23, 64>}, {pipeline_mode = #tpu.pipeline_mode<synchronous>, transform_indices = @transform_1, window_bounds = array<i64: 4, 2, 32, 32>}, {pipeline_mode = #tpu.pipeline_mode<synchronous>, transform_indices = @transform_2, window_bounds = array<i64: 1, 64>}, {pipeline_mode = #tpu.pipeline_mode<synchronous>, transform_indices = @transform_3, window_bounds = array<i64: 1, 64>}, {pipeline_mode = #tpu.pipeline_mode<synchronous>, transform_indices = @transform_4, window_bounds = array<i64: 1, 64>}, {pipeline_mode = #tpu.pipeline_mode<synchronous>, transform_indices = @transform_5, window_bounds = array<i64: 2, 64, 192>}, {pipeline_mode = #tpu.pipeline_mode<synchronous>, transform_indices = @transform_6, window_bounds = array<i64: 2, 1, 192>}, {pipeline_mode = #tpu.pipeline_mode<synchronous>, transform_indices = @transform_7, window_bounds = array<i64: 2, 64, 64>}, {pipeline_mode = #tpu.pipeline_mode<synchronous>, transform_indices = @transform_8, window_bounds = array<i64: 2, 1, 64>}, {pipeline_mode = #tpu.pipeline_mode<synchronous>, transform_indices = @transform_9, window_bounds = array<i64: 2, 1, 64>}, {pipeline_mode = #tpu.pipeline_mode<synchronous>, transform_indices = @transform_10, window_bounds = array<i64: 2, 1, 64>}, {pipeline_mode = #tpu.pipeline_mode<synchronous>, transform_indices = @transform_11, window_bounds = array<i64: 2, 64, 128>}, {pipeline_mode = #tpu.pipeline_mode<synchronous>, transform_indices = @transform_12, window_bounds = array<i64: 2, 1, 128>}, {pipeline_mode = #tpu.pipeline_mode<synchronous>, transform_indices = @transform_13, window_bounds = array<i64: 2, 128, 64>}, {pipeline_mode = #tpu.pipeline_mode<synchronous>, transform_indices = @transform_14, window_bounds = array<i64: 2, 1, 64>}, {pipeline_mode = #tpu.pipeline_mode<synchronous>, transform_indices = @transform_15, window_bounds = array<i64: 2, 1, 64>}, {pipeline_mode = #tpu.pipeline_mode<synchronous>, transform_indices = @transform_16, window_bounds = array<i64: 2, 1, 64>}, {transform_indices = @transform_17, window_bounds = array<i64: 1, 19, 64>}]} {
    %c0 = arith.constant 0 : index
    %c0_0 = arith.constant 0 : index
    %c0_1 = arith.constant 0 : index
    %0 = vector.load %arg1[%c0, %c0_0, %c0_1] : memref<1x23x64xf32, #tpu.memory_space<vmem>>, vector<1x23x64xf32>
    %1 = vector.shape_cast %0 : vector<1x23x64xf32> to vector<23x64xf32>
    %c0_2 = arith.constant 0 : index
    %c0_3 = arith.constant 0 : index
    %c0_4 = arith.constant 0 : index
    %c0_5 = arith.constant 0 : index
    %2 = vector.load %arg2[%c0_2, %c0_3, %c0_4, %c0_5] : memref<4x2x32x32xf32, #tpu.memory_space<vmem>>, vector<4x2x32x32xf32>
    %cst = arith.constant 0.000000e+00 : f32
    %3 = vector.broadcast %cst : f32 to vector<19x32xf32>
    %4 = vector.extract_strided_slice %1 {offsets = [0, 0], sizes = [19, 32], strides = [1, 1]} : vector<23x64xf32> to vector<19x32xf32>
    %5 = vector.extract_strided_slice %2 {offsets = [0, 0, 0, 0], sizes = [1, 1, 32, 32], strides = [1, 1, 1, 1]} : vector<4x2x32x32xf32> to vector<1x1x32x32xf32>
    %6 = vector.shape_cast %5 : vector<1x1x32x32xf32> to vector<32x32xf32>
    %cst_6 = arith.constant dense<0.000000e+00> : vector<19x32xf32>
    %7 = tpu.matmul %4, %6, %cst_6 {dimension_numbers = #tpu.dot_dimension_numbers<[1], [0], [0], [1], [0, 0, 1, 1], [], []>} : vector<19x32xf32>, vector<32x32xf32>, vector<19x32xf32> -> vector<19x32xf32>
    %8 = arith.addf %3, %7 : vector<19x32xf32>
    %9 = vector.extract_strided_slice %1 {offsets = [1, 0], sizes = [19, 32], strides = [1, 1]} : vector<23x64xf32> to vector<19x32xf32>
    %10 = vector.extract_strided_slice %2 {offsets = [1, 0, 0, 0], sizes = [1, 1, 32, 32], strides = [1, 1, 1, 1]} : vector<4x2x32x32xf32> to vector<1x1x32x32xf32>
    %11 = vector.shape_cast %10 : vector<1x1x32x32xf32> to vector<32x32xf32>
    %cst_7 = arith.constant dense<0.000000e+00> : vector<19x32xf32>
    %12 = tpu.matmul %9, %11, %cst_7 {dimension_numbers = #tpu.dot_dimension_numbers<[1], [0], [0], [1], [0, 0, 1, 1], [], []>} : vector<19x32xf32>, vector<32x32xf32>, vector<19x32xf32> -> vector<19x32xf32>
    %13 = arith.addf %8, %12 : vector<19x32xf32>
    %14 = vector.extract_strided_slice %1 {offsets = [2, 0], sizes = [19, 32], strides = [1, 1]} : vector<23x64xf32> to vector<19x32xf32>
    %15 = vector.extract_strided_slice %2 {offsets = [2, 0, 0, 0], sizes = [1, 1, 32, 32], strides = [1, 1, 1, 1]} : vector<4x2x32x32xf32> to vector<1x1x32x32xf32>
    %16 = vector.shape_cast %15 : vector<1x1x32x32xf32> to vector<32x32xf32>
    %cst_8 = arith.constant dense<0.000000e+00> : vector<19x32xf32>
    %17 = tpu.matmul %14, %16, %cst_8 {dimension_numbers = #tpu.dot_dimension_numbers<[1], [0], [0], [1], [0, 0, 1, 1], [], []>} : vector<19x32xf32>, vector<32x32xf32>, vector<19x32xf32> -> vector<19x32xf32>
    %18 = arith.addf %13, %17 : vector<19x32xf32>
    %19 = vector.extract_strided_slice %1 {offsets = [3, 0], sizes = [19, 32], strides = [1, 1]} : vector<23x64xf32> to vector<19x32xf32>
    %20 = vector.extract_strided_slice %2 {offsets = [3, 0, 0, 0], sizes = [1, 1, 32, 32], strides = [1, 1, 1, 1]} : vector<4x2x32x32xf32> to vector<1x1x32x32xf32>
    %21 = vector.shape_cast %20 : vector<1x1x32x32xf32> to vector<32x32xf32>
    %cst_9 = arith.constant dense<0.000000e+00> : vector<19x32xf32>
    %22 = tpu.matmul %19, %21, %cst_9 {dimension_numbers = #tpu.dot_dimension_numbers<[1], [0], [0], [1], [0, 0, 1, 1], [], []>} : vector<19x32xf32>, vector<32x32xf32>, vector<19x32xf32> -> vector<19x32xf32>
    %23 = arith.addf %18, %22 : vector<19x32xf32>
    %cst_10 = arith.constant 0.000000e+00 : f32
    %24 = vector.broadcast %cst_10 : f32 to vector<19x32xf32>
    %25 = vector.extract_strided_slice %1 {offsets = [0, 32], sizes = [19, 32], strides = [1, 1]} : vector<23x64xf32> to vector<19x32xf32>
    %26 = vector.extract_strided_slice %2 {offsets = [0, 1, 0, 0], sizes = [1, 1, 32, 32], strides = [1, 1, 1, 1]} : vector<4x2x32x32xf32> to vector<1x1x32x32xf32>
    %27 = vector.shape_cast %26 : vector<1x1x32x32xf32> to vector<32x32xf32>
    %cst_11 = arith.constant dense<0.000000e+00> : vector<19x32xf32>
    %28 = tpu.matmul %25, %27, %cst_11 {dimension_numbers = #tpu.dot_dimension_numbers<[1], [0], [0], [1], [0, 0, 1, 1], [], []>} : vector<19x32xf32>, vector<32x32xf32>, vector<19x32xf32> -> vector<19x32xf32>
    %29 = arith.addf %24, %28 : vector<19x32xf32>
    %30 = vector.extract_strided_slice %1 {offsets = [1, 32], sizes = [19, 32], strides = [1, 1]} : vector<23x64xf32> to vector<19x32xf32>
    %31 = vector.extract_strided_slice %2 {offsets = [1, 1, 0, 0], sizes = [1, 1, 32, 32], strides = [1, 1, 1, 1]} : vector<4x2x32x32xf32> to vector<1x1x32x32xf32>
    %32 = vector.shape_cast %31 : vector<1x1x32x32xf32> to vector<32x32xf32>
    %cst_12 = arith.constant dense<0.000000e+00> : vector<19x32xf32>
    %33 = tpu.matmul %30, %32, %cst_12 {dimension_numbers = #tpu.dot_dimension_numbers<[1], [0], [0], [1], [0, 0, 1, 1], [], []>} : vector<19x32xf32>, vector<32x32xf32>, vector<19x32xf32> -> vector<19x32xf32>
    %34 = arith.addf %29, %33 : vector<19x32xf32>
    %35 = vector.extract_strided_slice %1 {offsets = [2, 32], sizes = [19, 32], strides = [1, 1]} : vector<23x64xf32> to vector<19x32xf32>
    %36 = vector.extract_strided_slice %2 {offsets = [2, 1, 0, 0], sizes = [1, 1, 32, 32], strides = [1, 1, 1, 1]} : vector<4x2x32x32xf32> to vector<1x1x32x32xf32>
    %37 = vector.shape_cast %36 : vector<1x1x32x32xf32> to vector<32x32xf32>
    %cst_13 = arith.constant dense<0.000000e+00> : vector<19x32xf32>
    %38 = tpu.matmul %35, %37, %cst_13 {dimension_numbers = #tpu.dot_dimension_numbers<[1], [0], [0], [1], [0, 0, 1, 1], [], []>} : vector<19x32xf32>, vector<32x32xf32>, vector<19x32xf32> -> vector<19x32xf32>
    %39 = arith.addf %34, %38 : vector<19x32xf32>
    %40 = vector.extract_strided_slice %1 {offsets = [3, 32], sizes = [19, 32], strides = [1, 1]} : vector<23x64xf32> to vector<19x32xf32>
    %41 = vector.extract_strided_slice %2 {offsets = [3, 1, 0, 0], sizes = [1, 1, 32, 32], strides = [1, 1, 1, 1]} : vector<4x2x32x32xf32> to vector<1x1x32x32xf32>
    %42 = vector.shape_cast %41 : vector<1x1x32x32xf32> to vector<32x32xf32>
    %cst_14 = arith.constant dense<0.000000e+00> : vector<19x32xf32>
    %43 = tpu.matmul %40, %42, %cst_14 {dimension_numbers = #tpu.dot_dimension_numbers<[1], [0], [0], [1], [0, 0, 1, 1], [], []>} : vector<19x32xf32>, vector<32x32xf32>, vector<19x32xf32> -> vector<19x32xf32>
    %44 = arith.addf %39, %43 : vector<19x32xf32>
    %45 = tpu.concatenate %23, %44 in 1 : vector<19x32xf32>, vector<19x32xf32> -> vector<19x64xf32>
    %c0_15 = arith.constant 0 : index
    %c0_16 = arith.constant 0 : index
    %46 = vector.load %arg3[%c0_15, %c0_16] : memref<1x64xf32, #tpu.memory_space<vmem>>, vector<1x64xf32>
    %47 = vector.broadcast %46 : vector<1x64xf32> to vector<19x64xf32>
    %48 = arith.addf %45, %47 : vector<19x64xf32>
    %cst_17 = arith.constant 5.000000e-01 : f32
    %49 = vector.broadcast %cst_17 : f32 to vector<19x64xf32>
    %50 = arith.mulf %49, %48 : vector<19x64xf32>
    %cst_18 = arith.constant 4.471500e-02 : f32
    %51 = vector.broadcast %cst_18 : f32 to vector<19x64xf32>
    %52 = arith.mulf %51, %48 : vector<19x64xf32>
    %53 = arith.mulf %52, %48 : vector<19x64xf32>
    %54 = arith.mulf %53, %48 : vector<19x64xf32>
    %55 = arith.addf %48, %54 : vector<19x64xf32>
    %cst_19 = arith.constant 0.797884583 : f32
    %56 = vector.broadcast %cst_19 : f32 to vector<19x64xf32>
    %57 = arith.mulf %56, %55 : vector<19x64xf32>
    %58 = math.tanh %57 : vector<19x64xf32>
    %cst_20 = arith.constant 1.000000e+00 : f32
    %59 = vector.broadcast %cst_20 : f32 to vector<19x64xf32>
    %60 = arith.addf %59, %58 : vector<19x64xf32>
    %61 = arith.mulf %50, %60 : vector<19x64xf32>
    %62 = vector.extract_strided_slice %1 {offsets = [2, 0], sizes = [19, 64], strides = [1, 1]} : vector<23x64xf32> to vector<19x64xf32>
    %63 = arith.addf %62, %61 : vector<19x64xf32>
    %c0_21 = arith.constant 0 : index
    %c0_22 = arith.constant 0 : index
    %64 = vector.load %arg4[%c0_21, %c0_22] : memref<1x64xf32, #tpu.memory_space<vmem>>, vector<1x64xf32>
    %c0_23 = arith.constant 0 : index
    %c0_24 = arith.constant 0 : index
    %65 = vector.load %arg5[%c0_23, %c0_24] : memref<1x64xf32, #tpu.memory_space<vmem>>, vector<1x64xf32>
    %cst_25 = arith.constant dense<0.000000e+00> : vector<19xf32>
    %66 = vector.multi_reduction <add>, %63, %cst_25 [1] : vector<19x64xf32> to vector<19xf32>
    %67 = vector.shape_cast %66 : vector<19xf32> to vector<19x1xf32>
    %cst_26 = arith.constant 6.400000e+01 : f32
    %68 = vector.broadcast %cst_26 : f32 to vector<19x1xf32>
    %69 = arith.divf %67, %68 : vector<19x1xf32>
    %70 = vector.broadcast %69 : vector<19x1xf32> to vector<19x64xf32>
    %71 = arith.subf %63, %70 : vector<19x64xf32>
    %72 = arith.mulf %71, %71 : vector<19x64xf32>
    %cst_27 = arith.constant dense<0.000000e+00> : vector<19xf32>
    %73 = vector.multi_reduction <add>, %72, %cst_27 [1] : vector<19x64xf32> to vector<19xf32>
    %74 = vector.shape_cast %73 : vector<19xf32> to vector<19x1xf32>
    %cst_28 = arith.constant 6.400000e+01 : f32
    %75 = vector.broadcast %cst_28 : f32 to vector<19x1xf32>
    %76 = arith.divf %74, %75 : vector<19x1xf32>
    %77 = vector.broadcast %69 : vector<19x1xf32> to vector<19x64xf32>
    %78 = arith.subf %63, %77 : vector<19x64xf32>
    %cst_29 = arith.constant 9.99999974E-6 : f32
    %79 = vector.broadcast %cst_29 : f32 to vector<19x1xf32>
    %80 = arith.addf %76, %79 : vector<19x1xf32>
    %81 = math.rsqrt %80 : vector<19x1xf32>
    %82 = vector.broadcast %81 : vector<19x1xf32> to vector<19x64xf32>
    %83 = arith.mulf %78, %82 : vector<19x64xf32>
    %84 = vector.broadcast %64 : vector<1x64xf32> to vector<19x64xf32>
    %85 = arith.mulf %83, %84 : vector<19x64xf32>
    %86 = vector.broadcast %65 : vector<1x64xf32> to vector<19x64xf32>
    %87 = arith.addf %85, %86 : vector<19x64xf32>
    %c0_30 = arith.constant 0 : index
    %c0_31 = arith.constant 0 : index
    %c0_32 = arith.constant 0 : index
    %88 = vector.load %arg6[%c0_30, %c0_31, %c0_32] : memref<2x64x192xf32, #tpu.memory_space<vmem>>, vector<1x64x192xf32>
    %89 = vector.shape_cast %88 : vector<1x64x192xf32> to vector<64x192xf32>
    %cst_33 = arith.constant dense<0.000000e+00> : vector<19x192xf32>
    %90 = tpu.matmul %87, %89, %cst_33 {dimension_numbers = #tpu.dot_dimension_numbers<[1], [0], [0], [1], [0, 0, 1, 1], [], []>} : vector<19x64xf32>, vector<64x192xf32>, vector<19x192xf32> -> vector<19x192xf32>
    %c0_34 = arith.constant 0 : index
    %c0_35 = arith.constant 0 : index
    %c0_36 = arith.constant 0 : index
    %91 = vector.load %arg7[%c0_34, %c0_35, %c0_36] : memref<2x1x192xf32, #tpu.memory_space<vmem>>, vector<1x1x192xf32>
    %92 = vector.shape_cast %91 : vector<1x1x192xf32> to vector<1x192xf32>
    %93 = vector.broadcast %92 : vector<1x192xf32> to vector<19x192xf32>
    %94 = arith.addf %90, %93 : vector<19x192xf32>
    %95 = vector.extract_strided_slice %94 {offsets = [0, 0], sizes = [19, 16], strides = [1, 1]} : vector<19x192xf32> to vector<19x16xf32>
    %96 = vector.extract_strided_slice %94 {offsets = [0, 64], sizes = [19, 16], strides = [1, 1]} : vector<19x192xf32> to vector<19x16xf32>
    %97 = vector.extract_strided_slice %94 {offsets = [0, 128], sizes = [19, 16], strides = [1, 1]} : vector<19x192xf32> to vector<19x16xf32>
    %cst_37 = arith.constant dense<0.000000e+00> : vector<19x19xf32>
    %98 = tpu.matmul %95, %96, %cst_37 {dimension_numbers = #tpu.dot_dimension_numbers<[1], [1], [0], [0], [0, 0, 1, 0], [], []>} : vector<19x16xf32>, vector<19x16xf32>, vector<19x19xf32> -> vector<19x19xf32>
    %cst_38 = arith.constant dense<0xFF800000> : vector<19xf32>
    %99 = vector.multi_reduction <maximumf>, %98, %cst_38 [1] : vector<19x19xf32> to vector<19xf32>
    %100 = vector.shape_cast %99 : vector<19xf32> to vector<19x1xf32>
    %101 = vector.broadcast %100 : vector<19x1xf32> to vector<19x19xf32>
    %102 = arith.subf %98, %101 : vector<19x19xf32>
    %103 = math.exp %102 : vector<19x19xf32>
    %cst_39 = arith.constant dense<0.000000e+00> : vector<19xf32>
    %104 = vector.multi_reduction <add>, %103, %cst_39 [1] : vector<19x19xf32> to vector<19xf32>
    %105 = vector.shape_cast %104 : vector<19xf32> to vector<19x1xf32>
    %106 = tpu.reciprocal %105 {approx = true} : vector<19x1xf32> -> vector<19x1xf32>
    %107 = vector.broadcast %106 : vector<19x1xf32> to vector<19x19xf32>
    %108 = arith.mulf %103, %107 : vector<19x19xf32>
    %cst_40 = arith.constant dense<0.000000e+00> : vector<19x16xf32>
    %109 = tpu.matmul %108, %97, %cst_40 {dimension_numbers = #tpu.dot_dimension_numbers<[1], [0], [0], [1], [0, 0, 1, 1], [], []>} : vector<19x19xf32>, vector<19x16xf32>, vector<19x16xf32> -> vector<19x16xf32>
    %110 = vector.extract_strided_slice %94 {offsets = [0, 16], sizes = [19, 16], strides = [1, 1]} : vector<19x192xf32> to vector<19x16xf32>
    %111 = vector.extract_strided_slice %94 {offsets = [0, 80], sizes = [19, 16], strides = [1, 1]} : vector<19x192xf32> to vector<19x16xf32>
    %112 = vector.extract_strided_slice %94 {offsets = [0, 144], sizes = [19, 16], strides = [1, 1]} : vector<19x192xf32> to vector<19x16xf32>
    %cst_41 = arith.constant dense<0.000000e+00> : vector<19x19xf32>
    %113 = tpu.matmul %110, %111, %cst_41 {dimension_numbers = #tpu.dot_dimension_numbers<[1], [1], [0], [0], [0, 0, 1, 0], [], []>} : vector<19x16xf32>, vector<19x16xf32>, vector<19x19xf32> -> vector<19x19xf32>
    %cst_42 = arith.constant dense<0xFF800000> : vector<19xf32>
    %114 = vector.multi_reduction <maximumf>, %113, %cst_42 [1] : vector<19x19xf32> to vector<19xf32>
    %115 = vector.shape_cast %114 : vector<19xf32> to vector<19x1xf32>
    %116 = vector.broadcast %115 : vector<19x1xf32> to vector<19x19xf32>
    %117 = arith.subf %113, %116 : vector<19x19xf32>
    %118 = math.exp %117 : vector<19x19xf32>
    %cst_43 = arith.constant dense<0.000000e+00> : vector<19xf32>
    %119 = vector.multi_reduction <add>, %118, %cst_43 [1] : vector<19x19xf32> to vector<19xf32>
    %120 = vector.shape_cast %119 : vector<19xf32> to vector<19x1xf32>
    %121 = tpu.reciprocal %120 {approx = true} : vector<19x1xf32> -> vector<19x1xf32>
    %122 = vector.broadcast %121 : vector<19x1xf32> to vector<19x19xf32>
    %123 = arith.mulf %118, %122 : vector<19x19xf32>
    %cst_44 = arith.constant dense<0.000000e+00> : vector<19x16xf32>
    %124 = tpu.matmul %123, %112, %cst_44 {dimension_numbers = #tpu.dot_dimension_numbers<[1], [0], [0], [1], [0, 0, 1, 1], [], []>} : vector<19x19xf32>, vector<19x16xf32>, vector<19x16xf32> -> vector<19x16xf32>
    %125 = vector.extract_strided_slice %94 {offsets = [0, 32], sizes = [19, 16], strides = [1, 1]} : vector<19x192xf32> to vector<19x16xf32>
    %126 = vector.extract_strided_slice %94 {offsets = [0, 96], sizes = [19, 16], strides = [1, 1]} : vector<19x192xf32> to vector<19x16xf32>
    %127 = vector.extract_strided_slice %94 {offsets = [0, 160], sizes = [19, 16], strides = [1, 1]} : vector<19x192xf32> to vector<19x16xf32>
    %cst_45 = arith.constant dense<0.000000e+00> : vector<19x19xf32>
    %128 = tpu.matmul %125, %126, %cst_45 {dimension_numbers = #tpu.dot_dimension_numbers<[1], [1], [0], [0], [0, 0, 1, 0], [], []>} : vector<19x16xf32>, vector<19x16xf32>, vector<19x19xf32> -> vector<19x19xf32>
    %cst_46 = arith.constant dense<0xFF800000> : vector<19xf32>
    %129 = vector.multi_reduction <maximumf>, %128, %cst_46 [1] : vector<19x19xf32> to vector<19xf32>
    %130 = vector.shape_cast %129 : vector<19xf32> to vector<19x1xf32>
    %131 = vector.broadcast %130 : vector<19x1xf32> to vector<19x19xf32>
    %132 = arith.subf %128, %131 : vector<19x19xf32>
    %133 = math.exp %132 : vector<19x19xf32>
    %cst_47 = arith.constant dense<0.000000e+00> : vector<19xf32>
    %134 = vector.multi_reduction <add>, %133, %cst_47 [1] : vector<19x19xf32> to vector<19xf32>
    %135 = vector.shape_cast %134 : vector<19xf32> to vector<19x1xf32>
    %136 = tpu.reciprocal %135 {approx = true} : vector<19x1xf32> -> vector<19x1xf32>
    %137 = vector.broadcast %136 : vector<19x1xf32> to vector<19x19xf32>
    %138 = arith.mulf %133, %137 : vector<19x19xf32>
    %cst_48 = arith.constant dense<0.000000e+00> : vector<19x16xf32>
    %139 = tpu.matmul %138, %127, %cst_48 {dimension_numbers = #tpu.dot_dimension_numbers<[1], [0], [0], [1], [0, 0, 1, 1], [], []>} : vector<19x19xf32>, vector<19x16xf32>, vector<19x16xf32> -> vector<19x16xf32>
    %140 = vector.extract_strided_slice %94 {offsets = [0, 48], sizes = [19, 16], strides = [1, 1]} : vector<19x192xf32> to vector<19x16xf32>
    %141 = vector.extract_strided_slice %94 {offsets = [0, 112], sizes = [19, 16], strides = [1, 1]} : vector<19x192xf32> to vector<19x16xf32>
    %142 = vector.extract_strided_slice %94 {offsets = [0, 176], sizes = [19, 16], strides = [1, 1]} : vector<19x192xf32> to vector<19x16xf32>
    %cst_49 = arith.constant dense<0.000000e+00> : vector<19x19xf32>
    %143 = tpu.matmul %140, %141, %cst_49 {dimension_numbers = #tpu.dot_dimension_numbers<[1], [1], [0], [0], [0, 0, 1, 0], [], []>} : vector<19x16xf32>, vector<19x16xf32>, vector<19x19xf32> -> vector<19x19xf32>
    %cst_50 = arith.constant dense<0xFF800000> : vector<19xf32>
    %144 = vector.multi_reduction <maximumf>, %143, %cst_50 [1] : vector<19x19xf32> to vector<19xf32>
    %145 = vector.shape_cast %144 : vector<19xf32> to vector<19x1xf32>
    %146 = vector.broadcast %145 : vector<19x1xf32> to vector<19x19xf32>
    %147 = arith.subf %143, %146 : vector<19x19xf32>
    %148 = math.exp %147 : vector<19x19xf32>
    %cst_51 = arith.constant dense<0.000000e+00> : vector<19xf32>
    %149 = vector.multi_reduction <add>, %148, %cst_51 [1] : vector<19x19xf32> to vector<19xf32>
    %150 = vector.shape_cast %149 : vector<19xf32> to vector<19x1xf32>
    %151 = tpu.reciprocal %150 {approx = true} : vector<19x1xf32> -> vector<19x1xf32>
    %152 = vector.broadcast %151 : vector<19x1xf32> to vector<19x19xf32>
    %153 = arith.mulf %148, %152 : vector<19x19xf32>
    %cst_52 = arith.constant dense<0.000000e+00> : vector<19x16xf32>
    %154 = tpu.matmul %153, %142, %cst_52 {dimension_numbers = #tpu.dot_dimension_numbers<[1], [0], [0], [1], [0, 0, 1, 1], [], []>} : vector<19x19xf32>, vector<19x16xf32>, vector<19x16xf32> -> vector<19x16xf32>
    %155 = tpu.concatenate %109, %124, %139, %154 in 1 : vector<19x16xf32>, vector<19x16xf32>, vector<19x16xf32>, vector<19x16xf32> -> vector<19x64xf32>
    %c0_53 = arith.constant 0 : index
    %c0_54 = arith.constant 0 : index
    %c0_55 = arith.constant 0 : index
    %156 = vector.load %arg8[%c0_53, %c0_54, %c0_55] : memref<2x64x64xf32, #tpu.memory_space<vmem>>, vector<1x64x64xf32>
    %157 = vector.shape_cast %156 : vector<1x64x64xf32> to vector<64x64xf32>
    %cst_56 = arith.constant dense<0.000000e+00> : vector<19x64xf32>
    %158 = tpu.matmul %155, %157, %cst_56 {dimension_numbers = #tpu.dot_dimension_numbers<[1], [0], [0], [1], [0, 0, 1, 1], [], []>} : vector<19x64xf32>, vector<64x64xf32>, vector<19x64xf32> -> vector<19x64xf32>
    %c0_57 = arith.constant 0 : index
    %c0_58 = arith.constant 0 : index
    %c0_59 = arith.constant 0 : index
    %159 = vector.load %arg9[%c0_57, %c0_58, %c0_59] : memref<2x1x64xf32, #tpu.memory_space<vmem>>, vector<1x1x64xf32>
    %160 = vector.shape_cast %159 : vector<1x1x64xf32> to vector<1x64xf32>
    %161 = vector.broadcast %160 : vector<1x64xf32> to vector<19x64xf32>
    %162 = arith.addf %158, %161 : vector<19x64xf32>
    %163 = arith.addf %87, %162 : vector<19x64xf32>
    %c0_60 = arith.constant 0 : index
    %c0_61 = arith.constant 0 : index
    %c0_62 = arith.constant 0 : index
    %164 = vector.load %arg10[%c0_60, %c0_61, %c0_62] : memref<2x1x64xf32, #tpu.memory_space<vmem>>, vector<1x1x64xf32>
    %165 = vector.shape_cast %164 : vector<1x1x64xf32> to vector<1x64xf32>
    %c0_63 = arith.constant 0 : index
    %c0_64 = arith.constant 0 : index
    %c0_65 = arith.constant 0 : index
    %166 = vector.load %arg11[%c0_63, %c0_64, %c0_65] : memref<2x1x64xf32, #tpu.memory_space<vmem>>, vector<1x1x64xf32>
    %167 = vector.shape_cast %166 : vector<1x1x64xf32> to vector<1x64xf32>
    %cst_66 = arith.constant dense<0.000000e+00> : vector<19xf32>
    %168 = vector.multi_reduction <add>, %163, %cst_66 [1] : vector<19x64xf32> to vector<19xf32>
    %169 = vector.shape_cast %168 : vector<19xf32> to vector<19x1xf32>
    %cst_67 = arith.constant 6.400000e+01 : f32
    %170 = vector.broadcast %cst_67 : f32 to vector<19x1xf32>
    %171 = arith.divf %169, %170 : vector<19x1xf32>
    %172 = vector.broadcast %171 : vector<19x1xf32> to vector<19x64xf32>
    %173 = arith.subf %163, %172 : vector<19x64xf32>
    %174 = arith.mulf %173, %173 : vector<19x64xf32>
    %cst_68 = arith.constant dense<0.000000e+00> : vector<19xf32>
    %175 = vector.multi_reduction <add>, %174, %cst_68 [1] : vector<19x64xf32> to vector<19xf32>
    %176 = vector.shape_cast %175 : vector<19xf32> to vector<19x1xf32>
    %cst_69 = arith.constant 6.400000e+01 : f32
    %177 = vector.broadcast %cst_69 : f32 to vector<19x1xf32>
    %178 = arith.divf %176, %177 : vector<19x1xf32>
    %179 = vector.broadcast %171 : vector<19x1xf32> to vector<19x64xf32>
    %180 = arith.subf %163, %179 : vector<19x64xf32>
    %cst_70 = arith.constant 9.99999974E-6 : f32
    %181 = vector.broadcast %cst_70 : f32 to vector<19x1xf32>
    %182 = arith.addf %178, %181 : vector<19x1xf32>
    %183 = math.rsqrt %182 : vector<19x1xf32>
    %184 = vector.broadcast %183 : vector<19x1xf32> to vector<19x64xf32>
    %185 = arith.mulf %180, %184 : vector<19x64xf32>
    %186 = vector.broadcast %165 : vector<1x64xf32> to vector<19x64xf32>
    %187 = arith.mulf %185, %186 : vector<19x64xf32>
    %188 = vector.broadcast %167 : vector<1x64xf32> to vector<19x64xf32>
    %189 = arith.addf %187, %188 : vector<19x64xf32>
    %c0_71 = arith.constant 0 : index
    %c0_72 = arith.constant 0 : index
    %c0_73 = arith.constant 0 : index
    %190 = vector.load %arg12[%c0_71, %c0_72, %c0_73] : memref<2x64x128xf32, #tpu.memory_space<vmem>>, vector<1x64x128xf32>
    %191 = vector.shape_cast %190 : vector<1x64x128xf32> to vector<64x128xf32>
    %cst_74 = arith.constant dense<0.000000e+00> : vector<19x128xf32>
    %192 = tpu.matmul %189, %191, %cst_74 {dimension_numbers = #tpu.dot_dimension_numbers<[1], [0], [0], [1], [0, 0, 1, 1], [], []>} : vector<19x64xf32>, vector<64x128xf32>, vector<19x128xf32> -> vector<19x128xf32>
    %c0_75 = arith.constant 0 : index
    %c0_76 = arith.constant 0 : index
    %c0_77 = arith.constant 0 : index
    %193 = vector.load %arg13[%c0_75, %c0_76, %c0_77] : memref<2x1x128xf32, #tpu.memory_space<vmem>>, vector<1x1x128xf32>
    %194 = vector.shape_cast %193 : vector<1x1x128xf32> to vector<1x128xf32>
    %195 = vector.broadcast %194 : vector<1x128xf32> to vector<19x128xf32>
    %196 = arith.addf %192, %195 : vector<19x128xf32>
    %cst_78 = arith.constant 5.000000e-01 : f32
    %197 = vector.broadcast %cst_78 : f32 to vector<19x128xf32>
    %198 = arith.mulf %197, %196 : vector<19x128xf32>
    %cst_79 = arith.constant 4.471500e-02 : f32
    %199 = vector.broadcast %cst_79 : f32 to vector<19x128xf32>
    %200 = arith.mulf %199, %196 : vector<19x128xf32>
    %201 = arith.mulf %200, %196 : vector<19x128xf32>
    %202 = arith.mulf %201, %196 : vector<19x128xf32>
    %203 = arith.addf %196, %202 : vector<19x128xf32>
    %cst_80 = arith.constant 0.797884583 : f32
    %204 = vector.broadcast %cst_80 : f32 to vector<19x128xf32>
    %205 = arith.mulf %204, %203 : vector<19x128xf32>
    %206 = math.tanh %205 : vector<19x128xf32>
    %cst_81 = arith.constant 1.000000e+00 : f32
    %207 = vector.broadcast %cst_81 : f32 to vector<19x128xf32>
    %208 = arith.addf %207, %206 : vector<19x128xf32>
    %209 = arith.mulf %198, %208 : vector<19x128xf32>
    %c0_82 = arith.constant 0 : index
    %c0_83 = arith.constant 0 : index
    %c0_84 = arith.constant 0 : index
    %210 = vector.load %arg14[%c0_82, %c0_83, %c0_84] : memref<2x128x64xf32, #tpu.memory_space<vmem>>, vector<1x128x64xf32>
    %211 = vector.shape_cast %210 : vector<1x128x64xf32> to vector<128x64xf32>
    %cst_85 = arith.constant dense<0.000000e+00> : vector<19x64xf32>
    %212 = tpu.matmul %209, %211, %cst_85 {dimension_numbers = #tpu.dot_dimension_numbers<[1], [0], [0], [1], [0, 0, 1, 1], [], []>} : vector<19x128xf32>, vector<128x64xf32>, vector<19x64xf32> -> vector<19x64xf32>
    %c0_86 = arith.constant 0 : index
    %c0_87 = arith.constant 0 : index
    %c0_88 = arith.constant 0 : index
    %213 = vector.load %arg15[%c0_86, %c0_87, %c0_88] : memref<2x1x64xf32, #tpu.memory_space<vmem>>, vector<1x1x64xf32>
    %214 = vector.shape_cast %213 : vector<1x1x64xf32> to vector<1x64xf32>
    %215 = vector.broadcast %214 : vector<1x64xf32> to vector<19x64xf32>
    %216 = arith.addf %212, %215 : vector<19x64xf32>
    %217 = arith.addf %189, %216 : vector<19x64xf32>
    %c0_89 = arith.constant 0 : index
    %c0_90 = arith.constant 0 : index
    %c0_91 = arith.constant 0 : index
    %218 = vector.load %arg16[%c0_89, %c0_90, %c0_91] : memref<2x1x64xf32, #tpu.memory_space<vmem>>, vector<1x1x64xf32>
    %219 = vector.shape_cast %218 : vector<1x1x64xf32> to vector<1x64xf32>
    %c0_92 = arith.constant 0 : index
    %c0_93 = arith.constant 0 : index
    %c0_94 = arith.constant 0 : index
    %220 = vector.load %arg17[%c0_92, %c0_93, %c0_94] : memref<2x1x64xf32, #tpu.memory_space<vmem>>, vector<1x1x64xf32>
    %221 = vector.shape_cast %220 : vector<1x1x64xf32> to vector<1x64xf32>
    %cst_95 = arith.constant dense<0.000000e+00> : vector<19xf32>
    %222 = vector.multi_reduction <add>, %217, %cst_95 [1] : vector<19x64xf32> to vector<19xf32>
    %223 = vector.shape_cast %222 : vector<19xf32> to vector<19x1xf32>
    %cst_96 = arith.constant 6.400000e+01 : f32
    %224 = vector.broadcast %cst_96 : f32 to vector<19x1xf32>
    %225 = arith.divf %223, %224 : vector<19x1xf32>
    %226 = vector.broadcast %225 : vector<19x1xf32> to vector<19x64xf32>
    %227 = arith.subf %217, %226 : vector<19x64xf32>
    %228 = arith.mulf %227, %227 : vector<19x64xf32>
    %cst_97 = arith.constant dense<0.000000e+00> : vector<19xf32>
    %229 = vector.multi_reduction <add>, %228, %cst_97 [1] : vector<19x64xf32> to vector<19xf32>
    %230 = vector.shape_cast %229 : vector<19xf32> to vector<19x1xf32>
    %cst_98 = arith.constant 6.400000e+01 : f32
    %231 = vector.broadcast %cst_98 : f32 to vector<19x1xf32>
    %232 = arith.divf %230, %231 : vector<19x1xf32>
    %233 = vector.broadcast %225 : vector<19x1xf32> to vector<19x64xf32>
    %234 = arith.subf %217, %233 : vector<19x64xf32>
    %cst_99 = arith.constant 9.99999974E-6 : f32
    %235 = vector.broadcast %cst_99 : f32 to vector<19x1xf32>
    %236 = arith.addf %232, %235 : vector<19x1xf32>
    %237 = math.rsqrt %236 : vector<19x1xf32>
    %238 = vector.broadcast %237 : vector<19x1xf32> to vector<19x64xf32>
    %239 = arith.mulf %234, %238 : vector<19x64xf32>
    %240 = vector.broadcast %219 : vector<1x64xf32> to vector<19x64xf32>
    %241 = arith.mulf %239, %240 : vector<19x64xf32>
    %242 = vector.broadcast %221 : vector<1x64xf32> to vector<19x64xf32>
    %243 = arith.addf %241, %242 : vector<19x64xf32>
    %c1 = arith.constant 1 : index
    %c0_100 = arith.constant 0 : index
    %c0_101 = arith.constant 0 : index
    %244 = vector.load %arg6[%c1, %c0_100, %c0_101] : memref<2x64x192xf32, #tpu.memory_space<vmem>>, vector<1x64x192xf32>
    %245 = vector.shape_cast %244 : vector<1x64x192xf32> to vector<64x192xf32>
    %cst_102 = arith.constant dense<0.000000e+00> : vector<19x192xf32>
    %246 = tpu.matmul %243, %245, %cst_102 {dimension_numbers = #tpu.dot_dimension_numbers<[1], [0], [0], [1], [0, 0, 1, 1], [], []>} : vector<19x64xf32>, vector<64x192xf32>, vector<19x192xf32> -> vector<19x192xf32>
    %c1_103 = arith.constant 1 : index
    %c0_104 = arith.constant 0 : index
    %c0_105 = arith.constant 0 : index
    %247 = vector.load %arg7[%c1_103, %c0_104, %c0_105] : memref<2x1x192xf32, #tpu.memory_space<vmem>>, vector<1x1x192xf32>
    %248 = vector.shape_cast %247 : vector<1x1x192xf32> to vector<1x192xf32>
    %249 = vector.broadcast %248 : vector<1x192xf32> to vector<19x192xf32>
    %250 = arith.addf %246, %249 : vector<19x192xf32>
    %251 = vector.extract_strided_slice %250 {offsets = [0, 0], sizes = [19, 16], strides = [1, 1]} : vector<19x192xf32> to vector<19x16xf32>
    %252 = vector.extract_strided_slice %250 {offsets = [0, 64], sizes = [19, 16], strides = [1, 1]} : vector<19x192xf32> to vector<19x16xf32>
    %253 = vector.extract_strided_slice %250 {offsets = [0, 128], sizes = [19, 16], strides = [1, 1]} : vector<19x192xf32> to vector<19x16xf32>
    %cst_106 = arith.constant dense<0.000000e+00> : vector<19x19xf32>
    %254 = tpu.matmul %251, %252, %cst_106 {dimension_numbers = #tpu.dot_dimension_numbers<[1], [1], [0], [0], [0, 0, 1, 0], [], []>} : vector<19x16xf32>, vector<19x16xf32>, vector<19x19xf32> -> vector<19x19xf32>
    %cst_107 = arith.constant dense<0xFF800000> : vector<19xf32>
    %255 = vector.multi_reduction <maximumf>, %254, %cst_107 [1] : vector<19x19xf32> to vector<19xf32>
    %256 = vector.shape_cast %255 : vector<19xf32> to vector<19x1xf32>
    %257 = vector.broadcast %256 : vector<19x1xf32> to vector<19x19xf32>
    %258 = arith.subf %254, %257 : vector<19x19xf32>
    %259 = math.exp %258 : vector<19x19xf32>
    %cst_108 = arith.constant dense<0.000000e+00> : vector<19xf32>
    %260 = vector.multi_reduction <add>, %259, %cst_108 [1] : vector<19x19xf32> to vector<19xf32>
    %261 = vector.shape_cast %260 : vector<19xf32> to vector<19x1xf32>
    %262 = tpu.reciprocal %261 {approx = true} : vector<19x1xf32> -> vector<19x1xf32>
    %263 = vector.broadcast %262 : vector<19x1xf32> to vector<19x19xf32>
    %264 = arith.mulf %259, %263 : vector<19x19xf32>
    %cst_109 = arith.constant dense<0.000000e+00> : vector<19x16xf32>
    %265 = tpu.matmul %264, %253, %cst_109 {dimension_numbers = #tpu.dot_dimension_numbers<[1], [0], [0], [1], [0, 0, 1, 1], [], []>} : vector<19x19xf32>, vector<19x16xf32>, vector<19x16xf32> -> vector<19x16xf32>
    %266 = vector.extract_strided_slice %250 {offsets = [0, 16], sizes = [19, 16], strides = [1, 1]} : vector<19x192xf32> to vector<19x16xf32>
    %267 = vector.extract_strided_slice %250 {offsets = [0, 80], sizes = [19, 16], strides = [1, 1]} : vector<19x192xf32> to vector<19x16xf32>
    %268 = vector.extract_strided_slice %250 {offsets = [0, 144], sizes = [19, 16], strides = [1, 1]} : vector<19x192xf32> to vector<19x16xf32>
    %cst_110 = arith.constant dense<0.000000e+00> : vector<19x19xf32>
    %269 = tpu.matmul %266, %267, %cst_110 {dimension_numbers = #tpu.dot_dimension_numbers<[1], [1], [0], [0], [0, 0, 1, 0], [], []>} : vector<19x16xf32>, vector<19x16xf32>, vector<19x19xf32> -> vector<19x19xf32>
    %cst_111 = arith.constant dense<0xFF800000> : vector<19xf32>
    %270 = vector.multi_reduction <maximumf>, %269, %cst_111 [1] : vector<19x19xf32> to vector<19xf32>
    %271 = vector.shape_cast %270 : vector<19xf32> to vector<19x1xf32>
    %272 = vector.broadcast %271 : vector<19x1xf32> to vector<19x19xf32>
    %273 = arith.subf %269, %272 : vector<19x19xf32>
    %274 = math.exp %273 : vector<19x19xf32>
    %cst_112 = arith.constant dense<0.000000e+00> : vector<19xf32>
    %275 = vector.multi_reduction <add>, %274, %cst_112 [1] : vector<19x19xf32> to vector<19xf32>
    %276 = vector.shape_cast %275 : vector<19xf32> to vector<19x1xf32>
    %277 = tpu.reciprocal %276 {approx = true} : vector<19x1xf32> -> vector<19x1xf32>
    %278 = vector.broadcast %277 : vector<19x1xf32> to vector<19x19xf32>
    %279 = arith.mulf %274, %278 : vector<19x19xf32>
    %cst_113 = arith.constant dense<0.000000e+00> : vector<19x16xf32>
    %280 = tpu.matmul %279, %268, %cst_113 {dimension_numbers = #tpu.dot_dimension_numbers<[1], [0], [0], [1], [0, 0, 1, 1], [], []>} : vector<19x19xf32>, vector<19x16xf32>, vector<19x16xf32> -> vector<19x16xf32>
    %281 = vector.extract_strided_slice %250 {offsets = [0, 32], sizes = [19, 16], strides = [1, 1]} : vector<19x192xf32> to vector<19x16xf32>
    %282 = vector.extract_strided_slice %250 {offsets = [0, 96], sizes = [19, 16], strides = [1, 1]} : vector<19x192xf32> to vector<19x16xf32>
    %283 = vector.extract_strided_slice %250 {offsets = [0, 160], sizes = [19, 16], strides = [1, 1]} : vector<19x192xf32> to vector<19x16xf32>
    %cst_114 = arith.constant dense<0.000000e+00> : vector<19x19xf32>
    %284 = tpu.matmul %281, %282, %cst_114 {dimension_numbers = #tpu.dot_dimension_numbers<[1], [1], [0], [0], [0, 0, 1, 0], [], []>} : vector<19x16xf32>, vector<19x16xf32>, vector<19x19xf32> -> vector<19x19xf32>
    %cst_115 = arith.constant dense<0xFF800000> : vector<19xf32>
    %285 = vector.multi_reduction <maximumf>, %284, %cst_115 [1] : vector<19x19xf32> to vector<19xf32>
    %286 = vector.shape_cast %285 : vector<19xf32> to vector<19x1xf32>
    %287 = vector.broadcast %286 : vector<19x1xf32> to vector<19x19xf32>
    %288 = arith.subf %284, %287 : vector<19x19xf32>
    %289 = math.exp %288 : vector<19x19xf32>
    %cst_116 = arith.constant dense<0.000000e+00> : vector<19xf32>
    %290 = vector.multi_reduction <add>, %289, %cst_116 [1] : vector<19x19xf32> to vector<19xf32>
    %291 = vector.shape_cast %290 : vector<19xf32> to vector<19x1xf32>
    %292 = tpu.reciprocal %291 {approx = true} : vector<19x1xf32> -> vector<19x1xf32>
    %293 = vector.broadcast %292 : vector<19x1xf32> to vector<19x19xf32>
    %294 = arith.mulf %289, %293 : vector<19x19xf32>
    %cst_117 = arith.constant dense<0.000000e+00> : vector<19x16xf32>
    %295 = tpu.matmul %294, %283, %cst_117 {dimension_numbers = #tpu.dot_dimension_numbers<[1], [0], [0], [1], [0, 0, 1, 1], [], []>} : vector<19x19xf32>, vector<19x16xf32>, vector<19x16xf32> -> vector<19x16xf32>
    %296 = vector.extract_strided_slice %250 {offsets = [0, 48], sizes = [19, 16], strides = [1, 1]} : vector<19x192xf32> to vector<19x16xf32>
    %297 = vector.extract_strided_slice %250 {offsets = [0, 112], sizes = [19, 16], strides = [1, 1]} : vector<19x192xf32> to vector<19x16xf32>
    %298 = vector.extract_strided_slice %250 {offsets = [0, 176], sizes = [19, 16], strides = [1, 1]} : vector<19x192xf32> to vector<19x16xf32>
    %cst_118 = arith.constant dense<0.000000e+00> : vector<19x19xf32>
    %299 = tpu.matmul %296, %297, %cst_118 {dimension_numbers = #tpu.dot_dimension_numbers<[1], [1], [0], [0], [0, 0, 1, 0], [], []>} : vector<19x16xf32>, vector<19x16xf32>, vector<19x19xf32> -> vector<19x19xf32>
    %cst_119 = arith.constant dense<0xFF800000> : vector<19xf32>
    %300 = vector.multi_reduction <maximumf>, %299, %cst_119 [1] : vector<19x19xf32> to vector<19xf32>
    %301 = vector.shape_cast %300 : vector<19xf32> to vector<19x1xf32>
    %302 = vector.broadcast %301 : vector<19x1xf32> to vector<19x19xf32>
    %303 = arith.subf %299, %302 : vector<19x19xf32>
    %304 = math.exp %303 : vector<19x19xf32>
    %cst_120 = arith.constant dense<0.000000e+00> : vector<19xf32>
    %305 = vector.multi_reduction <add>, %304, %cst_120 [1] : vector<19x19xf32> to vector<19xf32>
    %306 = vector.shape_cast %305 : vector<19xf32> to vector<19x1xf32>
    %307 = tpu.reciprocal %306 {approx = true} : vector<19x1xf32> -> vector<19x1xf32>
    %308 = vector.broadcast %307 : vector<19x1xf32> to vector<19x19xf32>
    %309 = arith.mulf %304, %308 : vector<19x19xf32>
    %cst_121 = arith.constant dense<0.000000e+00> : vector<19x16xf32>
    %310 = tpu.matmul %309, %298, %cst_121 {dimension_numbers = #tpu.dot_dimension_numbers<[1], [0], [0], [1], [0, 0, 1, 1], [], []>} : vector<19x19xf32>, vector<19x16xf32>, vector<19x16xf32> -> vector<19x16xf32>
    %311 = tpu.concatenate %265, %280, %295, %310 in 1 : vector<19x16xf32>, vector<19x16xf32>, vector<19x16xf32>, vector<19x16xf32> -> vector<19x64xf32>
    %c1_122 = arith.constant 1 : index
    %c0_123 = arith.constant 0 : index
    %c0_124 = arith.constant 0 : index
    %312 = vector.load %arg8[%c1_122, %c0_123, %c0_124] : memref<2x64x64xf32, #tpu.memory_space<vmem>>, vector<1x64x64xf32>
    %313 = vector.shape_cast %312 : vector<1x64x64xf32> to vector<64x64xf32>
    %cst_125 = arith.constant dense<0.000000e+00> : vector<19x64xf32>
    %314 = tpu.matmul %311, %313, %cst_125 {dimension_numbers = #tpu.dot_dimension_numbers<[1], [0], [0], [1], [0, 0, 1, 1], [], []>} : vector<19x64xf32>, vector<64x64xf32>, vector<19x64xf32> -> vector<19x64xf32>
    %c1_126 = arith.constant 1 : index
    %c0_127 = arith.constant 0 : index
    %c0_128 = arith.constant 0 : index
    %315 = vector.load %arg9[%c1_126, %c0_127, %c0_128] : memref<2x1x64xf32, #tpu.memory_space<vmem>>, vector<1x1x64xf32>
    %316 = vector.shape_cast %315 : vector<1x1x64xf32> to vector<1x64xf32>
    %317 = vector.broadcast %316 : vector<1x64xf32> to vector<19x64xf32>
    %318 = arith.addf %314, %317 : vector<19x64xf32>
    %319 = arith.addf %243, %318 : vector<19x64xf32>
    %c1_129 = arith.constant 1 : index
    %c0_130 = arith.constant 0 : index
    %c0_131 = arith.constant 0 : index
    %320 = vector.load %arg10[%c1_129, %c0_130, %c0_131] : memref<2x1x64xf32, #tpu.memory_space<vmem>>, vector<1x1x64xf32>
    %321 = vector.shape_cast %320 : vector<1x1x64xf32> to vector<1x64xf32>
    %c1_132 = arith.constant 1 : index
    %c0_133 = arith.constant 0 : index
    %c0_134 = arith.constant 0 : index
    %322 = vector.load %arg11[%c1_132, %c0_133, %c0_134] : memref<2x1x64xf32, #tpu.memory_space<vmem>>, vector<1x1x64xf32>
    %323 = vector.shape_cast %322 : vector<1x1x64xf32> to vector<1x64xf32>
    %cst_135 = arith.constant dense<0.000000e+00> : vector<19xf32>
    %324 = vector.multi_reduction <add>, %319, %cst_135 [1] : vector<19x64xf32> to vector<19xf32>
    %325 = vector.shape_cast %324 : vector<19xf32> to vector<19x1xf32>
    %cst_136 = arith.constant 6.400000e+01 : f32
    %326 = vector.broadcast %cst_136 : f32 to vector<19x1xf32>
    %327 = arith.divf %325, %326 : vector<19x1xf32>
    %328 = vector.broadcast %327 : vector<19x1xf32> to vector<19x64xf32>
    %329 = arith.subf %319, %328 : vector<19x64xf32>
    %330 = arith.mulf %329, %329 : vector<19x64xf32>
    %cst_137 = arith.constant dense<0.000000e+00> : vector<19xf32>
    %331 = vector.multi_reduction <add>, %330, %cst_137 [1] : vector<19x64xf32> to vector<19xf32>
    %332 = vector.shape_cast %331 : vector<19xf32> to vector<19x1xf32>
    %cst_138 = arith.constant 6.400000e+01 : f32
    %333 = vector.broadcast %cst_138 : f32 to vector<19x1xf32>
    %334 = arith.divf %332, %333 : vector<19x1xf32>
    %335 = vector.broadcast %327 : vector<19x1xf32> to vector<19x64xf32>
    %336 = arith.subf %319, %335 : vector<19x64xf32>
    %cst_139 = arith.constant 9.99999974E-6 : f32
    %337 = vector.broadcast %cst_139 : f32 to vector<19x1xf32>
    %338 = arith.addf %334, %337 : vector<19x1xf32>
    %339 = math.rsqrt %338 : vector<19x1xf32>
    %340 = vector.broadcast %339 : vector<19x1xf32> to vector<19x64xf32>
    %341 = arith.mulf %336, %340 : vector<19x64xf32>
    %342 = vector.broadcast %321 : vector<1x64xf32> to vector<19x64xf32>
    %343 = arith.mulf %341, %342 : vector<19x64xf32>
    %344 = vector.broadcast %323 : vector<1x64xf32> to vector<19x64xf32>
    %345 = arith.addf %343, %344 : vector<19x64xf32>
    %c1_140 = arith.constant 1 : index
    %c0_141 = arith.constant 0 : index
    %c0_142 = arith.constant 0 : index
    %346 = vector.load %arg12[%c1_140, %c0_141, %c0_142] : memref<2x64x128xf32, #tpu.memory_space<vmem>>, vector<1x64x128xf32>
    %347 = vector.shape_cast %346 : vector<1x64x128xf32> to vector<64x128xf32>
    %cst_143 = arith.constant dense<0.000000e+00> : vector<19x128xf32>
    %348 = tpu.matmul %345, %347, %cst_143 {dimension_numbers = #tpu.dot_dimension_numbers<[1], [0], [0], [1], [0, 0, 1, 1], [], []>} : vector<19x64xf32>, vector<64x128xf32>, vector<19x128xf32> -> vector<19x128xf32>
    %c1_144 = arith.constant 1 : index
    %c0_145 = arith.constant 0 : index
    %c0_146 = arith.constant 0 : index
    %349 = vector.load %arg13[%c1_144, %c0_145, %c0_146] : memref<2x1x128xf32, #tpu.memory_space<vmem>>, vector<1x1x128xf32>
    %350 = vector.shape_cast %349 : vector<1x1x128xf32> to vector<1x128xf32>
    %351 = vector.broadcast %350 : vector<1x128xf32> to vector<19x128xf32>
    %352 = arith.addf %348, %351 : vector<19x128xf32>
    %cst_147 = arith.constant 5.000000e-01 : f32
    %353 = vector.broadcast %cst_147 : f32 to vector<19x128xf32>
    %354 = arith.mulf %353, %352 : vector<19x128xf32>
    %cst_148 = arith.constant 4.471500e-02 : f32
    %355 = vector.broadcast %cst_148 : f32 to vector<19x128xf32>
    %356 = arith.mulf %355, %352 : vector<19x128xf32>
    %357 = arith.mulf %356, %352 : vector<19x128xf32>
    %358 = arith.mulf %357, %352 : vector<19x128xf32>
    %359 = arith.addf %352, %358 : vector<19x128xf32>
    %cst_149 = arith.constant 0.797884583 : f32
    %360 = vector.broadcast %cst_149 : f32 to vector<19x128xf32>
    %361 = arith.mulf %360, %359 : vector<19x128xf32>
    %362 = math.tanh %361 : vector<19x128xf32>
    %cst_150 = arith.constant 1.000000e+00 : f32
    %363 = vector.broadcast %cst_150 : f32 to vector<19x128xf32>
    %364 = arith.addf %363, %362 : vector<19x128xf32>
    %365 = arith.mulf %354, %364 : vector<19x128xf32>
    %c1_151 = arith.constant 1 : index
    %c0_152 = arith.constant 0 : index
    %c0_153 = arith.constant 0 : index
    %366 = vector.load %arg14[%c1_151, %c0_152, %c0_153] : memref<2x128x64xf32, #tpu.memory_space<vmem>>, vector<1x128x64xf32>
    %367 = vector.shape_cast %366 : vector<1x128x64xf32> to vector<128x64xf32>
    %cst_154 = arith.constant dense<0.000000e+00> : vector<19x64xf32>
    %368 = tpu.matmul %365, %367, %cst_154 {dimension_numbers = #tpu.dot_dimension_numbers<[1], [0], [0], [1], [0, 0, 1, 1], [], []>} : vector<19x128xf32>, vector<128x64xf32>, vector<19x64xf32> -> vector<19x64xf32>
    %c1_155 = arith.constant 1 : index
    %c0_156 = arith.constant 0 : index
    %c0_157 = arith.constant 0 : index
    %369 = vector.load %arg15[%c1_155, %c0_156, %c0_157] : memref<2x1x64xf32, #tpu.memory_space<vmem>>, vector<1x1x64xf32>
    %370 = vector.shape_cast %369 : vector<1x1x64xf32> to vector<1x64xf32>
    %371 = vector.broadcast %370 : vector<1x64xf32> to vector<19x64xf32>
    %372 = arith.addf %368, %371 : vector<19x64xf32>
    %373 = arith.addf %345, %372 : vector<19x64xf32>
    %c1_158 = arith.constant 1 : index
    %c0_159 = arith.constant 0 : index
    %c0_160 = arith.constant 0 : index
    %374 = vector.load %arg16[%c1_158, %c0_159, %c0_160] : memref<2x1x64xf32, #tpu.memory_space<vmem>>, vector<1x1x64xf32>
    %375 = vector.shape_cast %374 : vector<1x1x64xf32> to vector<1x64xf32>
    %c1_161 = arith.constant 1 : index
    %c0_162 = arith.constant 0 : index
    %c0_163 = arith.constant 0 : index
    %376 = vector.load %arg17[%c1_161, %c0_162, %c0_163] : memref<2x1x64xf32, #tpu.memory_space<vmem>>, vector<1x1x64xf32>
    %377 = vector.shape_cast %376 : vector<1x1x64xf32> to vector<1x64xf32>
    %cst_164 = arith.constant dense<0.000000e+00> : vector<19xf32>
    %378 = vector.multi_reduction <add>, %373, %cst_164 [1] : vector<19x64xf32> to vector<19xf32>
    %379 = vector.shape_cast %378 : vector<19xf32> to vector<19x1xf32>
    %cst_165 = arith.constant 6.400000e+01 : f32
    %380 = vector.broadcast %cst_165 : f32 to vector<19x1xf32>
    %381 = arith.divf %379, %380 : vector<19x1xf32>
    %382 = vector.broadcast %381 : vector<19x1xf32> to vector<19x64xf32>
    %383 = arith.subf %373, %382 : vector<19x64xf32>
    %384 = arith.mulf %383, %383 : vector<19x64xf32>
    %cst_166 = arith.constant dense<0.000000e+00> : vector<19xf32>
    %385 = vector.multi_reduction <add>, %384, %cst_166 [1] : vector<19x64xf32> to vector<19xf32>
    %386 = vector.shape_cast %385 : vector<19xf32> to vector<19x1xf32>
    %cst_167 = arith.constant 6.400000e+01 : f32
    %387 = vector.broadcast %cst_167 : f32 to vector<19x1xf32>
    %388 = arith.divf %386, %387 : vector<19x1xf32>
    %389 = vector.broadcast %381 : vector<19x1xf32> to vector<19x64xf32>
    %390 = arith.subf %373, %389 : vector<19x64xf32>
    %cst_168 = arith.constant 9.99999974E-6 : f32
    %391 = vector.broadcast %cst_168 : f32 to vector<19x1xf32>
    %392 = arith.addf %388, %391 : vector<19x1xf32>
    %393 = math.rsqrt %392 : vector<19x1xf32>
    %394 = vector.broadcast %393 : vector<19x1xf32> to vector<19x64xf32>
    %395 = arith.mulf %390, %394 : vector<19x64xf32>
    %396 = vector.broadcast %375 : vector<1x64xf32> to vector<19x64xf32>
    %397 = arith.mulf %395, %396 : vector<19x64xf32>
    %398 = vector.broadcast %377 : vector<1x64xf32> to vector<19x64xf32>
    %399 = arith.addf %397, %398 : vector<19x64xf32>
    %c0_169 = arith.constant 0 : index
    %c0_170 = arith.constant 0 : index
    %c0_171 = arith.constant 0 : index
    %400 = vector.load %arg18[%c0_169, %c0_170, %c0_171] : memref<1x19x64xf32, #tpu.memory_space<vmem>>, vector<1x19x64xf32>
    %401 = vector.shape_cast %400 : vector<1x19x64xf32> to vector<19x64xf32>
    %402 = vector.shape_cast %399 : vector<19x64xf32> to vector<1x19x64xf32>
    tpu.vector_store %arg18[%c0_169, %c0_170, %c0_171], %402 {strides = array<i32>} : memref<1x19x64xf32, #tpu.memory_space<vmem>>, vector<1x19x64xf32>,
    return
  }
  func.func @transform_0(%arg0: i32) -> (i32, i32, i32) {
    %c0_i32 = arith.constant 0 : i32
    %c0_i32_0 = arith.constant 0 : i32
    %c0_i32_1 = arith.constant 0 : i32
    return %arg0, %c0_i32, %c0_i32_0 : i32, i32, i32
  }
  func.func @transform_1(%arg0: i32) -> (i32, i32, i32, i32) {
    %c0_i32 = arith.constant 0 : i32
    %c0_i32_0 = arith.constant 0 : i32
    %c0_i32_1 = arith.constant 0 : i32
    %c0_i32_2 = arith.constant 0 : i32
    %c0_i32_3 = arith.constant 0 : i32
    return %c0_i32, %c0_i32_0, %c0_i32_1, %c0_i32_2 : i32, i32, i32, i32
  }
  func.func @transform_2(%arg0: i32) -> (i32, i32) {
    %c0_i32 = arith.constant 0 : i32
    %c0_i32_0 = arith.constant 0 : i32
    %c0_i32_1 = arith.constant 0 : i32
    return %c0_i32, %c0_i32_0 : i32, i32
  }
  func.func @transform_3(%arg0: i32) -> (i32, i32) {
    %c0_i32 = arith.constant 0 : i32
    %c0_i32_0 = arith.constant 0 : i32
    %c0_i32_1 = arith.constant 0 : i32
    return %c0_i32, %c0_i32_0 : i32, i32
  }
  func.func @transform_4(%arg0: i32) -> (i32, i32) {
    %c0_i32 = arith.constant 0 : i32
    %c0_i32_0 = arith.constant 0 : i32
    %c0_i32_1 = arith.constant 0 : i32
    return %c0_i32, %c0_i32_0 : i32, i32
  }
  func.func @transform_5(%arg0: i32) -> (i32, i32, i32) {
    %c0_i32 = arith.constant 0 : i32
    %c0_i32_0 = arith.constant 0 : i32
    %c0_i32_1 = arith.constant 0 : i32
    %c0_i32_2 = arith.constant 0 : i32
    return %c0_i32, %c0_i32_0, %c0_i32_1 : i32, i32, i32
  }
  func.func @transform_6(%arg0: i32) -> (i32, i32, i32) {
    %c0_i32 = arith.constant 0 : i32
    %c0_i32_0 = arith.constant 0 : i32
    %c0_i32_1 = arith.constant 0 : i32
    %c0_i32_2 = arith.constant 0 : i32
    return %c0_i32, %c0_i32_0, %c0_i32_1 : i32, i32, i32
  }
  func.func @transform_7(%arg0: i32) -> (i32, i32, i32) {
    %c0_i32 = arith.constant 0 : i32
    %c0_i32_0 = arith.constant 0 : i32
    %c0_i32_1 = arith.constant 0 : i32
    %c0_i32_2 = arith.constant 0 : i32
    return %c0_i32, %c0_i32_0, %c0_i32_1 : i32, i32, i32
  }
  func.func @transform_8(%arg0: i32) -> (i32, i32, i32) {
    %c0_i32 = arith.constant 0 : i32
    %c0_i32_0 = arith.constant 0 : i32
    %c0_i32_1 = arith.constant 0 : i32
    %c0_i32_2 = arith.constant 0 : i32
    return %c0_i32, %c0_i32_0, %c0_i32_1 : i32, i32, i32
  }
  func.func @transform_9(%arg0: i32) -> (i32, i32, i32) {
    %c0_i32 = arith.constant 0 : i32
    %c0_i32_0 = arith.constant 0 : i32
    %c0_i32_1 = arith.constant 0 : i32
    %c0_i32_2 = arith.constant 0 : i32
    return %c0_i32, %c0_i32_0, %c0_i32_1 : i32, i32, i32
  }
  func.func @transform_10(%arg0: i32) -> (i32, i32, i32) {
    %c0_i32 = arith.constant 0 : i32
    %c0_i32_0 = arith.constant 0 : i32
    %c0_i32_1 = arith.constant 0 : i32
    %c0_i32_2 = arith.constant 0 : i32
    return %c0_i32, %c0_i32_0, %c0_i32_1 : i32, i32, i32
  }
  func.func @transform_11(%arg0: i32) -> (i32, i32, i32) {
    %c0_i32 = arith.constant 0 : i32
    %c0_i32_0 = arith.constant 0 : i32
    %c0_i32_1 = arith.constant 0 : i32
    %c0_i32_2 = arith.constant 0 : i32
    return %c0_i32, %c0_i32_0, %c0_i32_1 : i32, i32, i32
  }
  func.func @transform_12(%arg0: i32) -> (i32, i32, i32) {
    %c0_i32 = arith.constant 0 : i32
    %c0_i32_0 = arith.constant 0 : i32
    %c0_i32_1 = arith.constant 0 : i32
    %c0_i32_2 = arith.constant 0 : i32
    return %c0_i32, %c0_i32_0, %c0_i32_1 : i32, i32, i32
  }
  func.func @transform_13(%arg0: i32) -> (i32, i32, i32) {
    %c0_i32 = arith.constant 0 : i32
    %c0_i32_0 = arith.constant 0 : i32
    %c0_i32_1 = arith.constant 0 : i32
    %c0_i32_2 = arith.constant 0 : i32
    return %c0_i32, %c0_i32_0, %c0_i32_1 : i32, i32, i32
  }
  func.func @transform_14(%arg0: i32) -> (i32, i32, i32) {
    %c0_i32 = arith.constant 0 : i32
    %c0_i32_0 = arith.constant 0 : i32
    %c0_i32_1 = arith.constant 0 : i32
    %c0_i32_2 = arith.constant 0 : i32
    return %c0_i32, %c0_i32_0, %c0_i32_1 : i32, i32, i32
  }
  func.func @transform_15(%arg0: i32) -> (i32, i32, i32) {
    %c0_i32 = arith.constant 0 : i32
    %c0_i32_0 = arith.constant 0 : i32
    %c0_i32_1 = arith.constant 0 : i32
    %c0_i32_2 = arith.constant 0 : i32
    return %c0_i32, %c0_i32_0, %c0_i32_1 : i32, i32, i32
  }
  func.func @transform_16(%arg0: i32) -> (i32, i32, i32) {
    %c0_i32 = arith.constant 0 : i32
    %c0_i32_0 = arith.constant 0 : i32
    %c0_i32_1 = arith.constant 0 : i32
    %c0_i32_2 = arith.constant 0 : i32
    return %c0_i32, %c0_i32_0, %c0_i32_1 : i32, i32, i32
  }
  func.func @transform_17(%arg0: i32) -> (i32, i32, i32) {
    %c0_i32 = arith.constant 0 : i32
    %c0_i32_0 = arith.constant 0 : i32
    %c0_i32_1 = arith.constant 0 : i32
    return %arg0, %c0_i32, %c0_i32_0 : i32, i32, i32
  }
}

</mosaic_0001>

<bundles_post_ra>
// kernel: squeeze.1
= control target key start
LH: loop header
LB: loop body
LE: loop exit
PB: predicated region body
PF: predicated region fallthrough
CT: control target
= control target key end

     0   :  { %s32_s14 = smov 3  ;;  %s783_s15 = smov 127   ;;  %vm575_vm0 = vcmask 1014784   ;;  %vm591_vm1 = vcmask 1022976   ;;  %vm607_vm2 = vcmask 1039360   ;;  %vm22_vm3 = vcmask 39936   ;;  %s1210_s0 = inlined_call_operand.vmem [shape: f32[2,400], index: 0, kind: input, shape index: {}]   ;;  %s1211_s1 = inlined_call_operand.vmem [shape: f32[2,80,5], index: 1, kind: output, shape index: {}]  }
   0x1   :  { %v619_v0 = vld [vmem:[%s1210_s0 + $0x6] sm:$0x3]  ;;  %v620_v1 = vld [vmem:[%s1210_s0 + $0x4] sm:$0x3]  ;;  %v621_v2 = vld [vmem:[%s1210_s0 + $0x2] sm:$0x3] }
   0x2   :  { %9 = vst [vmem:[#allocation0 + $0x18] sm:$0x3] %v619_v0  ;;  %14 = vst [vmem:[#allocation0 + $0x10] sm:$0x3] %v620_v1  ;;  %v19_v3 = vld [vmem:[%s1210_s0] sm:$0x3] }
   0x3   :  { %18 = vst [vmem:[#allocation0 + $0x8] sm:$0x3] %v621_v2  ;;  %20 = vst [vmem:[#allocation0] sm:$0x3] %v19_v3  ;;  %s40_s0 = smov 3  ;;  %s784_s16 = smov 124  }
   0x4   :  { %s61_s17 = smov 3  ;;  %s785_s18 = smov 126   ;;  %vm579_vm4 = vcmask 31744   ;;  %vm595_vm5 = vcmask 23552   ;;  %vm582_vm6 = vcmask 39968   ;;  %vm598_vm7 = vcmask 39960  }
   0x5   :  { %s786_s19 = smov 123   ;;  %s69_s20 = smov 3  ;;  %vm611_vm8 = vcmask 7168   ;;  %vm614_vm9 = vcmask 39944  }
   0x6   :  { %s787_s21 = smov 122   ;;  %s788_s22 = smov 121  }
   0x7   :  { %s90_s23 = smov 3  ;;  %s789_s24 = smov 119  }
   0x8   :  { %s790_s25 = smov 118   ;;  %s98_s26 = smov 3 }
   0x9   :  { %v25_v4 = vld [vmem:[#allocation0 + $0x18] sm:$0x3]   ;;  %v41_v5 = vld [vmem:[#allocation0 + $0x11] ss:$-1 sm:%s40_s0]   ;;  %s791_s27 = smov 117   ;;  %s792_s28 = smov 116  }
   0xa   :  { %26 = vrot.lane.b32.xlu0 %v25_v4, %s783_s15  ;;  %42 = vrot.lane.b32.xlu1 %v41_v5, %s784_s16  ;;  %v33_v6 = vld [vmem:[#allocation0 + $0x9] ss:$-1 sm:%s32_s14]   ;;  %v47_v7 = vld [vmem:[#allocation0] sm:$0x3]   ;;  %v54_v8 = vld [vmem:[#allocation0 + $0x18] sm:$0x3]  }
   0xb   :  { %v62_v9 = vld [vmem:[#allocation0 + $0x9] ss:$-1 sm:%s61_s17]   ;;  %v70_v10 = vld [vmem:[#allocation0 + $0x11] ss:$-1 sm:%s69_s20]   ;;  %v76_v11 = vld [vmem:[#allocation0] sm:$0x3]  }
   0xc   :  { %v83_v12 = vld [vmem:[#allocation0 + $0x18] sm:$0x3]   ;;  %v91_v13 = vld [vmem:[#allocation0 + $0x9] ss:$-1 sm:%s90_s23]   ;;  %v99_v14 = vld [vmem:[#allocation0 + $0x11] ss:$-1 sm:%s98_s26]  }
   0xd   :  { %v105_v15 = vld [vmem:[#allocation0] sm:$0x3]   ;;  %s112_s29 = smov 3  ;;  %s120_s30 = smov 3  ;;  %v178_v25 = vld [vmem:[#allocation0 + $0x8] sm:$0x3]  }
   0xe   :  { %34 = vrot.lane.b32.xlu0 %v33_v6, %s785_s18  ;;  %48 = vrot.lane.b32.xlu1 %v47_v7, %s786_s19  ;;  %s793_s2 = smov 114   ;;  %s794_s3 = smov 113   ;;  %v113_v16 = vld [vmem:[#allocation0 + $0x9] ss:$-1 sm:%s112_s29]   ;;  %v121_v17 = vld [vmem:[#allocation0 + $0x11] ss:$-1 sm:%s120_s30]  }
   0xf   :  { %s134_s4 = smov 3  ;;  %s795_s5 = smov 111   ;;  %v127_v18 = vld [vmem:[#allocation0] sm:$0x3]   ;;  %v199_v28 = vld [vmem:[#allocation0 + $0x8] sm:$0x3]  }
  0x10   :  { %s796_s6 = smov 109   ;;  %v135_v19 = vld [vmem:[#allocation0 + $0x9] ss:$-1 sm:%s134_s4]   ;;  %s142_s7 = smov 3  ;;  %v149_v21 = vld [vmem:[#allocation0] sm:$0x3]  }
  0x11   :  { %s797_s8 = smov 108   ;;  %s798_s9 = smov 106   ;;  %v143_v20 = vld [vmem:[#allocation0 + $0x11] ss:$-1 sm:%s142_s7]   ;;  %v171_v24 = vld [vmem:[#allocation0] sm:$0x3]  }
  0x12   :  { %55 = vrot.lane.b32.xlu0 %v54_v8, %s787_s21  ;;  %63 = vrot.lane.b32.xlu1 %v62_v9, %s788_s22  ;;  %s156_s10 = smov 3  ;;  %s164_s11 = smov 3  ;;  %v192_v27 = vld [vmem:[#allocation0] sm:$0x3]   ;;  %v220_v31 = vld [vmem:[#allocation0 + $0x8] sm:$0x3]  }
  0x13   :  { %s799_s12 = smov 104   ;;  %s800_s13 = smov 103   ;;  %v157_v22 = vld [vmem:[#allocation0 + $0x9] ss:$-1 sm:%s156_s10]   ;;  %v165_v23 = vld [vmem:[#allocation0 + $0x11] ss:$-1 sm:%s164_s11]  }
  0x14   :  { %s801_s0 = smov 101   ;;  %s802_s14 = smov 99   ;;  %v213_v30 = vld [vmem:[#allocation0] sm:$0x3]   ;;  %v241_v34 = vld [vmem:[#allocation0 + $0x8] sm:$0x3]  }
  0x15   :  { %s185_s15 = smov 3  ;;  %s803_s16 = smov 98   ;;  %v234_v33 = vld [vmem:[#allocation0] sm:$0x3]   ;;  %v262_v37 = vld [vmem:[#allocation0 + $0x8] sm:$0x3]  }
  0x16   :  { %71 = vrot.lane.b32.xlu0 %v70_v10, %s789_s24  ;;  %77 = vrot.lane.b32.xlu1 %v76_v11, %s790_s25  ;;  %s804_s17 = smov 96   ;;  %v186_v26 = vld [vmem:[#allocation0 + $0x11] ss:$-1 sm:%s185_s15]   ;;  %s206_s18 = smov 3  ;;  %v255_v36 = vld [vmem:[#allocation0] sm:$0x3]  }
  0x17   :  { %s805_s19 = smov 94   ;;  %s806_s20 = smov 93   ;;  %v207_v29 = vld [vmem:[#allocation0 + $0x11] ss:$-1 sm:%s206_s18]   ;;  %v276_v39 = vld [vmem:[#allocation0] sm:$0x3]  }
  0x18   :  { %s807_s21 = smov 91   ;;  %s808_s22 = smov 89   ;;  %v283_v40 = vld [vmem:[#allocation0 + $0x8] sm:$0x3]   ;;  %v297_v42 = vld [vmem:[#allocation0] sm:$0x3]  }
  0x19   :  { %s227_s23 = smov 3  ;;  %s809_s24 = smov 88   ;;  %v304_v43 = vld [vmem:[#allocation0 + $0x8] sm:$0x3]   ;;  %v311_v44 = vld [vmem:[#allocation0 + $0x10] sm:$0x3]  }
  0x1a   :  { %84 = vrot.lane.b32.xlu0 %v83_v12, %s791_s27  ;;  %92 = vrot.lane.b32.xlu1 %v91_v13, %s792_s28  ;;  %s810_s25 = smov 86   ;;  %v228_v32 = vld [vmem:[#allocation0 + $0x11] ss:$-1 sm:%s227_s23]   ;;  %s248_s26 = smov 3  ;;  %v317_v45 = vld [vmem:[#allocation0] sm:$0x3]  }
  0x1b   :  { %s811_s27 = smov 84   ;;  %s812_s28 = smov 83   ;;  %v249_v35 = vld [vmem:[#allocation0 + $0x11] ss:$-1 sm:%s248_s26]   ;;  %v324_v46 = vld [vmem:[#allocation0 + $0x8] sm:$0x3]  }
  0x1c   :  { %s813_s29 = smov 81   ;;  %s814_s30 = smov 79   ;;  %v331_v47 = vld [vmem:[#allocation0 + $0x10] sm:$0x3]   ;;  %v337_v48 = vld [vmem:[#allocation0] sm:$0x3]  }
  0x1d   :  { %s816_s4 = smov 76   ;;  %s818_s7 = smov 73   ;;  %v344_v49 = vld [vmem:[#allocation0 + $0x8] sm:$0x3]   ;;  %v351_v50 = vld [vmem:[#allocation0 + $0x10] sm:$0x3]  }
  0x1e   :  { %100 = vrot.lane.b32.xlu0 %v99_v14, %s793_s2  ;;  %106 = vrot.lane.b32.xlu1 %v105_v15, %s794_s3  ;;  %s269_s2 = smov 3  ;;  %s815_s3 = smov 78   ;;  %v357_v51 = vld [vmem:[#allocation0] sm:$0x3]   ;;  %v364_v52 = vld [vmem:[#allocation0 + $0x8] sm:$0x3]  }
  0x1f   :  { %v270_v38 = vld [vmem:[#allocation0 + $0x11] ss:$-1 sm:%s269_s2]   ;;  %s821_s10 = smov 68   ;;  %s822_s11 = smov 66   ;;  %v574_v55 = vld [vmem:[#allocation0 + $0x18] sm:$0x3]  }
  0x20   :  { %s827_s15 = smov 58   ;;  %s589_s18 = smov 3  ;;  %v371_v53 = vld [vmem:[#allocation0 + $0x10] sm:$0x3]   ;;  %v386_v0 = vld [vmem:[#allocation0 + $0x8] sm:$0x3]  }
  0x21   :  { %v572_v54 = vld [vmem:[#allocation0 + $0x10] sm:$0x3]   ;;  %v590_v57 = vld [vmem:[#allocation0 + $0x9] ss:$-1 sm:%s589_s18]   ;;  %s831_s23 = smov 51   ;;  %s833_s26 = smov 4  }
  0x22   :  { %114 = vrot.lane.b32.xlu0 %v113_v16, %s795_s5  ;;  %122 = vrot.lane.b32.xlu1 %v121_v17, %s796_s6  ;;  %s290_s5 = smov 3  ;;  %s817_s6 = smov 74   ;;  %v576_v58 = vsel %vm575_vm0, %v574_v55, %v572_v54  ;;  %v393_v1 = vld [vmem:[#allocation0 + $0x10] sm:$0x3]   ;;  %v408_v3 = vld [vmem:[#allocation0 + $0x8] sm:$0x3]  }
  0x23   :  { %v291_v41 = vld [vmem:[#allocation0 + $0x11] ss:$-1 sm:%s290_s5]   ;;  %s837_s2 = smov 46   ;;  %s839_s5 = smov 43   ;;  %v430_v8 = vld [vmem:[#allocation0 + $0x8] sm:$0x3]  }
  0x24   :  { %v415_v4 = vld [vmem:[#allocation0 + $0x10] sm:$0x3]   ;;  %s844_s18 = smov 34   ;;  %v452_v13 = vld [vmem:[#allocation0 + $0x8] sm:$0x3]  }
  0x25   :  { %v437_v9 = vld [vmem:[#allocation0 + $0x10] sm:$0x3]  }
  0x26   :  { %128 = vrot.lane.b32.xlu0 %v127_v18, %s797_s8  ;;  %136 = vrot.lane.b32.xlu1 %v135_v19, %s798_s9  ;;  %s819_s8 = smov 71   ;;  %s820_s9 = smov 69   ;;  %v459_v16 = vld [vmem:[#allocation0 + $0x10] sm:$0x3]  }
  0x2a   :  { %144 = vrot.lane.b32.xlu0 %v143_v20, %s799_s12  ;;  %150 = vrot.lane.b32.xlu1 %v149_v21, %s800_s13  ;;  %s823_s12 = smov 64   ;;  %s824_s13 = smov 63   ;;  %v474_v20 = vld [vmem:[#allocation0 + $0x8] sm:$0x3]   ;;  %v481_v21 = vld [vmem:[#allocation0 + $0x10] sm:$0x3]  }
  0x2e   :  { %158 = vrot.lane.b32.xlu0 %v157_v22, %s801_s0  ;;  %166 = vrot.lane.b32.xlu1 %v165_v23, %s802_s14  ;;  %s825_s0 = smov 61   ;;  %s826_s14 = smov 59  }
  0x32   :  { %172 = vrot.lane.b32.xlu0 %v171_v24, %s803_s16  ;;  %179 = vrot.lane.b32.xlu1 %v178_v25, %s804_s17  ;;  %s828_s16 = smov 56   ;;  %s586_s17 = smov 3  ;;  %v496_v25 = vld [vmem:[#allocation0 + $0x8] sm:$0x3]  }
  0x33   :  { %v587_v56 = vld [vmem:[#allocation0 + $0x1] ss:$-1 sm:%s586_s17]   ;;  %s843_s17 = smov 36  }
  0x34   :  { %v592_v59 = vsel %vm591_vm1, %v590_v57, %v587_v56 }
  0x36   :  { %187 = vrot.lane.b32.xlu0 %v186_v26, %s805_s19  ;;  %193 = vrot.lane.b32.xlu1 %v192_v27, %s806_s20  ;;  %s829_s19 = smov 54   ;;  %s830_s20 = smov 53  }
  0x3a   :  { %200 = vrot.lane.b32.xlu0 %v199_v28, %s807_s21  ;;  %208 = vrot.lane.b32.xlu1 %v207_v29, %s808_s22  ;;  %s602_s21 = smov 3  ;;  %s605_s22 = smov 3  ;;  %v503_v28 = vld [vmem:[#allocation0 + $0x10] sm:$0x3]  }
  0x3b   :  { %v603_v60 = vld [vmem:[#allocation0 + $0x9] ss:$-1 sm:%s602_s21]   ;;  %v606_v61 = vld [vmem:[#allocation0 + $0x11] ss:$-1 sm:%s605_s22]   ;;  %s853_s21 = smov 19   ;;  %s854_s22 = smov 18  }
  0x3c   :  { %v608_v62 = vsel %vm607_vm2, %v606_v61, %v603_v60 }
  0x3e   :  { %214 = vrot.lane.b32.xlu0 %v213_v30, %s809_s24  ;;  %221 = vrot.lane.b32.xlu1 %v220_v31, %s810_s25  ;;  %s832_s24 = smov 49   ;;  %s378_s25 = smov 3 }
  0x3f   :  { %v379_v63 = vld [vmem:[#allocation0 + $0x1] ss:$-1 sm:%s378_s25]   ;;  %s846_s25 = smov 31  }
  0x42   :  { %229 = vrot.lane.b32.xlu0 %v228_v32, %s811_s27  ;;  %235 = vrot.lane.b32.xlu1 %v234_v33, %s812_s28  ;;  %s834_s27 = smov 3   ;;  %s835_s28 = smov 1   ;;  %v526_v33 = vld [vmem:[#allocation0 + $0x10] sm:$0x3]  }
  0x46   :  { %242 = vrot.lane.b32.xlu0 %v241_v34, %s813_s29  ;;  %250 = vrot.lane.b32.xlu1 %v249_v35, %s814_s30  ;;  %s836_s29 = smov 48   ;;  %s400_s30 = smov 3 }
  0x47   :  { %v401_v2 = vld [vmem:[#allocation0 + $0x1] ss:$-1 sm:%s400_s30]   ;;  %s847_s30 = smov 29  }
  0x4a   :  { %256 = vrot.lane.b32.xlu0 %v255_v36, %s815_s3  ;;  %263 = vrot.lane.b32.xlu1 %v262_v37, %s816_s4  ;;  %s838_s3 = smov 44   ;;  %s422_s4 = smov 3  ;;  %v21_v36 = vld [vmem:[#allocation0] sm:$0x3]  }
  0x4b   :  { %v423_v5 = vld [vmem:[#allocation0 + $0x1] ss:$-1 sm:%s422_s4]   ;;  %23 = vst.msk [vmem:[%s1211_s1] ss:$80 sm:$0x3] %vm22_vm3, %v21_v36   ;;  %s556_s4 = smov 3 }
  0x4e   :  { %271 = vrot.lane.b32.xlu0 %v270_v38, %s817_s6  ;;  %277 = vrot.lane.b32.xlu1 %v276_v39, %s818_s7  ;;  %s840_s6 = smov 41  }
  0x52   :  { %284 = vrot.lane.b32.xlu0 %v283_v40, %s819_s8  ;;  %292 = vrot.lane.b32.xlu1 %v291_v41, %s820_s9  ;;  %s849_s8 = smov 26   ;;  %s850_s9 = smov 24   ;;  %v549_v41 = vld [vmem:[#allocation0 + $0x10] sm:$0x3]  }
  0x56   :  { %298 = vrot.lane.b32.xlu0 %v297_v42, %s821_s10  ;;  %305 = vrot.lane.b32.xlu1 %v304_v43, %s822_s11  ;;  %s841_s11 = smov 39   ;;  %s510_s10 = smov 3  ;;  %v557_v42 = vld [vmem:[#allocation0 + $0x1] ss:$-1 sm:%s556_s4]  }
  0x57   :  { %v511_v29 = vld [vmem:[#allocation0 + $0x1] ss:$-1 sm:%s510_s10]   ;;  %s858_s10 = smov 11  }
  0x5a   :  { %312 = vrot.lane.b32.xlu0 %v311_v44, %s823_s12  ;;  %318 = vrot.lane.b32.xlu1 %v317_v45, %s824_s13  ;;  %s842_s12 = smov 38   ;;  %s444_s13 = smov 3 }
  0x5b   :  { %v445_v12 = vld [vmem:[#allocation0 + $0x1] ss:$-1 sm:%s444_s13]  }
  0x5e   :  { %325 = vrot.lane.b32.xlu0 %v324_v46, %s825_s0  ;;  %332 = vrot.lane.b32.xlu1 %v331_v47, %s826_s14  ;;  %s851_s14 = smov 23  }
  0x62   :  { %338 = vrot.lane.b32.xlu0 %v337_v48, %s827_s15  ;;  %345 = vrot.lane.b32.xlu1 %v344_v49, %s828_s16  ;;  %s852_s15 = smov 21   ;;  %s518_s16 = smov 3 }
  0x63   :  { %v519_v32 = vld [vmem:[#allocation0 + $0x9] ss:$-1 sm:%s518_s16]   ;;  %s860_s16 = smov 8  }
  0x66   :  { %352 = vrot.lane.b32.xlu0 %v351_v50, %s829_s19  ;;  %358 = vrot.lane.b32.xlu1 %v357_v51, %s830_s20  ;;  %s466_s19 = smov 3 }
  0x67   :  { %v467_v17 = vld [vmem:[#allocation0 + $0x1] ss:$-1 sm:%s466_s19]  }
  0x6a   :  { %365 = vrot.lane.b32.xlu0 %v364_v52, %s831_s23  ;;  %372 = vrot.lane.b32.xlu1 %v371_v53, %s832_s24  ;;  %s845_s24 = smov 33   ;;  %s533_s23 = smov 3 }
  0x6b   :  { %v534_v37 = vld [vmem:[#allocation0 + $0x1] ss:$-1 sm:%s533_s23]  }
  0x6e   :  { %577 = vrot.lane.b32.xlu0 %v576_v58, %s833_s26  ;;  %593 = vrot.lane.b32.xlu1 %v592_v59, %s834_s27 }
  0x72   :  { %609 = vrot.lane.b32.xlu0 %v608_v62, %s835_s28  ;;  %380 = vrot.lane.b32.xlu1 %v379_v63, %s836_s29 }
  0x76   :  { %387 = vrot.lane.b32.xlu0 %v386_v0, %s837_s2  ;;  %394 = vrot.lane.b32.xlu1 %v393_v1, %s838_s3  ;;  %s848_s2 = smov 28   ;;  %s488_s3 = smov 3 }
  0x77   :  { %v489_v24 = vld [vmem:[#allocation0 + $0x1] ss:$-1 sm:%s488_s3]   ;;  %s856_s3 = smov 14  }
  0x7a   :  { %402 = vrot.lane.b32.xlu0 %v401_v2, %s839_s5  ;;  %409 = vrot.lane.b32.xlu1 %v408_v3, %s840_s6 }
  0x7c   :  { %v27_v6 = vpop.permute.xlu0 %26   ;;  %v43_v7 = vpop.permute.xlu1 %42  }
  0x7d   :  { %622 = vst.msk [vmem:[%s1211_s1 + $0x4d] ss:$80 sm:$0x3] %vm22_vm3, %v27_v6   ;;  %624 = vst.msk [vmem:[%s1211_s1 + $0x84] ss:$-80 sm:$0x3] %vm22_vm3, %v43_v7  }
  0x7e   :  { %416 = vrot.lane.b32.xlu0 %v415_v4, %s841_s11  ;;  %424 = vrot.lane.b32.xlu1 %v423_v5, %s842_s12  ;;  %s564_s11 = smov 3 }
  0x7f   :  { %v565_v45 = vld [vmem:[#allocation0 + $0x9] ss:$-1 sm:%s564_s11]  }
  0x80   :  { %v35_v10 = vpop.permute.xlu0 %34   ;;  %v49_v11 = vpop.permute.xlu1 %48  }
  0x81   :  { %623 = vst.msk [vmem:[%s1211_s1 + $0x6a] ss:$-80 sm:$0x3] %vm22_vm3, %v35_v10   ;;  %625 = vst.msk [vmem:[%s1211_s1 + $0x1] ss:$80 sm:$0x3] %vm22_vm3, %v49_v11  }
  0x82   :  { %431 = vrot.lane.b32.xlu0 %v430_v8, %s843_s17  ;;  %438 = vrot.lane.b32.xlu1 %v437_v9, %s844_s18 }
  0x84   :  { %v56_v14 = vpop.permute.xlu0 %55   ;;  %v64_v15 = vpop.permute.xlu1 %63  }
  0x85   :  { %626 = vst.msk [vmem:[%s1211_s1 + $0x4e] ss:$80 sm:$0x3] %vm22_vm3, %v56_v14   ;;  %627 = vst.msk [vmem:[%s1211_s1 + $0x6b] ss:$-80 sm:$0x3] %vm22_vm3, %v64_v15  }
  0x86   :  { %446 = vrot.lane.b32.xlu0 %v445_v12, %s845_s24  ;;  %453 = vrot.lane.b32.xlu1 %v452_v13, %s846_s25  ;;  %s541_s24 = smov 3 }
  0x87   :  { %v542_v38 = vld [vmem:[#allocation0 + $0x9] ss:$-1 sm:%s541_s24]  }
  0x88   :  { %v72_v18 = vpop.permute.xlu0 %71   ;;  %v78_v19 = vpop.permute.xlu1 %77  }
  0x89   :  { %628 = vst.msk [vmem:[%s1211_s1 + $0x85] ss:$-80 sm:$0x3] %vm22_vm3, %v72_v18   ;;  %629 = vst.msk [vmem:[%s1211_s1 + $0x2] ss:$80 sm:$0x3] %vm22_vm3, %v78_v19  }
  0x8a   :  { %460 = vrot.lane.b32.xlu0 %v459_v16, %s847_s30  ;;  %468 = vrot.lane.b32.xlu1 %v467_v17, %s848_s2  ;;  %s855_s2 = smov 16  }
  0x8c   :  { %v85_v22 = vpop.permute.xlu0 %84   ;;  %v93_v23 = vpop.permute.xlu1 %92  }
  0x8d   :  { %630 = vst.msk [vmem:[%s1211_s1 + $0x4f] ss:$80 sm:$0x3] %vm22_vm3, %v85_v22   ;;  %631 = vst.msk [vmem:[%s1211_s1 + $0x6c] ss:$-80 sm:$0x3] %vm22_vm3, %v93_v23  }
  0x8e   :  { %475 = vrot.lane.b32.xlu0 %v474_v20, %s849_s8  ;;  %482 = vrot.lane.b32.xlu1 %v481_v21, %s850_s9  ;;  %s857_s9 = smov 13  }
  0x90   :  { %v101_v26 = vpop.permute.xlu0 %100   ;;  %v107_v27 = vpop.permute.xlu1 %106  }
  0x91   :  { %632 = vst.msk [vmem:[%s1211_s1 + $0x86] ss:$-80 sm:$0x3] %vm22_vm3, %v101_v26   ;;  %633 = vst.msk [vmem:[%s1211_s1 + $0x3] ss:$80 sm:$0x3] %vm22_vm3, %v107_v27  }
  0x92   :  { %490 = vrot.lane.b32.xlu0 %v489_v24, %s851_s14  ;;  %497 = vrot.lane.b32.xlu1 %v496_v25, %s852_s15  ;;  %s859_s15 = smov 9  }
  0x94   :  { %v115_v30 = vpop.permute.xlu0 %114   ;;  %v123_v31 = vpop.permute.xlu1 %122  }
  0x95   :  { %634 = vst.msk [vmem:[%s1211_s1 + $0x6d] ss:$-80 sm:$0x3] %vm22_vm3, %v115_v30   ;;  %635 = vst.msk [vmem:[%s1211_s1 + $0x87] ss:$-80 sm:$0x3] %vm22_vm3, %v123_v31  }
  0x96   :  { %504 = vrot.lane.b32.xlu0 %v503_v28, %s853_s21  ;;  %512 = vrot.lane.b32.xlu1 %v511_v29, %s854_s22  ;;  %s861_s21 = smov 6  }
  0x98   :  { %v129_v34 = vpop.permute.xlu0 %128   ;;  %v137_v35 = vpop.permute.xlu1 %136  }
  0x99   :  { %636 = vst.msk [vmem:[%s1211_s1 + $0x4] ss:$80 sm:$0x3] %vm22_vm3, %v129_v34   ;;  %637 = vst.msk [vmem:[%s1211_s1 + $0x6e] ss:$-80 sm:$0x3] %vm22_vm3, %v137_v35  }
  0x9a   :  { %520 = vrot.lane.b32.xlu0 %v519_v32, %s855_s2  ;;  %527 = vrot.lane.b32.xlu1 %v526_v33, %s856_s3 }
  0x9c   :  { %v145_v39 = vpop.permute.xlu0 %144   ;;  %v151_v40 = vpop.permute.xlu1 %150  }
  0x9d   :  { %638 = vst.msk [vmem:[%s1211_s1 + $0x88] ss:$-80 sm:$0x3] %vm22_vm3, %v145_v39   ;;  %639 = vst.msk [vmem:[%s1211_s1 + $0x5] ss:$80 sm:$0x3] %vm22_vm3, %v151_v40  }
  0x9e   :  { %535 = vrot.lane.b32.xlu0 %v534_v37, %s857_s9  ;;  %543 = vrot.lane.b32.xlu1 %v542_v38, %s858_s10 }
  0xa0   :  { %v159_v43 = vpop.permute.xlu0 %158   ;;  %v167_v44 = vpop.permute.xlu1 %166  }
  0xa1   :  { %640 = vst.msk [vmem:[%s1211_s1 + $0x6f] ss:$-80 sm:$0x3] %vm22_vm3, %v159_v43   ;;  %641 = vst.msk [vmem:[%s1211_s1 + $0x89] ss:$-80 sm:$0x3] %vm22_vm3, %v167_v44  }
  0xa2   :  { %550 = vrot.lane.b32.xlu0 %v549_v41, %s859_s15  ;;  %558 = vrot.lane.b32.xlu1 %v557_v42, %s860_s16 }
  0xa4   :  { %v173_v46 = vpop.permute.xlu0 %172   ;;  %v180_v47 = vpop.permute.xlu1 %179  }
  0xa5   :  { %642 = vst.msk [vmem:[%s1211_s1 + $0x6] ss:$80 sm:$0x3] %vm22_vm3, %v173_v46   ;;  %643 = vst.msk [vmem:[%s1211_s1 + $0x20] ss:$80 sm:$0x3] %vm22_vm3, %v180_v47  }
  0xa6   :  { %566 = vrot.lane.b32.xlu0 %v565_v45, %s861_s21 }
  0xa8   :  { %v188_v48 = vpop.permute.xlu0 %187   ;;  %v194_v49 = vpop.permute.xlu1 %193  }
  0xa9   :  { %644 = vst.msk [vmem:[%s1211_s1 + $0x8a] ss:$-80 sm:$0x3] %vm22_vm3, %v188_v48   ;;  %645 = vst.msk [vmem:[%s1211_s1 + $0x7] ss:$80 sm:$0x3] %vm22_vm3, %v194_v49  }
  0xac   :  { %v201_v50 = vpop.permute.xlu0 %200   ;;  %v209_v51 = vpop.permute.xlu1 %208  }
  0xad   :  { %646 = vst.msk [vmem:[%s1211_s1 + $0x21] ss:$80 sm:$0x3] %vm22_vm3, %v201_v50   ;;  %647 = vst.msk [vmem:[%s1211_s1 + $0x8b] ss:$-80 sm:$0x3] %vm22_vm3, %v209_v51  }
  0xb0   :  { %v215_v52 = vpop.permute.xlu0 %214   ;;  %v222_v53 = vpop.permute.xlu1 %221  }
  0xb1   :  { %648 = vst.msk [vmem:[%s1211_s1 + $0x8] ss:$80 sm:$0x3] %vm22_vm3, %v215_v52   ;;  %649 = vst.msk [vmem:[%s1211_s1 + $0x22] ss:$80 sm:$0x3] %vm22_vm3, %v222_v53  }
  0xb4   :  { %v230_v54 = vpop.permute.xlu0 %229   ;;  %v236_v55 = vpop.permute.xlu1 %235  }
  0xb5   :  { %650 = vst.msk [vmem:[%s1211_s1 + $0x8c] ss:$-80 sm:$0x3] %vm22_vm3, %v230_v54   ;;  %651 = vst.msk [vmem:[%s1211_s1 + $0x9] ss:$80 sm:$0x3] %vm22_vm3, %v236_v55  }
  0xb8   :  { %v243_v56 = vpop.permute.xlu0 %242   ;;  %v251_v57 = vpop.permute.xlu1 %250  }
  0xb9   :  { %652 = vst.msk [vmem:[%s1211_s1 + $0x23] ss:$80 sm:$0x3] %vm22_vm3, %v243_v56   ;;  %653 = vst.msk [vmem:[%s1211_s1 + $0x8d] ss:$-80 sm:$0x3] %vm22_vm3, %v251_v57  }
  0xbc   :  { %v257_v58 = vpop.permute.xlu0 %256   ;;  %v264_v59 = vpop.permute.xlu1 %263  }
  0xbd   :  { %654 = vst.msk [vmem:[%s1211_s1 + $0xa] ss:$80 sm:$0x3] %vm22_vm3, %v257_v58   ;;  %655 = vst.msk [vmem:[%s1211_s1 + $0x24] ss:$80 sm:$0x3] %vm22_vm3, %v264_v59  }
  0xc0   :  { %v272_v60 = vpop.permute.xlu0 %271   ;;  %v278_v61 = vpop.permute.xlu1 %277  }
  0xc1   :  { %656 = vst.msk [vmem:[%s1211_s1 + $0x8e] ss:$-80 sm:$0x3] %vm22_vm3, %v272_v60   ;;  %657 = vst.msk [vmem:[%s1211_s1 + $0xb] ss:$80 sm:$0x3] %vm22_vm3, %v278_v61  }
  0xc4   :  { %v285_v62 = vpop.permute.xlu0 %284   ;;  %v293_v63 = vpop.permute.xlu1 %292  }
  0xc5   :  { %658 = vst.msk [vmem:[%s1211_s1 + $0x25] ss:$80 sm:$0x3] %vm22_vm3, %v285_v62   ;;  %659 = vst.msk [vmem:[%s1211_s1 + $0x8f] ss:$-80 sm:$0x3] %vm22_vm3, %v293_v63  }
  0xc8   :  { %v299_v0 = vpop.permute.xlu0 %298   ;;  %v306_v1 = vpop.permute.xlu1 %305  }
  0xc9   :  { %660 = vst.msk [vmem:[%s1211_s1 + $0xc] ss:$80 sm:$0x3] %vm22_vm3, %v299_v0   ;;  %661 = vst.msk [vmem:[%s1211_s1 + $0x26] ss:$80 sm:$0x3] %vm22_vm3, %v306_v1  }
  0xcc   :  { %v313_v2 = vpop.permute.xlu0 %312   ;;  %v319_v3 = vpop.permute.xlu1 %318  }
  0xcd   :  { %662 = vst.msk [vmem:[%s1211_s1 + $0x40] ss:$80 sm:$0x3] %vm22_vm3, %v313_v2   ;;  %663 = vst.msk [vmem:[%s1211_s1 + $0xd] ss:$80 sm:$0x3] %vm22_vm3, %v319_v3  }
  0xd0   :  { %v326_v4 = vpop.permute.xlu0 %325   ;;  %v333_v5 = vpop.permute.xlu1 %332  }
  0xd1   :  { %664 = vst.msk [vmem:[%s1211_s1 + $0x27] ss:$80 sm:$0x3] %vm22_vm3, %v326_v4   ;;  %665 = vst.msk [vmem:[%s1211_s1 + $0x41] ss:$80 sm:$0x3] %vm22_vm3, %v333_v5  }
  0xd4   :  { %v339_v6 = vpop.permute.xlu0 %338   ;;  %v346_v7 = vpop.permute.xlu1 %345  }
  0xd5   :  { %666 = vst.msk [vmem:[%s1211_s1 + $0xe] ss:$80 sm:$0x3] %vm22_vm3, %v339_v6   ;;  %667 = vst.msk [vmem:[%s1211_s1 + $0x28] ss:$80 sm:$0x3] %vm22_vm3, %v346_v7  }
  0xd8   :  { %v353_v8 = vpop.permute.xlu0 %352   ;;  %v359_v9 = vpop.permute.xlu1 %358  }
  0xd9   :  { %668 = vst.msk [vmem:[%s1211_s1 + $0x42] ss:$80 sm:$0x3] %vm22_vm3, %v353_v8   ;;  %669 = vst.msk [vmem:[%s1211_s1 + $0xf] ss:$80 sm:$0x3] %vm22_vm3, %v359_v9  }
  0xdc   :  { %v366_v10 = vpop.permute.xlu0 %365   ;;  %v373_v11 = vpop.permute.xlu1 %372  }
  0xdd   :  { %670 = vst.msk [vmem:[%s1211_s1 + $0x29] ss:$80 sm:$0x3] %vm22_vm3, %v366_v10   ;;  %671 = vst.msk [vmem:[%s1211_s1 + $0x43] ss:$80 sm:$0x3] %vm22_vm3, %v373_v11  }
  0xe0   :  { %v578_v12 = vpop.permute.xlu0 %577   ;;  %v594_v13 = vpop.permute.xlu1 %593  }
  0xe1   :  { %698 = vst.msk [vmem:[%s1211_s1 + $0x4c] ss:$80 sm:$0x3] %vm579_vm4, %v578_v12  }
  0xe2   :  { %700 = vst.msk [vmem:[%s1211_s1 + $0x69] ss:$-80 sm:$0x3] %vm595_vm5, %v594_v13  }
  0xe3   :  { %699 = vst.msk [vmem:[%s1211_s1 + $0x4c] ss:$80 sm:$0x3] %vm582_vm6, %v578_v12  }
  0xe4   :  { %701 = vst.msk [vmem:[%s1211_s1 + $0x69] ss:$-80 sm:$0x3] %vm598_vm7, %v594_v13   ;;  %v610_v14 = vpop.permute.xlu0 %609   ;;  %v381_v15 = vpop.permute.xlu1 %380  }
  0xe5   :  { %702 = vst.msk [vmem:[%s1211_s1 + $0x83] ss:$-80 sm:$0x3] %vm611_vm8, %v610_v14  }
  0xe6   :  { %672 = vst.msk [vmem:[%s1211_s1 + $0x60] ss:$-80 sm:$0x3] %vm22_vm3, %v381_v15  }
  0xe7   :  { %703 = vst.msk [vmem:[%s1211_s1 + $0x83] ss:$-80 sm:$0x3] %vm614_vm9, %v610_v14  }
  0xe8   :  { %v388_v16 = vpop.permute.xlu0 %387   ;;  %v395_v17 = vpop.permute.xlu1 %394  }
  0xe9   :  { %673 = vst.msk [vmem:[%s1211_s1 + $0x2a] ss:$80 sm:$0x3] %vm22_vm3, %v388_v16   ;;  %674 = vst.msk [vmem:[%s1211_s1 + $0x44] ss:$80 sm:$0x3] %vm22_vm3, %v395_v17  }
  0xec   :  { %v403_v18 = vpop.permute.xlu0 %402   ;;  %v410_v19 = vpop.permute.xlu1 %409  }
  0xed   :  { %675 = vst.msk [vmem:[%s1211_s1 + $0x61] ss:$-80 sm:$0x3] %vm22_vm3, %v403_v18   ;;  %676 = vst.msk [vmem:[%s1211_s1 + $0x2b] ss:$80 sm:$0x3] %vm22_vm3, %v410_v19  }
  0xf0   :  { %v417_v20 = vpop.permute.xlu0 %416   ;;  %v425_v21 = vpop.permute.xlu1 %424  }
  0xf1   :  { %677 = vst.msk [vmem:[%s1211_s1 + $0x45] ss:$80 sm:$0x3] %vm22_vm3, %v417_v20   ;;  %678 = vst.msk [vmem:[%s1211_s1 + $0x62] ss:$-80 sm:$0x3] %vm22_vm3, %v425_v21  }
  0xf4   :  { %v432_v22 = vpop.permute.xlu0 %431   ;;  %v439_v23 = vpop.permute.xlu1 %438  }
  0xf5   :  { %679 = vst.msk [vmem:[%s1211_s1 + $0x2c] ss:$80 sm:$0x3] %vm22_vm3, %v432_v22   ;;  %680 = vst.msk [vmem:[%s1211_s1 + $0x46] ss:$80 sm:$0x3] %vm22_vm3, %v439_v23  }
  0xf8   :  { %v447_v24 = vpop.permute.xlu0 %446   ;;  %v454_v25 = vpop.permute.xlu1 %453  }
  0xf9   :  { %681 = vst.msk [vmem:[%s1211_s1 + $0x63] ss:$-80 sm:$0x3] %vm22_vm3, %v447_v24   ;;  %682 = vst.msk [vmem:[%s1211_s1 + $0x2d] ss:$80 sm:$0x3] %vm22_vm3, %v454_v25  }
  0xfc   :  { %v461_v26 = vpop.permute.xlu0 %460   ;;  %v469_v27 = vpop.permute.xlu1 %468  }
  0xfd   :  { %683 = vst.msk [vmem:[%s1211_s1 + $0x47] ss:$80 sm:$0x3] %vm22_vm3, %v461_v26   ;;  %684 = vst.msk [vmem:[%s1211_s1 + $0x64] ss:$-80 sm:$0x3] %vm22_vm3, %v469_v27  }
 0x100   :  { %v476_v28 = vpop.permute.xlu0 %475   ;;  %v483_v29 = vpop.permute.xlu1 %482  }
 0x101   :  { %685 = vst.msk [vmem:[%s1211_s1 + $0x2e] ss:$80 sm:$0x3] %vm22_vm3, %v476_v28   ;;  %686 = vst.msk [vmem:[%s1211_s1 + $0x48] ss:$80 sm:$0x3] %vm22_vm3, %v483_v29  }
 0x104   :  { %v491_v30 = vpop.permute.xlu0 %490   ;;  %v498_v31 = vpop.permute.xlu1 %497  }
 0x105   :  { %687 = vst.msk [vmem:[%s1211_s1 + $0x65] ss:$-80 sm:$0x3] %vm22_vm3, %v491_v30   ;;  %688 = vst.msk [vmem:[%s1211_s1 + $0x2f] ss:$80 sm:$0x3] %vm22_vm3, %v498_v31  }
 0x108   :  { %v505_v32 = vpop.permute.xlu0 %504   ;;  %v513_v33 = vpop.permute.xlu1 %512  }
 0x109   :  { %689 = vst.msk [vmem:[%s1211_s1 + $0x49] ss:$80 sm:$0x3] %vm22_vm3, %v505_v32   ;;  %690 = vst.msk [vmem:[%s1211_s1 + $0x66] ss:$-80 sm:$0x3] %vm22_vm3, %v513_v33  }
 0x10c   :  { %v521_v34 = vpop.permute.xlu0 %520   ;;  %v528_v35 = vpop.permute.xlu1 %527  }
 0x10d   :  { %691 = vst.msk [vmem:[%s1211_s1 + $0x80] ss:$-80 sm:$0x3] %vm22_vm3, %v521_v34   ;;  %692 = vst.msk [vmem:[%s1211_s1 + $0x4a] ss:$80 sm:$0x3] %vm22_vm3, %v528_v35  }
 0x110   :  { %v536_v36 = vpop.permute.xlu0 %535   ;;  %v544_v37 = vpop.permute.xlu1 %543  }
 0x111   :  { %693 = vst.msk [vmem:[%s1211_s1 + $0x67] ss:$-80 sm:$0x3] %vm22_vm3, %v536_v36   ;;  %694 = vst.msk [vmem:[%s1211_s1 + $0x81] ss:$-80 sm:$0x3] %vm22_vm3, %v544_v37  }
 0x114   :  { %v551_v38 = vpop.permute.xlu0 %550   ;;  %v559_v39 = vpop.permute.xlu1 %558  }
 0x115   :  { %695 = vst.msk [vmem:[%s1211_s1 + $0x4b] ss:$80 sm:$0x3] %vm22_vm3, %v551_v38   ;;  %696 = vst.msk [vmem:[%s1211_s1 + $0x68] ss:$-80 sm:$0x3] %vm22_vm3, %v559_v39  }
 0x118   :  { %v567_v40 = vpop.permute.xlu0 %566  }
 0x119   :  { %697 = vst.msk [vmem:[%s1211_s1 + $0x82] ss:$-80 sm:$0x3] %vm22_vm3, %v567_v40  }

// kernel: wav2vec2_forward.2
= control target key start
LH: loop header
LB: loop body
LE: loop exit
PB: predicated region body
PF: predicated region fallthrough
CT: control target
= control target key end

     0   :  { %15 = vsyncpa [#allocation5], 0  ;;  %s2701_s0 = inlined_call_operand.vmem [shape: f32[2,80,5], index: 0, kind: input, shape index: {}]   ;;  %s2702_s1 = inlined_call_operand.vmem [shape: f32[10,32], index: 1, kind: input, shape index: {}]   ;;  %s2703_s2 = inlined_call_operand.hbm [shape: f32[1,32], index: 2, kind: input, shape index: {}]   ;;  %s2704_s3 = inlined_call_operand.hbm [shape: f32[1,32], index: 3, kind: input, shape index: {}]   ;;  %s2705_s4 = inlined_call_operand.vmem [shape: f32[3,32,32], index: 4, kind: input, shape index: {}]   ;;  %s2706_s5 = inlined_call_operand.vmem [shape: f32[2,32,32], index: 5, kind: input, shape index: {}]   ;;  %s2707_s6 = inlined_call_operand.vmem [shape: f32[1,32], index: 6, kind: input, shape index: {}]   ;;  %s2708_s7 = inlined_call_operand.hbm [shape: f32[1,32], index: 7, kind: input, shape index: {}]   ;;  %s2709_s8 = inlined_call_operand.vmem [shape: f32[32,64], index: 8, kind: input, shape index: {}]   ;;  %s2710_s9 = inlined_call_operand.vmem [shape: f32[1,64], index: 9, kind: input, shape index: {}]   ;;  %s2711_s10 = inlined_call_operand.vmem [shape: f32[2,19,64], index: 10, kind: output, shape index: {}]  }
   0x1   :  { %16 = vsyncpa [#allocation7], 0  ;;  %s2259_s13 = smov 0  }
   0x2 LB: > { %s2265_s14 = sadd.s32 4294967295, %s2196_s13   ;;  %p1744_p0 = scmp.ge.s32.totalorder %s2196_s13, 1  ;;  %s2196_s13 = sphi %s2259_s13, %s22_s13  }
   0x3   : > { %p268_p1 = scmp.lt.s32.totalorder %s2196_s13, 3  ;;  %p2712_p2 = scmp.eq.s32.totalorder %s2265_s14, 0 }
   0x4   : > { %s2198_s16 = smov [#allocation6]   ;;  %s2199_s18 = smov [#allocation4]  }
   0x5   : > { %p2270_p3 = pnand %p1744_p0, %p268_p1  ;;  %s295_s17 = sshll.u32 %s2198_s16, 4  ;;  %s296_s17 = int_to_ptr.vmem [resolvable:$true] %s295_s17 }
   0x6   : > { %s284_s19 = sshll.u32 %s2199_s18, 4  ;;  %s2200_s20 = smov [#allocation8]   ;;  %s285_s19 = int_to_ptr.vmem [resolvable:$true] %s284_s19 }
   0x7   : > { %p2030_p4 = pneg %p2270_p3  ;;  %s315_s21 = sshll.u32 %s2200_s20, 4  ;;  %s2282_s21 = int_to_ptr.vmem [resolvable:$true] %s315_s21 }
   0x8   : > { %s2115_s23 = scalar_lea.vmem %s296_s17, 16  ;;  %s2122_s24 = scalar_lea.vmem %s296_s17, 32 }
   0x9   : > { %p2278_p5 = pnand %p2712_p2, %p2030_p4  ;;  %p2116_p7 = scmp.ne.s32.totalorder %s296_s17, %s2115_s23 }
   0xa   : > { %p2123_p10 = scmp.lt.s32.totalorder %s296_s17, %s296_s17  ;;  %p2124_p11 = scmp.lt.s32.totalorder %s2122_s24, %s2115_s23 }
   0xb   : > { %p2106_p6 = pneg %p2278_p5 }
   0xc   : > { %p2125_p12 = por %p2124_p11, %p2123_p10 }
   0xd   : > { %p2118_p8 = pnand %p2116_p7, %p2106_p6 }
   0xf   : > { %p2119_p9 = pneg %p2118_p8 }
  0x11   : > { %p2126_p13 = pnand %p2125_p12, %p2119_p9 }
  0x13   : > { %2129 = shalt.err (!%p2126_p13)
}
  0x14   : > { %2036 = dma.hbm_to_vmem [thread:$0]  (!%p2278_p5), %s2704_s3, 16, %s296_s17, [#allocation7]  }
  0x15   : > { %s2141_s27 = scalar_lea.vmem %s285_s19, 16  ;;  %s2148_s28 = scalar_lea.vmem %s285_s19, 32 }
  0x16   : > { %p2142_p0 = scmp.ne.s32.totalorder %s285_s19, %s2141_s27  ;;  %p2149_p7 = scmp.lt.s32.totalorder %s285_s19, %s285_s19 }
  0x17   : > { %p2150_p8 = scmp.lt.s32.totalorder %s2148_s28, %s2141_s27 }
  0x18   : > { %p2144_p1 = pnand %p2142_p0, %p2106_p6 }
  0x19   : > { %p2151_p2 = por %p2150_p8, %p2149_p7 }
  0x1a   : > { %p2145_p4 = pneg %p2144_p1 }
  0x1c   : > { %p2152_p10 = pnand %p2151_p2, %p2145_p4 }
  0x1e   : > { %2155 = shalt.err (!%p2152_p10)
}
  0x1f   : > { %2033 = dma.hbm_to_vmem [thread:$0]  (!%p2278_p5), %s2703_s2, 16, %s285_s19, [#allocation5]  }
  0x20   : > { %s2167_s11 = scalar_lea.vmem %s2282_s21, 16  ;;  %s2174_s12 = scalar_lea.vmem %s2282_s21, 32 }
  0x21   : > { %p2168_p9 = scmp.ne.s32.totalorder %s2282_s21, %s2167_s11  ;;  %p2175_p2 = scmp.lt.s32.totalorder %s2282_s21, %s2282_s21 }
  0x22   : > { %p2176_p13 = scmp.lt.s32.totalorder %s2174_s12, %s2167_s11 }
  0x23   : > { %p2170_p11 = pnand %p2168_p9, %p2106_p6 }
  0x24   : > { %p2177_p0 = por %p2176_p13, %p2175_p2 }
  0x25   : > { %p2171_p12 = pneg %p2170_p11 }
  0x27   : > { %p2178_p1 = pnand %p2177_p0, %p2171_p12 }
  0x29   : > { %2181 = shalt.err (!%p2178_p1)
}
  0x2a   : > { %2039 = dma.hbm_to_vmem [thread:$0]  (!%p2278_p5), %s2708_s7, 16, %s2282_s21, [#allocation7]  }
  0x2b   : > { %342 = sbr.rel (%p2270_p3) target bundleno = 1506 (0x5e2), region = 60  ;;  %p2715_p6 = scmp.eq.s32.totalorder (!%p2270_p3), %s2265_s14, 0 }
  0x30   : > { %2187 = dma.done.wait (%p2715_p6), [#allocation5], 16   ;;  %p2716_p4 = pmov %p2715_p6 }
  0x32   : > { %2189 = vsyncadd (%p2716_p4), [#allocation5], 4294967280  ;;  %p2717_p7 = pmov %p2716_p4 }
  0x33   : > { %p2718_p8 = pmov %p2716_p4 }
  0x34   : > { %2191 = dma.done.wait (%p2717_p7), [#allocation7], 32  }
  0x35   : > { %2193 = vsyncadd (%p2718_p8), [#allocation7], 4294967264  ;;  %p388_p10 = scmp.lt.s32.totalorder %s2265_s14, 1  ;;  %vm418_vm0 = vcmask 1046528   ;;  %vm512_vm1 = vcmask 1041408   ;;  %v479_v14 = vld [vmem:[%s2702_s1] sm:$0xff] }
  0x36   : > { %v480_v13 = vld [vmem:[%s2702_s1 + $0x8] sm:$0x3]  ;;  %s2201_s25 = smov 5   ;;  %vm468_vm2 = vcmask 39936   ;;  %vm481_vm3 = vcmask 80896   ;;  %vm631_vm4 = vcmask 261120  }
  0x37   : > { %s2720_s14 = smov (!%p388_p10, %s2265_s14), 1  ;;  %1869 = vmatprep.subr.msk.mxu0 %vm512_vm1, %v480_v13  ;;  %vm649_vm5 = vcmask 260096   ;;  %vm2203_vm6 = vmmov 0   ;;  %vm1498_vm7 = vcmask 256000   ;;  %vm1651_vm8 = vcmask 523264  }
  0x38   : > { %s2016_s15 = smul.u32 80, %s2720_s14  ;;  %1870 = vmatpush3.msk.msra.mxu0 %vm512_vm1, %v480_v13  ;;  %vm1654_vm9 = vcmask 518144  }
  0x39   : > { %1871 = vmatprep.subr.mxu0 %v479_v14  ;;  %s2017_s22 = smul.u32 24, %s2720_s14 }
  0x3a   : > { %s2334_s20 = scalar_lea.vmem %s2701_s0, %s2016_s15  ;;  %1872 = vmatpush3.msra.mxu0 %v479_v14 }
  0x3b   : > { %v398_v0 = vld [vmem:[%s2334_s20] sm:$0xff]  ;;  %v399_v1 = vld [vmem:[%s2334_s20 + $0x8] sm:$0xff]  ;;  %v400_v2 = vld [vmem:[%s2334_s20 + $0x10] sm:$0xff]  ;;  %s397_s27 = scalar_lea.vmem %s2711_s10, %s2017_s22 }
  0x3c   : > { %v419_v3 = vrot.slane %v398_v0, 1  ;;  %v420_v4 = vrot.slane %v399_v1, 1  ;;  %v401_v5 = vld [vmem:[%s2334_s20 + $0x18] sm:$0xff]  ;;  %v422_v6 = vrot.slane %v400_v2, 1  ;;  %v402_v7 = vld [vmem:[%s2334_s20 + $0x20] sm:$0xff]  ;;  %v403_v10 = vld [vmem:[%s2334_s20 + $0x28] sm:$0xff] }
  0x3d   : > { %v424_v8 = vrot.slane %v401_v5, 1  ;;  %v426_v9 = vrot.slane %v402_v7, 1  ;;  %v404_v12 = vld [vmem:[%s2334_s20 + $0x30] sm:$0xff]  ;;  %v428_v17 = vrot.slane %v403_v10, 1  ;;  %v405_v20 = vld [vmem:[%s2334_s20 + $0x38] sm:$0xff]  ;;  %v406_v21 = vld [vmem:[%s2334_s20 + $0x40] sm:$0xff] }
  0x3e   : > { %v421_v11 = vsel %vm418_vm0, %v419_v3, %v420_v4  ;;  %v423_v16 = vsel %vm418_vm0, %v420_v4, %v422_v6  ;;  %v430_v19 = vrot.slane %v404_v12, 1  ;;  %v432_v23 = vrot.slane %v405_v20, 1  ;;  %v407_v26 = vld [vmem:[%s2334_s20 + $0x48] sm:$0xff]  ;;  %v1771_v4 = vld [vmem:[%s2705_s4 + $0x38] sm:$0xff] }
  0x3f   : > { %438 = vrot.lane.b32.xlu0 %v421_v11, %s2201_s25  ;;  %v425_v15 = vsel %vm418_vm0, %v422_v6, %v424_v8  ;;  %v427_v18 = vsel %vm418_vm0, %v424_v8, %v426_v9  ;;  %v429_v22 = vsel %vm418_vm0, %v426_v9, %v428_v17  ;;  %v434_v25 = vrot.slane %v406_v21, 1  ;;  %v1770_v6 = vld [vmem:[%s2705_s4 + $0x30] sm:$0xff]  ;;  %v1769_v11 = vld [vmem:[%s2705_s4 + $0x28] sm:$0xff] }
  0x40   : > { %442 = vrot.lane.b32.xlu1 %v425_v15, %s2201_s25  ;;  %v431_v24 = vsel %vm418_vm0, %v428_v17, %v430_v19  ;;  %v433_v27 = vsel %vm418_vm0, %v430_v19, %v432_v23  ;;  %v436_v28 = vrot.slane %v407_v26, 1  ;;  %v2202_v3 = vmov 0.0   ;;  %v863_v8 = vld [vmem:[%s2705_s4 + $0x10] sm:$0xff] }
  0x41   : > { %v435_v29 = vsel %vm418_vm0, %v432_v23, %v434_v25  ;;  %1888 = vmatprep.subr.mxu1 %v2202_v3  ;;  %1911 = vmatprep.subr.mxu0 %v2202_v3 }
  0x42   : > { %v437_v30 = vsel %vm418_vm0, %v434_v25, %v436_v28  ;;  %1889 = vmatpush3.msra.mxu1 %v1771_v4  ;;  %1896 = vmatprep.mubr.msk.f32.mxu1 %vm2203_vm6, %v2202_v3 }
  0x43   : > { %440 = vrot.lane.b32.xlu0 %v423_v16, %s2201_s25  ;;  %1890 = vmatprep.subr.mxu1 %v2202_v3  ;;  %v1768_v16 = vld [vmem:[%s2705_s4 + $0x20] sm:$0xff] }
  0x44   : > { %444 = vrot.lane.b32.xlu1 %v427_v18, %s2201_s25  ;;  %1891 = vmatpush3.msra.mxu1 %v1770_v6  ;;  %v861_v18 = vld [vmem:[%s2705_s4] sm:$0xff] }
  0x45   : > { %1892 = vmatprep.subr.mxu1 %v2202_v3 }
  0x46   : > { %1893 = vmatpush3.msra.mxu1 %v1769_v11 }
  0x47   : > { %446 = vrot.lane.b32.xlu0 %v429_v22, %s2201_s25  ;;  %1894 = vmatprep.subr.mxu1 %v2202_v3 }
  0x48   : > { %448 = vrot.lane.b32.xlu1 %v431_v24, %s2201_s25  ;;  %1895 = vmatpush3.msra.mxu1 %v1768_v16 }
  0x49   : > { %1934 = vmatprep.subr.mxu1 %v2202_v3 }
  0x4b   : > { %450 = vrot.lane.b32.xlu0 %v433_v27, %s2201_s25 }
  0x4c   : > { %452 = vrot.lane.b32.xlu1 %v435_v29, %s2201_s25 }
  0x4f   : > { %454 = vrot.lane.b32.xlu0 %v437_v30, %s2201_s25 }
  0x50   : > { %456 = vrot.lane.b32.xlu1 %v436_v28, %s2201_s25 }
  0xb1   : > { %v439_v31 = vpop.permute.xlu0 %438 }
  0xb2   : > { %v469_v32 = vsel %vm468_vm2, %v398_v0, %v439_v31  ;;  %v443_v33 = vpop.permute.xlu1 %442 }
  0xb3   : > { %1873 = vmatprep.mubr.msk.f32.mxu0 %vm481_vm3, %v469_v32  ;;  %v471_v34 = vsel %vm468_vm2, %v400_v2, %v443_v33 }
  0xb5   : > { %v441_v35 = vpop.permute.xlu0 %440 }
  0xb6   : > { %v470_v36 = vsel %vm468_vm2, %v399_v1, %v441_v35  ;;  %v445_v37 = vpop.permute.xlu1 %444 }
  0xb7   : > { %1874 = vmatmul.mubr.msk.f32.vlgmr.msra.gmra.mxu0 %vm481_vm3, %v470_v36  ;;  %v472_v38 = vsel %vm468_vm2, %v401_v5, %v445_v37  ;;  %v864_v5 = vld [vmem:[%s2705_s4 + $0x18] sm:$0xff] }
  0xb8   : > { %1876 = vmatprep.mubr.msk.f32.mxu0 %vm481_vm3, %v471_v34  ;;  %1912 = vmatpush3.msra.mxu0 %v864_v5 }
  0xb9   : > { %v447_v39 = vpop.permute.xlu0 %446  ;;  %1913 = vmatprep.subr.mxu0 %v2202_v3 }
  0xba   : > { %v473_v40 = vsel %vm468_vm2, %v402_v7, %v447_v39  ;;  %v449_v41 = vpop.permute.xlu1 %448  ;;  %1914 = vmatpush3.msra.mxu0 %v863_v8 }
  0xbb   : > { %1877 = vmatmul.mubr.msk.f32.gmra.mxu0 %vm481_vm3, %v472_v38  ;;  %v474_v42 = vsel %vm468_vm2, %v403_v10, %v449_v41  ;;  %1915 = vmatprep.subr.mxu0 %v2202_v3 }
  0xbc   : > { %1879 = vmatprep.mubr.msk.f32.mxu0 %vm481_vm3, %v473_v40 }
  0xbd   : > { %v451_v43 = vpop.permute.xlu0 %450 }
  0xbe   : > { %v475_v44 = vsel %vm468_vm2, %v404_v12, %v451_v43  ;;  %v453_v45 = vpop.permute.xlu1 %452  ;;  %v862_v12 = vld [vmem:[%s2705_s4 + $0x8] sm:$0xff] }
  0xbf   : > { %1880 = vmatmul.mubr.msk.f32.gmra.mxu0 %vm481_vm3, %v474_v42  ;;  %v476_v46 = vsel %vm468_vm2, %v405_v20, %v453_v45 }
  0xc0   : > { %1882 = vmatprep.mubr.msk.f32.mxu0 %vm481_vm3, %v475_v44  ;;  %1916 = vmatpush3.msra.mxu0 %v862_v12 }
  0xc1   : > { %v455_v47 = vpop.permute.xlu0 %454  ;;  %1917 = vmatprep.subr.mxu0 %v2202_v3 }
  0xc2   : > { %v477_v48 = vsel %vm468_vm2, %v406_v21, %v455_v47  ;;  %v457_v49 = vpop.permute.xlu1 %456  ;;  %1918 = vmatpush3.msra.mxu0 %v861_v18 }
  0xc3   : > { %1883 = vmatmul.mubr.msk.f32.gmra.mxu0 %vm481_vm3, %v476_v46  ;;  %v478_v50 = vsel %vm468_vm2, %v407_v26, %v457_v49  ;;  %1957 = vmatprep.subr.mxu0 %v2202_v3 }
  0xc4   : > { %1885 = vmatprep.mubr.msk.f32.mxu0 %vm481_vm3, %v477_v48 }
  0xc7   : > { %1886 = vmatmul.mubr.msk.f32.gmra.mxu0 %vm481_vm3, %v478_v50 }
  0xc8   : > { %1919 = vmatprep.mubr.msk.f32.mxu0 %vm2203_vm6, %v2202_v3 }
 0x177   : > { %v2381_v51 = vpop.f32.mrf.mxu0 }
 0x178   : > { %v633_v55 = vsel %vm631_vm4, %v2381_v51, 0.0 }
 0x179   : > { %v2383_v52 = vpop.f32.mrf.mxu0 }
 0x17a   : > { %v632_v53 = vsel %vm631_vm4, %v2383_v52, 0.0 }
 0x17b   : > { %v2387_v54 = vpop.f32.mrf.mxu0  ;;  %v634_v56 = vadd.f32 %v633_v55, %v632_v53 }
 0x17c   : > { %v637_v61 = vsel %vm631_vm4, %v2387_v54, 0.0 }
 0x17d   : > { %v2391_v57 = vpop.f32.mrf.mxu0 }
 0x17e   : > { %v635_v58 = vsel %vm631_vm4, %v2391_v57, 0.0 }
 0x17f   : > { %v636_v59 = vadd.f32 %v635_v58, %v634_v56  ;;  %v2395_v60 = vpop.f32.mrf.mxu0 }
 0x180   : > { %v641_v7 = vsel %vm631_vm4, %v2395_v60, 0.0 }
 0x181   : > { %v602_v62 = vpop.f32.mrf.mxu0  ;;  %v638_v63 = vadd.f32 %v637_v61, %v636_v59 }
 0x182   : > { %v639_v0 = vsel %vm631_vm4, %v602_v62, 0.0 }
 0x183   : > { %v640_v1 = vadd.f32 %v639_v0, %v638_v63  ;;  %v2400_v2 = vpop.f32.mrf.mxu0 }
 0x184   : > { %v645_v17 = vsel %vm631_vm4, %v2400_v2, 0.0 }
 0x185   : > { %v612_v9 = vpop.f32.mrf.mxu0  ;;  %v642_v10 = vadd.f32 %v641_v7, %v640_v1 }
 0x186   : > { %v643_v13 = vsel %vm631_vm4, %v612_v9, 0.0 }
 0x187   : > { %v644_v14 = vadd.f32 %v643_v13, %v642_v10  ;;  %v1887_v15 = vpop.f32.mrf.mxu0 }
 0x188   : > { %v650_v23 = vsel %vm649_vm5, %v1887_v15, 0.0 }
 0x189   : > { %v622_v19 = vpop.f32.mrf.mxu0  ;;  %v646_v20 = vadd.f32 %v645_v17, %v644_v14  ;;  %v1766_v17 = vld [vmem:[#allocation4] ss:$0 sm:$0xff] }
 0x18a   : > { %v647_v21 = vsel %vm631_vm4, %v622_v19, 0.0 }
 0x18b   : > { %v648_v22 = vadd.f32 %v647_v21, %v646_v20 }
 0x18d   : > { %v651_v24 = vadd.f32 %v650_v23, %v648_v22 }
 0x18f   : > { %v652_v25 = vrot.slane %v651_v24, 4 }
 0x191   : > { %v653_v26 = vadd.f32 %v652_v25, %v651_v24 }
 0x193   : > { %v654_v27 = vrot.slane %v653_v26, 2 }
 0x195   : > { %v655_v28 = vadd.f32 %v654_v27, %v653_v26 }
 0x197   : > { %v656_v29 = vrot.slane %v655_v28, 1 }
 0x199   : > { %v657_v30 = vadd.f32 %v656_v29, %v655_v28 }
 0x19b   : > { %v659_v31 = vmul.f32 0.012658228, %v657_v30  ;;  %v1767_v30 = vld [vmem:[#allocation6] ss:$0 sm:$0xff] }
 0x19d   : > { %v660_v32 = vsub.f32 %v2383_v52, %v659_v31  ;;  %v661_v33 = vsub.f32 %v2381_v51, %v659_v31  ;;  %v662_v34 = vsub.f32 %v2391_v57, %v659_v31  ;;  %v663_v35 = vsub.f32 %v2387_v54, %v659_v31 }
 0x19e   : > { %v664_v38 = vsub.f32 %v602_v62, %v659_v31  ;;  %v665_v40 = vsub.f32 %v2395_v60, %v659_v31  ;;  %v666_v45 = vsub.f32 %v612_v9, %v659_v31  ;;  %v667_v49 = vsub.f32 %v2400_v2, %v659_v31 }
 0x19f   : > { %v670_v36 = vmul.f32 %v660_v32, %v660_v32  ;;  %v671_v37 = vmul.f32 %v661_v33, %v661_v33  ;;  %v672_v39 = vmul.f32 %v662_v34, %v662_v34  ;;  %v673_v41 = vmul.f32 %v663_v35, %v663_v35 }
 0x1a0   : > { %v674_v46 = vmul.f32 %v664_v38, %v664_v38  ;;  %v675_v50 = vmul.f32 %v665_v40, %v665_v40  ;;  %v668_v53 = vsub.f32 %v622_v19, %v659_v31  ;;  %v676_v54 = vmul.f32 %v666_v45, %v666_v45 }
 0x1a1   : > { %v680_v42 = vsel %vm631_vm4, %v670_v36, 0.0  ;;  %v681_v43 = vsel %vm631_vm4, %v671_v37, 0.0  ;;  %v683_v47 = vsel %vm631_vm4, %v672_v39, 0.0  ;;  %v685_v51 = vsel %vm631_vm4, %v673_v41, 0.0 }
 0x1a2   : > { %v682_v44 = vadd.f32 %v681_v43, %v680_v42  ;;  %v687_v55 = vsel %vm631_vm4, %v674_v46, 0.0  ;;  %v669_v57 = vsub.f32 %v1887_v15, %v659_v31  ;;  %v677_v58 = vmul.f32 %v667_v49, %v667_v49 }
 0x1a3   : > { %v689_v59 = vsel %vm631_vm4, %v675_v50, 0.0  ;;  %v678_v61 = vmul.f32 %v668_v53, %v668_v53  ;;  %v691_v62 = vsel %vm631_vm4, %v676_v54, 0.0 }
 0x1a4   : > { %v684_v48 = vadd.f32 %v683_v47, %v682_v44  ;;  %v679_v0 = vmul.f32 %v669_v57, %v669_v57  ;;  %v693_v1 = vsel %vm631_vm4, %v677_v58, 0.0 }
 0x1a5   : > { %v695_v4 = vsel %vm631_vm4, %v678_v61, 0.0 }
 0x1a6   : > { %v686_v52 = vadd.f32 %v685_v51, %v684_v48  ;;  %v697_v6 = vsel %vm649_vm5, %v679_v0, 0.0 }
 0x1a8   : > { %v688_v56 = vadd.f32 %v687_v55, %v686_v52 }
 0x1aa   : > { %v690_v60 = vadd.f32 %v689_v59, %v688_v56 }
 0x1ac   : > { %v692_v63 = vadd.f32 %v691_v62, %v690_v60 }
 0x1ae   : > { %v694_v2 = vadd.f32 %v693_v1, %v692_v63 }
 0x1b0   : > { %v696_v5 = vadd.f32 %v695_v4, %v694_v2 }
 0x1b2   : > { %v698_v7 = vadd.f32 %v697_v6, %v696_v5 }
 0x1b4   : > { %v699_v8 = vrot.slane %v698_v7, 4 }
 0x1b6   : > { %v700_v9 = vadd.f32 %v699_v8, %v698_v7 }
 0x1b8   : > { %v701_v10 = vrot.slane %v700_v9, 2 }
 0x1ba   : > { %v702_v11 = vadd.f32 %v701_v10, %v700_v9 }
 0x1bc   : > { %v703_v12 = vrot.slane %v702_v11, 1 }
 0x1be   : > { %v704_v13 = vadd.f32 %v703_v12, %v702_v11 }
 0x1c0   : > { %v705_v14 = vmul.f32 0.012658228, %v704_v13 }
 0x1c2   : > { %v706_v15 = vadd.f32 1e-05, %v705_v14 }
 0x1c4   : > { %2060 = vrsqrt.f32 %v706_v15 }
 0x1d1   : > { %v2061_v16 = vpop.eup %2060 }
 0x1d2   : > { %v708_v18 = vmul.f32 %v2061_v16, %v660_v32  ;;  %v709_v19 = vmul.f32 %v2061_v16, %v661_v33  ;;  %v710_v20 = vmul.f32 %v2061_v16, %v662_v34  ;;  %v711_v21 = vmul.f32 %v2061_v16, %v663_v35 }
 0x1d3   : > { %v712_v22 = vmul.f32 %v2061_v16, %v664_v38  ;;  %v713_v23 = vmul.f32 %v2061_v16, %v665_v40  ;;  %v714_v24 = vmul.f32 %v2061_v16, %v666_v45  ;;  %v715_v25 = vmul.f32 %v2061_v16, %v667_v49 }
 0x1d4   : > { %v716_v26 = vmul.f32 %v2061_v16, %v668_v53  ;;  %v717_v27 = vmul.f32 %v2061_v16, %v669_v57  ;;  %v725_v28 = vmul.f32 %v1766_v17, %v708_v18  ;;  %v726_v29 = vmul.f32 %v1766_v17, %v709_v19 }
 0x1d5   : > { %v727_v31 = vmul.f32 %v1766_v17, %v710_v20  ;;  %v728_v36 = vmul.f32 %v1766_v17, %v711_v21  ;;  %v729_v37 = vmul.f32 %v1766_v17, %v712_v22  ;;  %v730_v39 = vmul.f32 %v1766_v17, %v713_v23 }
 0x1d6   : > { %v731_v41 = vmul.f32 %v1766_v17, %v714_v24  ;;  %v732_v42 = vmul.f32 %v1766_v17, %v715_v25  ;;  %v733_v43 = vmul.f32 %v1766_v17, %v716_v26  ;;  %v734_v32 = vmul.f32 %v1766_v17, %v717_v27 }
 0x1d7   : > { %v2463_v33 = vadd.f32 %v1767_v30, %v725_v28  ;;  %v2465_v34 = vadd.f32 %v1767_v30, %v726_v29  ;;  %v2467_v35 = vadd.f32 %v1767_v30, %v727_v31  ;;  %v2469_v38 = vadd.f32 %v1767_v30, %v728_v36 }
 0x1d8   : > { %v2471_v40 = vadd.f32 %v1767_v30, %v729_v37  ;;  %v2473_v44 = vadd.f32 %v1767_v30, %v730_v39  ;;  %v2475_v45 = vadd.f32 %v1767_v30, %v731_v41  ;;  %v2477_v46 = vadd.f32 %v1767_v30, %v732_v42 }
 0x1d9   : > { %v2479_v47 = vadd.f32 %v1767_v30, %v733_v43  ;;  %v762_v48 = vmul.f32 0.044715, %v2463_v33  ;;  %v2482_v49 = vadd.f32 %v1767_v30, %v734_v32  ;;  %v763_v50 = vmul.f32 0.044715, %v2465_v34 }
 0x1da   : > { %v764_v51 = vmul.f32 0.044715, %v2467_v35  ;;  %v765_v52 = vmul.f32 0.044715, %v2469_v38  ;;  %v766_v53 = vmul.f32 0.044715, %v2471_v40 }
 0x1db   : > { %v767_v54 = vmul.f32 0.044715, %v2473_v44  ;;  %v772_v55 = vmul.f32 %v762_v48, %v2463_v33  ;;  %v768_v56 = vmul.f32 0.044715, %v2475_v45  ;;  %v769_v57 = vmul.f32 0.044715, %v2477_v46 }
 0x1dc   : > { %v770_v58 = vmul.f32 0.044715, %v2479_v47  ;;  %v773_v59 = vmul.f32 %v763_v50, %v2465_v34  ;;  %v771_v60 = vmul.f32 0.044715, %v2482_v49  ;;  %v774_v61 = vmul.f32 %v764_v51, %v2467_v35 }
 0x1dd   : > { %v775_v62 = vmul.f32 %v765_v52, %v2469_v38  ;;  %v776_v63 = vmul.f32 %v766_v53, %v2471_v40  ;;  %v777_v0 = vmul.f32 %v767_v54, %v2473_v44  ;;  %v778_v1 = vmul.f32 %v768_v56, %v2475_v45 }
 0x1de   : > { %v779_v2 = vmul.f32 %v769_v57, %v2477_v46  ;;  %v780_v4 = vmul.f32 %v770_v58, %v2479_v47  ;;  %v781_v5 = vmul.f32 %v771_v60, %v2482_v49  ;;  %v782_v6 = vmul.f32 %v772_v55, %v2463_v33 }
 0x1df   : > { %v783_v7 = vmul.f32 %v773_v59, %v2465_v34  ;;  %v784_v8 = vmul.f32 %v774_v61, %v2467_v35  ;;  %v785_v9 = vmul.f32 %v775_v62, %v2469_v38  ;;  %v786_v10 = vmul.f32 %v776_v63, %v2471_v40 }
 0x1e0   : > { %v787_v11 = vmul.f32 %v777_v0, %v2473_v44  ;;  %v788_v12 = vmul.f32 %v778_v1, %v2475_v45  ;;  %v789_v13 = vmul.f32 %v779_v2, %v2477_v46  ;;  %v790_v14 = vmul.f32 %v780_v4, %v2479_v47 }
 0x1e1   : > { %v792_v15 = vadd.f32 %v782_v6, %v2463_v33  ;;  %v793_v16 = vadd.f32 %v783_v7, %v2465_v34  ;;  %v794_v17 = vadd.f32 %v784_v8, %v2467_v35  ;;  %v795_v18 = vadd.f32 %v785_v9, %v2469_v38 }
 0x1e2   : > { %v796_v19 = vadd.f32 %v786_v10, %v2471_v40  ;;  %v791_v20 = vmul.f32 %v781_v5, %v2482_v49  ;;  %v797_v21 = vadd.f32 %v787_v11, %v2473_v44  ;;  %v798_v22 = vadd.f32 %v788_v12, %v2475_v45 }
 0x1e3   : > { %v802_v23 = vmul.f32 0.7978846, %v792_v15  ;;  %v803_v24 = vmul.f32 0.7978846, %v793_v16  ;;  %v804_v25 = vmul.f32 0.7978846, %v794_v17  ;;  %v799_v26 = vadd.f32 %v789_v13, %v2477_v46 }
 0x1e4   : > { %v805_v27 = vmul.f32 0.7978846, %v795_v18  ;;  %v800_v28 = vadd.f32 %v790_v14, %v2479_v47  ;;  %v806_v29 = vmul.f32 0.7978846, %v796_v19  ;;  %v801_v30 = vadd.f32 %v791_v20, %v2482_v49  ;;  %v1783_v19 = vld [vmem:[%s2705_s4 + $0x48] sm:$0xff] }
 0x1e5   : > { %2062 = vtanh.f32 %v802_v23  ;;  %v807_v31 = vmul.f32 0.7978846, %v797_v21  ;;  %v808_v36 = vmul.f32 0.7978846, %v798_v22  ;;  %v809_v37 = vmul.f32 0.7978846, %v799_v26 }
 0x1e6   : > { %2064 = vtanh.f32 %v803_v24  ;;  %v810_v39 = vmul.f32 0.7978846, %v800_v28  ;;  %v811_v41 = vmul.f32 0.7978846, %v801_v30  ;;  %v752_v32 = vmul.f32 0.5, %v2463_v33  ;;  %v1782_v22 = vld [vmem:[%s2705_s4 + $0x40] sm:$0xff] }
 0x1e7   : > { %2066 = vtanh.f32 %v804_v25  ;;  %v753_v51 = vmul.f32 0.5, %v2465_v34  ;;  %v754_v55 = vmul.f32 0.5, %v2467_v35  ;;  %v755_v58 = vmul.f32 0.5, %v2469_v38 }
 0x1e8   : > { %2068 = vtanh.f32 %v805_v27  ;;  %v756_v62 = vmul.f32 0.5, %v2471_v40  ;;  %v757_v34 = vmul.f32 0.5, %v2473_v44  ;;  %v758_v4 = vmul.f32 0.5, %v2475_v45 }
 0x1e9   : > { %2070 = vtanh.f32 %v806_v29  ;;  %v759_v40 = vmul.f32 0.5, %v2477_v46  ;;  %v760_v44 = vmul.f32 0.5, %v2479_v47  ;;  %v761_v45 = vmul.f32 0.5, %v2482_v49  ;;  %v1785_v47 = vld [vmem:[%s2705_s4 + $0x58] sm:$0xff]  ;;  %v1784_v49 = vld [vmem:[%s2705_s4 + $0x50] sm:$0xff] }
 0x1ea   : > { %2072 = vtanh.f32 %v807_v31 }
 0x1eb   : > { %2074 = vtanh.f32 %v808_v36  ;;  %v1794_v36 = vld [vmem:[%s2706_s5 + $0x38] sm:$0xff] }
 0x1ec   : > { %2076 = vtanh.f32 %v809_v37  ;;  %v1273_v37 = vld [vmem:[%s2706_s5 + $0x18] sm:$0xff] }
 0x1ed   : > { %2078 = vtanh.f32 %v810_v39  ;;  %v1793_v39 = vld [vmem:[%s2706_s5 + $0x30] sm:$0xff] }
 0x1ee   : > { %2080 = vtanh.f32 %v811_v41  ;;  %v1272_v41 = vld [vmem:[%s2706_s5 + $0x10] sm:$0xff] }
 0x1f2   : > { %v2063_v42 = vpop.eup %2062 }
 0x1f3   : > { %v2065_v43 = vpop.eup %2064  ;;  %v822_v48 = vadd.f32 1.0, %v2063_v42  ;;  %v1792_v42 = vld [vmem:[%s2706_s5 + $0x28] sm:$0xff] }
 0x1f4   : > { %v2067_v50 = vpop.eup %2066  ;;  %v823_v52 = vadd.f32 1.0, %v2065_v43  ;;  %v1271_v43 = vld [vmem:[%s2706_s5 + $0x8] sm:$0xff] }
 0x1f5   : > { %v2069_v53 = vpop.eup %2068  ;;  %v832_v54 = vmul.f32 %v822_v48, %v752_v32  ;;  %v824_v56 = vadd.f32 1.0, %v2067_v50  ;;  %v1791_v32 = vld [vmem:[%s2706_s5 + $0x20] sm:$0xff] }
 0x1f6   : > { %v2071_v57 = vpop.eup %2070  ;;  %v833_v59 = vmul.f32 %v823_v52, %v753_v51  ;;  %v825_v60 = vadd.f32 1.0, %v2069_v53  ;;  %v1270_v48 = vld [vmem:[%s2706_s5] sm:$0xff] }
 0x1f7   : > { %v2073_v61 = vpop.eup %2072  ;;  %842 = vst.msk [vmem:[#allocation2] sm:$0xff] %vm631_vm4, %v832_v54  ;;  %v834_v33 = vmul.f32 %v824_v56, %v754_v55  ;;  %v826_v63 = vadd.f32 1.0, %v2071_v57 }
 0x1f8   : > { %v2075_v0 = vpop.eup %2074  ;;  %v827_v1 = vadd.f32 1.0, %v2073_v61  ;;  %843 = vst.msk [vmem:[#allocation2 + $0x8] sm:$0xff] %vm631_vm4, %v833_v59  ;;  %v835_v35 = vmul.f32 %v825_v60, %v755_v58 }
 0x1f9   : > { %v2077_v2 = vpop.eup %2076  ;;  %v828_v38 = vadd.f32 1.0, %v2075_v0  ;;  %844 = vst.msk [vmem:[#allocation2 + $0x10] sm:$0xff] %vm631_vm4, %v834_v33  ;;  %v836_v5 = vmul.f32 %v826_v63, %v756_v62 }
 0x1fa   : > { %v2079_v6 = vpop.eup %2078  ;;  %v829_v7 = vadd.f32 1.0, %v2077_v2  ;;  %v837_v8 = vmul.f32 %v827_v1, %v757_v34  ;;  %845 = vst.msk [vmem:[#allocation2 + $0x18] sm:$0xff] %vm631_vm4, %v835_v35 }
 0x1fb   : > { %v2081_v9 = vpop.eup %2080  ;;  %v830_v10 = vadd.f32 1.0, %v2079_v6  ;;  %v838_v11 = vmul.f32 %v828_v38, %v758_v4  ;;  %846 = vst.msk [vmem:[#allocation2 + $0x20] sm:$0xff] %vm631_vm4, %v836_v5 }
 0x1fc   : > { %v831_v12 = vadd.f32 1.0, %v2081_v9  ;;  %v839_v13 = vmul.f32 %v829_v7, %v759_v40  ;;  %847 = vst.msk [vmem:[#allocation2 + $0x28] sm:$0xff] %vm631_vm4, %v837_v8 }
 0x1fd   : > { %v840_v14 = vmul.f32 %v830_v10, %v760_v44  ;;  %848 = vst.msk [vmem:[#allocation2 + $0x30] sm:$0xff] %vm631_vm4, %v838_v11 }
 0x1fe   : > { %v841_v46 = vmul.f32 %v831_v12, %v761_v45  ;;  %849 = vst.msk [vmem:[#allocation2 + $0x38] sm:$0xff] %vm631_vm4, %v839_v13 }
 0x1ff   : > { %850 = vst.msk [vmem:[#allocation2 + $0x40] sm:$0xff] %vm631_vm4, %v840_v14  ;;  %v866_v15 = vld [vmem:[#allocation2 + $0x1] ss:$2 sm:$0xff]  ;;  %v852_v16 = vld [vmem:[#allocation2] ss:$2 sm:$0xff] }
 0x200   : > { %851 = vst.msk [vmem:[#allocation2 + $0x48] sm:$0x7f] %vm649_vm5, %v841_v46  ;;  %1897 = vmatmul.mubr.msk.f32.vlgmr.msra.gmra.mxu1 %vm631_vm4, %v866_v15  ;;  %1920 = vmatmul.mubr.msk.f32.vlgmr.msra.gmra.mxu0 %vm631_vm4, %v852_v16  ;;  %v1091_v27 = vld [vmem:[#allocation2 + $0x2] ss:$2 sm:$0xff] }
 0x201   : > { %1935 = vmatpush3.msra.mxu1 %v1785_v47  ;;  %1899 = vmatprep.mubr.msk.f32.mxu1 %vm2203_vm6, %v2202_v3  ;;  %v868_v17 = vld [vmem:[#allocation2 + $0x11] ss:$2 sm:$0xff]  ;;  %v854_v18 = vld [vmem:[#allocation2 + $0x10] ss:$2 sm:$0xff] }
 0x202   : > { %1922 = vmatprep.mubr.msk.f32.mxu0 %vm2203_vm6, %v2202_v3  ;;  %1936 = vmatprep.subr.mxu1 %v2202_v3  ;;  %v1093_v28 = vld [vmem:[#allocation2 + $0x12] ss:$2 sm:$0xff] }
 0x203   : > { %1937 = vmatpush3.msra.mxu1 %v1784_v49  ;;  %v870_v20 = vld [vmem:[#allocation2 + $0x21] ss:$2 sm:$0xff]  ;;  %v856_v21 = vld [vmem:[#allocation2 + $0x20] ss:$2 sm:$0xff]  ;;  %1958 = vmatpush3.msra.mxu0 %v1794_v36 }
 0x204   : > { %1900 = vmatmul.mubr.msk.f32.gmra.mxu1 %vm631_vm4, %v868_v17  ;;  %1923 = vmatmul.mubr.msk.f32.gmra.mxu0 %vm631_vm4, %v854_v18  ;;  %v1095_v29 = vld [vmem:[#allocation2 + $0x22] ss:$2 sm:$0xff] }
 0x205   : > { %1902 = vmatprep.mubr.msk.f32.mxu1 %vm2203_vm6, %v2202_v3  ;;  %1925 = vmatprep.mubr.msk.f32.mxu0 %vm2203_vm6, %v2202_v3  ;;  %v872_v23 = vld [vmem:[#allocation2 + $0x31] ss:$2 sm:$0xff]  ;;  %v858_v24 = vld [vmem:[#allocation2 + $0x30] ss:$2 sm:$0xff] }
 0x206   : > { %1938 = vmatprep.subr.mxu1 %v2202_v3  ;;  %v1097_v30 = vld [vmem:[#allocation2 + $0x32] ss:$2 sm:$0xff]  ;;  %1959 = vmatprep.subr.mxu0 %v2202_v3 }
 0x207   : > { %1939 = vmatpush3.msra.mxu1 %v1783_v19  ;;  %v874_v25 = vld [vmem:[#allocation2 + $0x41] ss:$2 sm:$0x7f]  ;;  %v860_v26 = vld [vmem:[#allocation2 + $0x40] ss:$2 sm:$0x7f]  ;;  %1960 = vmatpush3.msra.mxu0 %v1793_v39 }
 0x208   : > { %1903 = vmatmul.mubr.msk.f32.gmra.mxu1 %vm631_vm4, %v870_v20  ;;  %1926 = vmatmul.mubr.msk.f32.gmra.mxu0 %vm631_vm4, %v856_v21  ;;  %v1099_v31 = vld [vmem:[#allocation2 + $0x42] ss:$2 sm:$0x7f] }
 0x209   : > { %1905 = vmatprep.mubr.msk.f32.mxu1 %vm2203_vm6, %v2202_v3  ;;  %1928 = vmatprep.mubr.msk.f32.mxu0 %vm2203_vm6, %v2202_v3 }
 0x20a   : > { %1940 = vmatprep.subr.mxu1 %v2202_v3  ;;  %1961 = vmatprep.subr.mxu0 %v2202_v3 }
 0x20b   : > { %1941 = vmatpush3.msra.mxu1 %v1782_v22  ;;  %1962 = vmatpush3.msra.mxu0 %v1792_v42 }
 0x20c   : > { %1906 = vmatmul.mubr.msk.f32.gmra.mxu1 %vm631_vm4, %v872_v23  ;;  %1929 = vmatmul.mubr.msk.f32.gmra.mxu0 %vm631_vm4, %v858_v24 }
 0x20d   : > { %1908 = vmatprep.mubr.msk.f32.mxu1 %vm2203_vm6, %v2202_v3  ;;  %1931 = vmatprep.mubr.msk.f32.mxu0 %vm2203_vm6, %v2202_v3 }
 0x20e   : > { %1974 = vmatprep.subr.mxu1 %v2202_v3  ;;  %1963 = vmatprep.subr.mxu0 %v2202_v3 }
 0x20f   : > { %1964 = vmatpush3.msra.mxu0 %v1791_v32 }
 0x210   : > { %1909 = vmatmul.mubr.msk.f32.gmra.mxu1 %vm631_vm4, %v874_v25  ;;  %1932 = vmatmul.mubr.msk.f32.gmra.mxu0 %vm631_vm4, %v860_v26 }
 0x211   : > { %1942 = vmatprep.mubr.msk.f32.mxu1 %vm2203_vm6, %v2202_v3  ;;  %1965 = vmatprep.mubr.msk.f32.mxu0 %vm2203_vm6, %v2202_v3 }
 0x212   : > { %1991 = vmatprep.subr.mxu0 %v2202_v3 }
 0x214   : > { %1943 = vmatmul.mubr.msk.f32.vlgmr.msra.gmra.mxu1 %vm631_vm4, %v1091_v27 }
 0x215   : > { %1945 = vmatprep.mubr.msk.f32.mxu1 %vm2203_vm6, %v2202_v3  ;;  %1975 = vmatpush3.msra.mxu1 %v1273_v37 }
 0x216   : > { %1976 = vmatprep.subr.mxu1 %v2202_v3 }
 0x217   : > { %1977 = vmatpush3.msra.mxu1 %v1272_v41 }
 0x218   : > { %1946 = vmatmul.mubr.msk.f32.gmra.mxu1 %vm631_vm4, %v1093_v28  ;;  %1978 = vmatprep.subr.mxu1 %v2202_v3 }
 0x219   : > { %1948 = vmatprep.mubr.msk.f32.mxu1 %vm2203_vm6, %v2202_v3  ;;  %1979 = vmatpush3.msra.mxu1 %v1271_v43 }
 0x21a   : > { %1980 = vmatprep.subr.mxu1 %v2202_v3 }
 0x21b   : > { %1981 = vmatpush3.msra.mxu1 %v1270_v48 }
 0x21c   : > { %1949 = vmatmul.mubr.msk.f32.gmra.mxu1 %vm631_vm4, %v1095_v29  ;;  %2008 = vmatprep.subr.mxu1 %v2202_v3 }
 0x21d   : > { %1951 = vmatprep.mubr.msk.f32.mxu1 %vm2203_vm6, %v2202_v3 }
 0x220   : > { %1952 = vmatmul.mubr.msk.f32.gmra.mxu1 %vm631_vm4, %v1097_v30 }
 0x221   : > { %1954 = vmatprep.mubr.msk.f32.mxu1 %vm2203_vm6, %v2202_v3 }
 0x224   : > { %1955 = vmatmul.mubr.msk.f32.gmra.mxu1 %vm631_vm4, %v1099_v31 }
 0x225   : > { %1982 = vmatprep.mubr.msk.f32.mxu1 %vm2203_vm6, %v2202_v3 }
 0x2c0   : > { %v961_v50 = vpop.f32.mrf.mxu1  ;;  %v1066_v51 = vpop.f32.mrf.mxu0 }
 0x2c1   : > { %v1067_v4 = vadd.f32 %v1066_v51, %v961_v50 }
 0x2c2   : > { %v1898_v52 = vpop.f32.mrf.mxu1  ;;  %v1921_v53 = vpop.f32.mrf.mxu0 }
 0x2c4   : > { %v966_v54 = vpop.f32.mrf.mxu1  ;;  %v1071_v55 = vpop.f32.mrf.mxu0 }
 0x2c5   : > { %v1072_v40 = vadd.f32 %v1071_v55, %v966_v54 }
 0x2c6   : > { %v1901_v56 = vpop.f32.mrf.mxu1  ;;  %v1924_v57 = vpop.f32.mrf.mxu0 }
 0x2c8   : > { %v971_v58 = vpop.f32.mrf.mxu1  ;;  %v1076_v59 = vpop.f32.mrf.mxu0 }
 0x2c9   : > { %v1077_v11 = vadd.f32 %v1076_v59, %v971_v58 }
 0x2ca   : > { %v1904_v60 = vpop.f32.mrf.mxu1  ;;  %v1927_v61 = vpop.f32.mrf.mxu0 }
 0x2cc   : > { %v976_v62 = vpop.f32.mrf.mxu1  ;;  %v1081_v33 = vpop.f32.mrf.mxu0 }
 0x2cd   : > { %v1082_v16 = vadd.f32 %v1081_v33, %v976_v62 }
 0x2ce   : > { %v1907_v63 = vpop.f32.mrf.mxu1  ;;  %v1930_v0 = vpop.f32.mrf.mxu0 }
 0x2d0   : > { %v981_v34 = vpop.f32.mrf.mxu1  ;;  %v1086_v1 = vpop.f32.mrf.mxu0 }
 0x2d1   : > { %v1087_v24 = vadd.f32 %v1086_v1, %v981_v34 }
 0x2d2   : > { %v1910_v35 = vpop.f32.mrf.mxu1  ;;  %v1933_v2 = vpop.f32.mrf.mxu0 }
 0x2d4   : > { %v1186_v38 = vpop.f32.mrf.mxu1 }
 0x2d5   : > { %v1210_v5 = vadd.f32 %v1186_v38, %v1067_v4 }
 0x2d6   : > { %v1944_v6 = vpop.f32.mrf.mxu1 }
 0x2d7   : > { %v1220_v7 = vmul.f32 0.044715, %v1210_v5  ;;  %v1215_v52 = vmul.f32 0.5, %v1210_v5 }
 0x2d8   : > { %v1191_v8 = vpop.f32.mrf.mxu1 }
 0x2d9   : > { %v1225_v9 = vmul.f32 %v1220_v7, %v1210_v5  ;;  %v1211_v44 = vadd.f32 %v1191_v8, %v1072_v40 }
 0x2da   : > { %v1947_v10 = vpop.f32.mrf.mxu1 }
 0x2db   : > { %v1230_v45 = vmul.f32 %v1225_v9, %v1210_v5  ;;  %v1221_v12 = vmul.f32 0.044715, %v1211_v44  ;;  %v1216_v57 = vmul.f32 0.5, %v1211_v44 }
 0x2dc   : > { %v1196_v13 = vpop.f32.mrf.mxu1 }
 0x2dd   : > { %v1235_v14 = vadd.f32 %v1230_v45, %v1210_v5  ;;  %v1226_v46 = vmul.f32 %v1221_v12, %v1211_v44  ;;  %v1212_v47 = vadd.f32 %v1196_v13, %v1077_v11 }
 0x2de   : > { %v1950_v15 = vpop.f32.mrf.mxu1 }
 0x2df   : > { %v1240_v49 = vmul.f32 0.7978846, %v1235_v14  ;;  %v1231_v17 = vmul.f32 %v1226_v46, %v1211_v44  ;;  %v1222_v18 = vmul.f32 0.044715, %v1212_v47  ;;  %v1217_v61 = vmul.f32 0.5, %v1212_v47 }
 0x2e0   : > { %v1201_v19 = vpop.f32.mrf.mxu1 }
 0x2e1   : > { %2082 = vtanh.f32 %v1240_v49  ;;  %v1236_v20 = vadd.f32 %v1231_v17, %v1211_v44  ;;  %v1227_v21 = vmul.f32 %v1222_v18, %v1212_v47  ;;  %v1213_v22 = vadd.f32 %v1201_v19, %v1082_v16 }
 0x2e2   : > { %v1953_v23 = vpop.f32.mrf.mxu1 }
 0x2e3   : > { %v1241_v25 = vmul.f32 0.7978846, %v1236_v20  ;;  %v1232_v26 = vmul.f32 %v1227_v21, %v1212_v47  ;;  %v1223_v27 = vmul.f32 0.044715, %v1213_v22  ;;  %v1218_v0 = vmul.f32 0.5, %v1213_v22 }
 0x2e4   : > { %v1206_v28 = vpop.f32.mrf.mxu1 }
 0x2e5   : > { %2084 = vtanh.f32 %v1241_v25  ;;  %v1237_v29 = vadd.f32 %v1232_v26, %v1212_v47  ;;  %v1228_v30 = vmul.f32 %v1223_v27, %v1213_v22  ;;  %v1214_v31 = vadd.f32 %v1206_v28, %v1087_v24 }
 0x2e6   : > { %v1956_v36 = vpop.f32.mrf.mxu1 }
 0x2e7   : > { %v1242_v37 = vmul.f32 0.7978846, %v1237_v29  ;;  %v1233_v39 = vmul.f32 %v1228_v30, %v1213_v22  ;;  %v1224_v41 = vmul.f32 0.044715, %v1214_v31  ;;  %v1219_v38 = vmul.f32 0.5, %v1214_v31 }
 0x2e9   : > { %2086 = vtanh.f32 %v1242_v37  ;;  %v1238_v42 = vadd.f32 %v1233_v39, %v1213_v22  ;;  %v1229_v43 = vmul.f32 %v1224_v41, %v1214_v31 }
 0x2eb   : > { %v1243_v32 = vmul.f32 0.7978846, %v1238_v42  ;;  %v1234_v48 = vmul.f32 %v1229_v43, %v1214_v31 }
 0x2ed   : > { %2088 = vtanh.f32 %v1243_v32  ;;  %v1239_v50 = vadd.f32 %v1234_v48, %v1214_v31 }
 0x2ee   : > { %v2083_v51 = vpop.eup %2082 }
 0x2ef   : > { %v1250_v53 = vadd.f32 1.0, %v2083_v51  ;;  %v1244_v54 = vmul.f32 0.7978846, %v1239_v50 }
 0x2f1   : > { %v1255_v55 = vmul.f32 %v1250_v53, %v1215_v52  ;;  %2090 = vtanh.f32 %v1244_v54 }
 0x2f2   : > { %v2085_v56 = vpop.eup %2084 }
 0x2f3   : > { %1260 = vst.msk [vmem:[#allocation3] sm:$0xff] %vm631_vm4, %v1255_v55  ;;  %v1251_v58 = vadd.f32 1.0, %v2085_v56 }
 0x2f5   : > { %v1256_v59 = vmul.f32 %v1251_v58, %v1216_v57 }
 0x2f6   : > { %v2087_v60 = vpop.eup %2086 }
 0x2f7   : > { %1261 = vst.msk [vmem:[#allocation3 + $0x8] sm:$0xff] %vm631_vm4, %v1256_v59  ;;  %v1252_v62 = vadd.f32 1.0, %v2087_v60 }
 0x2f9   : > { %v1257_v33 = vmul.f32 %v1252_v62, %v1217_v61 }
 0x2fa   : > { %v2089_v63 = vpop.eup %2088 }
 0x2fb   : > { %1262 = vst.msk [vmem:[#allocation3 + $0x10] sm:$0xff] %vm631_vm4, %v1257_v33  ;;  %v1253_v34 = vadd.f32 1.0, %v2089_v63 }
 0x2fd   : > { %v1258_v1 = vmul.f32 %v1253_v34, %v1218_v0 }
 0x2fe   : > { %v2091_v35 = vpop.eup %2090  ;;  %v1275_v2 = vld [vmem:[#allocation3 + $0x1] ss:$2 sm:$0xff]  ;;  %v1265_v4 = vld [vmem:[#allocation3] ss:$2 sm:$0xff] }
 0x2ff   : > { %1263 = vst.msk [vmem:[#allocation3 + $0x18] sm:$0xff] %vm631_vm4, %v1258_v1  ;;  %v1254_v5 = vadd.f32 1.0, %v2091_v35  ;;  %1966 = vmatmul.mubr.msk.f32.vlgmr.msra.gmra.mxu0 %vm631_vm4, %v1275_v2  ;;  %1983 = vmatmul.mubr.msk.f32.vlgmr.msra.gmra.mxu1 %vm631_vm4, %v1265_v4 }
 0x300   : > { %1968 = vmatprep.mubr.msk.f32.mxu0 %vm2203_vm6, %v2202_v3  ;;  %1985 = vmatprep.mubr.msk.f32.mxu1 %vm2203_vm6, %v2202_v3 }
 0x301   : > { %v1259_v6 = vmul.f32 %v1254_v5, %v1219_v38 }
 0x303   : > { %1264 = vst.msk [vmem:[#allocation3 + $0x20] sm:$0x7f] %vm649_vm5, %v1259_v6 }
 0x306   : > { %v1277_v40 = vld [vmem:[#allocation3 + $0x11] ss:$2 sm:$0xff]  ;;  %v1267_v7 = vld [vmem:[#allocation3 + $0x10] ss:$2 sm:$0xff] }
 0x307   : > { %1969 = vmatmul.mubr.msk.f32.gmra.mxu0 %vm631_vm4, %v1277_v40  ;;  %1986 = vmatmul.mubr.msk.f32.gmra.mxu1 %vm631_vm4, %v1267_v7  ;;  %v1554_v7 = vld [vmem:[%s2709_s8 + $0x18] sm:$0xff] }
 0x308   : > { %1971 = vmatprep.mubr.msk.f32.mxu0 %vm2203_vm6, %v2202_v3  ;;  %1988 = vmatprep.mubr.msk.f32.mxu1 %vm2203_vm6, %v2202_v3 }
 0x309   : > { %1992 = vmatpush3.msra.mxu0 %v1554_v7  ;;  %2012 = vmatpush3.msra.mxu1 %v1554_v7 }
 0x30a   : > { %v1279_v8 = vld [vmem:[#allocation3 + $0x21] ss:$2 sm:$0x7]  ;;  %v1269_v9 = vld [vmem:[#allocation3 + $0x20] ss:$2 sm:$0x7]  ;;  %1993 = vmatprep.subr.mxu0 %v2202_v3  ;;  %2009 = vmatprep.subr.mxu1 %v2202_v3 }
 0x30b   : > { %1972 = vmatmul.mubr.msk.f32.gmra.mxu0 %vm631_vm4, %v1279_v8  ;;  %1989 = vmatmul.mubr.msk.f32.gmra.mxu1 %vm631_vm4, %v1269_v9  ;;  %v1553_v8 = vld [vmem:[%s2709_s8 + $0x10] sm:$0xff]  ;;  %v1552_v9 = vld [vmem:[%s2709_s8 + $0x8] sm:$0xff] }
 0x30c   : > { %1999 = vmatprep.mubr.msk.f32.mxu0 %vm2203_vm6, %v2202_v3  ;;  %2005 = vmatprep.mubr.msk.f32.mxu1 %vm2203_vm6, %v2202_v3 }
 0x30d   : > { %1994 = vmatpush3.msra.mxu0 %v1553_v8  ;;  %2013 = vmatpush3.msra.mxu1 %v1553_v8 }
 0x30e   : > { %1995 = vmatprep.subr.mxu0 %v2202_v3  ;;  %2010 = vmatprep.subr.mxu1 %v2202_v3 }
 0x30f   : > { %1996 = vmatpush3.msra.mxu0 %v1552_v9  ;;  %2014 = vmatpush3.msra.mxu1 %v1552_v9 }
 0x310   : > { %1997 = vmatprep.subr.mxu0 %v2202_v3  ;;  %2011 = vmatprep.subr.mxu1 %v2202_v3 }
 0x3bf   : > { %v1360_v44 = vpop.f32.mrf.mxu0  ;;  %v1449_v10 = vpop.f32.mrf.mxu1 }
 0x3c0   : > { %v1450_v11 = vadd.f32 %v1449_v10, %v1360_v44  ;;  %v1551_v44 = vld [vmem:[%s2709_s8] sm:$0xff] }
 0x3c1   : > { %v1967_v45 = vpop.f32.mrf.mxu0  ;;  %v1984_v12 = vpop.f32.mrf.mxu1  ;;  %1998 = vmatpush3.msra.mxu0 %v1551_v44  ;;  %2015 = vmatpush3.msra.mxu1 %v1551_v44 }
 0x3c2   : > { %v1466_v13 = vmul.f32 0.044715, %v1450_v11  ;;  %v1463_v42 = vmul.f32 0.5, %v1450_v11 }
 0x3c4   : > { %v1469_v14 = vmul.f32 %v1466_v13, %v1450_v11 }
 0x3c6   : > { %v1472_v46 = vmul.f32 %v1469_v14, %v1450_v11 }
 0x3c7   : > { %v1365_v47 = vpop.f32.mrf.mxu0  ;;  %v1454_v15 = vpop.f32.mrf.mxu1 }
 0x3c8   : > { %v1455_v16 = vadd.f32 %v1454_v15, %v1365_v47  ;;  %v1475_v49 = vadd.f32 %v1472_v46, %v1450_v11 }
 0x3c9   : > { %v1970_v17 = vpop.f32.mrf.mxu0  ;;  %v1987_v18 = vpop.f32.mrf.mxu1 }
 0x3ca   : > { %v1467_v19 = vmul.f32 0.044715, %v1455_v16  ;;  %v1478_v20 = vmul.f32 0.7978846, %v1475_v49  ;;  %v1464_v51 = vmul.f32 0.5, %v1455_v16 }
 0x3cb   : > { %v1370_v21 = vpop.f32.mrf.mxu0  ;;  %v1459_v22 = vpop.f32.mrf.mxu1  ;;  %v1801_v49 = vld [vmem:[%s2707_s6] ss:$0 sm:$0xff]  ;;  %v1802_v18 = vld [vmem:[#allocation8] ss:$0 sm:$0xff] }
 0x3cc   : > { %v1460_v23 = vadd.f32 %v1459_v22, %v1370_v21  ;;  %2092 = vtanh.f32 %v1478_v20  ;;  %v1470_v24 = vmul.f32 %v1467_v19, %v1455_v16 }
 0x3cd   : > { %v1973_v25 = vpop.f32.mrf.mxu0  ;;  %v1990_v26 = vpop.f32.mrf.mxu1 }
 0x3ce   : > { %v1468_v27 = vmul.f32 0.044715, %v1460_v23  ;;  %v1473_v28 = vmul.f32 %v1470_v24, %v1455_v16  ;;  %v1465_v56 = vmul.f32 0.5, %v1460_v23 }
 0x3d0   : > { %v1476_v29 = vadd.f32 %v1473_v28, %v1455_v16  ;;  %v1471_v30 = vmul.f32 %v1468_v27, %v1460_v23 }
 0x3d2   : > { %v1479_v31 = vmul.f32 0.7978846, %v1476_v29  ;;  %v1474_v36 = vmul.f32 %v1471_v30, %v1460_v23  ;;  %v1803_v29 = vld [vmem:[%s2710_s9] ss:$0 sm:$0xff] }
 0x3d4   : > { %2094 = vtanh.f32 %v1479_v31  ;;  %v1477_v37 = vadd.f32 %v1474_v36, %v1460_v23 }
 0x3d6   : > { %v1480_v39 = vmul.f32 0.7978846, %v1477_v37 }
 0x3d8   : > { %2096 = vtanh.f32 %v1480_v39 }
 0x3d9   : > { %v2093_v41 = vpop.eup %2092 }
 0x3da   : > { %v1484_v43 = vadd.f32 1.0, %v2093_v41 }
 0x3dc   : > { %v1487_v32 = vmul.f32 %v1484_v43, %v1463_v42 }
 0x3de   : > { %v1492_v48 = vsel %vm631_vm4, %v1487_v32, 0.0 }
 0x3df   : > { %1493 = vadd.xlane.f32.xlu0 %v1492_v48 }
 0x3e1   : > { %v2095_v50 = vpop.eup %2094 }
 0x3e2   : > { %v1485_v52 = vadd.f32 1.0, %v2095_v50 }
 0x3e4   : > { %v1488_v53 = vmul.f32 %v1485_v52, %v1464_v51 }
 0x3e5   : > { %v2097_v54 = vpop.eup %2096 }
 0x3e6   : > { %v1495_v55 = vsel %vm631_vm4, %v1488_v53, 0.0  ;;  %v1486_v57 = vadd.f32 1.0, %v2097_v54 }
 0x3e7   : > { %1496 = vadd.xlane.f32.xlu1 %v1495_v55 }
 0x3e8   : > { %v1489_v58 = vmul.f32 %v1486_v57, %v1465_v56 }
 0x3ea   : > { %v1499_v59 = vsel %vm1498_vm7, %v1489_v58, 0.0 }
 0x3eb   : > { %1500 = vadd.xlane.f32.xlu0 %v1499_v59 }
 0x468   : > { %v1494_v60 = vpop.xlane.xlu0 %1493 }
 0x469   : > { %v1503_v61 = vmul.f32 0.03125, %v1494_v60 }
 0x46b   : > { %v1506_v62 = vsub.f32 %v1487_v32, %v1503_v61 }
 0x46d   : > { %v1509_v33 = vmul.f32 %v1506_v62, %v1506_v62 }
 0x46f   : > { %v1512_v63 = vsel %vm631_vm4, %v1509_v33, 0.0 }
 0x470   : > { %v1497_v0 = vpop.xlane.xlu1 %1496  ;;  %1513 = vadd.xlane.f32.xlu0 %v1512_v63 }
 0x471   : > { %v1504_v34 = vmul.f32 0.03125, %v1497_v0 }
 0x473   : > { %v1507_v1 = vsub.f32 %v1488_v53, %v1504_v34 }
 0x474   : > { %v1501_v35 = vpop.xlane.xlu0 %1500 }
 0x475   : > { %v1505_v2 = vmul.f32 0.03125, %v1501_v35  ;;  %v1510_v4 = vmul.f32 %v1507_v1, %v1507_v1 }
 0x477   : > { %v1508_v38 = vsub.f32 %v1489_v58, %v1505_v2  ;;  %v1515_v5 = vsel %vm631_vm4, %v1510_v4, 0.0 }
 0x478   : > { %1516 = vadd.xlane.f32.xlu1 %v1515_v5 }
 0x479   : > { %v1511_v6 = vmul.f32 %v1508_v38, %v1508_v38 }
 0x47b   : > { %v1518_v40 = vsel %vm1498_vm7, %v1511_v6, 0.0 }
 0x47c   : > { %1519 = vadd.xlane.f32.xlu0 %v1518_v40 }
 0x4f9   : > { %v1514_v10 = vpop.xlane.xlu0 %1513 }
 0x4fa   : > { %v1521_v11 = vmul.f32 0.03125, %v1514_v10 }
 0x4fc   : > { %v1524_v45 = vadd.f32 1e-05, %v1521_v11 }
 0x4fe   : > { %2098 = vrsqrt.f32 %v1524_v45 }
 0x501   : > { %v1517_v12 = vpop.xlane.xlu1 %1516 }
 0x502   : > { %v1522_v13 = vmul.f32 0.03125, %v1517_v12 }
 0x504   : > { %v1525_v14 = vadd.f32 1e-05, %v1522_v13 }
 0x505   : > { %v1520_v46 = vpop.xlane.xlu0 %1519 }
 0x506   : > { %2100 = vrsqrt.f32 %v1525_v14  ;;  %v1523_v47 = vmul.f32 0.03125, %v1520_v46 }
 0x508   : > { %v1526_v15 = vadd.f32 1e-05, %v1523_v47 }
 0x50a   : > { %2102 = vrsqrt.f32 %v1526_v15 }
 0x50b   : > { %v2099_v16 = vpop.eup %2098 }
 0x50c   : > { %v1530_v17 = vmul.f32 %v2099_v16, %v1506_v62 }
 0x50e   : > { %v1539_v19 = vmul.f32 %v1801_v49, %v1530_v17 }
 0x510   : > { %v1548_v20 = vadd.f32 %v1802_v18, %v1539_v19 }
 0x512   : > { %2000 = vmatmul.mubr.msk.f32.vlgmr.msra.gmra.mxu0 %vm631_vm4, %v1548_v20 }
 0x513   : > { %v2101_v21 = vpop.eup %2100  ;;  %2002 = vmatprep.mubr.msk.f32.mxu0 %vm2203_vm6, %v2202_v3 }
 0x514   : > { %v1531_v22 = vmul.f32 %v2101_v21, %v1507_v1 }
 0x516   : > { %v1540_v23 = vmul.f32 %v1801_v49, %v1531_v22 }
 0x517   : > { %v2103_v24 = vpop.eup %2102 }
 0x518   : > { %v1532_v25 = vmul.f32 %v2103_v24, %v1508_v38  ;;  %v1549_v26 = vadd.f32 %v1802_v18, %v1540_v23 }
 0x51a   : > { %v1541_v27 = vmul.f32 %v1801_v49, %v1532_v25  ;;  %2003 = vmatmul.mubr.msk.f32.gmra.mxu0 %vm631_vm4, %v1549_v26 }
 0x51c   : > { %v1550_v28 = vadd.f32 %v1802_v18, %v1541_v27 }
 0x51e   : > { %2006 = vmatmul.mubr.msk.f32.vlgmr.msra.gmra.mxu1 %vm631_vm4, %v1550_v28 }
 0x5d2   : > { %v1637_v3 = vpop.f32.mrf.mxu0 }
 0x5d3   : > { %v1638_v30 = vadd.f32 %v1803_v29, %v1637_v3 }
 0x5d4   : > { %v2001_v31 = vpop.f32.mrf.mxu0 }
 0x5d5   : > { %1652 = vst.msk [vmem:[%s397_s27] sm:$0xff] %vm1651_vm8, %v1638_v30 }
 0x5da   : > { %v1642_v36 = vpop.f32.mrf.mxu0 }
 0x5db   : > { %v1643_v37 = vadd.f32 %v1803_v29, %v1642_v36 }
 0x5dc   : > { %v2004_v39 = vpop.f32.mrf.mxu0 }
 0x5dd   : > { %1653 = vst.msk [vmem:[%s397_s27 + $0x8] sm:$0xff] %vm1651_vm8, %v1643_v37 }
 0x5de   : > { %v1647_v41 = vpop.f32.mrf.mxu1 }
 0x5df   : > { %v1648_v42 = vadd.f32 %v1803_v29, %v1647_v41 }
 0x5e0   : > { %v2007_v43 = vpop.f32.mrf.mxu1 }
 0x5e1   : > { %1655 = vst.msk [vmem:[%s397_s27 + $0x10] sm:$0x7] %vm1654_vm9, %v1648_v42 }
 0x5e2 PF: > { %s22_s13 = sadd.s32 1, %s2196_s13  }
 0x5e3   : > { %p19_p3 = scmp.ge.s32.totalorder %s22_s13, 4  }
 0x5e5   :  { %21 = sbr.rel (!%p19_p3) target bundleno = 2 (0x2), region = 125 }
 0x5ea   :  { %1677 = vsyncpa [#allocation5], 1 }
 0x5eb   :  { %1679 = vsyncpa [#allocation5 + $0x1], 1 }
 0x5ec   :  { %1680 = vsyncpa [#allocation7], 1 }

// kernel: wav2vec2_forward.3
= control target key start
LH: loop header
LB: loop body
LE: loop exit
PB: predicated region body
PF: predicated region fallthrough
CT: control target
= control target key end

     0   :  { %s8132_s0 = inlined_call_operand.vmem [shape: f32[2,23,64], index: 0, kind: input, shape index: {}]   ;;  %s8133_s1 = inlined_call_operand.vmem [shape: f32[4,2,32,32], index: 1, kind: input, shape index: {}]   ;;  %s8134_s2 = inlined_call_operand.hbm [shape: f32[1,64], index: 2, kind: input, shape index: {}]   ;;  %s8135_s3 = inlined_call_operand.hbm [shape: f32[1,64], index: 3, kind: input, shape index: {}]   ;;  %s8136_s4 = inlined_call_operand.hbm [shape: f32[1,64], index: 4, kind: input, shape index: {}]   ;;  %s8137_s5 = inlined_call_operand.vmem [shape: f32[2,64,192], index: 5, kind: input, shape index: {}]   ;;  %s8138_s6 = inlined_call_operand.vmem [shape: f32[2,1,192], index: 6, kind: input, shape index: {}]   ;;  %s8139_s7 = inlined_call_operand.vmem [shape: f32[2,64,64], index: 7, kind: input, shape index: {}]   ;;  %s8140_s8 = inlined_call_operand.vmem [shape: f32[2,1,64], index: 8, kind: input, shape index: {}]   ;;  %s8141_s9 = inlined_call_operand.hbm [shape: f32[2,1,64], index: 9, kind: input, shape index: {}]   ;;  %s8142_s10 = inlined_call_operand.hbm [shape: f32[2,1,64], index: 10, kind: input, shape index: {}]   ;;  %s8143_s11 = inlined_call_operand.vmem [shape: f32[2,64,128], index: 11, kind: input, shape index: {}]   ;;  %s8144_s12 = inlined_call_operand.hbm [shape: f32[2,1,128], index: 12, kind: input, shape index: {}]   ;;  %s8145_s13 = inlined_call_operand.vmem [shape: f32[2,128,64], index: 13, kind: input, shape index: {}]   ;;  %s8146_s14 = inlined_call_operand.hbm [shape: f32[2,1,64], index: 14, kind: input, shape index: {}]   ;;  %s8147_s15 = inlined_call_operand.hbm [shape: f32[2,1,64], index: 15, kind: input, shape index: {}]   ;;  %s8148_s16 = inlined_call_operand.hbm [shape: f32[2,1,64], index: 16, kind: input, shape index: {}]   ;;  %s8149_s17 = inlined_call_operand.vmem [shape: f32[2,19,64], index: 17, kind: output, shape index: {}]  }
   0x1   :  { %8163 = sst [smem:[#allocation21_spill]] %s8132_s0 }
   0x2   :  { %8164 = sst [smem:[#allocation22_spill]] %s8133_s1 }
   0x3   :  { %8165 = sst [smem:[#allocation23_spill]] %s8135_s3 }
   0x4   :  { %22 = vsyncpa [#allocation3], 0 }
   0x5   :  { %23 = vsyncpa [#allocation5], 0 }
   0x6   :  { %24 = vsyncpa [#allocation8], 0 }
   0x7   :  { %25 = vsyncpa [#allocation11], 0 }
   0x8   :  { %26 = vsyncpa [#allocation14], 0  ;;  %s6573_s24 = smov 0  }
   0x9 LB: > { %s6463_s25 = smov [#allocation4]   ;;  %s6579_s27 = sadd.s32 4294967295, %s6461_s24   ;;  %s6461_s24 = sphi %s6573_s24, %s32_s24  }
   0xa   : > { %s452_s26 = sshll.u32 %s6463_s25, 4  ;;  %p4940_p0 = scmp.ge.s32.totalorder %s6461_s24, 1  ;;  %s453_s26 = int_to_ptr.vmem [resolvable:$true] %s452_s26 }
   0xb   : > { %p425_p1 = scmp.lt.s32.totalorder %s6461_s24, 3  ;;  %p8151_p2 = scmp.eq.s32.totalorder %s6579_s27, 0 }
   0xc   : > { %s6464_s29 = smov [#allocation7]   ;;  %s6465_s18 = smov [#allocation10]  }
   0xd   : > { %p6584_p3 = pnand %p4940_p0, %p425_p1  ;;  %s485_s0 = sshll.u32 %s6464_s29, 4  ;;  %s6590_s0 = int_to_ptr.vmem [resolvable:$true] %s485_s0 }
   0xe   : > { %s514_s19 = sshll.u32 %s6465_s18, 4  ;;  %s6466_s1 = smov [#allocation13]   ;;  %s6598_s19 = int_to_ptr.vmem [resolvable:$true] %s514_s19 }
   0xf   : > { %p5983_p4 = pneg %p6584_p3  ;;  %s6600_s20 = sshll.u32 %s6466_s1, 4  ;;  %s544_s20 = int_to_ptr.vmem [resolvable:$true] %s6600_s20 }
  0x10   : > { %s6212_s22 = scalar_lea.vmem %s453_s26, 16  ;;  %s6219_s23 = scalar_lea.vmem %s453_s26, 32 }
  0x11   : > { %p6594_p5 = pnand %p8151_p2, %p5983_p4  ;;  %p6213_p7 = scmp.ne.s32.totalorder %s453_s26, %s6212_s22 }
  0x12   : > { %p6220_p10 = scmp.lt.s32.totalorder %s453_s26, %s453_s26  ;;  %p6221_p11 = scmp.lt.s32.totalorder %s6219_s23, %s6212_s22 }
  0x13   : > { %p6604_p6 = pneg %p6594_p5 }
  0x14   : > { %p6222_p12 = por %p6221_p11, %p6220_p10 }
  0x15   : > { %p6215_p8 = pnand %p6213_p7, %p6604_p6 }
  0x17   : > { %p6216_p9 = pneg %p6215_p8 }
  0x19   : > { %p6223_p13 = pnand %p6222_p12, %p6216_p9 }
  0x1b   : > { %6226 = shalt.err (!%p6223_p13)
}
  0x1c   : > { %s8169_s3 = sld [smem:[#allocation23_spill]]  ;;  %s6238_s18 = scalar_lea.vmem %s6590_s0, 32 }
  0x1d   : > { %p6239_p0 = scmp.ne.s32.totalorder %s6590_s0, %s6238_s18  ;;  %p6246_p7 = scmp.lt.s32.totalorder %s6590_s0, %s6590_s0 }
  0x1e   : > { %p6247_p8 = scmp.lt.s32.totalorder %s6238_s18, %s6238_s18 }
  0x1f   : > { %p6241_p1 = pnand %p6239_p0, %p6604_p6 }
  0x20   : > { %p6248_p9 = por %p6247_p8, %p6246_p7 }
  0x21   : > { %p6242_p4 = pneg %p6241_p1 }
  0x22   : > { %5989 = dma.hbm_to_vmem [thread:$0]  (!%p6594_p5), %s8169_s3, 16, %s453_s26, [#allocation5]  }
  0x23   : > { %p6249_p10 = pnand %p6248_p9, %p6242_p4 }
  0x25   : > { %6252 = shalt.err (!%p6249_p10)
}
  0x26   : > { %s8152_s1 = smov 16   ;;  %s6468_s22 = smov 1  }
  0x27   : > { %5995 = dma.hbm_to_vmem [thread:$0]  (!%p6594_p5), %s8141_s9, 32, %s6590_s0, [#allocation8], %s8152_s1, %s8152_s1, %s6468_s22  }
  0x28   : > { %s6264_s25 = scalar_lea.vmem %s6598_s19, 32  ;;  %p6272_p0 = scmp.lt.s32.totalorder %s6598_s19, %s6598_s19 }
  0x29   : > { %p6265_p11 = scmp.ne.s32.totalorder %s6598_s19, %s6264_s25  ;;  %p6273_p1 = scmp.lt.s32.totalorder %s6264_s25, %s6264_s25 }
  0x2b   : > { %p6267_p12 = pnand %p6265_p11, %p6604_p6  ;;  %p6274_p4 = por %p6273_p1, %p6272_p0 }
  0x2d   : > { %p6268_p13 = pneg %p6267_p12 }
  0x2f   : > { %p6275_p7 = pnand %p6274_p4, %p6268_p13 }
  0x31   : > { %6278 = shalt.err (!%p6275_p7)
}
  0x32   : > { %6001 = dma.hbm_to_vmem [thread:$0]  (!%p6594_p5), %s8144_s12, 32, %s6598_s19, [#allocation11], %s8152_s1, %s8152_s1, %s6468_s22  }
  0x33   : > { %s6290_s0 = scalar_lea.vmem %s544_s20, 32  ;;  %p6298_p11 = scmp.lt.s32.totalorder %s544_s20, %s544_s20 }
  0x34   : > { %p6291_p8 = scmp.ne.s32.totalorder %s544_s20, %s6290_s0  ;;  %p6299_p12 = scmp.lt.s32.totalorder %s6290_s0, %s6290_s0 }
  0x36   : > { %p6293_p9 = pnand %p6291_p8, %p6604_p6  ;;  %p6300_p13 = por %p6299_p12, %p6298_p11 }
  0x38   : > { %p6294_p10 = pneg %p6293_p9 }
  0x3a   : > { %p6301_p0 = pnand %p6300_p13, %p6294_p10 }
  0x3c   : > { %6304 = shalt.err (!%p6301_p0)
}
  0x3d   : > { %6007 = dma.hbm_to_vmem [thread:$0]  (!%p6594_p5), %s8147_s15, 32, %s544_s20, [#allocation14], %s8152_s1, %s8152_s1, %s6468_s22  }
  0x3e   : > { %s6469_s19 = smov [#allocation2]   ;;  %s6470_s29 = smov [#allocation6]  }
  0x3f   : > { %s441_s25 = sshll.u32 %s6469_s19, 4  ;;  %s463_s18 = sshll.u32 %s6470_s29, 4  ;;  %s442_s25 = int_to_ptr.vmem [resolvable:$true] %s441_s25  ;;  %s464_s18 = int_to_ptr.vmem [resolvable:$true] %s463_s18 }
  0x40   : > { %s6316_s3 = scalar_lea.vmem %s442_s25, 16  ;;  %s6323_s0 = scalar_lea.vmem %s442_s25, 32 }
  0x41   : > { %p6317_p1 = scmp.ne.s32.totalorder %s442_s25, %s6316_s3  ;;  %p6324_p8 = scmp.lt.s32.totalorder %s442_s25, %s442_s25 }
  0x42   : > { %p6325_p9 = scmp.lt.s32.totalorder %s6323_s0, %s6316_s3 }
  0x43   : > { %p6319_p4 = pnand %p6317_p1, %p6604_p6 }
  0x44   : > { %p6326_p10 = por %p6325_p9, %p6324_p8 }
  0x45   : > { %p6320_p7 = pneg %p6319_p4 }
  0x47   : > { %p6327_p11 = pnand %p6326_p10, %p6320_p7 }
  0x49   : > { %6330 = shalt.err (!%p6327_p11)
}
  0x4a   : > { %5986 = dma.hbm_to_vmem [thread:$0]  (!%p6594_p5), %s8134_s2, 16, %s442_s25, [#allocation3]  }
  0x4b   : > { %s6342_s23 = scalar_lea.vmem %s464_s18, 16  ;;  %s6349_s19 = scalar_lea.vmem %s464_s18, 32 }
  0x4c   : > { %p6343_p12 = scmp.ne.s32.totalorder %s464_s18, %s6342_s23  ;;  %p6350_p1 = scmp.lt.s32.totalorder %s464_s18, %s464_s18 }
  0x4d   : > { %p6351_p4 = scmp.lt.s32.totalorder %s6349_s19, %s6342_s23 }
  0x4e   : > { %p6345_p13 = pnand %p6343_p12, %p6604_p6 }
  0x4f   : > { %p6352_p2 = por %p6351_p4, %p6350_p1 }
  0x50   : > { %p6346_p0 = pneg %p6345_p13 }
  0x52   : > { %p6353_p8 = pnand %p6352_p2, %p6346_p0 }
  0x54   : > { %6356 = shalt.err (!%p6353_p8)
}
  0x55   : > { %5992 = dma.hbm_to_vmem [thread:$0]  (!%p6594_p5), %s8136_s4, 16, %s464_s18, [#allocation5]  }
  0x56   : > { %s6471_s25 = smov [#allocation9]   ;;  %s6472_s26 = smov [#allocation12]  }
  0x57   : > { %s498_s0 = sshll.u32 %s6471_s25, 4  ;;  %s530_s20 = sshll.u32 %s6472_s26, 4  ;;  %s499_s0 = int_to_ptr.vmem [resolvable:$true] %s498_s0  ;;  %s531_s20 = int_to_ptr.vmem [resolvable:$true] %s530_s20 }
  0x58   : > { %s6368_s1 = scalar_lea.vmem %s499_s0, 32  ;;  %p6376_p11 = scmp.lt.s32.totalorder %s499_s0, %s499_s0 }
  0x59   : > { %p6369_p7 = scmp.ne.s32.totalorder %s499_s0, %s6368_s1  ;;  %p6377_p2 = scmp.lt.s32.totalorder %s6368_s1, %s6368_s1 }
  0x5b   : > { %p6371_p9 = pnand %p6369_p7, %p6604_p6  ;;  %p6378_p12 = por %p6377_p2, %p6376_p11 }
  0x5d   : > { %p6372_p10 = pneg %p6371_p9 }
  0x5f   : > { %p6379_p13 = pnand %p6378_p12, %p6372_p10 }
  0x61   : > { %6382 = shalt.err (!%p6379_p13)
}
  0x62   : > { %s8170_s23 = smov 16   ;;  %s6394_s3 = scalar_lea.vmem %s531_s20, 32 }
  0x63   : > { %5998 = dma.hbm_to_vmem [thread:$0]  (!%p6594_p5), %s8142_s10, 32, %s499_s0, [#allocation8], %s8170_s23, %s8170_s23, %s6468_s22  }
  0x64   : > { %p6395_p0 = scmp.ne.s32.totalorder %s531_s20, %s6394_s3  ;;  %p6402_p8 = scmp.lt.s32.totalorder %s531_s20, %s531_s20 }
  0x65   : > { %p6403_p7 = scmp.lt.s32.totalorder %s6394_s3, %s6394_s3 }
  0x66   : > { %p6397_p1 = pnand %p6395_p0, %p6604_p6 }
  0x67   : > { %p6404_p9 = por %p6403_p7, %p6402_p8 }
  0x68   : > { %p6398_p4 = pneg %p6397_p1 }
  0x6a   : > { %p6405_p10 = pnand %p6404_p9, %p6398_p4 }
  0x6c   : > { %6408 = shalt.err (!%p6405_p10)
}
  0x6d   : > { %6004 = dma.hbm_to_vmem [thread:$0]  (!%p6594_p5), %s8146_s14, 32, %s531_s20, [#allocation11], %s8170_s23, %s8170_s23, %s6468_s22  }
  0x6e   : > { %s6473_s25 = smov [#allocation15]  }
  0x6f   : > { %s556_s0 = sshll.u32 %s6473_s25, 4  ;;  %s557_s0 = int_to_ptr.vmem [resolvable:$true] %s556_s0 }
  0x70   : > { %s6420_s26 = scalar_lea.vmem %s557_s0, 32  ;;  %p6428_p13 = scmp.lt.s32.totalorder %s557_s0, %s557_s0 }
  0x71   : > { %p6421_p11 = scmp.ne.s32.totalorder %s557_s0, %s6420_s26  ;;  %p6429_p0 = scmp.lt.s32.totalorder %s6420_s26, %s6420_s26 }
  0x73   : > { %p6423_p2 = pnand %p6421_p11, %p6604_p6  ;;  %p6430_p1 = por %p6429_p0, %p6428_p13 }
  0x75   : > { %p6424_p12 = pneg %p6423_p2 }
  0x77   : > { %p6431_p4 = pnand %p6430_p1, %p6424_p12 }
  0x79   : > { %6434 = shalt.err (!%p6431_p4)
}
  0x7a   : > { %6010 = dma.hbm_to_vmem [thread:$0]  (!%p6594_p5), %s8148_s16, 32, %s557_s0, [#allocation14], %s8170_s23, %s8170_s23, %s6468_s22  }
  0x7b   : > { %580 = sbr.rel (%p6584_p3) target bundleno = 5945 (0x1739), region = 88  ;;  %p8171_p6 = scmp.eq.s32.totalorder (!%p6584_p3), %s6579_s27, 0 }
  0x80   : > { %6440 = dma.done.wait (%p8171_p6), [#allocation3], 16   ;;  %p8172_p8 = pmov %p8171_p6 }
  0x81   : > { %p8173_p7 = pmov %p8171_p6 }
  0x82   : > { %6442 = vsyncadd (%p8172_p8), [#allocation3], 4294967280 }
  0x83   : > { %6444 = dma.done.wait (%p8173_p7), [#allocation5], 32   ;;  %p8174_p9 = pmov %p8171_p6 }
  0x84   : > { %p8175_p10 = pmov %p8171_p6 }
  0x85   : > { %6446 = vsyncadd (%p8174_p9), [#allocation5], 4294967264 }
  0x86   : > { %6448 = dma.done.wait (%p8175_p10), [#allocation8], 64   ;;  %p8176_p5 = pmov %p8171_p6 }
  0x88   : > { %6450 = vsyncadd (%p8176_p5), [#allocation8], 4294967232  ;;  %p8177_p3 = pmov %p8176_p5 }
  0x8a   : > { %6452 = dma.done.wait (%p8177_p3), [#allocation11], 64   ;;  %p8178_p11 = pmov %p8177_p3 }
  0x8b   : > { %p8179_p2 = pmov %p8177_p3 }
  0x8c   : > { %6454 = vsyncadd (%p8178_p11), [#allocation11], 4294967232 }
  0x8d   : > { %6456 = dma.done.wait (%p8179_p2), [#allocation14], 64   ;;  %p8180_p12 = pmov %p8179_p2 }
  0x8e   : > { %p664_p13 = scmp.lt.s32.totalorder %s6579_s27, 1  ;;  %v6474_v0 = vmov 0.0   ;;  %vm6475_vm0 = vmmov 0   ;;  %s8181_s22 = sld [smem:[#allocation21_spill]]  ;;  %vm712_vm1 = vcmask 1046528   ;;  %vm718_vm2 = vcmask 261120  }
  0x8f   : > { %6458 = vsyncadd (%p8180_p12), [#allocation14], 4294967232  ;;  %5388 = vmatprep.subr.mxu0 %v6474_v0  ;;  %5396 = vmatprep.mubr.msk.f32.mxu0 %vm6475_vm0, %v6474_v0  ;;  %s8182_s1 = sld [smem:[#allocation22_spill]]  ;;  %s8157_s0 = smov 96   ;;  %vm891_vm3 = vcmask 1045504   ;;  %vm986_vm4 = vcmask 1044480  }
  0x90   : > { %s8189_s27 = smov (!%p664_p13, %s6579_s27), 1  ;;  %5439 = vmatprep.subr.mxu1 %v6474_v0  ;;  %5447 = vmatprep.mubr.msk.f32.mxu1 %vm6475_vm0, %v6474_v0  ;;  %vm1524_vm5 = vcmask 523266   ;;  %vm1510_vm6 = vcmask 1041408   ;;  %vm1528_vm7 = vcmask 523264   ;;  %vm1532_vm8 = vcmask 520192   ;;  %s6478_s25 = smov 64  }
  0x91   : > { %s8154_s28 = smul.u32 24, %s8189_s27  ;;  %s6479_s26 = smov 48   ;;  %vm1719_vm9 = vcmask 130048   ;;  %vm1856_vm10 = vcmask 1042432   ;;  %vm1812_vm11 = vcmask 154624   ;;  %vm1819_vm12 = vcmask 149504  }
  0x92   : > { %s6480_s18 = smov 112   ;;  %s8159_s20 = smov 16   ;;  %vm2692_vm13 = vcmask 392192  }
  0x93   : > { %s8155_s30 = smov 80   ;;  %s8187_s19 = smul.u32 24, %s8189_s27 }
  0x94   : > { %s668_s23 = scalar_lea.vmem %s8181_s22, %s8154_s28  ;;  %s8161_s22 = smov 32  }
  0x95   : > { %v6738_v1 = vld [vmem:[%s668_s23] sm:$0xff]  ;;  %v6740_v2 = vld [vmem:[%s668_s23 + $0x8] sm:$0xff]  ;;  %v6742_v3 = vld [vmem:[%s668_s23 + $0x10] sm:$0x7f]  ;;  %s8183_s28 = smov 96  }
  0x96   : > { %v713_v4 = vrot.slane %v6738_v1, 1  ;;  %v714_v5 = vrot.slane %v6740_v2, 1  ;;  %v716_v6 = vrot.slane %v6742_v3, 1  ;;  %v688_v7 = vld [vmem:[%s8182_s1 + $0x58] sm:$0xff]  ;;  %v687_v8 = vld [vmem:[%s8182_s1 + $0x50] sm:$0xff]  ;;  %v686_v11 = vld [vmem:[%s8182_s1 + $0x48] sm:$0xff] }
  0x97   : > { %5389 = vmatpush3.msra.mxu0 %v688_v7  ;;  %v704_v12 = vld [vmem:[%s8182_s1 + $0xd8] sm:$0xff]  ;;  %v703_v13 = vld [vmem:[%s8182_s1 + $0xd0] sm:$0xff]  ;;  %v685_v14 = vld [vmem:[%s8182_s1 + $0x40] sm:$0xff]  ;;  %v892_v15 = vrot.slane %v6738_v1, 2  ;;  %v893_v16 = vrot.slane %v6740_v2, 2  ;;  %v987_v17 = vrot.slane %v6738_v1, 3 }
  0x98   : > { %v715_v9 = vsel %vm712_vm1, %v713_v4, %v714_v5  ;;  %v717_v10 = vsel %vm712_vm1, %v714_v5, %v716_v6  ;;  %5390 = vmatprep.subr.mxu0 %v6474_v0  ;;  %5440 = vmatpush3.msra.mxu1 %v704_v12  ;;  %v988_v18 = vrot.slane %v6740_v2, 3  ;;  %v680_v19 = vld [vmem:[%s8182_s1 + $0x18] sm:$0xff]  ;;  %v702_v20 = vld [vmem:[%s8182_s1 + $0xc8] sm:$0xff]  ;;  %v6796_v23 = vrot.slane %v6742_v3, 2  ;;  %v679_v25 = vld [vmem:[%s8182_s1 + $0x10] sm:$0xff] }
  0x99   : > { %1081 = vrot.lane.b32.xlu0 %v715_v9, %s8157_s0  ;;  %1083 = vrot.lane.b32.xlu1 %v717_v10, %s8157_s0  ;;  %v6792_v21 = vsel %vm891_vm3, %v892_v15, %v893_v16  ;;  %v990_v24 = vrot.slane %v6742_v3, 3  ;;  %v701_v26 = vld [vmem:[%s8182_s1 + $0xc0] sm:$0xff]  ;;  %v678_v29 = vld [vmem:[%s8182_s1 + $0x8] sm:$0xff] }
  0x9a   : > { %5391 = vmatpush3.msra.mxu0 %v687_v8  ;;  %5441 = vmatprep.subr.mxu1 %v6474_v0  ;;  %v989_v22 = vsel %vm986_vm4, %v987_v17, %v988_v18  ;;  %v896_v27 = vsel %vm891_vm3, %v893_v16, %v6796_v23  ;;  %v677_v30 = vld [vmem:[%s8182_s1] sm:$0xff]  ;;  %v696_v31 = vld [vmem:[%s8182_s1 + $0x98] sm:$0xff]  ;;  %v695_v32 = vld [vmem:[%s8182_s1 + $0x90] sm:$0xff] }
  0x9b   : > { %5392 = vmatprep.subr.mxu0 %v6474_v0  ;;  %5442 = vmatpush3.msra.mxu1 %v703_v13  ;;  %v991_v28 = vsel %vm986_vm4, %v988_v18, %v990_v24  ;;  %v694_v33 = vld [vmem:[%s8182_s1 + $0x88] sm:$0xff]  ;;  %v693_v34 = vld [vmem:[%s8182_s1 + $0x80] sm:$0xff]  ;;  %v684_v35 = vld [vmem:[%s8182_s1 + $0x38] sm:$0xff] }
  0x9c   : > { %5393 = vmatpush3.msra.mxu0 %v686_v11  ;;  %5443 = vmatprep.subr.mxu1 %v6474_v0  ;;  %v683_v36 = vld [vmem:[%s8182_s1 + $0x30] sm:$0xff]  ;;  %v682_v37 = vld [vmem:[%s8182_s1 + $0x28] sm:$0xff]  ;;  %v692_v38 = vld [vmem:[%s8182_s1 + $0x78] sm:$0xff] }
  0x9d   : > { %1173 = vrot.lane.b32.xlu0 %v6738_v1, %s8157_s0  ;;  %1175 = vrot.lane.b32.xlu1 %v6740_v2, %s8157_s0  ;;  %v691_v39 = vld [vmem:[%s8182_s1 + $0x70] sm:$0xff]  ;;  %v681_v40 = vld [vmem:[%s8182_s1 + $0x20] sm:$0xff] }
  0x9e   : > { %5394 = vmatprep.subr.mxu0 %v6474_v0  ;;  %5444 = vmatpush3.msra.mxu1 %v702_v20  ;;  %v690_v41 = vld [vmem:[%s8182_s1 + $0x68] sm:$0xff]  ;;  %v689_v42 = vld [vmem:[%s8182_s1 + $0x60] sm:$0xff]  ;;  %v700_v43 = vld [vmem:[%s8182_s1 + $0xb8] sm:$0xff] }
  0x9f   : > { %5395 = vmatpush3.msra.mxu0 %v685_v14  ;;  %5445 = vmatprep.subr.mxu1 %v6474_v0  ;;  %v699_v46 = vld [vmem:[%s8182_s1 + $0xb0] sm:$0xff]  ;;  %v708_v47 = vld [vmem:[%s8182_s1 + $0xf8] sm:$0xff]  ;;  %v698_v51 = vld [vmem:[%s8182_s1 + $0xa8] sm:$0xff] }
  0xa0   : > { %5397 = vmatmul.mubr.msk.f32.vlgmr.msra.gmra.mxu0 %vm718_vm2, %v715_v9  ;;  %5405 = vmatprep.subr.mxu0 %v6474_v0  ;;  %v707_v50 = vld [vmem:[%s8182_s1 + $0xf0] sm:$0xff]  ;;  %v706_v54 = vld [vmem:[%s8182_s1 + $0xe8] sm:$0xff]  ;;  %v697_v55 = vld [vmem:[%s8182_s1 + $0xa0] sm:$0xff] }
  0xa1   : > { %1085 = vrot.lane.b32.xlu0 %v716_v6, %s8157_s0  ;;  %1177 = vrot.lane.b32.xlu1 %v6742_v3, %s8157_s0  ;;  %v705_v57 = vld [vmem:[%s8182_s1 + $0xe0] sm:$0xff] }
  0xa2   : > { %5399 = vmatprep.mubr.msk.f32.mxu0 %vm6475_vm0, %v6474_v0  ;;  %5406 = vmatpush3.msra.mxu0 %v680_v19 }
  0xa3   : > { %5407 = vmatprep.subr.mxu0 %v6474_v0  ;;  %5446 = vmatpush3.msra.mxu1 %v701_v26 }
  0xa4   : > { %5400 = vmatmul.mubr.msk.f32.gmra.mxu0 %vm718_vm2, %v717_v10  ;;  %5448 = vmatmul.mubr.msk.f32.vlgmr.msra.gmra.mxu1 %vm718_vm2, %v989_v22 }
  0xa5   : > { %1265 = vrot.lane.b32.xlu0 %v6792_v21, %s8157_s0  ;;  %1360 = vrot.lane.b32.xlu1 %v989_v22, %s8157_s0 }
  0xa6   : > { %5402 = vmatprep.mubr.msk.f32.mxu0 %vm6475_vm0, %v6474_v0  ;;  %5408 = vmatpush3.msra.mxu0 %v679_v25 }
  0xa7   : > { %5409 = vmatprep.subr.mxu0 %v6474_v0  ;;  %5450 = vmatprep.mubr.msk.f32.mxu1 %vm6475_vm0, %v6474_v0 }
  0xa8   : > { %5403 = vmatmul.mubr.msk.f32.gmra.mxu0 %vm718_vm2, %v716_v6  ;;  %5451 = vmatmul.mubr.msk.f32.gmra.mxu1 %vm718_vm2, %v991_v28 }
  0xa9   : > { %1267 = vrot.lane.b32.xlu0 %v896_v27, %s8157_s0  ;;  %1362 = vrot.lane.b32.xlu1 %v991_v28, %s8157_s0 }
  0xaa   : > { %5410 = vmatpush3.msra.mxu0 %v678_v29  ;;  %5413 = vmatprep.mubr.msk.f32.mxu0 %vm6475_vm0, %v6474_v0 }
  0xab   : > { %5411 = vmatprep.subr.mxu0 %v6474_v0  ;;  %5453 = vmatprep.mubr.msk.f32.mxu1 %vm6475_vm0, %v6474_v0 }
  0xac   : > { %5412 = vmatpush3.msra.mxu0 %v677_v30  ;;  %5454 = vmatmul.mubr.msk.f32.gmra.mxu1 %vm718_vm2, %v990_v24 }
  0xad   : > { %1269 = vrot.lane.b32.xlu0 %v6796_v23, %s8157_s0  ;;  %1364 = vrot.lane.b32.xlu1 %v990_v24, %s8157_s0 }
  0xae   : > { %5414 = vmatmul.mubr.msk.f32.vlgmr.msra.gmra.mxu0 %vm718_vm2, %v6738_v1  ;;  %5422 = vmatprep.subr.mxu0 %v6474_v0 }
  0xaf   : > { %5416 = vmatprep.mubr.msk.f32.mxu0 %vm6475_vm0, %v6474_v0  ;;  %5423 = vmatpush3.msra.mxu0 %v696_v31 }
  0xb0   : > { %5424 = vmatprep.subr.mxu0 %v6474_v0  ;;  %5473 = vmatprep.subr.mxu1 %v6474_v0 }
  0xb1   : > { %5425 = vmatpush3.msra.mxu0 %v695_v32  ;;  %5474 = vmatpush3.msra.mxu1 %v684_v35 }
  0xb2   : > { %5417 = vmatmul.mubr.msk.f32.gmra.mxu0 %vm718_vm2, %v6740_v2  ;;  %5426 = vmatprep.subr.mxu0 %v6474_v0 }
  0xb3   : > { %5419 = vmatprep.mubr.msk.f32.mxu0 %vm6475_vm0, %v6474_v0  ;;  %5427 = vmatpush3.msra.mxu0 %v694_v33 }
  0xb4   : > { %5428 = vmatprep.subr.mxu0 %v6474_v0  ;;  %5475 = vmatprep.subr.mxu1 %v6474_v0 }
  0xb5   : > { %5429 = vmatpush3.msra.mxu0 %v693_v34  ;;  %5476 = vmatpush3.msra.mxu1 %v683_v36 }
  0xb6   : > { %5420 = vmatmul.mubr.msk.f32.gmra.mxu0 %vm718_vm2, %v6742_v3  ;;  %5456 = vmatprep.subr.mxu0 %v6474_v0 }
  0xb7   : > { %5430 = vmatprep.mubr.msk.f32.mxu0 %vm6475_vm0, %v6474_v0  ;;  %5481 = vmatprep.mubr.msk.f32.mxu1 %vm6475_vm0, %v6474_v0 }
  0xb8   : > { %5477 = vmatprep.subr.mxu1 %v6474_v0 }
  0xb9   : > { %5478 = vmatpush3.msra.mxu1 %v682_v37 }
  0xba   : > { %5431 = vmatmul.mubr.msk.f32.vlgmr.msra.gmra.mxu0 %vm718_vm2, %v6792_v21  ;;  %5479 = vmatprep.subr.mxu1 %v6474_v0 }
  0xbb   : > { %5433 = vmatprep.mubr.msk.f32.mxu0 %vm6475_vm0, %v6474_v0  ;;  %5457 = vmatpush3.msra.mxu0 %v692_v38 }
  0xbc   : > { %5458 = vmatprep.subr.mxu0 %v6474_v0  ;;  %5480 = vmatpush3.msra.mxu1 %v681_v40 }
  0xbd   : > { %5459 = vmatpush3.msra.mxu0 %v691_v39  ;;  %5507 = vmatprep.subr.mxu1 %v6474_v0 }
  0xbe   : > { %5434 = vmatmul.mubr.msk.f32.gmra.mxu0 %vm718_vm2, %v896_v27  ;;  %5460 = vmatprep.subr.mxu0 %v6474_v0 }
  0xbf   : > { %5436 = vmatprep.mubr.msk.f32.mxu0 %vm6475_vm0, %v6474_v0  ;;  %5461 = vmatpush3.msra.mxu0 %v690_v41 }
  0xc0   : > { %5462 = vmatprep.subr.mxu0 %v6474_v0 }
  0xc1   : > { %5463 = vmatpush3.msra.mxu0 %v689_v42 }
  0xc2   : > { %5437 = vmatmul.mubr.msk.f32.gmra.mxu0 %vm718_vm2, %v6796_v23  ;;  %5490 = vmatprep.subr.mxu0 %v6474_v0 }
  0xc3   : > { %5464 = vmatprep.mubr.msk.f32.mxu0 %vm6475_vm0, %v6474_v0 }
 0x10b   : > { %v1082_v44 = vpop.permute.xlu0 %1081  ;;  %v1084_v45 = vpop.permute.xlu1 %1083 }
 0x10c   : > { %5465 = vmatmul.mubr.msk.f32.vlgmr.msra.gmra.mxu0 %vm718_vm2, %v1082_v44 }
 0x10d   : > { %5467 = vmatprep.mubr.msk.f32.mxu0 %vm6475_vm0, %v6474_v0  ;;  %5491 = vmatpush3.msra.mxu0 %v700_v43 }
 0x10e   : > { %5492 = vmatprep.subr.mxu0 %v6474_v0 }
 0x10f   : > { %v1174_v48 = vpop.permute.xlu0 %1173  ;;  %5493 = vmatpush3.msra.mxu0 %v699_v46  ;;  %v1176_v49 = vpop.permute.xlu1 %1175 }
 0x110   : > { %5468 = vmatmul.mubr.msk.f32.gmra.mxu0 %vm718_vm2, %v1084_v45  ;;  %5482 = vmatmul.mubr.msk.f32.vlgmr.msra.gmra.mxu1 %vm718_vm2, %v1174_v48 }
 0x111   : > { %5508 = vmatpush3.msra.mxu1 %v708_v47  ;;  %5484 = vmatprep.mubr.msk.f32.mxu1 %vm6475_vm0, %v6474_v0 }
 0x112   : > { %5509 = vmatprep.subr.mxu1 %v6474_v0  ;;  %5470 = vmatprep.mubr.msk.f32.mxu0 %vm6475_vm0, %v6474_v0 }
 0x113   : > { %v1086_v52 = vpop.permute.xlu0 %1085  ;;  %5494 = vmatprep.subr.mxu0 %v6474_v0  ;;  %5510 = vmatpush3.msra.mxu1 %v707_v50  ;;  %v1178_v53 = vpop.permute.xlu1 %1177 }
 0x114   : > { %5471 = vmatmul.mubr.msk.f32.gmra.mxu0 %vm718_vm2, %v1086_v52  ;;  %5485 = vmatmul.mubr.msk.f32.gmra.mxu1 %vm718_vm2, %v1176_v49 }
 0x115   : > { %5495 = vmatpush3.msra.mxu0 %v698_v51  ;;  %5511 = vmatprep.subr.mxu1 %v6474_v0 }
 0x116   : > { %5496 = vmatprep.subr.mxu0 %v6474_v0  ;;  %5487 = vmatprep.mubr.msk.f32.mxu1 %vm6475_vm0, %v6474_v0 }
 0x117   : > { %5512 = vmatpush3.msra.mxu1 %v706_v54  ;;  %v1266_v56 = vpop.permute.xlu0 %1265  ;;  %5497 = vmatpush3.msra.mxu0 %v697_v55  ;;  %v1361_v58 = vpop.permute.xlu1 %1360 }
 0x118   : > { %5498 = vmatprep.mubr.msk.f32.mxu0 %vm6475_vm0, %v6474_v0  ;;  %5488 = vmatmul.mubr.msk.f32.gmra.mxu1 %vm718_vm2, %v1178_v53 }
 0x119   : > { %5499 = vmatmul.mubr.msk.f32.vlgmr.msra.gmra.mxu0 %vm718_vm2, %v1266_v56  ;;  %5513 = vmatprep.subr.mxu1 %v6474_v0 }
 0x11a   : > { %5514 = vmatpush3.msra.mxu1 %v705_v57  ;;  %5515 = vmatprep.mubr.msk.f32.mxu1 %vm6475_vm0, %v6474_v0 }
 0x11b   : > { %v1268_v59 = vpop.permute.xlu0 %1267  ;;  %5501 = vmatprep.mubr.msk.f32.mxu0 %vm6475_vm0, %v6474_v0  ;;  %v1363_v60 = vpop.permute.xlu1 %1362  ;;  %5524 = vmatprep.subr.mxu1 %v6474_v0 }
 0x11c   : > { %5516 = vmatmul.mubr.msk.f32.vlgmr.msra.gmra.mxu1 %vm718_vm2, %v1361_v58 }
 0x11d   : > { %5502 = vmatmul.mubr.msk.f32.gmra.mxu0 %vm718_vm2, %v1268_v59  ;;  %5518 = vmatprep.mubr.msk.f32.mxu1 %vm6475_vm0, %v6474_v0 }
 0x11e   : > { %5504 = vmatprep.mubr.msk.f32.mxu0 %vm6475_vm0, %v6474_v0 }
 0x11f   : > { %v1270_v61 = vpop.permute.xlu0 %1269  ;;  %v1365_v62 = vpop.permute.xlu1 %1364 }
 0x120   : > { %5519 = vmatmul.mubr.msk.f32.gmra.mxu1 %vm718_vm2, %v1363_v60 }
 0x121   : > { %5505 = vmatmul.mubr.msk.f32.gmra.mxu0 %vm718_vm2, %v1270_v61  ;;  %5521 = vmatprep.mubr.msk.f32.mxu1 %vm6475_vm0, %v6474_v0 }
 0x122   : > { %1691 = vmatprep.mubr.f32.mxu0 %v6474_v0 }
 0x124   : > { %5522 = vmatmul.mubr.msk.f32.gmra.mxu1 %vm718_vm2, %v1365_v62 }
 0x125   : > { %5530 = vmatprep.mubr.msk.f32.mxu1 %vm6475_vm0, %v6474_v0 }
 0x160   : > { %v791_v63 = vpop.f32.mrf.mxu0 }
 0x162   : > { %v5398_v4 = vpop.f32.mrf.mxu0 }
 0x164   : > { %v796_v5 = vpop.f32.mrf.mxu0  ;;  %v1064_v8 = vpop.f32.mrf.mxu1 }
 0x166   : > { %v5401_v6 = vpop.f32.mrf.mxu0  ;;  %v5449_v10 = vpop.f32.mrf.mxu1 }
 0x168   : > { %v801_v7 = vpop.f32.mrf.mxu0  ;;  %v1069_v11 = vpop.f32.mrf.mxu1 }
 0x16a   : > { %v5404_v9 = vpop.f32.mrf.mxu0  ;;  %v5452_v13 = vpop.f32.mrf.mxu1 }
 0x16b   : > { %v4987_v9 = vld [vmem:[#allocation2] ss:$0 sm:$0xff] }
 0x16c   : > { %v1074_v16 = vpop.f32.mrf.mxu1 }
 0x16e   : > { %v877_v12 = vpop.f32.mrf.mxu0  ;;  %v5455_v19 = vpop.f32.mrf.mxu1 }
 0x16f   : > { %v878_v14 = vadd.f32 %v877_v12, %v791_v63 }
 0x170   : > { %v5415_v15 = vpop.f32.mrf.mxu0 }
 0x172   : > { %v882_v17 = vpop.f32.mrf.mxu0 }
 0x173   : > { %v883_v18 = vadd.f32 %v882_v17, %v796_v5 }
 0x174   : > { %v5418_v20 = vpop.f32.mrf.mxu0 }
 0x176   : > { %v887_v21 = vpop.f32.mrf.mxu0 }
 0x177   : > { %v888_v22 = vadd.f32 %v887_v21, %v801_v7 }
 0x178   : > { %v5421_v23 = vpop.f32.mrf.mxu0 }
 0x17a   : > { %v969_v24 = vpop.f32.mrf.mxu0 }
 0x17b   : > { %v983_v25 = vadd.f32 %v969_v24, %v878_v14 }
 0x17c   : > { %v5432_v26 = vpop.f32.mrf.mxu0 }
 0x17d   : > { %v1078_v27 = vadd.f32 %v1064_v8, %v983_v25 }
 0x17e   : > { %v974_v28 = vpop.f32.mrf.mxu0 }
 0x17f   : > { %v984_v29 = vadd.f32 %v974_v28, %v883_v18 }
 0x180   : > { %v5435_v30 = vpop.f32.mrf.mxu0 }
 0x181   : > { %v1079_v31 = vadd.f32 %v1069_v11, %v984_v29 }
 0x182   : > { %v979_v32 = vpop.f32.mrf.mxu0 }
 0x183   : > { %v985_v33 = vadd.f32 %v979_v32, %v888_v22 }
 0x184   : > { %v5438_v34 = vpop.f32.mrf.mxu0 }
 0x185   : > { %v1080_v35 = vadd.f32 %v1074_v16, %v985_v33 }
 0x1cc   : > { %v1159_v36 = vpop.f32.mrf.mxu0 }
 0x1ce   : > { %v5466_v37 = vpop.f32.mrf.mxu0 }
 0x1d0   : > { %v1164_v38 = vpop.f32.mrf.mxu0  ;;  %v1251_v39 = vpop.f32.mrf.mxu1 }
 0x1d1   : > { %v1252_v47 = vadd.f32 %v1251_v39, %v1159_v36 }
 0x1d2   : > { %v5469_v40 = vpop.f32.mrf.mxu0  ;;  %v5483_v41 = vpop.f32.mrf.mxu1 }
 0x1d4   : > { %v1169_v42 = vpop.f32.mrf.mxu0  ;;  %v1256_v43 = vpop.f32.mrf.mxu1 }
 0x1d5   : > { %v1257_v53 = vadd.f32 %v1256_v43, %v1164_v38 }
 0x1d6   : > { %v5472_v44 = vpop.f32.mrf.mxu0  ;;  %v5486_v45 = vpop.f32.mrf.mxu1 }
 0x1d8   : > { %v1261_v46 = vpop.f32.mrf.mxu1 }
 0x1d9   : > { %v1343_v48 = vpop.f32.mrf.mxu0  ;;  %v1262_v60 = vadd.f32 %v1261_v46, %v1169_v42 }
 0x1da   : > { %v5489_v49 = vpop.f32.mrf.mxu1  ;;  %v1357_v50 = vadd.f32 %v1343_v48, %v1252_v47 }
 0x1db   : > { %v5500_v51 = vpop.f32.mrf.mxu0 }
 0x1dc   : > { %v1438_v52 = vpop.f32.mrf.mxu1 }
 0x1dd   : > { %v1348_v54 = vpop.f32.mrf.mxu0  ;;  %v1452_v55 = vadd.f32 %v1438_v52, %v1357_v50 }
 0x1de   : > { %v5517_v56 = vpop.f32.mrf.mxu1  ;;  %v1358_v57 = vadd.f32 %v1348_v54, %v1257_v53 }
 0x1df   : > { %v5503_v58 = vpop.f32.mrf.mxu0  ;;  %1458 = vrot.lane.b32.xlu0 %v1452_v55, %s8161_s22 }
 0x1e0   : > { %v1443_v59 = vpop.f32.mrf.mxu1 }
 0x1e1   : > { %v1353_v61 = vpop.f32.mrf.mxu0  ;;  %v1453_v62 = vadd.f32 %v1443_v59, %v1358_v57 }
 0x1e2   : > { %v5520_v63 = vpop.f32.mrf.mxu1  ;;  %v1359_v4 = vadd.f32 %v1353_v61, %v1262_v60 }
 0x1e3   : > { %v5506_v5 = vpop.f32.mrf.mxu0  ;;  %1460 = vrot.lane.b32.xlu1 %v1453_v62, %s8161_s22 }
 0x1e4   : > { %v1448_v6 = vpop.f32.mrf.mxu1 }
 0x1e5   : > { %v1454_v7 = vadd.f32 %v1448_v6, %v1359_v4 }
 0x1e6   : > { %v5523_v8 = vpop.f32.mrf.mxu1 }
 0x1e7   : > { %1462 = vrot.lane.b32.xlu0 %v1454_v7, %s8161_s22 }
 0x251   : > { %v1459_v10 = vpop.permute.xlu0 %1458 }
 0x252   : > { %v1467_v11 = vsel %vm718_vm2, %v1078_v27, %v1459_v10  ;;  %v1599_v10 = vld [vmem:[%s8137_s5 + $0x70] sm:$0xff] }
 0x253   : > { %v1477_v12 = vadd.f32 %v4987_v9, %v1467_v11  ;;  %v1598_v11 = vld [vmem:[%s8137_s5 + $0x68] sm:$0xff] }
 0x255   : > { %v1483_v13 = vmul.f32 0.044715, %v1477_v12  ;;  %v1461_v14 = vpop.permute.xlu1 %1460  ;;  %v1480_v36 = vmul.f32 0.5, %v1477_v12 }
 0x256   : > { %v1468_v15 = vsel %vm718_vm2, %v1079_v31, %v1461_v14  ;;  %v1595_v14 = vld [vmem:[%s8137_s5 + $0x50] sm:$0xff] }
 0x257   : > { %v1486_v16 = vmul.f32 %v1483_v13, %v1477_v12  ;;  %v1478_v17 = vadd.f32 %v4987_v9, %v1468_v15  ;;  %v1596_v13 = vld [vmem:[%s8137_s5 + $0x58] sm:$0xff]  ;;  %v1594_v15 = vld [vmem:[%s8137_s5 + $0x48] sm:$0xff] }
 0x259   : > { %v1484_v18 = vmul.f32 0.044715, %v1478_v17  ;;  %v1463_v19 = vpop.permute.xlu0 %1462  ;;  %v1489_v20 = vmul.f32 %v1486_v16, %v1477_v12  ;;  %v1481_v40 = vmul.f32 0.5, %v1478_v17  ;;  %v1593_v16 = vld [vmem:[%s8137_s5 + $0x40] sm:$0xff] }
 0x25a   : > { %v1469_v21 = vsel %vm718_vm2, %v1080_v35, %v1463_v19  ;;  %v1590_v19 = vld [vmem:[%s8137_s5 + $0x28] sm:$0xff] }
 0x25b   : > { %v1487_v22 = vmul.f32 %v1484_v18, %v1478_v17  ;;  %v1479_v23 = vadd.f32 %v4987_v9, %v1469_v21  ;;  %v1492_v24 = vadd.f32 %v1489_v20, %v1477_v12  ;;  %v1600_v9 = vld [vmem:[%s8137_s5 + $0x78] sm:$0xff]  ;;  %v1597_v12 = vld [vmem:[%s8137_s5 + $0x60] sm:$0xff]  ;;  %v1591_v18 = vld [vmem:[%s8137_s5 + $0x30] sm:$0xff] }
 0x25c   : > { %1643 = vmatprep.subr.mxu0 %v1600_v9  ;;  %v1589_v20 = vld [vmem:[%s8137_s5 + $0x20] sm:$0xff]  ;;  %v1588_v21 = vld [vmem:[%s8137_s5 + $0x18] sm:$0xff] }
 0x25d   : > { %v1490_v25 = vmul.f32 %v1487_v22, %v1478_v17  ;;  %v1485_v26 = vmul.f32 0.044715, %v1479_v23  ;;  %v1495_v28 = vmul.f32 0.7978846, %v1492_v24  ;;  %v1482_v47 = vmul.f32 0.5, %v1479_v23  ;;  %1644 = vmatpush1.msra.mxu0 %v1599_v10  ;;  %v1587_v22 = vld [vmem:[%s8137_s5 + $0x10] sm:$0xff] }
 0x25e   : > { %1645 = vmatprep.subr.mxu0 %v1598_v11  ;;  %v1585_v24 = vld [vmem:[%s8137_s5] sm:$0xff] }
 0x25f   : > { %v1488_v29 = vmul.f32 %v1485_v26, %v1479_v23  ;;  %6057 = vtanh.f32 %v1495_v28  ;;  %v1493_v27 = vadd.f32 %v1490_v25, %v1478_v17  ;;  %1646 = vmatpush1.msra.mxu0 %v1597_v12  ;;  %v1592_v17 = vld [vmem:[%s8137_s5 + $0x38] sm:$0xff] }
 0x260   : > { %1647 = vmatprep.subr.mxu0 %v1596_v13 }
 0x261   : > { %v1491_v30 = vmul.f32 %v1488_v29, %v1479_v23  ;;  %v1496_v32 = vmul.f32 0.7978846, %v1493_v27  ;;  %1648 = vmatpush1.msra.mxu0 %v1595_v14 }
 0x262   : > { %1649 = vmatprep.subr.mxu0 %v1594_v15 }
 0x263   : > { %6059 = vtanh.f32 %v1496_v32  ;;  %v1494_v31 = vadd.f32 %v1491_v30, %v1479_v23  ;;  %1650 = vmatpush1.msra.mxu0 %v1593_v16  ;;  %v1586_v23 = vld [vmem:[%s8137_s5 + $0x8] sm:$0xff] }
 0x264   : > { %1651 = vmatprep.subr.mxu0 %v1592_v17 }
 0x265   : > { %v1497_v33 = vmul.f32 0.7978846, %v1494_v31  ;;  %1652 = vmatpush1.msra.mxu0 %v1591_v18 }
 0x266   : > { %1653 = vmatprep.subr.mxu0 %v1590_v19 }
 0x267   : > { %6061 = vtanh.f32 %v1497_v33  ;;  %1654 = vmatpush1.msra.mxu0 %v1589_v20 }
 0x268   : > { %1655 = vmatprep.subr.mxu0 %v1588_v21 }
 0x269   : > { %1656 = vmatpush1.msra.mxu0 %v1587_v22 }
 0x26a   : > { %1657 = vmatprep.subr.mxu0 %v1586_v23 }
 0x26b   : > { %1658 = vmatpush1.msra.mxu0 %v1585_v24 }
 0x26c   : > { %v6058_v34 = vpop.eup %6057  ;;  %5554 = vmatprep.subr.mxu0 %v6474_v0 }
 0x26d   : > { %v1501_v37 = vadd.f32 1.0, %v6058_v34 }
 0x26f   : > { %v1504_v38 = vmul.f32 %v1501_v37, %v1480_v36  ;;  %v4988_v37 = vld [vmem:[#allocation4] ss:$0 sm:$0xff] }
 0x270   : > { %v6060_v35 = vpop.eup %6059 }
 0x271   : > { %v1511_v39 = vrot.slane %v1504_v38, 6  ;;  %v1502_v41 = vadd.f32 1.0, %v6060_v35 }
 0x273   : > { %v1519_v42 = vadd.f32 %v1511_v39, %v6738_v1  ;;  %v1505_v43 = vmul.f32 %v1502_v41, %v1481_v40 }
 0x274   : > { %v6062_v44 = vpop.eup %6061 }
 0x275   : > { %v1525_v45 = vsel %vm1524_vm5, %v1519_v42, 0.0  ;;  %v1512_v46 = vrot.slane %v1505_v43, 6  ;;  %v1503_v48 = vadd.f32 1.0, %v6062_v44 }
 0x276   : > { %1526 = vadd.xlane.f32.xlu1 %v1525_v45 }
 0x277   : > { %v1513_v49 = vsel %vm1510_vm6, %v1511_v39, %v1512_v46  ;;  %v1506_v50 = vmul.f32 %v1503_v48, %v1482_v47  ;;  %v4989_v39 = vld [vmem:[#allocation6] ss:$0 sm:$0xff] }
 0x278   : > { %v1520_v51 = vadd.f32 %v1513_v49, %v6740_v2 }
 0x279   : > { %v1514_v52 = vrot.slane %v1506_v50, 6 }
 0x27a   : > { %v1529_v53 = vsel %vm1528_vm7, %v1520_v51, 0.0 }
 0x27b   : > { %1530 = vadd.xlane.f32.xlu0 %v1529_v53  ;;  %v1515_v1 = vsel %vm1510_vm6, %v1512_v46, %v1514_v52  ;;  %v1603_v53 = vlaneseq }
 0x27c   : > { %v1521_v54 = vadd.f32 %v1515_v1, %v6742_v3 }
 0x27d   : > { %v7066_v1 = vshrl.u32 %v1603_v53, 7 }
 0x27e   : > { %v1533_v55 = vsel %vm1532_vm8, %v1521_v54, 0.0 }
 0x27f   : > { %1534 = vadd.xlane.f32.xlu0 %v1533_v55  ;;  %v1601_v55 = vld [vmem:[%s8138_s6] sm:$0x3] }
 0x2ff   : > { %v1527_v56 = vpop.xlane.xlu1 %1526 }
 0x300   : > { %v1537_v57 = vmul.f32 0.015625, %v1527_v56 }
 0x302   : > { %v1540_v58 = vsub.f32 %v1519_v42, %v1537_v57 }
 0x304   : > { %v1531_v59 = vpop.xlane.xlu0 %1530  ;;  %v1543_v60 = vmul.f32 %v1540_v58, %v1540_v58 }
 0x305   : > { %v1538_v61 = vmul.f32 0.015625, %v1531_v59 }
 0x306   : > { %v1546_v2 = vsel %vm1524_vm5, %v1543_v60, 0.0 }
 0x307   : > { %v1541_v62 = vsub.f32 %v1520_v51, %v1538_v61  ;;  %1547 = vadd.xlane.f32.xlu1 %v1546_v2 }
 0x308   : > { %v1535_v63 = vpop.xlane.xlu0 %1534 }
 0x309   : > { %v1539_v4 = vmul.f32 0.015625, %v1535_v63  ;;  %v1544_v5 = vmul.f32 %v1541_v62, %v1541_v62 }
 0x30b   : > { %v1542_v6 = vsub.f32 %v1521_v54, %v1539_v4  ;;  %v1549_v7 = vsel %vm1528_vm7, %v1544_v5, 0.0  ;;  %v1605_v54 = vsub.s32 0, %v7066_v1  ;;  %v1609_v4 = vsub.s32 1, %v7066_v1 }
 0x30c   : > { %1550 = vadd.xlane.f32.xlu0 %v1549_v7 }
 0x30d   : > { %v1545_v3 = vmul.f32 %v1542_v6, %v1542_v6  ;;  %v1610_v5 = vrot.slane %v1601_v55, %v1609_v4 }
 0x30f   : > { %v1552_v8 = vsel %vm1532_vm8, %v1545_v3, 0.0 }
 0x310   : > { %1553 = vadd.xlane.f32.xlu1 %v1552_v8 }
 0x390   : > { %v1548_v25 = vpop.xlane.xlu1 %1547 }
 0x391   : > { %v1555_v26 = vmul.f32 0.015625, %v1548_v25 }
 0x393   : > { %v1558_v28 = vadd.f32 1e-05, %v1555_v26 }
 0x395   : > { %6063 = vrsqrt.f32 %v1558_v28  ;;  %v1551_v29 = vpop.xlane.xlu0 %1550 }
 0x396   : > { %v1556_v27 = vmul.f32 0.015625, %v1551_v29 }
 0x398   : > { %v1559_v30 = vadd.f32 1e-05, %v1556_v27 }
 0x399   : > { %v1554_v32 = vpop.xlane.xlu1 %1553 }
 0x39a   : > { %6065 = vrsqrt.f32 %v1559_v30  ;;  %v1557_v31 = vmul.f32 0.015625, %v1554_v32 }
 0x39c   : > { %v1560_v33 = vadd.f32 1e-05, %v1557_v31 }
 0x39e   : > { %6067 = vrsqrt.f32 %v1560_v33 }
 0x3a2   : > { %v6064_v34 = vpop.eup %6063 }
 0x3a3   : > { %v1564_v36 = vmul.f32 %v6064_v34, %v1540_v58  ;;  %v1606_v58 = vrot.slane %v1601_v55, %v1605_v54 }
 0x3a5   : > { %v1573_v38 = vmul.f32 %v4988_v37, %v1564_v36 }
 0x3a7   : > { %v6066_v35 = vpop.eup %6065  ;;  %v7048_v42 = vadd.f32 %v4989_v39, %v1573_v38 }
 0x3a8   : > { %v1565_v40 = vmul.f32 %v6066_v35, %v1541_v62 }
 0x3a9   : > { %v1616_v46 = vrot.slane %v7048_v42, 2 }
 0x3aa   : > { %v1574_v41 = vmul.f32 %v4988_v37, %v1565_v40 }
 0x3ab   : > { %v6068_v43 = vpop.eup %6067 }
 0x3ac   : > { %v7050_v44 = vadd.f32 %v4989_v39, %v1574_v41  ;;  %v1566_v45 = vmul.f32 %v6068_v43, %v1542_v6 }
 0x3ae   : > { %v1617_v47 = vrot.slane %v7050_v44, 2  ;;  %v1575_v48 = vmul.f32 %v4988_v37, %v1566_v45 }
 0x3b0   : > { %v1618_v49 = vsel %vm891_vm3, %v1616_v46, %v1617_v47  ;;  %v7055_v50 = vadd.f32 %v4989_v39, %v1575_v48 }
 0x3b1   : > { %4990 = vmatmul.mubr.msk.f32.vlgmr.msra.gmra.mxu0 %vm1528_vm7, %v1618_v49 }
 0x3b2   : > { %1697 = vmatprep.mubr.f32.mxu0 %v6474_v0  ;;  %v1619_v51 = vrot.slane %v7055_v50, 2 }
 0x3b4   : > { %v1620_v52 = vsel %vm891_vm3, %v1617_v47, %v1619_v51 }
 0x3b5   : > { %4991 = vmatmul.mubr.msk.f32.gmra.mxu0 %vm1528_vm7, %v1620_v52 }
 0x3b6   : > { %1703 = vmatprep.mubr.f32.mxu0 %v6474_v0 }
 0x3b9   : > { %4992 = vmatmul.mubr.msk.f32.gmra.mxu0 %vm1528_vm7, %v1619_v51 }
 0x3ba   : > { %5560 = vmatprep.mubr.msk.f32.mxu0 %vm6475_vm0, %v6474_v0 }
 0x471   : > { %v1693_v56 = vpop.f32.mrf.mxu0 }
 0x472   : > { %v1694_v62 = vadd.f32 %v1693_v56, %v1606_v58 }
 0x473   : > { %v1695_v57 = vpop.f32.mrf.mxu0 }
 0x474   : > { %v7116_v6 = vadd.f32 %v1695_v57, %v1610_v5 }
 0x475   : > { %v1699_v59 = vpop.f32.mrf.mxu0 }
 0x476   : > { %v7074_v60 = vadd.f32 %v1699_v59, %v1606_v58 }
 0x477   : > { %v1701_v61 = vpop.f32.mrf.mxu0 }
 0x478   : > { %1715 = vrot.lane.b32.xlu1 %v7074_v60, %s6478_s25  ;;  %v7118_v7 = vadd.f32 %v1701_v61, %v1610_v5 }
 0x479   : > { %v1705_v2 = vpop.f32.mrf.mxu0 }
 0x47a   : > { %v7078_v63 = vadd.f32 %v1705_v2, %v1606_v58 }
 0x47b   : > { %v1707_v3 = vpop.f32.mrf.mxu0 }
 0x47c   : > { %1717 = vrot.lane.b32.xlu0 %v7078_v63, %s6478_s25  ;;  %1713 = vrot.lane.b32.xlu1 %v1694_v62, %s6478_s25  ;;  %v7124_v8 = vadd.f32 %v1707_v3, %v1610_v5 }
 0x480   : > { %1950 = vrot.lane.b32.xlu0 %v7078_v63, %s6479_s26  ;;  %1948 = vrot.lane.b32.xlu1 %v7074_v60, %s6479_s26 }
 0x484   : > { %1946 = vrot.lane.b32.xlu0 %v1694_v62, %s6479_s26  ;;  %1940 = vrot.lane.b32.xlu1 %v1694_v62, %s6480_s18 }
 0x488   : > { %2188 = vrot.lane.b32.xlu0 %v7078_v63, %s8161_s22  ;;  %1942 = vrot.lane.b32.xlu1 %v7074_v60, %s6480_s18 }
 0x48c   : > { %2186 = vrot.lane.b32.xlu0 %v7074_v60, %s8161_s22  ;;  %1944 = vrot.lane.b32.xlu1 %v7078_v63, %s6480_s18 }
 0x490   : > { %2184 = vrot.lane.b32.xlu0 %v1694_v62, %s8161_s22  ;;  %2178 = vrot.lane.b32.xlu1 %v1694_v62, %s8157_s0 }
 0x494   : > { %2424 = vrot.lane.b32.xlu0 %v7078_v63, %s8159_s20  ;;  %2180 = vrot.lane.b32.xlu1 %v7074_v60, %s8157_s0 }
 0x498   : > { %2422 = vrot.lane.b32.xlu0 %v7074_v60, %s8159_s20  ;;  %2182 = vrot.lane.b32.xlu1 %v7078_v63, %s8157_s0 }
 0x49c   : > { %2420 = vrot.lane.b32.xlu0 %v1694_v62, %s8159_s20  ;;  %2414 = vrot.lane.b32.xlu1 %v1694_v62, %s8155_s30 }
 0x4a0   : > { %2416 = vrot.lane.b32.xlu0 %v7074_v60, %s8155_s30  ;;  %2418 = vrot.lane.b32.xlu1 %v7078_v63, %s8155_s30 }
 0x4a4   : > { %2079 = vrot.lane.b32.xlu0 %v7116_v6, %s6480_s18  ;;  %2081 = vrot.lane.b32.xlu1 %v7118_v7, %s6480_s18 }
 0x4a8   : > { %2083 = vrot.lane.b32.xlu0 %v7124_v8, %s6480_s18 }
 0x4ea   : > { %v1716_v9 = vpop.permute.xlu1 %1715 }
 0x4ee   : > { %v1718_v10 = vpop.permute.xlu0 %1717  ;;  %v1714_v11 = vpop.permute.xlu1 %1713 }
 0x4ef   : > { %5525 = vmatpush3.xpose.msk.msra.mxu1 %vm1719_vm9, %v1718_v10 }
 0x4f0   : > { %5526 = vmatprep.subr.mxu1 %v6474_v0 }
 0x4f2   : > { %v1951_v12 = vpop.permute.xlu0 %1950  ;;  %v1949_v13 = vpop.permute.xlu1 %1948 }
 0x4f3   : > { %5527 = vmatpush3.xpose.msk.msra.mxu1 %vm1719_vm9, %v1716_v9  ;;  %5555 = vmatpush3.xpose.msk.msra.mxu0 %vm1719_vm9, %v1951_v12 }
 0x4f4   : > { %5528 = vmatprep.subr.mxu1 %v6474_v0  ;;  %5556 = vmatprep.subr.mxu0 %v6474_v0 }
 0x4f6   : > { %v1947_v14 = vpop.permute.xlu0 %1946  ;;  %v1941_v15 = vpop.permute.xlu1 %1940 }
 0x4f7   : > { %5529 = vmatpush3.xpose.msk.msra.mxu1 %vm1719_vm9, %v1714_v11  ;;  %5557 = vmatpush3.xpose.msk.msra.mxu0 %vm1719_vm9, %v1949_v13 }
 0x4f8   : > { %5539 = vmatprep.subr.mxu1 %v6474_v0  ;;  %5558 = vmatprep.subr.mxu0 %v6474_v0 }
 0x4fa   : > { %v2189_v16 = vpop.permute.xlu0 %2188  ;;  %5531 = vmatmul.mubr.msk.f32.vlgmr.msra.gmra.mxu1 %vm1719_vm9, %v1694_v62  ;;  %v1943_v17 = vpop.permute.xlu1 %1942 }
 0x4fb   : > { %5540 = vmatpush3.msk.msra.mxu1 %vm1856_vm10, %v7124_v8  ;;  %5559 = vmatpush3.xpose.msk.msra.mxu0 %vm1719_vm9, %v1947_v14 }
 0x4fc   : > { %5541 = vmatprep.subr.mxu1 %v6474_v0  ;;  %5533 = vmatprep.mubr.msk.f32.mxu1 %vm6475_vm0, %v6474_v0 }
 0x4fd   : > { %5542 = vmatpush3.msra.mxu1 %v7118_v7  ;;  %5584 = vmatprep.subr.mxu0 %v6474_v0 }
 0x4fe   : > { %v2187_v18 = vpop.permute.xlu0 %2186  ;;  %5534 = vmatmul.mubr.msk.f32.gmra.mxu1 %vm1719_vm9, %v7074_v60  ;;  %5543 = vmatprep.subr.mxu1 %v6474_v0  ;;  %v1945_v19 = vpop.permute.xlu1 %1944 }
 0x4ff   : > { %5561 = vmatmul.mubr.msk.f32.vlgmr.msra.gmra.mxu0 %vm1719_vm9, %v1941_v15  ;;  %5544 = vmatpush3.msra.mxu1 %v7116_v6 }
 0x500   : > { %5585 = vmatpush3.xpose.msk.msra.mxu0 %vm1719_vm9, %v2189_v16  ;;  %5536 = vmatprep.mubr.msk.f32.mxu1 %vm6475_vm0, %v6474_v0 }
 0x501   : > { %5563 = vmatprep.mubr.msk.f32.mxu0 %vm6475_vm0, %v6474_v0  ;;  %5586 = vmatprep.subr.mxu0 %v6474_v0 }
 0x502   : > { %v2185_v20 = vpop.permute.xlu0 %2184  ;;  %5537 = vmatmul.mubr.msk.f32.gmra.mxu1 %vm1719_vm9, %v7078_v63  ;;  %5569 = vmatprep.subr.mxu1 %v6474_v0  ;;  %v2179_v21 = vpop.permute.xlu1 %2178 }
 0x503   : > { %5564 = vmatmul.mubr.msk.f32.gmra.mxu0 %vm1719_vm9, %v1943_v17  ;;  %5545 = vmatprep.mubr.msk.f32.mxu1 %vm6475_vm0, %v6474_v0 }
 0x504   : > { %5587 = vmatpush3.xpose.msk.msra.mxu0 %vm1719_vm9, %v2187_v18  ;;  %5566 = vmatprep.mubr.msk.f32.mxu0 %vm6475_vm0, %v6474_v0 }
 0x505   : > { %5588 = vmatprep.subr.mxu0 %v6474_v0 }
 0x506   : > { %v2425_v22 = vpop.permute.xlu0 %2424  ;;  %v2181_v23 = vpop.permute.xlu1 %2180 }
 0x507   : > { %5567 = vmatmul.mubr.msk.f32.gmra.mxu0 %vm1719_vm9, %v1945_v19 }
 0x508   : > { %5589 = vmatpush3.xpose.msk.msra.mxu0 %vm1719_vm9, %v2185_v20  ;;  %5590 = vmatprep.mubr.msk.f32.mxu0 %vm6475_vm0, %v6474_v0 }
 0x509   : > { %5614 = vmatprep.subr.mxu0 %v6474_v0 }
 0x50a   : > { %v2423_v24 = vpop.permute.xlu0 %2422  ;;  %v2183_v25 = vpop.permute.xlu1 %2182 }
 0x50b   : > { %5591 = vmatmul.mubr.msk.f32.vlgmr.msra.gmra.mxu0 %vm1719_vm9, %v2179_v21 }
 0x50c   : > { %5615 = vmatpush3.xpose.msk.msra.mxu0 %vm1719_vm9, %v2425_v22  ;;  %5593 = vmatprep.mubr.msk.f32.mxu0 %vm6475_vm0, %v6474_v0 }
 0x50d   : > { %5616 = vmatprep.subr.mxu0 %v6474_v0 }
 0x50e   : > { %v2421_v26 = vpop.permute.xlu0 %2420  ;;  %v2415_v28 = vpop.permute.xlu1 %2414 }
 0x50f   : > { %5594 = vmatmul.mubr.msk.f32.gmra.mxu0 %vm1719_vm9, %v2181_v23 }
 0x510   : > { %5617 = vmatpush3.xpose.msk.msra.mxu0 %vm1719_vm9, %v2423_v24  ;;  %5596 = vmatprep.mubr.msk.f32.mxu0 %vm6475_vm0, %v6474_v0 }
 0x511   : > { %5618 = vmatprep.subr.mxu0 %v6474_v0 }
 0x512   : > { %v2417_v29 = vpop.permute.xlu0 %2416  ;;  %v2419_v27 = vpop.permute.xlu1 %2418 }
 0x513   : > { %5597 = vmatmul.mubr.msk.f32.gmra.mxu0 %vm1719_vm9, %v2183_v25 }
 0x514   : > { %5619 = vmatpush3.xpose.msk.msra.mxu0 %vm1719_vm9, %v2421_v26  ;;  %5620 = vmatprep.mubr.msk.f32.mxu0 %vm6475_vm0, %v6474_v0 }
 0x515   : > { %5644 = vmatprep.subr.mxu0 %v6474_v0 }
 0x516   : > { %v7231_v12 = vpop.permute.xlu0 %2079  ;;  %v7235_v14 = vpop.permute.xlu1 %2081 }
 0x517   : > { %5621 = vmatmul.mubr.msk.f32.vlgmr.msra.gmra.mxu0 %vm1719_vm9, %v2415_v28 }
 0x518   : > { %5623 = vmatprep.mubr.msk.f32.mxu0 %vm6475_vm0, %v6474_v0 }
 0x51a   : > { %v7233_v13 = vpop.permute.xlu0 %2083 }
 0x51b   : > { %5624 = vmatmul.mubr.msk.f32.gmra.mxu0 %vm1719_vm9, %v2417_v29 }
 0x51c   : > { %5626 = vmatprep.mubr.msk.f32.mxu0 %vm6475_vm0, %v6474_v0 }
 0x51f   : > { %5627 = vmatmul.mubr.msk.f32.gmra.mxu0 %vm1719_vm9, %v2419_v27 }
 0x520   : > { %5660 = vmatprep.mubr.msk.f32.mxu0 %vm6475_vm0, %v6474_v0 }
 0x5ba   : > { %v1798_v30 = vpop.f32.mrf.mxu1 }
 0x5bb   : > { %v1813_v32 = vsel %vm1812_vm11, %v1798_v30, -inf }
 0x5bc   : > { %1814 = vmax.xlane.f32.xlu0 %v1813_v32  ;;  %v5532_v31 = vpop.f32.mrf.mxu1 }
 0x5be   : > { %v1803_v33 = vpop.f32.mrf.mxu1 }
 0x5bf   : > { %v2030_v34 = vpop.f32.mrf.mxu0  ;;  %v1816_v36 = vsel %vm1812_vm11, %v1803_v33, -inf }
 0x5c0   : > { %1817 = vmax.xlane.f32.xlu1 %v1816_v36  ;;  %v5535_v37 = vpop.f32.mrf.mxu1  ;;  %v2044_v38 = vsel %vm1812_vm11, %v2030_v34, -inf }
 0x5c1   : > { %2045 = vmax.xlane.f32.xlu0 %v2044_v38  ;;  %v5562_v35 = vpop.f32.mrf.mxu0 }
 0x5c2   : > { %v1808_v39 = vpop.f32.mrf.mxu1 }
 0x5c3   : > { %v2035_v40 = vpop.f32.mrf.mxu0  ;;  %v1820_v41 = vsel %vm1819_vm12, %v1808_v39, -inf }
 0x5c4   : > { %v5538_v43 = vpop.f32.mrf.mxu1  ;;  %v2047_v45 = vsel %vm1812_vm11, %v2035_v40, -inf }
 0x5c5   : > { %1821 = vmax.xlane.f32.xlu0 %v1820_v41  ;;  %2048 = vmax.xlane.f32.xlu1 %v2047_v45  ;;  %v5565_v46 = vpop.f32.mrf.mxu0 }
 0x5c7   : > { %v2040_v47 = vpop.f32.mrf.mxu0 }
 0x5c8   : > { %v2050_v48 = vsel %vm1819_vm12, %v2040_v47, -inf }
 0x5c9   : > { %2051 = vmax.xlane.f32.xlu0 %v2050_v48  ;;  %v5568_v49 = vpop.f32.mrf.mxu0 }
 0x5cb   : > { %v7203_v51 = vpop.f32.mrf.mxu0 }
 0x5cc   : > { %v2282_v52 = vsel %vm1812_vm11, %v7203_v51, -inf }
 0x5cd   : > { %2283 = vmax.xlane.f32.xlu1 %v2282_v52  ;;  %v5592_v53 = vpop.f32.mrf.mxu0 }
 0x5cf   : > { %v7207_v55 = vpop.f32.mrf.mxu0 }
 0x5d0   : > { %v2285_v56 = vsel %vm1812_vm11, %v7207_v55, -inf }
 0x5d1   : > { %2286 = vmax.xlane.f32.xlu0 %v2285_v56  ;;  %v5595_v57 = vpop.f32.mrf.mxu0 }
 0x5d3   : > { %v7211_v58 = vpop.f32.mrf.mxu0 }
 0x5d4   : > { %v2288_v59 = vsel %vm1819_vm12, %v7211_v58, -inf }
 0x5d5   : > { %2289 = vmax.xlane.f32.xlu1 %v2288_v59  ;;  %v5598_v60 = vpop.f32.mrf.mxu0 }
 0x5d7   : > { %v7215_v61 = vpop.f32.mrf.mxu0 }
 0x5d8   : > { %v2518_v2 = vsel %vm1812_vm11, %v7215_v61, -inf }
 0x5d9   : > { %2519 = vmax.xlane.f32.xlu0 %v2518_v2  ;;  %v5622_v62 = vpop.f32.mrf.mxu0 }
 0x5db   : > { %v7219_v63 = vpop.f32.mrf.mxu0 }
 0x5dc   : > { %v2521_v5 = vsel %vm1812_vm11, %v7219_v63, -inf }
 0x5dd   : > { %2522 = vmax.xlane.f32.xlu1 %v2521_v5  ;;  %v5625_v3 = vpop.f32.mrf.mxu0 }
 0x5df   : > { %v7223_v9 = vpop.f32.mrf.mxu0 }
 0x5e0   : > { %v2524_v10 = vsel %vm1819_vm12, %v7223_v9, -inf }
 0x5e1   : > { %2525 = vmax.xlane.f32.xlu0 %v2524_v10  ;;  %v5628_v11 = vpop.f32.mrf.mxu0 }
 0x5ee   : > { %2317 = vrot.lane.b32.xlu1 %v7118_v7, %s8157_s0 }
 0x5f7   : > { %2319 = vrot.lane.b32.xlu0 %v7124_v8, %s8157_s0 }
 0x645   : > { %v1815_v15 = vpop.xlane.xlu0 %1814 }
 0x646   : > { %v1823_v16 = vsub.f32 %v1798_v30, %v1815_v15 }
 0x648   : > { %v1826_v17 = vmul.f32 1.442695, %v1823_v16 }
 0x649   : > { %v1818_v18 = vpop.xlane.xlu1 %1817 }
 0x64a   : > { %6069 = vpow2.f32 %v1826_v17  ;;  %v2046_v19 = vpop.xlane.xlu0 %2045  ;;  %v1824_v20 = vsub.f32 %v1803_v33, %v1818_v18 }
 0x64b   : > { %v2053_v21 = vsub.f32 %v2030_v34, %v2046_v19 }
 0x64c   : > { %v1828_v23 = vmul.f32 1.442695, %v1824_v20 }
 0x64d   : > { %v2056_v22 = vmul.f32 1.442695, %v2053_v21 }
 0x64e   : > { %v1822_v24 = vpop.xlane.xlu0 %1821  ;;  %v2049_v25 = vpop.xlane.xlu1 %2048 }
 0x64f   : > { %6071 = vpow2.f32 %v2056_v22  ;;  %v1825_v26 = vsub.f32 %v1808_v39, %v1822_v24  ;;  %v2054_v28 = vsub.f32 %v2035_v40, %v2049_v25 }
 0x650   : > { %6073 = vpow2.f32 %v1828_v23 }
 0x651   : > { %v2058_v29 = vmul.f32 1.442695, %v2054_v28  ;;  %v1830_v27 = vmul.f32 1.442695, %v1825_v26 }
 0x652   : > { %v2052_v32 = vpop.xlane.xlu0 %2051 }
 0x653   : > { %v2055_v31 = vsub.f32 %v2040_v47, %v2052_v32  ;;  %6075 = vpow2.f32 %v2058_v29 }
 0x654   : > { %6077 = vpow2.f32 %v1830_v27 }
 0x655   : > { %v2060_v30 = vmul.f32 1.442695, %v2055_v31 }
 0x656   : > { %v2284_v49 = vpop.xlane.xlu1 %2283 }
 0x657   : > { %v7237_v36 = vpop.eup %6069  ;;  %6079 = vpow2.f32 %v2060_v30  ;;  %v2291_v53 = vsub.f32 %v7203_v51, %v2284_v49 }
 0x658   : > { %v1832_v33 = vsel %vm1812_vm11, %v7237_v36, 0.0 }
 0x659   : > { %1833 = vadd.xlane.f32.xlu1 %v1832_v33  ;;  %v2294_v2 = vmul.f32 1.442695, %v2291_v53 }
 0x65a   : > { %v2287_v47 = vpop.xlane.xlu0 %2286 }
 0x65b   : > { %v2292_v52 = vsub.f32 %v7207_v55, %v2287_v47 }
 0x65c   : > { %v7241_v34 = vpop.eup %6071 }
 0x65d   : > { %v2062_v37 = vsel %vm1812_vm11, %v7241_v34, 0.0  ;;  %v7245_v38 = vpop.eup %6073  ;;  %v2296_v59 = vmul.f32 1.442695, %v2292_v52 }
 0x65e   : > { %2063 = vadd.xlane.f32.xlu0 %v2062_v37  ;;  %v1835_v39 = vsel %vm1812_vm11, %v7245_v38, 0.0  ;;  %v2290_v57 = vpop.xlane.xlu1 %2289 }
 0x65f   : > { %v2293_v62 = vsub.f32 %v7211_v58, %v2290_v57  ;;  %6081 = vpow2.f32 %v2296_v59 }
 0x660   : > { %v7247_v35 = vpop.eup %6075  ;;  %6083 = vpow2.f32 %v2294_v2 }
 0x661   : > { %v2065_v40 = vsel %vm1812_vm11, %v7247_v35, 0.0  ;;  %v7253_v41 = vpop.eup %6077  ;;  %v2298_v3 = vmul.f32 1.442695, %v2293_v62 }
 0x662   : > { %1836 = vadd.xlane.f32.xlu0 %v1835_v39  ;;  %2066 = vadd.xlane.f32.xlu1 %v2065_v40  ;;  %v1838_v46 = vsel %vm1819_vm12, %v7253_v41, 0.0  ;;  %v2520_v48 = vpop.xlane.xlu0 %2519 }
 0x664   : > { %v7255_v43 = vpop.eup %6079 }
 0x665   : > { %v2068_v45 = vsel %vm1819_vm12, %v7255_v43, 0.0 }
 0x666   : > { %2069 = vadd.xlane.f32.xlu0 %v2068_v45  ;;  %1839 = vadd.xlane.f32.xlu1 %v1838_v46  ;;  %v2523_v10 = vpop.xlane.xlu1 %2522 }
 0x667   : > { %v2528_v51 = vsub.f32 %v7219_v63, %v2523_v10 }
 0x669   : > { %v2532_v11 = vmul.f32 1.442695, %v2528_v51 }
 0x66a   : > { %v2526_v56 = vpop.xlane.xlu0 %2525  ;;  %v2318_v23 = vpop.permute.xlu1 %2317 }
 0x66b   : > { %v2529_v60 = vsub.f32 %v7223_v9, %v2526_v56 }
 0x66c   : > { %v7271_v15 = vpop.eup %6081 }
 0x66d   : > { %v2534_v5 = vmul.f32 1.442695, %v2529_v60  ;;  %v7273_v9 = vpop.eup %6083  ;;  %v2303_v58 = vsel %vm1812_vm11, %v7271_v15, 0.0 }
 0x66e   : > { %v2320_v25 = vpop.permute.xlu0 %2319 }
 0x66f   : > { %6085 = vpow2.f32 %v2534_v5 }
 0x670   : > { %6087 = vpow2.f32 %v2298_v3 }
 0x677   : > { %2315 = vrot.lane.b32.xlu1 %v7116_v6, %s8157_s0  ;;  %s8184_s0 = smov 32  }
 0x67c   : > { %2555 = vrot.lane.b32.xlu0 %v7124_v8, %s8155_s30  ;;  %v2527_v8 = vsub.f32 %v7215_v61, %v2520_v48  ;;  %v7277_v16 = vpop.eup %6085  ;;  %v2300_v61 = vsel %vm1812_vm11, %v7273_v9, 0.0 }
 0x67d   : > { %v7281_v17 = vpop.eup %6087  ;;  %v2542_v63 = vsel %vm1819_vm12, %v7277_v16, 0.0 }
 0x67e   : > { %v2530_v55 = vmul.f32 1.442695, %v2527_v8  ;;  %v2306_v18 = vsel %vm1819_vm12, %v7281_v17, 0.0 }
 0x680   : > { %6089 = vpow2.f32 %v2530_v55 }
 0x681   : > { %6091 = vpow2.f32 %v2532_v11 }
 0x68d   : > { %v7287_v19 = vpop.eup %6089 }
 0x68e   : > { %v2536_v20 = vsel %vm1812_vm11, %v7287_v19, 0.0  ;;  %v7291_v21 = vpop.eup %6091 }
 0x68f   : > { %v2539_v22 = vsel %vm1812_vm11, %v7291_v21, 0.0 }
 0x69b   : > { %2304 = vadd.xlane.f32.xlu0 %v2303_v58  ;;  %2301 = vadd.xlane.f32.xlu1 %v2300_v61 }
 0x69f   : > { %2543 = vadd.xlane.f32.xlu0 %v2542_v63  ;;  %2307 = vadd.xlane.f32.xlu1 %v2306_v18 }
 0x6a3   : > { %2537 = vadd.xlane.f32.xlu1 %v2536_v20 }
 0x6a7   : > { %2540 = vadd.xlane.f32.xlu1 %v2539_v22  ;;  %v2701_v22 = vld [vmem:[%s8139_s7 + $0x28] sm:$0xff] }
 0x6b5   : > { %2551 = vrot.lane.b32.xlu0 %v7116_v6, %s8155_s30 }
 0x6b8   : > { %2553 = vrot.lane.b32.xlu1 %v7118_v7, %s8155_s30  ;;  %s8186_s30 = smov 16  }
 0x6e2   : > { %v1834_v24 = vpop.xlane.xlu1 %1833 }
 0x6e3   : > { %6093 = vrcp.f32 %v1834_v24  ;;  %v2699_v24 = vld [vmem:[%s8139_s7 + $0x18] sm:$0xff] }
 0x6e7   : > { %v2064_v26 = vpop.xlane.xlu0 %2063 }
 0x6eb   : > { %v1837_v28 = vpop.xlane.xlu0 %1836  ;;  %v2067_v29 = vpop.xlane.xlu1 %2066 }
 0x6ec   : > { %6095 = vrcp.f32 %v1837_v28 }
 0x6ef   : > { %v1840_v32 = vpop.xlane.xlu1 %1839  ;;  %v2070_v6 = vpop.xlane.xlu0 %2069 }
 0x6f0   : > { %v6094_v27 = vpop.eup %6093  ;;  %6097 = vrcp.f32 %v1840_v32 }
 0x6f1   : > { %v1844_v31 = vmul.f32 %v6094_v27, %v7237_v36  ;;  %6099 = vrcp.f32 %v2064_v26  ;;  %v2697_v26 = vld [vmem:[%s8139_s7 + $0x8] sm:$0xff] }
 0x6f2   : > { %6101 = vrcp.f32 %v2067_v29  ;;  %v2696_v29 = vld [vmem:[%s8139_s7] sm:$0xff] }
 0x6f3   : > { %5546 = vmatmul.mubr.msk.f32.vlgmr.msra.gmra.mxu1 %vm1812_vm11, %v1844_v31  ;;  %6103 = vrcp.f32 %v2070_v6  ;;  %v2316_v39 = vpop.permute.xlu1 %2315 }
 0x6f4   : > { %5570 = vmatpush3.msk.msra.mxu1 %vm1856_vm10, %v7233_v13  ;;  %5548 = vmatprep.mubr.msk.f32.mxu1 %vm6475_vm0, %v6474_v0 }
 0x6f5   : > { %5571 = vmatprep.subr.mxu1 %v6474_v0 }
 0x6f6   : > { %5572 = vmatpush3.msra.mxu1 %v7235_v14 }
 0x6f7   : > { %5573 = vmatprep.subr.mxu1 %v6474_v0 }
 0x6f8   : > { %5574 = vmatpush3.msra.mxu1 %v7231_v12 }
 0x6f9   : > { %v6096_v7 = vpop.eup %6095  ;;  %5599 = vmatprep.subr.mxu1 %v6474_v0 }
 0x6fa   : > { %v1845_v30 = vmul.f32 %v6096_v7, %v7245_v38 }
 0x6fc   : > { %5549 = vmatmul.mubr.msk.f32.gmra.mxu1 %vm1812_vm11, %v1845_v30 }
 0x6fd   : > { %5551 = vmatprep.mubr.msk.f32.mxu1 %vm6475_vm0, %v6474_v0  ;;  %v6098_v13 = vpop.eup %6097 }
 0x6fe   : > { %v1846_v14 = vmul.f32 %v6098_v13, %v7253_v41  ;;  %v6100_v36 = vpop.eup %6099 }
 0x6ff   : > { %v2074_v12 = vmul.f32 %v6100_v36, %v7241_v34  ;;  %v6102_v33 = vpop.eup %6101 }
 0x700   : > { %5552 = vmatmul.mubr.msk.f32.gmra.mxu1 %vm1812_vm11, %v1846_v14  ;;  %v2075_v37 = vmul.f32 %v6102_v33, %v7247_v35  ;;  %v6104_v38 = vpop.eup %6103  ;;  %v2556_v35 = vpop.permute.xlu0 %2555 }
 0x701   : > { %5575 = vmatprep.mubr.msk.f32.mxu1 %vm6475_vm0, %v6474_v0  ;;  %v2076_v34 = vmul.f32 %v6104_v38, %v7255_v43 }
 0x704   : > { %5576 = vmatmul.mubr.msk.f32.vlgmr.msra.gmra.mxu1 %vm1812_vm11, %v2074_v12 }
 0x705   : > { %5600 = vmatpush3.msk.msra.mxu1 %vm1856_vm10, %v2320_v25  ;;  %5578 = vmatprep.mubr.msk.f32.mxu1 %vm6475_vm0, %v6474_v0  ;;  %v2698_v25 = vld [vmem:[%s8139_s7 + $0x10] sm:$0xff] }
 0x706   : > { %5601 = vmatprep.subr.mxu1 %v6474_v0 }
 0x707   : > { %5602 = vmatpush3.msra.mxu1 %v2318_v23  ;;  %v2700_v23 = vld [vmem:[%s8139_s7 + $0x20] sm:$0xff] }
 0x708   : > { %5603 = vmatprep.subr.mxu1 %v6474_v0  ;;  %5579 = vmatmul.mubr.msk.f32.gmra.mxu1 %vm1812_vm11, %v2075_v37 }
 0x709   : > { %5604 = vmatpush3.msra.mxu1 %v2316_v39  ;;  %5581 = vmatprep.mubr.msk.f32.mxu1 %vm6475_vm0, %v6474_v0 }
 0x70a   : > { %5629 = vmatprep.subr.mxu1 %v6474_v0 }
 0x70c   : > { %5582 = vmatmul.mubr.msk.f32.gmra.mxu1 %vm1812_vm11, %v2076_v34 }
 0x70d   : > { %5605 = vmatprep.mubr.msk.f32.mxu1 %vm6475_vm0, %v6474_v0 }
 0x724   : > { %v2305_v40 = vpop.xlane.xlu0 %2304  ;;  %v2302_v41 = vpop.xlane.xlu1 %2301 }
 0x725   : > { %6105 = vrcp.f32 %v2302_v41 }
 0x726   : > { %6107 = vrcp.f32 %v2305_v40 }
 0x728   : > { %v2308_v45 = vpop.xlane.xlu1 %2307  ;;  %v2544_v49 = vpop.xlane.xlu0 %2543 }
 0x729   : > { %6109 = vrcp.f32 %v2308_v45 }
 0x72c   : > { %v2538_v46 = vpop.xlane.xlu1 %2537  ;;  %v2552_v59 = vpop.permute.xlu0 %2551 }
 0x72d   : > { %6111 = vrcp.f32 %v2538_v46 }
 0x730   : > { %v2541_v47 = vpop.xlane.xlu1 %2540 }
 0x731   : > { %6113 = vrcp.f32 %v2541_v47 }
 0x732   : > { %v6106_v48 = vpop.eup %6105  ;;  %6115 = vrcp.f32 %v2544_v49 }
 0x733   : > { %v2312_v43 = vmul.f32 %v6106_v48, %v7273_v9  ;;  %v6108_v52 = vpop.eup %6107 }
 0x734   : > { %v2554_v53 = vpop.permute.xlu1 %2553  ;;  %v2313_v56 = vmul.f32 %v6108_v52, %v7271_v15  ;;  %v2703_v15 = vld [vmem:[%s8139_s7 + $0x38] sm:$0xff] }
 0x735   : > { %5606 = vmatmul.mubr.msk.f32.vlgmr.msra.gmra.mxu1 %vm1812_vm11, %v2312_v43  ;;  %5645 = vmatpush3.msra.mxu0 %v2703_v15 }
 0x736   : > { %5630 = vmatpush3.msk.msra.mxu1 %vm1856_vm10, %v2556_v35  ;;  %5608 = vmatprep.mubr.msk.f32.mxu1 %vm6475_vm0, %v6474_v0  ;;  %v6110_v57 = vpop.eup %6109 }
 0x737   : > { %5631 = vmatprep.subr.mxu1 %v6474_v0  ;;  %v2314_v60 = vmul.f32 %v6110_v57, %v7281_v17  ;;  %5646 = vmatprep.subr.mxu0 %v6474_v0 }
 0x738   : > { %5632 = vmatpush3.msra.mxu1 %v2554_v53 }
 0x739   : > { %5633 = vmatprep.subr.mxu1 %v6474_v0  ;;  %5609 = vmatmul.mubr.msk.f32.gmra.mxu1 %vm1812_vm11, %v2313_v56 }
 0x73a   : > { %5634 = vmatpush3.msra.mxu1 %v2552_v59  ;;  %5611 = vmatprep.mubr.msk.f32.mxu1 %vm6475_vm0, %v6474_v0  ;;  %v6112_v2 = vpop.eup %6111 }
 0x73b   : > { %5669 = vmatprep.subr.mxu1 %v6474_v0  ;;  %v2548_v62 = vmul.f32 %v6112_v2, %v7287_v19 }
 0x73d   : > { %5612 = vmatmul.mubr.msk.f32.gmra.mxu1 %vm1812_vm11, %v2314_v60  ;;  %v5033_v60 = vld [vmem:[%s8140_s8] ss:$0 sm:$0xff] }
 0x73e   : > { %5635 = vmatprep.mubr.msk.f32.mxu1 %vm6475_vm0, %v6474_v0  ;;  %v6114_v5 = vpop.eup %6113 }
 0x73f   : > { %v2549_v3 = vmul.f32 %v6114_v5, %v7291_v21  ;;  %v6116_v8 = vpop.eup %6115  ;;  %v2702_v21 = vld [vmem:[%s8139_s7 + $0x30] sm:$0xff] }
 0x740   : > { %v2550_v10 = vmul.f32 %v6116_v8, %v7277_v16  ;;  %5647 = vmatpush3.msra.mxu0 %v2702_v21 }
 0x741   : > { %5636 = vmatmul.mubr.msk.f32.vlgmr.msra.gmra.mxu1 %vm1812_vm11, %v2548_v62  ;;  %5648 = vmatprep.subr.mxu0 %v6474_v0 }
 0x742   : > { %5638 = vmatprep.mubr.msk.f32.mxu1 %vm6475_vm0, %v6474_v0  ;;  %5649 = vmatpush3.msra.mxu0 %v2701_v22 }
 0x743   : > { %5650 = vmatprep.subr.mxu0 %v6474_v0 }
 0x744   : > { %5651 = vmatpush3.msra.mxu0 %v2700_v23 }
 0x745   : > { %5639 = vmatmul.mubr.msk.f32.gmra.mxu1 %vm1812_vm11, %v2549_v3  ;;  %5652 = vmatprep.subr.mxu0 %v6474_v0 }
 0x746   : > { %5641 = vmatprep.mubr.msk.f32.mxu1 %vm6475_vm0, %v6474_v0  ;;  %5653 = vmatpush3.msra.mxu0 %v2699_v24 }
 0x747   : > { %5654 = vmatprep.subr.mxu0 %v6474_v0 }
 0x748   : > { %5655 = vmatpush3.msra.mxu0 %v2698_v25 }
 0x749   : > { %5642 = vmatmul.mubr.msk.f32.gmra.mxu1 %vm1812_vm11, %v2550_v10  ;;  %5656 = vmatprep.subr.mxu0 %v6474_v0 }
 0x74a   : > { %5685 = vmatprep.mubr.msk.f32.mxu1 %vm6475_vm0, %v6474_v0  ;;  %5657 = vmatpush3.msra.mxu0 %v2697_v26 }
 0x74b   : > { %5658 = vmatprep.subr.mxu0 %v6474_v0 }
 0x74c   : > { %5659 = vmatpush3.msra.mxu0 %v2696_v29 }
 0x74d   : > { %5694 = vmatprep.subr.mxu0 %v6474_v0 }
 0x7b3   : > { %v7362_v55 = vpop.f32.mrf.mxu1 }
 0x7b5   : > { %v5547_v51 = vpop.f32.mrf.mxu1 }
 0x7bc   : > { %v7364_v11 = vpop.f32.mrf.mxu1 }
 0x7be   : > { %v5550_v9 = vpop.f32.mrf.mxu1 }
 0x7c0   : > { %v7370_v58 = vpop.f32.mrf.mxu1 }
 0x7c2   : > { %v5553_v16 = vpop.f32.mrf.mxu1 }
 0x7c4   : > { %v2164_v61 = vpop.f32.mrf.mxu1 }
 0x7c5   : > { %2653 = vrot.lane.b32.xlu1 %v2164_v61, %s8159_s20 }
 0x7c6   : > { %v5577_v17 = vpop.f32.mrf.mxu1 }
 0x7c8   : > { %v2169_v63 = vpop.f32.mrf.mxu1 }
 0x7c9   : > { %2655 = vrot.lane.b32.xlu0 %v2169_v63, %s8159_s20 }
 0x7ca   : > { %v5580_v18 = vpop.f32.mrf.mxu1 }
 0x7cc   : > { %v2174_v19 = vpop.f32.mrf.mxu1 }
 0x7ce   : > { %v5583_v20 = vpop.f32.mrf.mxu1 }
 0x7f5   : > { %v2400_v28 = vpop.f32.mrf.mxu1 }
 0x7f6   : > { %2665 = vrot.lane.b32.xlu0 %v2400_v28, %s8161_s22 }
 0x7f7   : > { %v5607_v27 = vpop.f32.mrf.mxu1 }
 0x7f9   : > { %v2405_v32 = vpop.f32.mrf.mxu1 }
 0x7fa   : > { %2667 = vrot.lane.b32.xlu1 %v2405_v32, %s8161_s22 }
 0x7fb   : > { %v5610_v31 = vpop.f32.mrf.mxu1 }
 0x7fd   : > { %v2410_v6 = vpop.f32.mrf.mxu1 }
 0x7ff   : > { %v5613_v7 = vpop.f32.mrf.mxu1 }
 0x801   : > { %v2636_v30 = vpop.f32.mrf.mxu1 }
 0x802   : > { %2677 = vrot.lane.b32.xlu1 %v2636_v30, %s6479_s26  ;;  %v2880_v30 = vld [vmem:[%s8143_s11 + $0x38] sm:$0xff] }
 0x803   : > { %v5637_v13 = vpop.f32.mrf.mxu1  ;;  %5670 = vmatpush3.msra.mxu1 %v2880_v30 }
 0x804   : > { %5671 = vmatprep.subr.mxu1 %v6474_v0  ;;  %v2879_v13 = vld [vmem:[%s8143_s11 + $0x30] sm:$0xff] }
 0x805   : > { %v2641_v14 = vpop.f32.mrf.mxu1  ;;  %5672 = vmatpush3.msra.mxu1 %v2879_v13 }
 0x806   : > { %2657 = vrot.lane.b32.xlu1 %v2174_v19, %s8159_s20  ;;  %2679 = vrot.lane.b32.xlu0 %v2641_v14, %s6479_s26  ;;  %v2878_v14 = vld [vmem:[%s8143_s11 + $0x28] sm:$0xff] }
 0x807   : > { %v5640_v36 = vpop.f32.mrf.mxu1  ;;  %5673 = vmatprep.subr.mxu1 %v6474_v0 }
 0x808   : > { %5674 = vmatpush3.msra.mxu1 %v2878_v14  ;;  %v2877_v36 = vld [vmem:[%s8143_s11 + $0x20] sm:$0xff] }
 0x809   : > { %v2646_v12 = vpop.f32.mrf.mxu1  ;;  %5675 = vmatprep.subr.mxu1 %v6474_v0 }
 0x80a   : > { %2669 = vrot.lane.b32.xlu0 %v2410_v6, %s8161_s22  ;;  %2681 = vrot.lane.b32.xlu1 %v2646_v12, %s6479_s26  ;;  %v2876_v12 = vld [vmem:[%s8143_s11 + $0x18] sm:$0xff] }
 0x80b   : > { %v5643_v33 = vpop.f32.mrf.mxu1  ;;  %5676 = vmatpush3.msra.mxu1 %v2877_v36 }
 0x80c   : > { %5677 = vmatprep.subr.mxu1 %v6474_v0  ;;  %v2875_v33 = vld [vmem:[%s8143_s11 + $0x10] sm:$0xff] }
 0x80d   : > { %5678 = vmatpush3.msra.mxu1 %v2876_v12 }
 0x80e   : > { %5679 = vmatprep.subr.mxu1 %v6474_v0 }
 0x80f   : > { %5680 = vmatpush3.msra.mxu1 %v2875_v33 }
 0x810   : > { %5681 = vmatprep.subr.mxu1 %v6474_v0 }
 0x837   : > { %v2654_v37 = vpop.permute.xlu1 %2653 }
 0x838   : > { %v2686_v35 = vsel %vm1719_vm9, %v7362_v55, %v2654_v37  ;;  %v2874_v37 = vld [vmem:[%s8143_s11 + $0x8] sm:$0xff] }
 0x839   : > { %5682 = vmatpush3.msra.mxu1 %v2874_v37 }
 0x83a   : > { %5683 = vmatprep.subr.mxu1 %v6474_v0 }
 0x83b   : > { %v2656_v38 = vpop.permute.xlu0 %2655 }
 0x83c   : > { %v2687_v46 = vsel %vm1719_vm9, %v7364_v11, %v2656_v38  ;;  %v2873_v38 = vld [vmem:[%s8143_s11] sm:$0xff] }
 0x83d   : > { %5684 = vmatpush3.msra.mxu1 %v2873_v38 }
 0x868   : > { %v2666_v34 = vpop.permute.xlu0 %2665 }
 0x869   : > { %v2689_v40 = vsel %vm718_vm2, %v2686_v35, %v2666_v34 }
 0x86c   : > { %v2668_v39 = vpop.permute.xlu1 %2667 }
 0x86d   : > { %v2690_v47 = vsel %vm718_vm2, %v2687_v46, %v2668_v39 }
 0x874   : > { %v2678_v41 = vpop.permute.xlu1 %2677 }
 0x875   : > { %v2693_v45 = vsel %vm2692_vm13, %v2689_v40, %v2678_v41 }
 0x876   : > { %5661 = vmatmul.mubr.msk.f32.vlgmr.msra.gmra.mxu0 %vm1528_vm7, %v2693_v45 }
 0x877   : > { %5663 = vmatprep.mubr.msk.f32.mxu0 %vm6475_vm0, %v6474_v0 }
 0x878   : > { %v2680_v48 = vpop.permute.xlu0 %2679  ;;  %v2658_v43 = vpop.permute.xlu1 %2657 }
 0x879   : > { %v2694_v49 = vsel %vm2692_vm13, %v2690_v47, %v2680_v48  ;;  %v2688_v52 = vsel %vm1719_vm9, %v7370_v58, %v2658_v43 }
 0x87a   : > { %5664 = vmatmul.mubr.msk.f32.gmra.mxu0 %vm1528_vm7, %v2694_v49 }
 0x87b   : > { %5666 = vmatprep.mubr.msk.f32.mxu0 %vm6475_vm0, %v6474_v0 }
 0x87c   : > { %v2670_v53 = vpop.permute.xlu0 %2669  ;;  %v2682_v56 = vpop.permute.xlu1 %2681 }
 0x87d   : > { %v2691_v57 = vsel %vm718_vm2, %v2688_v52, %v2670_v53  ;;  %v5037_v52 = vld [vmem:[#allocation7] ss:$0 sm:$0xff] }
 0x87e   : > { %v2695_v59 = vsel %vm2692_vm13, %v2691_v57, %v2682_v56  ;;  %v5038_v57 = vld [vmem:[#allocation9] ss:$0 sm:$0xff] }
 0x87f   : > { %5667 = vmatmul.mubr.msk.f32.gmra.mxu0 %vm1528_vm7, %v2695_v59 }
 0x880   : > { %5726 = vmatprep.mubr.msk.f32.mxu0 %vm6475_vm0, %v6474_v0 }
 0x936   : > { %v2786_v2 = vpop.f32.mrf.mxu0 }
 0x937   : > { %v2787_v62 = vadd.f32 %v5033_v60, %v2786_v2 }
 0x938   : > { %v5662_v5 = vpop.f32.mrf.mxu0 }
 0x939   : > { %v2803_v3 = vrot.slane %v2787_v62, 6 }
 0x93a   : > { %v2791_v8 = vpop.f32.mrf.mxu0 }
 0x93b   : > { %v2792_v10 = vadd.f32 %v5033_v60, %v2791_v8  ;;  %v2811_v55 = vadd.f32 %v2803_v3, %v7048_v42 }
 0x93c   : > { %v5665_v51 = vpop.f32.mrf.mxu0 }
 0x93d   : > { %v2804_v11 = vrot.slane %v2792_v10, 6  ;;  %v2816_v15 = vsel %vm1524_vm5, %v2811_v55, 0.0 }
 0x93e   : > { %2817 = vadd.xlane.f32.xlu0 %v2816_v15 }
 0x93f   : > { %v2796_v9 = vpop.f32.mrf.mxu0  ;;  %v2805_v58 = vsel %vm1510_vm6, %v2803_v3, %v2804_v11 }
 0x940   : > { %v2797_v16 = vadd.f32 %v5033_v60, %v2796_v9  ;;  %v2812_v61 = vadd.f32 %v2805_v58, %v7050_v44  ;;  %v3024_v58 = vld [vmem:[%s8145_s13 + $0x78] sm:$0xff] }
 0x941   : > { %v5668_v17 = vpop.f32.mrf.mxu0  ;;  %5695 = vmatpush3.msra.mxu0 %v3024_v58 }
 0x942   : > { %v2806_v63 = vrot.slane %v2797_v16, 6  ;;  %v2819_v18 = vsel %vm1528_vm7, %v2812_v61, 0.0  ;;  %5696 = vmatprep.subr.mxu0 %v6474_v0  ;;  %v3023_v16 = vld [vmem:[%s8145_s13 + $0x70] sm:$0xff]  ;;  %v3021_v17 = vld [vmem:[%s8145_s13 + $0x60] sm:$0xff] }
 0x943   : > { %2820 = vadd.xlane.f32.xlu1 %v2819_v18  ;;  %5697 = vmatpush3.msra.mxu0 %v3023_v16  ;;  %v3019_v18 = vld [vmem:[%s8145_s13 + $0x50] sm:$0xff] }
 0x944   : > { %v2807_v19 = vsel %vm1510_vm6, %v2804_v11, %v2806_v63  ;;  %5698 = vmatprep.subr.mxu0 %v6474_v0  ;;  %v3020_v63 = vld [vmem:[%s8145_s13 + $0x58] sm:$0xff] }
 0x945   : > { %v2813_v42 = vadd.f32 %v2807_v19, %v7055_v50  ;;  %v3018_v19 = vld [vmem:[%s8145_s13 + $0x48] sm:$0xff] }
 0x947   : > { %v2822_v20 = vsel %vm1532_vm8, %v2813_v42, 0.0 }
 0x948   : > { %2823 = vadd.xlane.f32.xlu0 %v2822_v20  ;;  %v3016_v20 = vld [vmem:[%s8145_s13 + $0x38] sm:$0xff] }
 0x9c7   : > { %v2818_v21 = vpop.xlane.xlu0 %2817 }
 0x9c8   : > { %v2825_v22 = vmul.f32 0.015625, %v2818_v21  ;;  %v3015_v21 = vld [vmem:[%s8145_s13 + $0x30] sm:$0xff] }
 0x9ca   : > { %v2828_v23 = vsub.f32 %v2811_v55, %v2825_v22  ;;  %v3014_v22 = vld [vmem:[%s8145_s13 + $0x28] sm:$0xff] }
 0x9cc   : > { %v2821_v24 = vpop.xlane.xlu1 %2820  ;;  %v2831_v25 = vmul.f32 %v2828_v23, %v2828_v23 }
 0x9cd   : > { %v2826_v26 = vmul.f32 0.015625, %v2821_v24  ;;  %v3012_v24 = vld [vmem:[%s8145_s13 + $0x18] sm:$0xff] }
 0x9ce   : > { %v2834_v44 = vsel %vm1524_vm5, %v2831_v25, 0.0  ;;  %v3011_v25 = vld [vmem:[%s8145_s13 + $0x10] sm:$0xff] }
 0x9cf   : > { %v2829_v28 = vsub.f32 %v2812_v61, %v2826_v26  ;;  %2835 = vadd.xlane.f32.xlu0 %v2834_v44  ;;  %v3022_v61 = vld [vmem:[%s8145_s13 + $0x68] sm:$0xff]  ;;  %v3009_v44 = vld [vmem:[%s8145_s13] sm:$0xff] }
 0x9d0   : > { %5699 = vmatpush3.msra.mxu0 %v3022_v61  ;;  %v3010_v26 = vld [vmem:[%s8145_s13 + $0x8] sm:$0xff] }
 0x9d1   : > { %v2824_v29 = vpop.xlane.xlu0 %2823  ;;  %v2832_v27 = vmul.f32 %v2829_v28, %v2829_v28  ;;  %5700 = vmatprep.subr.mxu0 %v6474_v0 }
 0x9d2   : > { %v2827_v32 = vmul.f32 0.015625, %v2824_v29  ;;  %5701 = vmatpush3.msra.mxu0 %v3021_v17 }
 0x9d3   : > { %v2837_v31 = vsel %vm1528_vm7, %v2832_v27, 0.0  ;;  %5702 = vmatprep.subr.mxu0 %v6474_v0 }
 0x9d4   : > { %v2830_v6 = vsub.f32 %v2813_v42, %v2827_v32  ;;  %2838 = vadd.xlane.f32.xlu1 %v2837_v31  ;;  %5703 = vmatpush3.msra.mxu0 %v3020_v63  ;;  %v3017_v42 = vld [vmem:[%s8145_s13 + $0x40] sm:$0xff] }
 0x9d5   : > { %5704 = vmatprep.subr.mxu0 %v6474_v0 }
 0x9d6   : > { %v2833_v50 = vmul.f32 %v2830_v6, %v2830_v6  ;;  %5705 = vmatpush3.msra.mxu0 %v3019_v18 }
 0x9d7   : > { %5706 = vmatprep.subr.mxu0 %v6474_v0 }
 0x9d8   : > { %v2840_v7 = vsel %vm1532_vm8, %v2833_v50, 0.0  ;;  %5707 = vmatpush3.msra.mxu0 %v3018_v19 }
 0x9d9   : > { %2841 = vadd.xlane.f32.xlu0 %v2840_v7  ;;  %5708 = vmatprep.subr.mxu0 %v6474_v0 }
 0x9da   : > { %5709 = vmatpush3.msra.mxu0 %v3017_v42 }
 0x9db   : > { %5710 = vmatprep.subr.mxu0 %v6474_v0 }
 0x9dc   : > { %5711 = vmatpush3.msra.mxu0 %v3016_v20 }
 0x9dd   : > { %5712 = vmatprep.subr.mxu0 %v6474_v0 }
 0x9de   : > { %5713 = vmatpush3.msra.mxu0 %v3015_v21 }
 0x9df   : > { %5714 = vmatprep.subr.mxu0 %v6474_v0 }
 0x9e0   : > { %5715 = vmatpush3.msra.mxu0 %v3014_v22 }
 0x9e1   : > { %5716 = vmatprep.subr.mxu0 %v6474_v0 }
 0xa58   : > { %v2836_v39 = vpop.xlane.xlu0 %2835 }
 0xa59   : > { %v2843_v34 = vmul.f32 0.015625, %v2836_v39 }
 0xa5b   : > { %v2846_v35 = vadd.f32 1e-05, %v2843_v34 }
 0xa5d   : > { %6117 = vrsqrt.f32 %v2846_v35  ;;  %v2839_v40 = vpop.xlane.xlu1 %2838 }
 0xa5e   : > { %v2844_v41 = vmul.f32 0.015625, %v2839_v40 }
 0xa60   : > { %v2847_v45 = vadd.f32 1e-05, %v2844_v41 }
 0xa62   : > { %6119 = vrsqrt.f32 %v2847_v45  ;;  %v2842_v46 = vpop.xlane.xlu0 %2841 }
 0xa63   : > { %v2845_v47 = vmul.f32 0.015625, %v2842_v46 }
 0xa65   : > { %v2848_v48 = vadd.f32 1e-05, %v2845_v47 }
 0xa67   : > { %6121 = vrsqrt.f32 %v2848_v48 }
 0xa6a   : > { %v6118_v43 = vpop.eup %6117 }
 0xa6b   : > { %v2852_v49 = vmul.f32 %v6118_v43, %v2828_v23  ;;  %v3013_v23 = vld [vmem:[%s8145_s13 + $0x20] sm:$0xff] }
 0xa6c   : > { %5717 = vmatpush3.msra.mxu0 %v3013_v23 }
 0xa6d   : > { %v2861_v53 = vmul.f32 %v5037_v52, %v2852_v49  ;;  %5718 = vmatprep.subr.mxu0 %v6474_v0 }
 0xa6e   : > { %5719 = vmatpush3.msra.mxu0 %v3012_v24 }
 0xa6f   : > { %v6120_v56 = vpop.eup %6119  ;;  %v7475_v2 = vadd.f32 %v5038_v57, %v2861_v53  ;;  %5720 = vmatprep.subr.mxu0 %v6474_v0 }
 0xa70   : > { %v2853_v59 = vmul.f32 %v6120_v56, %v2829_v28  ;;  %5721 = vmatpush3.msra.mxu0 %v3011_v25  ;;  %v5039_v28 = vld [vmem:[#allocation10] ss:$0 sm:$0xff] }
 0xa71   : > { %v2891_v8 = vrot.slane %v7475_v2, 2  ;;  %5722 = vmatprep.subr.mxu0 %v6474_v0 }
 0xa72   : > { %v2862_v60 = vmul.f32 %v5037_v52, %v2853_v59  ;;  %5723 = vmatpush3.msra.mxu0 %v3010_v26 }
 0xa73   : > { %5724 = vmatprep.subr.mxu0 %v6474_v0 }
 0xa74   : > { %v6122_v62 = vpop.eup %6121  ;;  %v7477_v5 = vadd.f32 %v5038_v57, %v2862_v60  ;;  %5725 = vmatpush3.msra.mxu0 %v3009_v44 }
 0xa75   : > { %v2854_v3 = vmul.f32 %v6122_v62, %v2830_v6  ;;  %5750 = vmatprep.subr.mxu0 %v6474_v0 }
 0xa76   : > { %v2892_v10 = vrot.slane %v7477_v5, 2 }
 0xa77   : > { %v2863_v55 = vmul.f32 %v5037_v52, %v2854_v3 }
 0xa78   : > { %v2893_v51 = vsel %vm891_vm3, %v2891_v8, %v2892_v10 }
 0xa79   : > { %5686 = vmatmul.mubr.msk.f32.vlgmr.msra.gmra.mxu1 %vm1528_vm7, %v2893_v51  ;;  %v7483_v11 = vadd.f32 %v5038_v57, %v2863_v55  ;;  %v5043_v55 = vld [vmem:[#allocation12] ss:$0 sm:$0xff] }
 0xa7a   : > { %5688 = vmatprep.mubr.msk.f32.mxu1 %vm6475_vm0, %v6474_v0 }
 0xa7b   : > { %v2894_v15 = vrot.slane %v7483_v11, 2 }
 0xa7d   : > { %v2895_v9 = vsel %vm891_vm3, %v2892_v10, %v2894_v15 }
 0xa7e   : > { %5689 = vmatmul.mubr.msk.f32.gmra.mxu1 %vm1528_vm7, %v2895_v9 }
 0xa7f   : > { %5691 = vmatprep.mubr.msk.f32.mxu1 %vm6475_vm0, %v6474_v0 }
 0xa82   : > { %5692 = vmatmul.mubr.msk.f32.gmra.mxu1 %vm1528_vm7, %v2894_v15 }
 0xa83   : > { %3293 = vmatprep.mubr.f32.mxu1 %v6474_v0 }
 0xb39   : > { %v2968_v29 = vpop.f32.mrf.mxu1 }
 0xb3a   : > { %v2969_v27 = vadd.f32 %v5039_v28, %v2968_v29 }
 0xb3b   : > { %v5687_v32 = vpop.f32.mrf.mxu1 }
 0xb3c   : > { %v2985_v31 = vmul.f32 0.044715, %v2969_v27  ;;  %v2982_v49 = vmul.f32 0.5, %v2969_v27 }
 0xb3e   : > { %v2988_v6 = vmul.f32 %v2985_v31, %v2969_v27  ;;  %v2973_v50 = vpop.f32.mrf.mxu1 }
 0xb3f   : > { %v2974_v7 = vadd.f32 %v5039_v28, %v2973_v50 }
 0xb40   : > { %v2991_v30 = vmul.f32 %v2988_v6, %v2969_v27  ;;  %v5690_v13 = vpop.f32.mrf.mxu1 }
 0xb41   : > { %v2986_v14 = vmul.f32 0.044715, %v2974_v7  ;;  %v2983_v57 = vmul.f32 0.5, %v2974_v7 }
 0xb42   : > { %v2994_v36 = vadd.f32 %v2991_v30, %v2969_v27  ;;  %v2978_v12 = vpop.f32.mrf.mxu1 }
 0xb43   : > { %v2989_v33 = vmul.f32 %v2986_v14, %v2974_v7  ;;  %v2979_v37 = vadd.f32 %v5039_v28, %v2978_v12 }
 0xb44   : > { %v2997_v38 = vmul.f32 0.7978846, %v2994_v36  ;;  %v5693_v39 = vpop.f32.mrf.mxu1 }
 0xb45   : > { %v2987_v34 = vmul.f32 0.044715, %v2979_v37  ;;  %v2992_v35 = vmul.f32 %v2989_v33, %v2974_v7  ;;  %v2984_v3 = vmul.f32 0.5, %v2979_v37  ;;  %v5061_v33 = vld [vmem:[%s8137_s5 + $0xf8] sm:$0xff]  ;;  %v5058_v39 = vld [vmem:[%s8137_s5 + $0xe0] sm:$0xff] }
 0xb46   : > { %6123 = vtanh.f32 %v2997_v38  ;;  %3245 = vmatprep.subr.mxu1 %v5061_v33  ;;  %v5059_v38 = vld [vmem:[%s8137_s5 + $0xe8] sm:$0xff] }
 0xb47   : > { %v2990_v40 = vmul.f32 %v2987_v34, %v2979_v37  ;;  %v2995_v41 = vadd.f32 %v2992_v35, %v2974_v7  ;;  %v5057_v34 = vld [vmem:[%s8137_s5 + $0xd8] sm:$0xff]  ;;  %v5056_v35 = vld [vmem:[%s8137_s5 + $0xd0] sm:$0xff] }
 0xb49   : > { %v2998_v45 = vmul.f32 0.7978846, %v2995_v41  ;;  %v2993_v46 = vmul.f32 %v2990_v40, %v2979_v37  ;;  %v5055_v40 = vld [vmem:[%s8137_s5 + $0xc8] sm:$0xff]  ;;  %v5054_v41 = vld [vmem:[%s8137_s5 + $0xc0] sm:$0xff] }
 0xb4b   : > { %6125 = vtanh.f32 %v2998_v45  ;;  %v2996_v47 = vadd.f32 %v2993_v46, %v2979_v37  ;;  %v5060_v37 = vld [vmem:[%s8137_s5 + $0xf0] sm:$0xff]  ;;  %v5053_v45 = vld [vmem:[%s8137_s5 + $0xb8] sm:$0xff] }
 0xb4c   : > { %3246 = vmatpush1.msra.mxu1 %v5060_v37  ;;  %v5052_v46 = vld [vmem:[%s8137_s5 + $0xb0] sm:$0xff] }
 0xb4d   : > { %v2999_v48 = vmul.f32 0.7978846, %v2996_v47  ;;  %3247 = vmatprep.subr.mxu1 %v5059_v38  ;;  %v5051_v47 = vld [vmem:[%s8137_s5 + $0xa8] sm:$0xff] }
 0xb4e   : > { %3248 = vmatpush1.msra.mxu1 %v5058_v39 }
 0xb4f   : > { %6127 = vtanh.f32 %v2999_v48  ;;  %3249 = vmatprep.subr.mxu1 %v5057_v34  ;;  %v5050_v48 = vld [vmem:[%s8137_s5 + $0xa0] sm:$0xff] }
 0xb50   : > { %3250 = vmatpush1.msra.mxu1 %v5056_v35 }
 0xb51   : > { %3251 = vmatprep.subr.mxu1 %v5055_v40 }
 0xb52   : > { %3252 = vmatpush1.msra.mxu1 %v5054_v41 }
 0xb53   : > { %v6124_v43 = vpop.eup %6123  ;;  %3253 = vmatprep.subr.mxu1 %v5053_v45 }
 0xb54   : > { %v3003_v52 = vadd.f32 1.0, %v6124_v43  ;;  %3254 = vmatpush1.msra.mxu1 %v5052_v46  ;;  %v5049_v43 = vld [vmem:[%s8137_s5 + $0x98] sm:$0xff] }
 0xb55   : > { %3255 = vmatprep.subr.mxu1 %v5051_v47 }
 0xb56   : > { %v3006_v53 = vmul.f32 %v3003_v52, %v2982_v49  ;;  %v5048_v49 = vld [vmem:[%s8137_s5 + $0x90] sm:$0xff]  ;;  %3256 = vmatpush1.msra.mxu1 %v5050_v48  ;;  %v5047_v52 = vld [vmem:[%s8137_s5 + $0x88] sm:$0xff] }
 0xb57   : > { %3257 = vmatprep.subr.mxu1 %v5049_v43 }
 0xb58   : > { %v6126_v56 = vpop.eup %6125  ;;  %5727 = vmatmul.mubr.f32.vlgmr.msra.gmra.mxu0 %v3006_v53  ;;  %v5046_v53 = vld [vmem:[%s8137_s5 + $0x80] sm:$0xff]  ;;  %3258 = vmatpush1.msra.mxu1 %v5048_v49 }
 0xb59   : > { %5729 = vmatprep.mubr.msk.f32.mxu0 %vm6475_vm0, %v6474_v0  ;;  %v3004_v59 = vadd.f32 1.0, %v6126_v56  ;;  %3259 = vmatprep.subr.mxu1 %v5047_v52 }
 0xb5a   : > { %3260 = vmatpush1.msra.mxu1 %v5046_v53 }
 0xb5b   : > { %v3007_v60 = vmul.f32 %v3004_v59, %v2983_v57  ;;  %5735 = vmatprep.subr.mxu1 %v6474_v0 }
 0xb5c   : > { %v6128_v62 = vpop.eup %6127 }
 0xb5d   : > { %5730 = vmatmul.mubr.f32.gmra.mxu0 %v3007_v60  ;;  %v3005_v8 = vadd.f32 1.0, %v6128_v62 }
 0xb5e   : > { %5732 = vmatprep.mubr.msk.f32.mxu0 %vm6475_vm0, %v6474_v0 }
 0xb5f   : > { %v3008_v10 = vmul.f32 %v3005_v8, %v2984_v3 }
 0xb61   : > { %5733 = vmatmul.mubr.f32.gmra.mxu0 %v3008_v10 }
 0xb62   : > { %5756 = vmatprep.mubr.msk.f32.mxu0 %vm6475_vm0, %v6474_v0 }
 0xc18   : > { %v3098_v51 = vpop.f32.mrf.mxu0 }
 0xc19   : > { %v3099_v15 = vadd.f32 %v5043_v55, %v3098_v51 }
 0xc1a   : > { %v5728_v9 = vpop.f32.mrf.mxu0 }
 0xc1b   : > { %v3115_v58 = vrot.slane %v3099_v15, 6  ;;  %v5044_v9 = vld [vmem:[#allocation13] ss:$0 sm:$0xff] }
 0xc1d   : > { %v3103_v16 = vpop.f32.mrf.mxu0  ;;  %v3123_v61 = vadd.f32 %v3115_v58, %v7475_v2 }
 0xc1e   : > { %v3104_v17 = vadd.f32 %v5043_v55, %v3103_v16 }
 0xc1f   : > { %v5731_v63 = vpop.f32.mrf.mxu0  ;;  %v3128_v18 = vsel %vm1524_vm5, %v3123_v61, 0.0 }
 0xc20   : > { %v3116_v19 = vrot.slane %v3104_v17, 6  ;;  %3129 = vadd.xlane.f32.xlu1 %v3128_v18 }
 0xc21   : > { %v3108_v42 = vpop.f32.mrf.mxu0 }
 0xc22   : > { %v3109_v20 = vadd.f32 %v5043_v55, %v3108_v42  ;;  %v3117_v21 = vsel %vm1510_vm6, %v3115_v58, %v3116_v19 }
 0xc23   : > { %v5734_v22 = vpop.f32.mrf.mxu0  ;;  %v3124_v23 = vadd.f32 %v3117_v21, %v7477_v5 }
 0xc24   : > { %v3118_v24 = vrot.slane %v3109_v20, 6 }
 0xc25   : > { %v3131_v25 = vsel %vm1528_vm7, %v3124_v23, 0.0 }
 0xc26   : > { %3132 = vadd.xlane.f32.xlu0 %v3131_v25  ;;  %v3119_v26 = vsel %vm1510_vm6, %v3116_v19, %v3118_v24 }
 0xc27   : > { %v3125_v2 = vadd.f32 %v3119_v26, %v7483_v11 }
 0xc29   : > { %v3134_v44 = vsel %vm1532_vm8, %v3125_v2, 0.0 }
 0xc2a   : > { %3135 = vadd.xlane.f32.xlu1 %v3134_v44  ;;  %v5062_v44 = vld [vmem:[%s8138_s6 + $0x2] sm:$0x3] }
 0xca9   : > { %v3130_v28 = vpop.xlane.xlu1 %3129 }
 0xcaa   : > { %v3137_v29 = vmul.f32 0.015625, %v3130_v28 }
 0xcac   : > { %v3140_v27 = vsub.f32 %v3123_v61, %v3137_v29  ;;  %v5045_v61 = vld [vmem:[#allocation15] ss:$0 sm:$0xff] }
 0xcae   : > { %v3143_v32 = vmul.f32 %v3140_v27, %v3140_v27 }
 0xcaf   : > { %v3133_v31 = vpop.xlane.xlu0 %3132 }
 0xcb0   : > { %v3138_v6 = vmul.f32 0.015625, %v3133_v31  ;;  %v3146_v50 = vsel %vm1524_vm5, %v3143_v32, 0.0 }
 0xcb1   : > { %3147 = vadd.xlane.f32.xlu0 %v3146_v50 }
 0xcb2   : > { %v3141_v5 = vsub.f32 %v3124_v23, %v3138_v6 }
 0xcb3   : > { %v3136_v7 = vpop.xlane.xlu1 %3135 }
 0xcb4   : > { %v3139_v30 = vmul.f32 0.015625, %v3136_v7  ;;  %v3144_v13 = vmul.f32 %v3141_v5, %v3141_v5 }
 0xcb6   : > { %v3142_v14 = vsub.f32 %v3125_v2, %v3139_v30  ;;  %v3149_v36 = vsel %vm1528_vm7, %v3144_v13, 0.0 }
 0xcb7   : > { %3150 = vadd.xlane.f32.xlu1 %v3149_v36 }
 0xcb8   : > { %v3145_v11 = vmul.f32 %v3142_v14, %v3142_v14 }
 0xcba   : > { %v3152_v12 = vsel %vm1532_vm8, %v3145_v11, 0.0 }
 0xcbb   : > { %3153 = vadd.xlane.f32.xlu0 %v3152_v12 }
 0xd3a   : > { %v3148_v56 = vpop.xlane.xlu0 %3147 }
 0xd3b   : > { %v3155_v57 = vmul.f32 0.015625, %v3148_v56 }
 0xd3d   : > { %v3158_v59 = vadd.f32 1e-05, %v3155_v57 }
 0xd3f   : > { %6129 = vrsqrt.f32 %v3158_v59 }
 0xd40   : > { %v3151_v60 = vpop.xlane.xlu1 %3150 }
 0xd41   : > { %v3156_v62 = vmul.f32 0.015625, %v3151_v60 }
 0xd43   : > { %v3159_v3 = vadd.f32 1e-05, %v3156_v62 }
 0xd44   : > { %v3154_v8 = vpop.xlane.xlu0 %3153 }
 0xd45   : > { %6131 = vrsqrt.f32 %v3159_v3  ;;  %v3157_v10 = vmul.f32 0.015625, %v3154_v8 }
 0xd47   : > { %v3160_v55 = vadd.f32 1e-05, %v3157_v10 }
 0xd49   : > { %6133 = vrsqrt.f32 %v3160_v55 }
 0xd4c   : > { %v6130_v51 = vpop.eup %6129 }
 0xd4d   : > { %v3164_v15 = vmul.f32 %v6130_v51, %v3140_v27  ;;  %v3208_v27 = vrot.slane %v5062_v44, %v1605_v54 }
 0xd4f   : > { %v3173_v58 = vmul.f32 %v5044_v9, %v3164_v15 }
 0xd51   : > { %v7624_v18 = vadd.f32 %v5045_v61, %v3173_v58 }
 0xd52   : > { %v6132_v16 = vpop.eup %6131 }
 0xd53   : > { %v3165_v17 = vmul.f32 %v6132_v16, %v3141_v5  ;;  %v3218_v21 = vrot.slane %v7624_v18, 2  ;;  %v3212_v5 = vrot.slane %v5062_v44, %v1609_v4 }
 0xd55   : > { %v3174_v63 = vmul.f32 %v5044_v9, %v3165_v17 }
 0xd56   : > { %v6134_v19 = vpop.eup %6133 }
 0xd57   : > { %v7626_v42 = vadd.f32 %v5045_v61, %v3174_v63  ;;  %v3166_v20 = vmul.f32 %v6134_v19, %v3142_v14 }
 0xd59   : > { %v3219_v22 = vrot.slane %v7626_v42, 2  ;;  %v3175_v23 = vmul.f32 %v5044_v9, %v3166_v20 }
 0xd5b   : > { %v3220_v24 = vsel %vm891_vm3, %v3218_v21, %v3219_v22  ;;  %v7631_v25 = vadd.f32 %v5045_v61, %v3175_v23 }
 0xd5c   : > { %5063 = vmatmul.mubr.msk.f32.vlgmr.msra.gmra.mxu1 %vm1528_vm7, %v3220_v24 }
 0xd5d   : > { %3299 = vmatprep.mubr.f32.mxu1 %v6474_v0  ;;  %v3221_v26 = vrot.slane %v7631_v25, 2 }
 0xd5f   : > { %v3222_v2 = vsel %vm891_vm3, %v3219_v22, %v3221_v26 }
 0xd60   : > { %5064 = vmatmul.mubr.msk.f32.gmra.mxu1 %vm1528_vm7, %v3222_v2 }
 0xd61   : > { %3305 = vmatprep.mubr.f32.mxu1 %v6474_v0 }
 0xd64   : > { %5065 = vmatmul.mubr.msk.f32.gmra.mxu1 %vm1528_vm7, %v3221_v26 }
 0xd65   : > { %5741 = vmatprep.mubr.msk.f32.mxu1 %vm6475_vm0, %v6474_v0 }
 0xe1c   : > { %v3295_v28 = vpop.f32.mrf.mxu1 }
 0xe1d   : > { %v3296_v14 = vadd.f32 %v3295_v28, %v3208_v27 }
 0xe1e   : > { %v3297_v29 = vpop.f32.mrf.mxu1 }
 0xe1f   : > { %v7659_v54 = vadd.f32 %v3297_v29, %v3212_v5 }
 0xe20   : > { %v3301_v32 = vpop.f32.mrf.mxu1 }
 0xe21   : > { %v3302_v31 = vadd.f32 %v3301_v32, %v3208_v27 }
 0xe22   : > { %v3303_v6 = vpop.f32.mrf.mxu1 }
 0xe23   : > { %3317 = vrot.lane.b32.xlu0 %v3302_v31, %s6478_s25  ;;  %v7654_v36 = vadd.f32 %v3303_v6, %v3212_v5 }
 0xe24   : > { %v3307_v50 = vpop.f32.mrf.mxu1 }
 0xe25   : > { %v3308_v7 = vadd.f32 %v3307_v50, %v3208_v27 }
 0xe26   : > { %v3309_v30 = vpop.f32.mrf.mxu1 }
 0xe27   : > { %v7650_v13 = vadd.f32 %v3309_v30, %v3212_v5  ;;  %3319 = vrot.lane.b32.xlu1 %v3308_v7, %s6478_s25  ;;  %3546 = vrot.lane.b32.xlu0 %v3302_v31, %s6479_s26 }
 0xe29   : > { %5751 = vmatpush3.msk.msra.mxu0 %vm1856_vm10, %v7650_v13 }
 0xe2a   : > { %5752 = vmatprep.subr.mxu0 %v6474_v0 }
 0xe2b   : > { %5753 = vmatpush3.msra.mxu0 %v7654_v36  ;;  %3538 = vrot.lane.b32.xlu0 %v3296_v14, %s6480_s18 }
 0xe2c   : > { %3315 = vrot.lane.b32.xlu1 %v3296_v14, %s6478_s25  ;;  %5754 = vmatprep.subr.mxu0 %v6474_v0  ;;  %s8185_s25 = smov 80  }
 0xe2d   : > { %5755 = vmatpush3.msra.mxu0 %v7659_v54 }
 0xe2e   : > { %5780 = vmatprep.subr.mxu0 %v6474_v0 }
 0xe2f   : > { %3540 = vrot.lane.b32.xlu0 %v3302_v31, %s6480_s18 }
 0xe30   : > { %3548 = vrot.lane.b32.xlu1 %v3308_v7, %s6479_s26 }
 0xe33   : > { %3542 = vrot.lane.b32.xlu0 %v3308_v7, %s6480_s18 }
 0xe34   : > { %3544 = vrot.lane.b32.xlu1 %v3296_v14, %s6479_s26 }
 0xe37   : > { %3776 = vrot.lane.b32.xlu0 %v3296_v14, %s8183_s28 }
 0xe38   : > { %3786 = vrot.lane.b32.xlu1 %v3308_v7, %s8184_s0 }
 0xe3b   : > { %3778 = vrot.lane.b32.xlu0 %v3302_v31, %s8183_s28 }
 0xe3c   : > { %3784 = vrot.lane.b32.xlu1 %v3302_v31, %s8184_s0 }
 0xe3f   : > { %3780 = vrot.lane.b32.xlu0 %v3308_v7, %s8183_s28 }
 0xe40   : > { %3782 = vrot.lane.b32.xlu1 %v3296_v14, %s8184_s0 }
 0xe43   : > { %4012 = vrot.lane.b32.xlu0 %v3296_v14, %s8185_s25 }
 0xe44   : > { %4022 = vrot.lane.b32.xlu1 %v3308_v7, %s8186_s30 }
 0xe47   : > { %4016 = vrot.lane.b32.xlu0 %v3308_v7, %s8185_s25 }
 0xe48   : > { %4020 = vrot.lane.b32.xlu1 %v3302_v31, %s8186_s30 }
 0xe4c   : > { %4018 = vrot.lane.b32.xlu1 %v3296_v14, %s8186_s30 }
 0xe50   : > { %4014 = vrot.lane.b32.xlu1 %v3302_v31, %s8185_s25 }
 0xe54   : > { %3681 = vrot.lane.b32.xlu1 %v7650_v13, %s6480_s18 }
 0xe95   : > { %v3318_v1 = vpop.permute.xlu0 %3317 }
 0xe99   : > { %v3320_v4 = vpop.permute.xlu1 %3319  ;;  %v3547_v11 = vpop.permute.xlu0 %3546 }
 0xe9a   : > { %5736 = vmatpush3.xpose.msk.msra.mxu1 %vm1719_vm9, %v3320_v4 }
 0xe9b   : > { %5737 = vmatprep.subr.mxu1 %v6474_v0 }
 0xe9d   : > { %v3539_v37 = vpop.permute.xlu0 %3538 }
 0xe9e   : > { %v3316_v12 = vpop.permute.xlu1 %3315  ;;  %5738 = vmatpush3.xpose.msk.msra.mxu1 %vm1719_vm9, %v3318_v1 }
 0xe9f   : > { %5739 = vmatprep.subr.mxu1 %v6474_v0 }
 0xea1   : > { %v3541_v39 = vpop.permute.xlu0 %3540 }
 0xea2   : > { %v3549_v33 = vpop.permute.xlu1 %3548  ;;  %5740 = vmatpush3.xpose.msk.msra.mxu1 %vm1719_vm9, %v3316_v12 }
 0xea3   : > { %5765 = vmatprep.subr.mxu1 %v6474_v0 }
 0xea5   : > { %5742 = vmatmul.mubr.msk.f32.vlgmr.msra.gmra.mxu1 %vm1719_vm9, %v3296_v14  ;;  %v3543_v40 = vpop.permute.xlu0 %3542 }
 0xea6   : > { %v3545_v38 = vpop.permute.xlu1 %3544  ;;  %5766 = vmatpush3.xpose.msk.msra.mxu1 %vm1719_vm9, %v3549_v33  ;;  %5744 = vmatprep.mubr.msk.f32.mxu1 %vm6475_vm0, %v6474_v0 }
 0xea7   : > { %5767 = vmatprep.subr.mxu1 %v6474_v0 }
 0xea9   : > { %5745 = vmatmul.mubr.msk.f32.gmra.mxu1 %vm1719_vm9, %v3302_v31  ;;  %v3777_v45 = vpop.permute.xlu0 %3776 }
 0xeaa   : > { %v3787_v34 = vpop.permute.xlu1 %3786  ;;  %5768 = vmatpush3.xpose.msk.msra.mxu1 %vm1719_vm9, %v3547_v11  ;;  %5747 = vmatprep.mubr.msk.f32.mxu1 %vm6475_vm0, %v6474_v0 }
 0xeab   : > { %5769 = vmatprep.subr.mxu1 %v6474_v0 }
 0xead   : > { %5748 = vmatmul.mubr.msk.f32.gmra.mxu1 %vm1719_vm9, %v3308_v7  ;;  %v3779_v47 = vpop.permute.xlu0 %3778 }
 0xeae   : > { %v3785_v35 = vpop.permute.xlu1 %3784  ;;  %5770 = vmatpush3.xpose.msk.msra.mxu1 %vm1719_vm9, %v3545_v38  ;;  %5771 = vmatprep.mubr.msk.f32.mxu1 %vm6475_vm0, %v6474_v0 }
 0xeaf   : > { %5795 = vmatprep.subr.mxu1 %v6474_v0 }
 0xeb1   : > { %5772 = vmatmul.mubr.msk.f32.vlgmr.msra.gmra.mxu1 %vm1719_vm9, %v3539_v37  ;;  %v3781_v43 = vpop.permute.xlu0 %3780 }
 0xeb2   : > { %5796 = vmatpush3.xpose.msk.msra.mxu1 %vm1719_vm9, %v3787_v34  ;;  %5774 = vmatprep.mubr.msk.f32.mxu1 %vm6475_vm0, %v6474_v0  ;;  %v3783_v41 = vpop.permute.xlu1 %3782 }
 0xeb3   : > { %5797 = vmatprep.subr.mxu1 %v6474_v0 }
 0xeb5   : > { %5775 = vmatmul.mubr.msk.f32.gmra.mxu1 %vm1719_vm9, %v3541_v39  ;;  %v4013_v52 = vpop.permute.xlu0 %4012 }
 0xeb6   : > { %5798 = vmatpush3.xpose.msk.msra.mxu1 %vm1719_vm9, %v3785_v35  ;;  %5777 = vmatprep.mubr.msk.f32.mxu1 %vm6475_vm0, %v6474_v0  ;;  %v4023_v46 = vpop.permute.xlu1 %4022 }
 0xeb7   : > { %5799 = vmatprep.subr.mxu1 %v6474_v0 }
 0xeb9   : > { %5778 = vmatmul.mubr.msk.f32.gmra.mxu1 %vm1719_vm9, %v3543_v40  ;;  %v4017_v56 = vpop.permute.xlu0 %4016 }
 0xeba   : > { %5800 = vmatpush3.xpose.msk.msra.mxu1 %vm1719_vm9, %v3783_v41  ;;  %5801 = vmatprep.mubr.msk.f32.mxu1 %vm6475_vm0, %v6474_v0  ;;  %v4021_v48 = vpop.permute.xlu1 %4020 }
 0xebb   : > { %5825 = vmatprep.subr.mxu1 %v6474_v0 }
 0xebd   : > { %5802 = vmatmul.mubr.msk.f32.vlgmr.msra.gmra.mxu1 %vm1719_vm9, %v3777_v45 }
 0xebe   : > { %5826 = vmatpush3.xpose.msk.msra.mxu1 %vm1719_vm9, %v4023_v46  ;;  %5804 = vmatprep.mubr.msk.f32.mxu1 %vm6475_vm0, %v6474_v0  ;;  %v4019_v49 = vpop.permute.xlu1 %4018 }
 0xebf   : > { %5827 = vmatprep.subr.mxu1 %v6474_v0 }
 0xec1   : > { %5805 = vmatmul.mubr.msk.f32.gmra.mxu1 %vm1719_vm9, %v3779_v47 }
 0xec2   : > { %5828 = vmatpush3.xpose.msk.msra.mxu1 %vm1719_vm9, %v4021_v48  ;;  %5807 = vmatprep.mubr.msk.f32.mxu1 %vm6475_vm0, %v6474_v0  ;;  %v4015_v53 = vpop.permute.xlu1 %4014 }
 0xec3   : > { %5829 = vmatprep.subr.mxu1 %v6474_v0 }
 0xec5   : > { %5808 = vmatmul.mubr.msk.f32.gmra.mxu1 %vm1719_vm9, %v3781_v43 }
 0xec6   : > { %5830 = vmatpush3.xpose.msk.msra.mxu1 %vm1719_vm9, %v4019_v49  ;;  %5831 = vmatprep.mubr.msk.f32.mxu1 %vm6475_vm0, %v6474_v0  ;;  %v7784_v1 = vpop.permute.xlu1 %3681 }
 0xec7   : > { %5855 = vmatprep.subr.mxu1 %v6474_v0 }
 0xec9   : > { %5832 = vmatmul.mubr.msk.f32.vlgmr.msra.gmra.mxu1 %vm1719_vm9, %v4013_v52 }
 0xeca   : > { %5834 = vmatprep.mubr.msk.f32.mxu1 %vm6475_vm0, %v6474_v0 }
 0xecd   : > { %5835 = vmatmul.mubr.msk.f32.gmra.mxu1 %vm1719_vm9, %v4015_v53 }
 0xece   : > { %5837 = vmatprep.mubr.msk.f32.mxu1 %vm6475_vm0, %v6474_v0 }
 0xed1   : > { %5838 = vmatmul.mubr.msk.f32.gmra.mxu1 %vm1719_vm9, %v4017_v56 }
 0xed2   : > { %5871 = vmatprep.mubr.msk.f32.mxu1 %vm6475_vm0, %v6474_v0 }
 0xf65   : > { %v3399_v57 = vpop.f32.mrf.mxu1 }
 0xf66   : > { %v3413_v59 = vsel %vm1812_vm11, %v3399_v57, -inf }
 0xf67   : > { %3414 = vmax.xlane.f32.xlu1 %v3413_v59  ;;  %v5743_v60 = vpop.f32.mrf.mxu1 }
 0xf69   : > { %v3404_v62 = vpop.f32.mrf.mxu1 }
 0xf6a   : > { %v3416_v3 = vsel %vm1812_vm11, %v3404_v62, -inf }
 0xf6b   : > { %3417 = vmax.xlane.f32.xlu0 %v3416_v3  ;;  %v5746_v8 = vpop.f32.mrf.mxu1 }
 0xf6d   : > { %v3409_v10 = vpop.f32.mrf.mxu1 }
 0xf6e   : > { %v3419_v55 = vsel %vm1819_vm12, %v3409_v10, -inf }
 0xf6f   : > { %3420 = vmax.xlane.f32.xlu0 %v3419_v55  ;;  %v5749_v51 = vpop.f32.mrf.mxu1 }
 0xf71   : > { %v7748_v15 = vpop.f32.mrf.mxu1 }
 0xf72   : > { %v3642_v9 = vsel %vm1812_vm11, %v7748_v15, -inf }
 0xf73   : > { %3643 = vmax.xlane.f32.xlu1 %v3642_v9  ;;  %v5773_v58 = vpop.f32.mrf.mxu1 }
 0xf75   : > { %v7752_v16 = vpop.f32.mrf.mxu1 }
 0xf76   : > { %v3645_v61 = vsel %vm1812_vm11, %v7752_v16, -inf }
 0xf77   : > { %3646 = vmax.xlane.f32.xlu0 %v3645_v61  ;;  %v5776_v17 = vpop.f32.mrf.mxu1 }
 0xf79   : > { %v7756_v63 = vpop.f32.mrf.mxu1 }
 0xf7a   : > { %v3648_v19 = vsel %vm1819_vm12, %v7756_v63, -inf }
 0xf7b   : > { %3649 = vmax.xlane.f32.xlu1 %v3648_v19  ;;  %v5779_v20 = vpop.f32.mrf.mxu1 }
 0xf7d   : > { %v7760_v21 = vpop.f32.mrf.mxu1 }
 0xf7e   : > { %v3880_v22 = vsel %vm1812_vm11, %v7760_v21, -inf }
 0xf7f   : > { %3881 = vmax.xlane.f32.xlu0 %v3880_v22  ;;  %v5803_v23 = vpop.f32.mrf.mxu1 }
 0xf81   : > { %v7764_v24 = vpop.f32.mrf.mxu1 }
 0xf82   : > { %v3883_v26 = vsel %vm1812_vm11, %v7764_v24, -inf }
 0xf83   : > { %3884 = vmax.xlane.f32.xlu1 %v3883_v26  ;;  %v5806_v2 = vpop.f32.mrf.mxu1 }
 0xf85   : > { %v3876_v44 = vpop.f32.mrf.mxu1 }
 0xf86   : > { %v3886_v28 = vsel %vm1819_vm12, %v3876_v44, -inf }
 0xf87   : > { %3887 = vmax.xlane.f32.xlu0 %v3886_v28  ;;  %v5809_v29 = vpop.f32.mrf.mxu1 }
 0xf89   : > { %v4102_v27 = vpop.f32.mrf.mxu1 }
 0xf8a   : > { %v4116_v32 = vsel %vm1812_vm11, %v4102_v27, -inf }
 0xf8b   : > { %4117 = vmax.xlane.f32.xlu1 %v4116_v32  ;;  %v5833_v31 = vpop.f32.mrf.mxu1 }
 0xf8d   : > { %v7770_v6 = vpop.f32.mrf.mxu1 }
 0xf8e   : > { %v4119_v50 = vsel %vm1812_vm11, %v7770_v6, -inf }
 0xf8f   : > { %4120 = vmax.xlane.f32.xlu0 %v4119_v50  ;;  %v5836_v5 = vpop.f32.mrf.mxu1 }
 0xf91   : > { %v7774_v7 = vpop.f32.mrf.mxu1 }
 0xf92   : > { %v4122_v14 = vsel %vm1819_vm12, %v7774_v7, -inf }
 0xf93   : > { %v5839_v30 = vpop.f32.mrf.mxu1 }
 0xf9c   : > { %3677 = vrot.lane.b32.xlu1 %v7659_v54, %s6480_s18 }
 0xfa0   : > { %3917 = vrot.lane.b32.xlu1 %v7650_v13, %s8183_s28 }
 0xfa5   : > { %3679 = vrot.lane.b32.xlu0 %v7654_v36, %s6480_s18 }
 0xfc4   : > { %4123 = vmax.xlane.f32.xlu1 %v4122_v14 }
 0xff0   : > { %v3415_v4 = vpop.xlane.xlu1 %3414 }
 0xff1   : > { %v3422_v11 = vsub.f32 %v3399_v57, %v3415_v4 }
 0xff3   : > { %v3425_v12 = vmul.f32 1.442695, %v3422_v11 }
 0xff4   : > { %v3418_v33 = vpop.xlane.xlu0 %3417 }
 0xff5   : > { %6135 = vpow2.f32 %v3425_v12  ;;  %v3423_v37 = vsub.f32 %v3404_v62, %v3418_v33 }
 0xff7   : > { %v3427_v38 = vmul.f32 1.442695, %v3423_v37 }
 0xff8   : > { %v3421_v39 = vpop.xlane.xlu0 %3420 }
 0xff9   : > { %6137 = vpow2.f32 %v3427_v38  ;;  %v3424_v34 = vsub.f32 %v3409_v10, %v3421_v39 }
 0xffb   : > { %v3429_v35 = vmul.f32 1.442695, %v3424_v34 }
 0xffc   : > { %v3644_v43 = vpop.xlane.xlu1 %3643 }
 0xffd   : > { %6139 = vpow2.f32 %v3429_v35  ;;  %v3651_v49 = vsub.f32 %v7748_v15, %v3644_v43 }
 0xfff   : > { %v3654_v53 = vmul.f32 1.442695, %v3651_v49 }
0x1000   : > { %v3647_v52 = vpop.xlane.xlu0 %3646 }
0x1001   : > { %v3652_v56 = vsub.f32 %v7752_v16, %v3647_v52  ;;  %6141 = vpow2.f32 %v3654_v53 }
0x1002   : > { %v7786_v40 = vpop.eup %6135 }
0x1003   : > { %v3431_v41 = vsel %vm1812_vm11, %v7786_v40, 0.0  ;;  %v3656_v60 = vmul.f32 1.442695, %v3652_v56 }
0x1004   : > { %3432 = vadd.xlane.f32.xlu0 %v3431_v41  ;;  %v3650_v57 = vpop.xlane.xlu1 %3649 }
0x1005   : > { %6143 = vpow2.f32 %v3656_v60  ;;  %v3653_v31 = vsub.f32 %v7756_v63, %v3650_v57 }
0x1006   : > { %v7790_v45 = vpop.eup %6137 }
0x1007   : > { %v3434_v46 = vsel %vm1812_vm11, %v7790_v45, 0.0  ;;  %v3658_v50 = vmul.f32 1.442695, %v3653_v31 }
0x1008   : > { %3435 = vadd.xlane.f32.xlu1 %v3434_v46  ;;  %v3882_v59 = vpop.xlane.xlu0 %3881 }
0x1009   : > { %v3889_v62 = vsub.f32 %v7760_v21, %v3882_v59 }
0x100a   : > { %v7794_v47 = vpop.eup %6139 }
0x100b   : > { %v3437_v48 = vsel %vm1819_vm12, %v7794_v47, 0.0  ;;  %v3892_v10 = vmul.f32 1.442695, %v3889_v62 }
0x100c   : > { %3438 = vadd.xlane.f32.xlu0 %v3437_v48  ;;  %v3885_v3 = vpop.xlane.xlu1 %3884 }
0x100d   : > { %6145 = vpow2.f32 %v3892_v10  ;;  %v3890_v5 = vsub.f32 %v7764_v24, %v3885_v3 }
0x100e   : > { %v7805_v61 = vpop.eup %6141 }
0x100f   : > { %v3660_v16 = vsel %vm1812_vm11, %v7805_v61, 0.0  ;;  %v3894_v11 = vmul.f32 1.442695, %v3890_v5 }
0x1010   : > { %v3888_v8 = vpop.xlane.xlu0 %3887 }
0x1011   : > { %v3891_v55 = vsub.f32 %v3876_v44, %v3888_v8 }
0x1012   : > { %v7809_v17 = vpop.eup %6143 }
0x1013   : > { %v3896_v9 = vmul.f32 1.442695, %v3891_v55  ;;  %v3663_v19 = vsel %vm1812_vm11, %v7809_v17, 0.0 }
0x1014   : > { %v4118_v51 = vpop.xlane.xlu1 %4117 }
0x1015   : > { %v4125_v58 = vsub.f32 %v4102_v27, %v4118_v51  ;;  %6147 = vpow2.f32 %v3896_v9 }
0x1017   : > { %v4128_v15 = vmul.f32 1.442695, %v4125_v58 }
0x1018   : > { %v3678_v21 = vpop.permute.xlu1 %3677  ;;  %v4121_v30 = vpop.xlane.xlu0 %4120 }
0x1019   : > { %3913 = vrot.lane.b32.xlu1 %v7659_v54, %s8183_s28  ;;  %6149 = vpow2.f32 %v4128_v15 }
0x101a   : > { %v7813_v20 = vpop.eup %6145 }
0x101b   : > { %v3898_v22 = vsel %vm1812_vm11, %v7813_v20, 0.0 }
0x101c   : > { %v7823_v44 = vpop.permute.xlu1 %3917  ;;  %v3680_v38 = vpop.permute.xlu0 %3679 }
0x1022   : > { %3915 = vrot.lane.b32.xlu0 %v7654_v36, %s8183_s28  ;;  %v7817_v23 = vpop.eup %6147 }
0x1023   : > { %v3904_v26 = vsel %vm1819_vm12, %v7817_v23, 0.0 }
0x1026   : > { %v7821_v2 = vpop.eup %6149 }
0x1027   : > { %v4134_v28 = vsel %vm1812_vm11, %v7821_v2, 0.0 }
0x103d   : > { %3661 = vadd.xlane.f32.xlu1 %v3660_v16 }
0x1041   : > { %3664 = vadd.xlane.f32.xlu0 %v3663_v19 }
0x1045   : > { %3899 = vadd.xlane.f32.xlu0 %v3898_v22 }
0x1049   : > { %3905 = vadd.xlane.f32.xlu0 %v3904_v26 }
0x104d   : > { %4135 = vadd.xlane.f32.xlu0 %v4134_v28  ;;  %v4124_v29 = vpop.xlane.xlu1 %4123 }
0x104e   : > { %v4127_v27 = vsub.f32 %v7774_v7, %v4124_v29  ;;  %4153 = vrot.lane.b32.xlu1 %v7650_v13, %s8185_s25  ;;  %v4126_v7 = vsub.f32 %v7770_v6, %v4121_v30  ;;  %v5113_v30 = vld [vmem:[%s8139_s7 + $0x78] sm:$0xff] }
0x104f   : > { %5856 = vmatpush3.msra.mxu1 %v5113_v30 }
0x1050   : > { %v4132_v32 = vmul.f32 1.442695, %v4127_v27  ;;  %v4130_v13 = vmul.f32 1.442695, %v4126_v7  ;;  %5857 = vmatprep.subr.mxu1 %v6474_v0 }
0x1052   : > { %6151 = vpow2.f32 %v4132_v32 }
0x1053   : > { %6153 = vpow2.f32 %v3658_v50 }
0x1054   : > { %6155 = vpow2.f32 %v3894_v11 }
0x1055   : > { %6157 = vpow2.f32 %v4130_v13  ;;  %v5112_v13 = vld [vmem:[%s8139_s7 + $0x70] sm:$0xff] }
0x1056   : > { %5858 = vmatpush3.msra.mxu1 %v5112_v13 }
0x1057   : > { %5859 = vmatprep.subr.mxu1 %v6474_v0 }
0x105f   : > { %v7832_v14 = vpop.eup %6151 }
0x1060   : > { %v4140_v4 = vsel %vm1819_vm12, %v7832_v14, 0.0  ;;  %v7837_v12 = vpop.eup %6153 }
0x1061   : > { %4141 = vadd.xlane.f32.xlu0 %v4140_v4  ;;  %v3666_v63 = vsel %vm1819_vm12, %v7837_v12, 0.0  ;;  %v7841_v24 = vpop.eup %6155 }
0x1062   : > { %v3901_v33 = vsel %vm1812_vm11, %v7841_v24, 0.0  ;;  %v7845_v37 = vpop.eup %6157 }
0x1063   : > { %v4137_v6 = vsel %vm1812_vm11, %v7845_v37, 0.0 }
0x1072   : > { %3667 = vadd.xlane.f32.xlu1 %v3666_v63  ;;  %v5110_v63 = vld [vmem:[%s8139_s7 + $0x60] sm:$0xff] }
0x1076   : > { %3902 = vadd.xlane.f32.xlu1 %v3901_v33  ;;  %v5108_v33 = vld [vmem:[%s8139_s7 + $0x50] sm:$0xff] }
0x1077   : > { %4151 = vrot.lane.b32.xlu0 %v7654_v36, %s8185_s25 }
0x107a   : > { %4138 = vadd.xlane.f32.xlu1 %v4137_v6  ;;  %v5107_v6 = vld [vmem:[%s8139_s7 + $0x48] sm:$0xff] }
0x108b   : > { %4149 = vrot.lane.b32.xlu1 %v7659_v54, %s8185_s25 }
0x108d   : > { %v3433_v39 = vpop.xlane.xlu0 %3432 }
0x108e   : > { %6159 = vrcp.f32 %v3433_v39 }
0x1091   : > { %v3436_v34 = vpop.xlane.xlu1 %3435 }
0x1092   : > { %6161 = vrcp.f32 %v3436_v34  ;;  %v5106_v34 = vld [vmem:[%s8139_s7 + $0x40] sm:$0xff] }
0x1095   : > { %v3439_v35 = vpop.xlane.xlu0 %3438 }
0x1096   : > { %6163 = vrcp.f32 %v3439_v35 }
0x109b   : > { %v6160_v41 = vpop.eup %6159 }
0x109c   : > { %v3443_v46 = vmul.f32 %v6160_v41, %v7786_v40 }
0x109e   : > { %5757 = vmatmul.mubr.msk.f32.vlgmr.msra.gmra.mxu0 %vm1812_vm11, %v3443_v46 }
0x109f   : > { %v6162_v36 = vpop.eup %6161  ;;  %5781 = vmatpush3.msk.msra.mxu0 %vm1856_vm10, %v7784_v1  ;;  %5759 = vmatprep.mubr.msk.f32.mxu0 %vm6475_vm0, %v6474_v0  ;;  %v3914_v1 = vpop.permute.xlu1 %3913 }
0x10a0   : > { %5782 = vmatprep.subr.mxu0 %v6474_v0  ;;  %v3444_v54 = vmul.f32 %v6162_v36, %v7790_v45  ;;  %v3916_v45 = vpop.permute.xlu0 %3915 }
0x10a1   : > { %5783 = vmatpush3.msra.mxu0 %v3680_v38 }
0x10a2   : > { %5784 = vmatprep.subr.mxu0 %v6474_v0  ;;  %5760 = vmatmul.mubr.msk.f32.gmra.mxu0 %vm1812_vm11, %v3444_v54 }
0x10a3   : > { %v6164_v48 = vpop.eup %6163  ;;  %5785 = vmatpush3.msra.mxu0 %v3678_v21  ;;  %5762 = vmatprep.mubr.msk.f32.mxu0 %vm6475_vm0, %v6474_v0 }
0x10a4   : > { %v3445_v40 = vmul.f32 %v6164_v48, %v7794_v47  ;;  %5810 = vmatprep.subr.mxu0 %v6474_v0 }
0x10a6   : > { %5763 = vmatmul.mubr.msk.f32.gmra.mxu0 %vm1812_vm11, %v3445_v40 }
0x10a7   : > { %5786 = vmatprep.mubr.msk.f32.mxu0 %vm6475_vm0, %v6474_v0 }
0x10c6   : > { %v3662_v43 = vpop.xlane.xlu1 %3661 }
0x10c7   : > { %6165 = vrcp.f32 %v3662_v43 }
0x10ca   : > { %v3665_v49 = vpop.xlane.xlu0 %3664  ;;  %v4154_v57 = vpop.permute.xlu1 %4153 }
0x10cb   : > { %6167 = vrcp.f32 %v3665_v49 }
0x10ce   : > { %v3900_v59 = vpop.xlane.xlu0 %3899 }
0x10d2   : > { %v3906_v3 = vpop.xlane.xlu0 %3905 }
0x10d4   : > { %v6166_v52 = vpop.eup %6165 }
0x10d5   : > { %v3672_v53 = vmul.f32 %v6166_v52, %v7805_v61 }
0x10d6   : > { %v4136_v8 = vpop.xlane.xlu0 %4135 }
0x10d7   : > { %5787 = vmatmul.mubr.msk.f32.vlgmr.msra.gmra.mxu0 %vm1812_vm11, %v3672_v53 }
0x10d8   : > { %v6168_v56 = vpop.eup %6167  ;;  %5811 = vmatpush3.msk.msra.mxu0 %vm1856_vm10, %v7823_v44  ;;  %5789 = vmatprep.mubr.msk.f32.mxu0 %vm6475_vm0, %v6474_v0 }
0x10d9   : > { %5812 = vmatprep.subr.mxu0 %v6474_v0  ;;  %v3673_v47 = vmul.f32 %v6168_v56, %v7809_v17 }
0x10da   : > { %5813 = vmatpush3.msra.mxu0 %v3916_v45 }
0x10db   : > { %5814 = vmatprep.subr.mxu0 %v6474_v0  ;;  %5790 = vmatmul.mubr.msk.f32.gmra.mxu0 %vm1812_vm11, %v3673_v47 }
0x10dc   : > { %5815 = vmatpush3.msra.mxu0 %v3914_v1  ;;  %5792 = vmatprep.mubr.msk.f32.mxu0 %vm6475_vm0, %v6474_v0 }
0x10dd   : > { %5840 = vmatprep.subr.mxu0 %v6474_v0 }
0x10ea   : > { %v4142_v58 = vpop.xlane.xlu0 %4141 }
0x10ee   : > { %v4152_v16 = vpop.permute.xlu0 %4151 }
0x10fb   : > { %v3668_v60 = vpop.xlane.xlu1 %3667 }
0x10fc   : > { %6169 = vrcp.f32 %v3668_v60 }
0x10fd   : > { %6171 = vrcp.f32 %v3900_v59 }
0x10ff   : > { %v3903_v62 = vpop.xlane.xlu1 %3902 }
0x1100   : > { %6173 = vrcp.f32 %v3903_v62 }
0x1101   : > { %6175 = vrcp.f32 %v3906_v3 }
0x1102   : > { %6177 = vrcp.f32 %v4136_v8 }
0x1103   : > { %v4139_v9 = vpop.xlane.xlu1 %4138 }
0x1104   : > { %6179 = vrcp.f32 %v4139_v9 }
0x1105   : > { %6181 = vrcp.f32 %v4142_v58 }
0x1107   : > { %v4150_v21 = vpop.permute.xlu1 %4149 }
0x1109   : > { %v6170_v10 = vpop.eup %6169 }
0x110a   : > { %v3674_v55 = vmul.f32 %v6170_v10, %v7837_v12  ;;  %v6172_v51 = vpop.eup %6171  ;;  %v5111_v12 = vld [vmem:[%s8139_s7 + $0x68] sm:$0xff] }
0x110b   : > { %v3910_v15 = vmul.f32 %v6172_v51, %v7813_v20  ;;  %5860 = vmatpush3.msra.mxu1 %v5111_v12 }
0x110c   : > { %5793 = vmatmul.mubr.msk.f32.gmra.mxu0 %vm1812_vm11, %v3674_v55  ;;  %5861 = vmatprep.subr.mxu1 %v6474_v0 }
0x110d   : > { %5816 = vmatprep.mubr.msk.f32.mxu0 %vm6475_vm0, %v6474_v0  ;;  %v6174_v61 = vpop.eup %6173  ;;  %5862 = vmatpush3.msra.mxu1 %v5110_v63 }
0x110e   : > { %v3911_v17 = vmul.f32 %v6174_v61, %v7841_v24  ;;  %v6176_v19 = vpop.eup %6175  ;;  %v5109_v24 = vld [vmem:[%s8139_s7 + $0x58] sm:$0xff]  ;;  %5863 = vmatprep.subr.mxu1 %v6474_v0 }
0x110f   : > { %v3912_v20 = vmul.f32 %v6176_v19, %v7817_v23  ;;  %v6178_v22 = vpop.eup %6177  ;;  %5864 = vmatpush3.msra.mxu1 %v5109_v24 }
0x1110   : > { %5817 = vmatmul.mubr.msk.f32.vlgmr.msra.gmra.mxu0 %vm1812_vm11, %v3910_v15  ;;  %v4146_v26 = vmul.f32 %v6178_v22, %v7821_v2  ;;  %5865 = vmatprep.subr.mxu1 %v6474_v0 }
0x1111   : > { %5841 = vmatpush3.msk.msra.mxu0 %vm1856_vm10, %v4154_v57  ;;  %5819 = vmatprep.mubr.msk.f32.mxu0 %vm6475_vm0, %v6474_v0  ;;  %v6180_v44 = vpop.eup %6179 }
0x1112   : > { %5842 = vmatprep.subr.mxu0 %v6474_v0  ;;  %v4147_v28 = vmul.f32 %v6180_v44, %v7845_v37  ;;  %v6182_v29 = vpop.eup %6181  ;;  %5866 = vmatpush3.msra.mxu1 %v5108_v33 }
0x1113   : > { %5843 = vmatpush3.msra.mxu0 %v4152_v16  ;;  %v4148_v23 = vmul.f32 %v6182_v29, %v7832_v14  ;;  %5867 = vmatprep.subr.mxu1 %v6474_v0 }
0x1114   : > { %5844 = vmatprep.subr.mxu0 %v6474_v0  ;;  %5820 = vmatmul.mubr.msk.f32.gmra.mxu0 %vm1812_vm11, %v3911_v17  ;;  %v5115_v17 = vld [vmem:[%s8140_s8 + $0x1] ss:$0 sm:$0xff] }
0x1115   : > { %5845 = vmatpush3.msra.mxu0 %v4150_v21  ;;  %5822 = vmatprep.mubr.msk.f32.mxu0 %vm6475_vm0, %v6474_v0 }
0x1116   : > { %5880 = vmatprep.subr.mxu0 %v6474_v0  ;;  %5868 = vmatpush3.msra.mxu1 %v5107_v6 }
0x1117   : > { %5869 = vmatprep.subr.mxu1 %v6474_v0 }
0x1118   : > { %5823 = vmatmul.mubr.msk.f32.gmra.mxu0 %vm1812_vm11, %v3912_v20  ;;  %5870 = vmatpush3.msra.mxu1 %v5106_v34 }
0x1119   : > { %5846 = vmatprep.mubr.msk.f32.mxu0 %vm6475_vm0, %v6474_v0  ;;  %5905 = vmatprep.subr.mxu1 %v6474_v0 }
0x111c   : > { %5847 = vmatmul.mubr.msk.f32.vlgmr.msra.gmra.mxu0 %vm1812_vm11, %v4146_v26 }
0x111d   : > { %5849 = vmatprep.mubr.msk.f32.mxu0 %vm6475_vm0, %v6474_v0 }
0x1120   : > { %5850 = vmatmul.mubr.msk.f32.gmra.mxu0 %vm1812_vm11, %v4147_v28 }
0x1121   : > { %5852 = vmatprep.mubr.msk.f32.mxu0 %vm6475_vm0, %v6474_v0 }
0x1124   : > { %5853 = vmatmul.mubr.msk.f32.gmra.mxu0 %vm1812_vm11, %v4148_v23 }
0x1125   : > { %5896 = vmatprep.mubr.msk.f32.mxu0 %vm6475_vm0, %v6474_v0 }
0x115e   : > { %v3524_v2 = vpop.f32.mrf.mxu0 }
0x1160   : > { %v5758_v27 = vpop.f32.mrf.mxu0 }
0x1162   : > { %v7915_v32 = vpop.f32.mrf.mxu0 }
0x1164   : > { %v5761_v31 = vpop.f32.mrf.mxu0 }
0x1166   : > { %v7917_v50 = vpop.f32.mrf.mxu0 }
0x1168   : > { %v5764_v5 = vpop.f32.mrf.mxu0 }
0x1197   : > { %v3762_v14 = vpop.f32.mrf.mxu0 }
0x1198   : > { %4251 = vrot.lane.b32.xlu0 %v3762_v14, %s8186_s30 }
0x1199   : > { %v5788_v4 = vpop.f32.mrf.mxu0 }
0x119b   : > { %v3767_v11 = vpop.f32.mrf.mxu0 }
0x119c   : > { %4253 = vrot.lane.b32.xlu1 %v3767_v11, %s8186_s30 }
0x119d   : > { %v5791_v7 = vpop.f32.mrf.mxu0 }
0x11cc   : > { %v3772_v37 = vpop.f32.mrf.mxu0 }
0x11ce   : > { %v5794_v38 = vpop.f32.mrf.mxu0 }
0x11d0   : > { %v3998_v39 = vpop.f32.mrf.mxu0 }
0x11d1   : > { %4263 = vrot.lane.b32.xlu1 %v3998_v39, %s8184_s0 }
0x11d2   : > { %v5818_v35 = vpop.f32.mrf.mxu0 }
0x11d4   : > { %v4003_v41 = vpop.f32.mrf.mxu0 }
0x11d5   : > { %4265 = vrot.lane.b32.xlu0 %v4003_v41, %s8184_s0 }
0x11d6   : > { %v5821_v46 = vpop.f32.mrf.mxu0 }
0x11d7   : > { %v5128_v46 = vld [vmem:[%s8143_s11 + $0x78] sm:$0xff] }
0x11d8   : > { %v4008_v36 = vpop.f32.mrf.mxu0  ;;  %5881 = vmatpush3.msra.mxu0 %v5128_v46 }
0x11d9   : > { %5882 = vmatprep.subr.mxu0 %v6474_v0 }
0x11da   : > { %v5824_v54 = vpop.f32.mrf.mxu0 }
0x11db   : > { %v5126_v54 = vld [vmem:[%s8143_s11 + $0x68] sm:$0xff] }
0x11dc   : > { %v4234_v48 = vpop.f32.mrf.mxu0 }
0x11dd   : > { %4275 = vrot.lane.b32.xlu0 %v4234_v48, %s6479_s26  ;;  %v5125_v48 = vld [vmem:[%s8143_s11 + $0x60] sm:$0xff] }
0x11de   : > { %v5848_v40 = vpop.f32.mrf.mxu0 }
0x11df   : > { %v5124_v40 = vld [vmem:[%s8143_s11 + $0x58] sm:$0xff] }
0x11e0   : > { %v4239_v1 = vpop.f32.mrf.mxu0 }
0x11e1   : > { %4255 = vrot.lane.b32.xlu0 %v3772_v37, %s8186_s30  ;;  %4277 = vrot.lane.b32.xlu1 %v4239_v1, %s6479_s26  ;;  %v5123_v1 = vld [vmem:[%s8143_s11 + $0x50] sm:$0xff] }
0x11e2   : > { %v5851_v45 = vpop.f32.mrf.mxu0 }
0x11e3   : > { %v5122_v45 = vld [vmem:[%s8143_s11 + $0x48] sm:$0xff] }
0x11e4   : > { %v4244_v43 = vpop.f32.mrf.mxu0 }
0x11e5   : > { %4267 = vrot.lane.b32.xlu1 %v4008_v36, %s8184_s0  ;;  %4279 = vrot.lane.b32.xlu0 %v4244_v43, %s6479_s26  ;;  %v5127_v36 = vld [vmem:[%s8143_s11 + $0x70] sm:$0xff]  ;;  %v5121_v43 = vld [vmem:[%s8143_s11 + $0x40] sm:$0xff]  ;;  %s673_s0 = scalar_lea.vmem %s8149_s17, %s8187_s19 }
0x11e6   : > { %v5854_v49 = vpop.f32.mrf.mxu0  ;;  %5883 = vmatpush3.msra.mxu0 %v5127_v36 }
0x11e7   : > { %5884 = vmatprep.subr.mxu0 %v6474_v0 }
0x11e8   : > { %5885 = vmatpush3.msra.mxu0 %v5126_v54 }
0x11e9   : > { %5886 = vmatprep.subr.mxu0 %v6474_v0 }
0x11ea   : > { %5887 = vmatpush3.msra.mxu0 %v5125_v48 }
0x11eb   : > { %5888 = vmatprep.subr.mxu0 %v6474_v0 }
0x11ec   : > { %5889 = vmatpush3.msra.mxu0 %v5124_v40 }
0x11ed   : > { %5890 = vmatprep.subr.mxu0 %v6474_v0 }
0x11ee   : > { %5891 = vmatpush3.msra.mxu0 %v5123_v1 }
0x11ef   : > { %5892 = vmatprep.subr.mxu0 %v6474_v0 }
0x11f0   : > { %5893 = vmatpush3.msra.mxu0 %v5122_v45 }
0x11f1   : > { %5894 = vmatprep.subr.mxu0 %v6474_v0 }
0x11f2   : > { %5895 = vmatpush3.msra.mxu0 %v5121_v43 }
0x120a   : > { %v4252_v52 = vpop.permute.xlu0 %4251 }
0x120b   : > { %v4284_v57 = vsel %vm1719_vm9, %v3524_v2, %v4252_v52 }
0x120e   : > { %v4254_v53 = vpop.permute.xlu1 %4253 }
0x120f   : > { %v4285_v3 = vsel %vm1719_vm9, %v7915_v32, %v4254_v53 }
0x1243   : > { %v4264_v47 = vpop.permute.xlu1 %4263 }
0x1244   : > { %v4287_v59 = vsel %vm718_vm2, %v4284_v57, %v4264_v47 }
0x1247   : > { %v4266_v56 = vpop.permute.xlu0 %4265 }
0x1248   : > { %v4288_v8 = vsel %vm718_vm2, %v4285_v3, %v4266_v56 }
0x124f   : > { %v4276_v60 = vpop.permute.xlu0 %4275 }
0x1250   : > { %v4290_v62 = vsel %vm2692_vm13, %v4287_v59, %v4276_v60 }
0x1251   : > { %5872 = vmatmul.mubr.msk.f32.vlgmr.msra.gmra.mxu1 %vm1528_vm7, %v4290_v62 }
0x1252   : > { %5874 = vmatprep.mubr.msk.f32.mxu1 %vm6475_vm0, %v6474_v0 }
0x1253   : > { %v4256_v10 = vpop.permute.xlu0 %4255  ;;  %v4278_v55 = vpop.permute.xlu1 %4277 }
0x1254   : > { %v4291_v51 = vsel %vm2692_vm13, %v4288_v8, %v4278_v55  ;;  %v4286_v9 = vsel %vm1719_vm9, %v7917_v50, %v4256_v10  ;;  %v5119_v10 = vld [vmem:[#allocation7 + $0x1] ss:$0 sm:$0xff] }
0x1255   : > { %5875 = vmatmul.mubr.msk.f32.gmra.mxu1 %vm1528_vm7, %v4291_v51 }
0x1256   : > { %5877 = vmatprep.mubr.msk.f32.mxu1 %vm6475_vm0, %v6474_v0 }
0x1257   : > { %v4280_v58 = vpop.permute.xlu0 %4279  ;;  %v4268_v15 = vpop.permute.xlu1 %4267 }
0x1258   : > { %v4289_v61 = vsel %vm718_vm2, %v4286_v9, %v4268_v15  ;;  %v5120_v9 = vld [vmem:[#allocation9 + $0x1] ss:$0 sm:$0xff] }
0x1259   : > { %v4292_v16 = vsel %vm2692_vm13, %v4289_v61, %v4280_v58 }
0x125a   : > { %5878 = vmatmul.mubr.msk.f32.gmra.mxu1 %vm1528_vm7, %v4292_v16 }
0x125b   : > { %5937 = vmatprep.mubr.msk.f32.mxu1 %vm6475_vm0, %v6474_v0 }
0x1311   : > { %v4385_v19 = vpop.f32.mrf.mxu1 }
0x1312   : > { %v4386_v21 = vadd.f32 %v5115_v17, %v4385_v19 }
0x1313   : > { %v5873_v20 = vpop.f32.mrf.mxu1 }
0x1314   : > { %v4402_v22 = vrot.slane %v4386_v21, 6 }
0x1315   : > { %v4390_v26 = vpop.f32.mrf.mxu1 }
0x1316   : > { %v4410_v44 = vadd.f32 %v4402_v22, %v7624_v18  ;;  %v4391_v28 = vadd.f32 %v5115_v17, %v4390_v26 }
0x1317   : > { %v5876_v29 = vpop.f32.mrf.mxu1 }
0x1318   : > { %v4403_v23 = vrot.slane %v4391_v28, 6  ;;  %v4417_v2 = vsel %vm1524_vm5, %v4410_v44, 0.0 }
0x1319   : > { %4418 = vadd.xlane.f32.xlu1 %v4417_v2  ;;  %v5147_v2 = vld [vmem:[%s8145_s13 + $0xf0] sm:$0xff] }
0x131a   : > { %v4395_v27 = vpop.f32.mrf.mxu1  ;;  %v4404_v32 = vsel %vm1510_vm6, %v4402_v22, %v4403_v23 }
0x131b   : > { %v4396_v31 = vadd.f32 %v5115_v17, %v4395_v27  ;;  %v4411_v50 = vadd.f32 %v4404_v32, %v7626_v42  ;;  %v5146_v27 = vld [vmem:[%s8145_s13 + $0xe8] sm:$0xff]  ;;  %v5145_v32 = vld [vmem:[%s8145_s13 + $0xe0] sm:$0xff] }
0x131c   : > { %v5879_v5 = vpop.f32.mrf.mxu1 }
0x131d   : > { %v4405_v30 = vrot.slane %v4396_v31, 6  ;;  %v4420_v14 = vsel %vm1528_vm7, %v4411_v50, 0.0  ;;  %v5144_v31 = vld [vmem:[%s8145_s13 + $0xd8] sm:$0xff]  ;;  %v5142_v5 = vld [vmem:[%s8145_s13 + $0xc8] sm:$0xff] }
0x131e   : > { %4421 = vadd.xlane.f32.xlu0 %v4420_v14  ;;  %v5140_v14 = vld [vmem:[%s8145_s13 + $0xb8] sm:$0xff] }
0x131f   : > { %v4406_v4 = vsel %vm1510_vm6, %v4403_v23, %v4405_v30  ;;  %v5148_v23 = vld [vmem:[%s8145_s13 + $0xf8] sm:$0xff]  ;;  %v5141_v30 = vld [vmem:[%s8145_s13 + $0xc0] sm:$0xff] }
0x1320   : > { %v4412_v18 = vadd.f32 %v4406_v4, %v7631_v25  ;;  %5906 = vmatpush3.msra.mxu1 %v5148_v23  ;;  %v5139_v4 = vld [vmem:[%s8145_s13 + $0xb0] sm:$0xff] }
0x1321   : > { %5907 = vmatprep.subr.mxu1 %v6474_v0 }
0x1322   : > { %v4423_v11 = vsel %vm1532_vm8, %v4412_v18, 0.0  ;;  %5908 = vmatpush3.msra.mxu1 %v5147_v2 }
0x1323   : > { %4424 = vadd.xlane.f32.xlu0 %v4423_v11  ;;  %5909 = vmatprep.subr.mxu1 %v6474_v0  ;;  %v5137_v11 = vld [vmem:[%s8145_s13 + $0xa0] sm:$0xff] }
0x1324   : > { %5910 = vmatpush3.msra.mxu1 %v5146_v27 }
0x1325   : > { %5911 = vmatprep.subr.mxu1 %v6474_v0 }
0x1326   : > { %5912 = vmatpush3.msra.mxu1 %v5145_v32 }
0x1327   : > { %5913 = vmatprep.subr.mxu1 %v6474_v0 }
0x1328   : > { %5914 = vmatpush3.msra.mxu1 %v5144_v31 }
0x1329   : > { %5915 = vmatprep.subr.mxu1 %v6474_v0 }
0x13a2   : > { %v4419_v7 = vpop.xlane.xlu1 %4418 }
0x13a3   : > { %v4426_v13 = vmul.f32 0.015625, %v4419_v7  ;;  %v5136_v7 = vld [vmem:[%s8145_s13 + $0x98] sm:$0xff] }
0x13a5   : > { %v4429_v12 = vsub.f32 %v4410_v44, %v4426_v13  ;;  %v5135_v13 = vld [vmem:[%s8145_s13 + $0x90] sm:$0xff] }
0x13a7   : > { %v4422_v63 = vpop.xlane.xlu0 %4421  ;;  %v4432_v24 = vmul.f32 %v4429_v12, %v4429_v12 }
0x13a8   : > { %v4427_v33 = vmul.f32 0.015625, %v4422_v63  ;;  %v5133_v63 = vld [vmem:[%s8145_s13 + $0x80] sm:$0xff] }
0x13a9   : > { %v4435_v42 = vsel %vm1524_vm5, %v4432_v24, 0.0  ;;  %v5129_v24 = vld [vmem:[#allocation10 + $0x1] ss:$0 sm:$0xff] }
0x13aa   : > { %v4430_v37 = vsub.f32 %v4411_v50, %v4427_v33  ;;  %4436 = vadd.xlane.f32.xlu1 %v4435_v42  ;;  %v5143_v50 = vld [vmem:[%s8145_s13 + $0xd0] sm:$0xff] }
0x13ab   : > { %5916 = vmatpush3.msra.mxu1 %v5143_v50 }
0x13ac   : > { %v4425_v6 = vpop.xlane.xlu0 %4424  ;;  %v4433_v38 = vmul.f32 %v4430_v37, %v4430_v37  ;;  %5917 = vmatprep.subr.mxu1 %v6474_v0 }
0x13ad   : > { %v4428_v39 = vmul.f32 0.015625, %v4425_v6  ;;  %5918 = vmatpush3.msra.mxu1 %v5142_v5 }
0x13ae   : > { %v4438_v34 = vsel %vm1528_vm7, %v4433_v38, 0.0  ;;  %5919 = vmatprep.subr.mxu1 %v6474_v0 }
0x13af   : > { %v4431_v35 = vsub.f32 %v4412_v18, %v4428_v39  ;;  %4439 = vadd.xlane.f32.xlu0 %v4438_v34  ;;  %5920 = vmatpush3.msra.mxu1 %v5141_v30  ;;  %v5138_v18 = vld [vmem:[%s8145_s13 + $0xa8] sm:$0xff] }
0x13b0   : > { %5921 = vmatprep.subr.mxu1 %v6474_v0 }
0x13b1   : > { %v4434_v25 = vmul.f32 %v4431_v35, %v4431_v35  ;;  %5922 = vmatpush3.msra.mxu1 %v5140_v14 }
0x13b2   : > { %5923 = vmatprep.subr.mxu1 %v6474_v0 }
0x13b3   : > { %v4441_v41 = vsel %vm1532_vm8, %v4434_v25, 0.0  ;;  %5924 = vmatpush3.msra.mxu1 %v5139_v4 }
0x13b4   : > { %4442 = vadd.xlane.f32.xlu1 %v4441_v41  ;;  %5925 = vmatprep.subr.mxu1 %v6474_v0 }
0x13b5   : > { %5926 = vmatpush3.msra.mxu1 %v5138_v18 }
0x13b6   : > { %5927 = vmatprep.subr.mxu1 %v6474_v0 }
0x13b7   : > { %5928 = vmatpush3.msra.mxu1 %v5137_v11 }
0x13b8   : > { %5929 = vmatprep.subr.mxu1 %v6474_v0 }
0x13b9   : > { %5930 = vmatpush3.msra.mxu1 %v5136_v7 }
0x13ba   : > { %5931 = vmatprep.subr.mxu1 %v6474_v0 }
0x13bb   : > { %5932 = vmatpush3.msra.mxu1 %v5135_v13 }
0x13bc   : > { %5933 = vmatprep.subr.mxu1 %v6474_v0 }
0x1433   : > { %v4437_v49 = vpop.xlane.xlu1 %4436 }
0x1434   : > { %v4444_v52 = vmul.f32 0.015625, %v4437_v49 }
0x1436   : > { %v4447_v53 = vadd.f32 1e-05, %v4444_v52 }
0x1438   : > { %6183 = vrsqrt.f32 %v4447_v53  ;;  %v4440_v56 = vpop.xlane.xlu0 %4439 }
0x1439   : > { %v4445_v47 = vmul.f32 0.015625, %v4440_v56 }
0x143b   : > { %v4448_v57 = vadd.f32 1e-05, %v4445_v47 }
0x143d   : > { %6185 = vrsqrt.f32 %v4448_v57  ;;  %v4443_v59 = vpop.xlane.xlu1 %4442 }
0x143e   : > { %v4446_v60 = vmul.f32 0.015625, %v4443_v59 }
0x1440   : > { %v4449_v62 = vadd.f32 1e-05, %v4446_v60 }
0x1442   : > { %6187 = vrsqrt.f32 %v4449_v62 }
0x1445   : > { %v6184_v3 = vpop.eup %6183 }
0x1446   : > { %v4453_v8 = vmul.f32 %v6184_v3, %v4429_v12  ;;  %v5134_v12 = vld [vmem:[%s8145_s13 + $0x88] sm:$0xff] }
0x1447   : > { %5934 = vmatpush3.msra.mxu1 %v5134_v12 }
0x1448   : > { %v4462_v55 = vmul.f32 %v5119_v10, %v4453_v8  ;;  %5935 = vmatprep.subr.mxu1 %v6474_v0 }
0x1449   : > { %5936 = vmatpush3.msra.mxu1 %v5133_v63 }
0x144a   : > { %v6186_v51 = vpop.eup %6185  ;;  %v8025_v61 = vadd.f32 %v5120_v9, %v4462_v55 }
0x144b   : > { %v4454_v58 = vmul.f32 %v6186_v51, %v4430_v37 }
0x144c   : > { %v4494_v21 = vrot.slane %v8025_v61, 2 }
0x144d   : > { %v4463_v15 = vmul.f32 %v5119_v10, %v4454_v58 }
0x144f   : > { %v6188_v16 = vpop.eup %6187  ;;  %v8027_v17 = vadd.f32 %v5120_v9, %v4463_v15 }
0x1450   : > { %v4455_v19 = vmul.f32 %v6188_v16, %v4431_v35 }
0x1451   : > { %v4495_v20 = vrot.slane %v8027_v17, 2 }
0x1452   : > { %v4464_v22 = vmul.f32 %v5119_v10, %v4455_v19  ;;  %v5149_v19 = vld [vmem:[#allocation12 + $0x1] ss:$0 sm:$0xff] }
0x1453   : > { %v4496_v26 = vsel %vm891_vm3, %v4494_v21, %v4495_v20 }
0x1454   : > { %5897 = vmatmul.mubr.msk.f32.vlgmr.msra.gmra.mxu0 %vm1528_vm7, %v4496_v26  ;;  %v8033_v44 = vadd.f32 %v5120_v9, %v4464_v22 }
0x1455   : > { %5899 = vmatprep.mubr.msk.f32.mxu0 %vm6475_vm0, %v6474_v0 }
0x1456   : > { %v4497_v28 = vrot.slane %v8033_v44, 2 }
0x1458   : > { %v4498_v29 = vsel %vm891_vm3, %v4495_v20, %v4497_v28 }
0x1459   : > { %5900 = vmatmul.mubr.msk.f32.gmra.mxu0 %vm1528_vm7, %v4498_v29 }
0x145a   : > { %5902 = vmatprep.mubr.msk.f32.mxu0 %vm6475_vm0, %v6474_v0 }
0x145d   : > { %5903 = vmatmul.mubr.msk.f32.gmra.mxu0 %vm1528_vm7, %v4497_v28 }
0x1514   : > { %v4571_v33 = vpop.f32.mrf.mxu0 }
0x1515   : > { %v4572_v42 = vadd.f32 %v5129_v24, %v4571_v33 }
0x1516   : > { %v5898_v37 = vpop.f32.mrf.mxu0 }
0x1517   : > { %v4588_v6 = vmul.f32 0.044715, %v4572_v42  ;;  %v4585_v60 = vmul.f32 0.5, %v4572_v42 }
0x1519   : > { %v4591_v38 = vmul.f32 %v4588_v6, %v4572_v42  ;;  %v4576_v39 = vpop.f32.mrf.mxu0 }
0x151a   : > { %v4577_v34 = vadd.f32 %v5129_v24, %v4576_v39 }
0x151b   : > { %v4594_v35 = vmul.f32 %v4591_v38, %v4572_v42  ;;  %v5901_v25 = vpop.f32.mrf.mxu0 }
0x151c   : > { %v4589_v41 = vmul.f32 0.044715, %v4577_v34  ;;  %v4586_v10 = vmul.f32 0.5, %v4577_v34 }
0x151d   : > { %v4597_v46 = vadd.f32 %v4594_v35, %v4572_v42  ;;  %v4581_v36 = vpop.f32.mrf.mxu0 }
0x151e   : > { %v4592_v54 = vmul.f32 %v4589_v41, %v4577_v34  ;;  %v4582_v48 = vadd.f32 %v5129_v24, %v4581_v36 }
0x151f   : > { %v4600_v40 = vmul.f32 0.7978846, %v4597_v46  ;;  %v5904_v1 = vpop.f32.mrf.mxu0 }
0x1520   : > { %v4590_v45 = vmul.f32 0.044715, %v4582_v48  ;;  %v4595_v43 = vmul.f32 %v4592_v54, %v4577_v34  ;;  %v4587_v58 = vmul.f32 0.5, %v4582_v48 }
0x1521   : > { %6189 = vtanh.f32 %v4600_v40 }
0x1522   : > { %v4593_v49 = vmul.f32 %v4590_v45, %v4582_v48  ;;  %v4598_v52 = vadd.f32 %v4595_v43, %v4577_v34 }
0x1524   : > { %v4601_v53 = vmul.f32 0.7978846, %v4598_v52  ;;  %v4596_v56 = vmul.f32 %v4593_v49, %v4582_v48  ;;  %v5150_v49 = vld [vmem:[#allocation13 + $0x1] ss:$0 sm:$0xff] }
0x1526   : > { %6191 = vtanh.f32 %v4601_v53  ;;  %v4599_v47 = vadd.f32 %v4596_v56, %v4582_v48  ;;  %v5151_v53 = vld [vmem:[#allocation15 + $0x1] ss:$0 sm:$0xff] }
0x1528   : > { %v4602_v57 = vmul.f32 0.7978846, %v4599_v47 }
0x152a   : > { %6193 = vtanh.f32 %v4602_v57 }
0x152e   : > { %v6190_v59 = vpop.eup %6189 }
0x152f   : > { %v4606_v62 = vadd.f32 1.0, %v6190_v59 }
0x1531   : > { %v4609_v3 = vmul.f32 %v4606_v62, %v4585_v60 }
0x1533   : > { %v6192_v8 = vpop.eup %6191  ;;  %5938 = vmatmul.mubr.f32.vlgmr.msra.gmra.mxu1 %v4609_v3 }
0x1534   : > { %5940 = vmatprep.mubr.msk.f32.mxu1 %vm6475_vm0, %v6474_v0  ;;  %v4607_v55 = vadd.f32 1.0, %v6192_v8 }
0x1536   : > { %v4610_v51 = vmul.f32 %v4607_v55, %v4586_v10 }
0x1537   : > { %v6194_v9 = vpop.eup %6193 }
0x1538   : > { %5941 = vmatmul.mubr.f32.gmra.mxu1 %v4610_v51  ;;  %v4608_v15 = vadd.f32 1.0, %v6194_v9 }
0x1539   : > { %5943 = vmatprep.mubr.msk.f32.mxu1 %vm6475_vm0, %v6474_v0 }
0x153a   : > { %v4611_v16 = vmul.f32 %v4608_v15, %v4587_v58 }
0x153c   : > { %5944 = vmatmul.mubr.f32.gmra.mxu1 %v4611_v16 }
0x15f3   : > { %v4703_v21 = vpop.f32.mrf.mxu1 }
0x15f4   : > { %v4704_v20 = vadd.f32 %v5149_v19, %v4703_v21 }
0x15f5   : > { %v5939_v22 = vpop.f32.mrf.mxu1 }
0x15f6   : > { %v4720_v26 = vrot.slane %v4704_v20, 6 }
0x15f8   : > { %v4728_v28 = vadd.f32 %v4720_v26, %v8025_v61  ;;  %v4708_v29 = vpop.f32.mrf.mxu1 }
0x15f9   : > { %v4709_v23 = vadd.f32 %v5149_v19, %v4708_v29 }
0x15fa   : > { %v5942_v2 = vpop.f32.mrf.mxu1  ;;  %v4735_v27 = vsel %vm1524_vm5, %v4728_v28, 0.0 }
0x15fb   : > { %v4721_v32 = vrot.slane %v4709_v23, 6  ;;  %4736 = vadd.xlane.f32.xlu0 %v4735_v27 }
0x15fc   : > { %v4713_v31 = vpop.f32.mrf.mxu1 }
0x15fd   : > { %v4714_v50 = vadd.f32 %v5149_v19, %v4713_v31  ;;  %v4722_v0 = vsel %vm1510_vm6, %v4720_v26, %v4721_v32 }
0x15fe   : > { %v5945_v5 = vpop.f32.mrf.mxu1  ;;  %v4729_v30 = vadd.f32 %v4722_v0, %v8027_v17 }
0x15ff   : > { %v4723_v14 = vrot.slane %v4714_v50, 6 }
0x1600   : > { %v4738_v4 = vsel %vm1528_vm7, %v4729_v30, 0.0 }
0x1601   : > { %4739 = vadd.xlane.f32.xlu1 %v4738_v4  ;;  %v4724_v61 = vsel %vm1510_vm6, %v4721_v32, %v4723_v14 }
0x1602   : > { %v4730_v18 = vadd.f32 %v4724_v61, %v8033_v44 }
0x1604   : > { %v4741_v11 = vsel %vm1532_vm8, %v4730_v18, 0.0 }
0x1605   : > { %4742 = vadd.xlane.f32.xlu0 %v4741_v11 }
0x1684   : > { %v4737_v7 = vpop.xlane.xlu0 %4736 }
0x1685   : > { %v4744_v13 = vmul.f32 0.015625, %v4737_v7 }
0x1687   : > { %v4747_v12 = vsub.f32 %v4728_v28, %v4744_v13 }
0x1689   : > { %v4750_v63 = vmul.f32 %v4747_v12, %v4747_v12 }
0x168a   : > { %v4740_v24 = vpop.xlane.xlu1 %4739 }
0x168b   : > { %v4745_v33 = vmul.f32 0.015625, %v4740_v24  ;;  %v4753_v42 = vsel %vm1524_vm5, %v4750_v63, 0.0 }
0x168c   : > { %4754 = vadd.xlane.f32.xlu1 %v4753_v42 }
0x168d   : > { %v4748_v17 = vsub.f32 %v4729_v30, %v4745_v33 }
0x168e   : > { %v4743_v37 = vpop.xlane.xlu0 %4742 }
0x168f   : > { %v4746_v6 = vmul.f32 0.015625, %v4743_v37  ;;  %v4751_v38 = vmul.f32 %v4748_v17, %v4748_v17 }
0x1691   : > { %v4749_v39 = vsub.f32 %v4730_v18, %v4746_v6  ;;  %v4756_v34 = vsel %vm1528_vm7, %v4751_v38, 0.0 }
0x1692   : > { %4757 = vadd.xlane.f32.xlu0 %v4756_v34 }
0x1693   : > { %v4752_v44 = vmul.f32 %v4749_v39, %v4749_v39 }
0x1695   : > { %v4759_v35 = vsel %vm1532_vm8, %v4752_v44, 0.0 }
0x1696   : > { %4760 = vadd.xlane.f32.xlu1 %v4759_v35 }
0x1715   : > { %v4755_v25 = vpop.xlane.xlu1 %4754 }
0x1716   : > { %v4762_v41 = vmul.f32 0.015625, %v4755_v25 }
0x1718   : > { %v4765_v46 = vadd.f32 1e-05, %v4762_v41 }
0x171a   : > { %6195 = vrsqrt.f32 %v4765_v46 }
0x171b   : > { %v4758_v36 = vpop.xlane.xlu0 %4757 }
0x171c   : > { %v4763_v54 = vmul.f32 0.015625, %v4758_v36 }
0x171e   : > { %v4766_v48 = vadd.f32 1e-05, %v4763_v54 }
0x171f   : > { %v4761_v40 = vpop.xlane.xlu1 %4760 }
0x1720   : > { %6197 = vrsqrt.f32 %v4766_v48  ;;  %v4764_v1 = vmul.f32 0.015625, %v4761_v40 }
0x1722   : > { %v4767_v45 = vadd.f32 1e-05, %v4764_v1 }
0x1724   : > { %6199 = vrsqrt.f32 %v4767_v45 }
0x1727   : > { %v6196_v43 = vpop.eup %6195 }
0x1728   : > { %v4771_v52 = vmul.f32 %v6196_v43, %v4747_v12 }
0x172a   : > { %v4780_v56 = vmul.f32 %v5150_v49, %v4771_v52 }
0x172c   : > { %v4789_v47 = vadd.f32 %v5151_v53, %v4780_v56 }
0x172d   : > { %v6198_v57 = vpop.eup %6197 }
0x172e   : > { %4792 = vst.msk [vmem:[%s673_s0 - $0x2] sm:$0xfc] %vm1524_vm5, %v4789_v47  ;;  %v4772_v59 = vmul.f32 %v6198_v57, %v4748_v17 }
0x1730   : > { %v4781_v60 = vmul.f32 %v5150_v49, %v4772_v59 }
0x1731   : > { %v6200_v62 = vpop.eup %6199 }
0x1732   : > { %v4790_v3 = vadd.f32 %v5151_v53, %v4781_v60  ;;  %v4773_v8 = vmul.f32 %v6200_v62, %v4749_v39 }
0x1734   : > { %4793 = vst.msk [vmem:[%s673_s0 + $0x6] sm:$0xff] %vm1528_vm7, %v4790_v3  ;;  %v4782_v10 = vmul.f32 %v5150_v49, %v4773_v8 }
0x1736   : > { %v4791_v55 = vadd.f32 %v5151_v53, %v4782_v10 }
0x1738   : > { %4794 = vst.msk [vmem:[%s673_s0 + $0xe] sm:$0x1f] %vm1532_vm8, %v4791_v55 }
0x1739 PF: > { %s32_s24 = sadd.s32 1, %s6461_s24  }
0x173a   : > { %p29_p0 = scmp.ge.s32.totalorder %s32_s24, 4  }
0x173c   :  { %31 = sbr.rel (!%p29_p0) target bundleno = 9 (0x9), region = 167 }
0x1741   :  { %4816 = vsyncpa [#allocation3], 1 }
0x1742   :  { %4818 = vsyncpa [#allocation3 + $0x1], 1 }
0x1743   :  { %4819 = vsyncpa [#allocation5], 1 }
0x1744   :  { %4820 = vsyncpa [#allocation8], 1 }
0x1745   :  { %4821 = vsyncpa [#allocation11], 1 }
0x1746   :  { %4822 = vsyncpa [#allocation14], 1 }

</bundles_post_ra>
